<compile_context>
chip_gen: v6e
topology: v6e:2x2x1
jax: 0.10.0
libtpu: 0.0.40
codegen_flags: <defaults>
</compile_context>

<pallas_src>
import functools

import jax
import jax.numpy as jnp
import numpy as np
from jax.experimental import pallas as pl
from jax.experimental.pallas import tpu as pltpu


def _round_up(n, m):
    return ((n + m - 1) // m) * m


# ----------------------------- Pallas kernel ------------------------------ #

def stu_kernel(ti_ref, si_ref, tp_ref, x_ref, m_ref, o_ref, acc_ref, *, K, tile):
    """Grid = (batch b, triangular step s). Step s covers (ti, si) with si <= ti.

    ti_ref/si_ref : SMEM (n_steps,) int32  output-tile / source-tile of step s
    tp_ref        : (1, 2*K*tile, tile) bf16  lag-indexed Toeplitz (plus|minus)
    x_ref         : (1, tile, Dp)       bf16  input source tile for batch b
    m_ref         : (2*K, Dp, DOp)      bf16  stacked projection (plus|minus)
    o_ref         : (1, tile, DOp)      f32   output tile
    acc_ref       : (2*K*tile, Dp)      f32   convolution accumulator (VMEM)
    """
    step = pl.program_id(1)
    ti = ti_ref[step]
    si = si_ref[step]

    @pl.when(si == 0)
    def _init():
        acc_ref[...] = jnp.zeros_like(acc_ref)

    # Causal convolution for both branches in ONE matmul: rows are
    # (branch, k, t_in_tile); the minus sign is baked into the filters.
    acc_ref[...] += jnp.dot(tp_ref[0], x_ref[0],
                            preferred_element_type=jnp.float32)

    # Reduction over source tiles finishes at si == ti: project and store.
    @pl.when(si == ti)
    def _project():
        out = jnp.zeros(o_ref.shape[1:], jnp.float32)       # (tile, DOp)
        for k in range(K):                                   # small static unroll
            up = acc_ref[k * tile:(k + 1) * tile, :].astype(jnp.bfloat16)
            um = acc_ref[(K + k) * tile:(K + k + 1) * tile, :].astype(jnp.bfloat16)
            out = out + jnp.dot(up, m_ref[k], preferred_element_type=jnp.float32)
            out = out + jnp.dot(um, m_ref[K + k], preferred_element_type=jnp.float32)
        o_ref[0] = out


# ------------------------------ JAX wrapper -------------------------------- #

def _build_operands(x, phi, m_plus, m_minus, L_pad, D_pad, DO_pad, tile):
    """Parameter-layout glue (plain JAX): padding, lag Toeplitz, step tables."""
    B, L, D = x.shape
    K = phi.shape[1]
    DO = m_plus.shape[-1]
    nT = L_pad // tile

    # x padded to lane/sublane-friendly sizes, bf16 for the MXU.
    xp = jnp.pad(x.astype(jnp.float32),
                 ((0, 0), (0, L_pad - L), (0, D_pad - D))).astype(jnp.bfloat16)

    # phi padded along L; minus branch folded in: phi_minus[lag] = (-1)^lag phi[lag].
    phi_f = jnp.pad(phi.astype(jnp.float32), ((0, L_pad - L), (0, 0)))
    sgn = jnp.where(jnp.arange(L_pad) % 2 == 0, 1.0, -1.0).astype(jnp.float32)
    phi2 = jnp.concatenate([phi_f, phi_f * sgn[:, None]], axis=1)      # (L_pad, 2K)

    # Lag-indexed Toeplitz blocks (only nT distinct blocks, O(K*L*tile)):
    #   tp[g, (p*K+k)*tile + tt, ss] = phi2[g*tile + tt - ss, p*K+k]  (lag >= 0)
    tt = jnp.arange(tile)
    lag = (jnp.arange(nT)[:, None, None] * tile
           + tt[None, :, None] - tt[None, None, :])                   # (nT, tile, tile)
    blk = jnp.where((lag >= 0)[..., None],
                    phi2[jnp.clip(lag, 0, L_pad - 1)], 0.0)            # (nT, tile, tile, 2K)
    tp = (blk.transpose(0, 3, 1, 2)
             .reshape(nT, 2 * K * tile, tile)
             .astype(jnp.bfloat16))

    # Raw projection matrices (no batch block-diagonal blowup), padded, bf16.
    m_stack = jnp.concatenate([m_plus.astype(jnp.float32),
                               m_minus.astype(jnp.float32)], axis=0)   # (2K, D, DO)
    m_pad = jnp.pad(m_stack,
                    ((0, 0), (0, D_pad - D), (0, DO_pad - DO))).astype(jnp.bfloat16)

    # Triangular step enumeration (si ascending within each ti).
    ti_steps = np.concatenate([np.full(t + 1, t, np.int32) for t in range(nT)])
    si_steps = np.concatenate([np.arange(t + 1, dtype=np.int32) for t in range(nT)])
    return xp, tp, m_pad, jnp.asarray(ti_steps), jnp.asarray(si_steps)


@functools.partial(jax.jit, static_argnames=("max_tile",))
def stu_forward(x, phi, m_phi_plus, m_phi_minus, *, max_tile=256):
    """STU forward (use_approx=False, use_hankel_L=False).

    x           : (B, L, D)   float32
    phi         : (L, K)      float32 spectral filters
    m_phi_plus  : (K, D, DO)  float32
    m_phi_minus : (K, D, DO)  float32
    returns     : (B, L, DO)  float32
    """
    B, L, D = x.shape
    K = phi.shape[1]
    DO = m_phi_plus.shape[-1]

    # Lane-dense padded sizes (contractions and lane widths >= 128).
    L_pad = _round_up(max(L, 128), 128)
    D_pad = _round_up(max(D, 128), 128)
    DO_pad = _round_up(max(DO, 128), 128)

    # Largest tile whose working set fits a conservative VMEM budget
    # (the f32 accumulator is the dominant, generation-specific term).
    tile = None
    budget = None
    for cand in (512, 384, 256, 128):
        if cand > L_pad or L_pad % cand or cand > max_tile:
            continue
        b = (2 * K * cand * D_pad * 4              # f32 accumulator scratch
             + 2 * (2 * K * cand * cand * 2)       # Toeplitz block (double-buffered)
             + 2 * (cand * D_pad * 2)              # x tile
             + 2 * (2 * K * D_pad * DO_pad * 2)    # projection matrices
             + 2 * (cand * DO_pad * 4))            # output tile
        if b <= 48 * 1024 * 1024:                  # safe on v7x (64 MiB) too
            tile, budget = cand, b
            break
    if tile is None:
        raise ValueError("no tile size fits the VMEM budget; reduce K or D")

    nT = L_pad // tile
    n_steps = nT * (nT + 1) // 2                   # triangular grid: no dead steps

    xp, tp, m_pad, ti_steps, si_steps = _build_operands(
        x, phi, m_phi_plus, m_phi_minus, L_pad, D_pad, DO_pad, tile)

    kernel = functools.partial(stu_kernel, K=K, tile=tile)

    out = pl.pallas_call(
        kernel,
        out_shape=jax.ShapeDtypeStruct((B, L_pad, DO_pad), jnp.float32),
        grid_spec=pltpu.PrefetchScalarGridSpec(
            num_scalar_prefetch=2,
            grid=(B, n_steps),
            in_specs=[
                # Lag-indexed Toeplitz block for this (ti, si) pair.
                pl.BlockSpec((1, 2 * K * tile, tile),
                             lambda b, s, ti_m, si_m: (ti_m[s] - si_m[s], 0, 0)),
                # Source sequence tile of this batch element.
                pl.BlockSpec((1, tile, D_pad),
                             lambda b, s, ti_m, si_m: (b, si_m[s], 0)),
                # Grid-invariant projection weights.
                pl.BlockSpec((2 * K, D_pad, DO_pad),
                             lambda b, s, ti_m, si_m: (0, 0, 0)),
            ],
            out_specs=pl.BlockSpec((1, tile, DO_pad),
                                   lambda b, s, ti_m, si_m: (b, ti_m[s], 0)),
            scratch_shapes=[pltpu.VMEM((2 * K * tile, D_pad), jnp.float32)],
        ),
        compiler_params=pltpu.CompilerParams(
            dimension_semantics=("parallel", "arbitrary"),
            vmem_limit_bytes=int(min(2 * budget + (8 << 20), 112 << 20)),
        ),
    )(ti_steps, si_steps, tp, xp, m_pad)

    # Output is already (B, L_pad, DO_pad) -- just strip the padding.
    return out[:, :L, :DO]


# ---------------------- Pure-JAX reference (FFT path) ---------------------- #

def stu_reference(x, phi, m_phi_plus, m_phi_minus, n):
    """Mirrors the torch FFT `convolve` + tensordot semantics (f32)."""
    B, L, D = x.shape
    sgn = jnp.where(jnp.arange(L) % 2 == 0, 1.0, -1.0)

    v = jnp.fft.rfft(phi.astype(jnp.float32), n=n, axis=0)                  # (nf, K)
    u = jnp.fft.rfft(x.astype(jnp.float32), n=n, axis=1)                    # (B, nf, D)
    u_alt = jnp.fft.rfft(x.astype(jnp.float32) * sgn[None, :, None], n=n, axis=1)

    prod_p = u[:, :, None, :] * v[None, :, :, None]                         # (B, nf, K, D)
    prod_m = u_alt[:, :, None, :] * v[None, :, :, None]
    u_plus = jnp.fft.irfft(prod_p, n=n, axis=1)[:, :L]                      # (B, L, K, D)
    u_minus = jnp.fft.irfft(prod_m, n=n, axis=1)[:, :L] * sgn[None, :, None, None]

    sp = jnp.tensordot(u_plus, m_phi_plus.astype(jnp.float32), axes=([2, 3], [0, 1]))
    sm = jnp.tensordot(u_minus, m_phi_minus.astype(jnp.float32), axes=([2, 3], [0, 1]))
    return sp + sm


# --------------------------------- main ------------------------------------ #

if __name__ == "__main__":
    # Small synthetic config; L=512 so the triangular multi-tile path runs
    # (tile=256 -> nT=2 -> 3 steps per batch element).
    B, L, D, K = 2, 512, 32, 8
    DO = D
    n_fft = 1 << (2 * L - 1).bit_length()

    key = jax.random.PRNGKey(0)
    kx, kphi, kmp, kmm = jax.random.split(key, 4)

    x = jax.random.normal(kx, (B, L, D), dtype=jnp.float32)
    phi = jax.random.normal(kphi, (L, K), dtype=jnp.float32) / np.sqrt(L)
    m_phi_plus = jax.random.normal(kmp, (K, D, DO), dtype=jnp.float32) / np.sqrt(K * D)
    m_phi_minus = jax.random.normal(kmm, (K, D, DO), dtype=jnp.float32) / np.sqrt(K * D)

    out = jax.block_until_ready(stu_forward(x, phi, m_phi_plus, m_phi_minus))
    ref = jax.block_until_ready(stu_reference(x, phi, m_phi_plus, m_phi_minus, n_fft))

    # bf16 MXU inputs (f32 accumulation) vs. f32 FFT reference -> loose tolerance.
    np.testing.assert_allclose(np.asarray(out), np.asarray(ref), rtol=5e-2, atol=5e-2)
    print("KERNEL_OK")
</pallas_src>

<mosaic_0001>
module attributes {stable_mosaic.version = 11 : i64} {
  func.func @stu_kernel(%arg0: i32, %arg1: i32, %arg2: memref<3xi32, #tpu.memory_space<smem>>, %arg3: memref<3xi32, #tpu.memory_space<smem>>, %arg4: memref<1x4096x256xbf16, #tpu.memory_space<vmem>>, %arg5: memref<1x256x128xbf16, #tpu.memory_space<vmem>>, %arg6: memref<16x128x128xbf16, #tpu.memory_space<vmem>>, %arg7: memref<1x256x128xf32, #tpu.memory_space<vmem>>, %arg8: memref<4096x128xf32, #tpu.memory_space<vmem>>) attributes {dimension_semantics = [#tpu.dimension_semantics<parallel>, #tpu.dimension_semantics<arbitrary>], iteration_bounds = array<i64: 2, 3>, scalar_prefetch = 2 : i64, scratch_operands = 1 : i64, tpu.core_type = #tpu.core_type<tc>, window_params = [{transform_indices = @transform_0, window_bounds = array<i64: 1, 4096, 256>}, {transform_indices = @transform_1, window_bounds = array<i64: 1, 256, 128>}, {pipeline_mode = #tpu.pipeline_mode<synchronous>, transform_indices = @transform_2, window_bounds = array<i64: 16, 128, 128>}, {transform_indices = @transform_3, window_bounds = array<i64: 1, 256, 128>}]} {
    %0 = arith.index_cast %arg1 : i32 to index
    %1 = memref.load %arg2[%0] : memref<3xi32, #tpu.memory_space<smem>>
    %2 = arith.index_cast %arg1 : i32 to index
    %3 = memref.load %arg3[%2] : memref<3xi32, #tpu.memory_space<smem>>
    %c0_i32 = arith.constant 0 : i32
    %4 = arith.cmpi eq, %3, %c0_i32 : i32
    %5 = arith.extui %4 : i1 to i32
    %c0_i32_0 = arith.constant 0 : i32
    %6 = arith.cmpi ne, %5, %c0_i32_0 : i32
    scf.if %6 {
      %cst_11 = arith.constant 0.000000e+00 : f32
      %18 = vector.broadcast %cst_11 : f32 to vector<4096x128xf32>
      %c0_12 = arith.constant 0 : index
      %c0_13 = arith.constant 0 : index
      %19 = vector.load %arg8[%c0_12, %c0_13] : memref<4096x128xf32, #tpu.memory_space<vmem>>, vector<4096x128xf32>
      tpu.vector_store %arg8[%c0_12, %c0_13], %18 {strides = array<i32>} : memref<4096x128xf32, #tpu.memory_space<vmem>>, vector<4096x128xf32>,
    } else {
    }
    %c0 = arith.constant 0 : index
    %c0_1 = arith.constant 0 : index
    %7 = vector.load %arg8[%c0, %c0_1] : memref<4096x128xf32, #tpu.memory_space<vmem>>, vector<4096x128xf32>
    %c0_2 = arith.constant 0 : index
    %c0_3 = arith.constant 0 : index
    %c0_4 = arith.constant 0 : index
    %8 = vector.load %arg4[%c0_2, %c0_3, %c0_4] : memref<1x4096x256xbf16, #tpu.memory_space<vmem>>, vector<1x4096x256xbf16>
    %9 = vector.shape_cast %8 : vector<1x4096x256xbf16> to vector<4096x256xbf16>
    %c0_5 = arith.constant 0 : index
    %c0_6 = arith.constant 0 : index
    %c0_7 = arith.constant 0 : index
    %10 = vector.load %arg5[%c0_5, %c0_6, %c0_7] : memref<1x256x128xbf16, #tpu.memory_space<vmem>>, vector<1x256x128xbf16>
    %11 = vector.shape_cast %10 : vector<1x256x128xbf16> to vector<256x128xbf16>
    %cst = arith.constant dense<0.000000e+00> : vector<4096x128xf32>
    %12 = tpu.matmul %9, %11, %cst {dimension_numbers = #tpu.dot_dimension_numbers<[1], [0], [0], [1], [0, 0, 1, 1], [], []>} : vector<4096x256xbf16>, vector<256x128xbf16>, vector<4096x128xf32> -> vector<4096x128xf32>
    %13 = arith.addf %7, %12 : vector<4096x128xf32>
    %c0_8 = arith.constant 0 : index
    %c0_9 = arith.constant 0 : index
    %14 = vector.load %arg8[%c0_8, %c0_9] : memref<4096x128xf32, #tpu.memory_space<vmem>>, vector<4096x128xf32>
    tpu.vector_store %arg8[%c0_8, %c0_9], %13 {strides = array<i32>} : memref<4096x128xf32, #tpu.memory_space<vmem>>, vector<4096x128xf32>,
    %15 = arith.cmpi eq, %3, %1 : i32
    %16 = arith.extui %15 : i1 to i32
    %c0_i32_10 = arith.constant 0 : i32
    %17 = arith.cmpi ne, %16, %c0_i32_10 : i32
    scf.if %17 {
      %cst_11 = arith.constant 0.000000e+00 : f32
      %18 = vector.broadcast %cst_11 : f32 to vector<256x128xf32>
      %c0_12 = arith.constant 0 : index
      %c0_13 = arith.constant 0 : index
      %19 = vector.load %arg8[%c0_12, %c0_13] : memref<4096x128xf32, #tpu.memory_space<vmem>>, vector<256x128xf32>
      %20 = arith.truncf %19 : vector<256x128xf32> to vector<256x128xbf16>
      %c2048 = arith.constant 2048 : index
      %c0_14 = arith.constant 0 : index
      %21 = vector.load %arg8[%c2048, %c0_14] : memref<4096x128xf32, #tpu.memory_space<vmem>>, vector<256x128xf32>
      %22 = arith.truncf %21 : vector<256x128xf32> to vector<256x128xbf16>
      %c0_15 = arith.constant 0 : index
      %c0_16 = arith.constant 0 : index
      %c0_17 = arith.constant 0 : index
      %23 = vector.load %arg6[%c0_15, %c0_16, %c0_17] : memref<16x128x128xbf16, #tpu.memory_space<vmem>>, vector<1x128x128xbf16>
      %24 = vector.shape_cast %23 : vector<1x128x128xbf16> to vector<128x128xbf16>
      %cst_18 = arith.constant dense<0.000000e+00> : vector<256x128xf32>
      %25 = tpu.matmul %20, %24, %cst_18 {dimension_numbers = #tpu.dot_dimension_numbers<[1], [0], [0], [1], [0, 0, 1, 1], [], []>} : vector<256x128xbf16>, vector<128x128xbf16>, vector<256x128xf32> -> vector<256x128xf32>
      %26 = arith.addf %18, %25 : vector<256x128xf32>
      %c8 = arith.constant 8 : index
      %c0_19 = arith.constant 0 : index
      %c0_20 = arith.constant 0 : index
      %27 = vector.load %arg6[%c8, %c0_19, %c0_20] : memref<16x128x128xbf16, #tpu.memory_space<vmem>>, vector<1x128x128xbf16>
      %28 = vector.shape_cast %27 : vector<1x128x128xbf16> to vector<128x128xbf16>
      %cst_21 = arith.constant dense<0.000000e+00> : vector<256x128xf32>
      %29 = tpu.matmul %22, %28, %cst_21 {dimension_numbers = #tpu.dot_dimension_numbers<[1], [0], [0], [1], [0, 0, 1, 1], [], []>} : vector<256x128xbf16>, vector<128x128xbf16>, vector<256x128xf32> -> vector<256x128xf32>
      %30 = arith.addf %26, %29 : vector<256x128xf32>
      %c256 = arith.constant 256 : index
      %c0_22 = arith.constant 0 : index
      %31 = vector.load %arg8[%c256, %c0_22] : memref<4096x128xf32, #tpu.memory_space<vmem>>, vector<256x128xf32>
      %32 = arith.truncf %31 : vector<256x128xf32> to vector<256x128xbf16>
      %c2304 = arith.constant 2304 : index
      %c0_23 = arith.constant 0 : index
      %33 = vector.load %arg8[%c2304, %c0_23] : memref<4096x128xf32, #tpu.memory_space<vmem>>, vector<256x128xf32>
      %34 = arith.truncf %33 : vector<256x128xf32> to vector<256x128xbf16>
      %c1 = arith.constant 1 : index
      %c0_24 = arith.constant 0 : index
      %c0_25 = arith.constant 0 : index
      %35 = vector.load %arg6[%c1, %c0_24, %c0_25] : memref<16x128x128xbf16, #tpu.memory_space<vmem>>, vector<1x128x128xbf16>
      %36 = vector.shape_cast %35 : vector<1x128x128xbf16> to vector<128x128xbf16>
      %cst_26 = arith.constant dense<0.000000e+00> : vector<256x128xf32>
      %37 = tpu.matmul %32, %36, %cst_26 {dimension_numbers = #tpu.dot_dimension_numbers<[1], [0], [0], [1], [0, 0, 1, 1], [], []>} : vector<256x128xbf16>, vector<128x128xbf16>, vector<256x128xf32> -> vector<256x128xf32>
      %38 = arith.addf %30, %37 : vector<256x128xf32>
      %c9 = arith.constant 9 : index
      %c0_27 = arith.constant 0 : index
      %c0_28 = arith.constant 0 : index
      %39 = vector.load %arg6[%c9, %c0_27, %c0_28] : memref<16x128x128xbf16, #tpu.memory_space<vmem>>, vector<1x128x128xbf16>
      %40 = vector.shape_cast %39 : vector<1x128x128xbf16> to vector<128x128xbf16>
      %cst_29 = arith.constant dense<0.000000e+00> : vector<256x128xf32>
      %41 = tpu.matmul %34, %40, %cst_29 {dimension_numbers = #tpu.dot_dimension_numbers<[1], [0], [0], [1], [0, 0, 1, 1], [], []>} : vector<256x128xbf16>, vector<128x128xbf16>, vector<256x128xf32> -> vector<256x128xf32>
      %42 = arith.addf %38, %41 : vector<256x128xf32>
      %c512 = arith.constant 512 : index
      %c0_30 = arith.constant 0 : index
      %43 = vector.load %arg8[%c512, %c0_30] : memref<4096x128xf32, #tpu.memory_space<vmem>>, vector<256x128xf32>
      %44 = arith.truncf %43 : vector<256x128xf32> to vector<256x128xbf16>
      %c2560 = arith.constant 2560 : index
      %c0_31 = arith.constant 0 : index
      %45 = vector.load %arg8[%c2560, %c0_31] : memref<4096x128xf32, #tpu.memory_space<vmem>>, vector<256x128xf32>
      %46 = arith.truncf %45 : vector<256x128xf32> to vector<256x128xbf16>
      %c2 = arith.constant 2 : index
      %c0_32 = arith.constant 0 : index
      %c0_33 = arith.constant 0 : index
      %47 = vector.load %arg6[%c2, %c0_32, %c0_33] : memref<16x128x128xbf16, #tpu.memory_space<vmem>>, vector<1x128x128xbf16>
      %48 = vector.shape_cast %47 : vector<1x128x128xbf16> to vector<128x128xbf16>
      %cst_34 = arith.constant dense<0.000000e+00> : vector<256x128xf32>
      %49 = tpu.matmul %44, %48, %cst_34 {dimension_numbers = #tpu.dot_dimension_numbers<[1], [0], [0], [1], [0, 0, 1, 1], [], []>} : vector<256x128xbf16>, vector<128x128xbf16>, vector<256x128xf32> -> vector<256x128xf32>
      %50 = arith.addf %42, %49 : vector<256x128xf32>
      %c10 = arith.constant 10 : index
      %c0_35 = arith.constant 0 : index
      %c0_36 = arith.constant 0 : index
      %51 = vector.load %arg6[%c10, %c0_35, %c0_36] : memref<16x128x128xbf16, #tpu.memory_space<vmem>>, vector<1x128x128xbf16>
      %52 = vector.shape_cast %51 : vector<1x128x128xbf16> to vector<128x128xbf16>
      %cst_37 = arith.constant dense<0.000000e+00> : vector<256x128xf32>
      %53 = tpu.matmul %46, %52, %cst_37 {dimension_numbers = #tpu.dot_dimension_numbers<[1], [0], [0], [1], [0, 0, 1, 1], [], []>} : vector<256x128xbf16>, vector<128x128xbf16>, vector<256x128xf32> -> vector<256x128xf32>
      %54 = arith.addf %50, %53 : vector<256x128xf32>
      %c768 = arith.constant 768 : index
      %c0_38 = arith.constant 0 : index
      %55 = vector.load %arg8[%c768, %c0_38] : memref<4096x128xf32, #tpu.memory_space<vmem>>, vector<256x128xf32>
      %56 = arith.truncf %55 : vector<256x128xf32> to vector<256x128xbf16>
      %c2816 = arith.constant 2816 : index
      %c0_39 = arith.constant 0 : index
      %57 = vector.load %arg8[%c2816, %c0_39] : memref<4096x128xf32, #tpu.memory_space<vmem>>, vector<256x128xf32>
      %58 = arith.truncf %57 : vector<256x128xf32> to vector<256x128xbf16>
      %c3 = arith.constant 3 : index
      %c0_40 = arith.constant 0 : index
      %c0_41 = arith.constant 0 : index
      %59 = vector.load %arg6[%c3, %c0_40, %c0_41] : memref<16x128x128xbf16, #tpu.memory_space<vmem>>, vector<1x128x128xbf16>
      %60 = vector.shape_cast %59 : vector<1x128x128xbf16> to vector<128x128xbf16>
      %cst_42 = arith.constant dense<0.000000e+00> : vector<256x128xf32>
      %61 = tpu.matmul %56, %60, %cst_42 {dimension_numbers = #tpu.dot_dimension_numbers<[1], [0], [0], [1], [0, 0, 1, 1], [], []>} : vector<256x128xbf16>, vector<128x128xbf16>, vector<256x128xf32> -> vector<256x128xf32>
      %62 = arith.addf %54, %61 : vector<256x128xf32>
      %c11 = arith.constant 11 : index
      %c0_43 = arith.constant 0 : index
      %c0_44 = arith.constant 0 : index
      %63 = vector.load %arg6[%c11, %c0_43, %c0_44] : memref<16x128x128xbf16, #tpu.memory_space<vmem>>, vector<1x128x128xbf16>
      %64 = vector.shape_cast %63 : vector<1x128x128xbf16> to vector<128x128xbf16>
      %cst_45 = arith.constant dense<0.000000e+00> : vector<256x128xf32>
      %65 = tpu.matmul %58, %64, %cst_45 {dimension_numbers = #tpu.dot_dimension_numbers<[1], [0], [0], [1], [0, 0, 1, 1], [], []>} : vector<256x128xbf16>, vector<128x128xbf16>, vector<256x128xf32> -> vector<256x128xf32>
      %66 = arith.addf %62, %65 : vector<256x128xf32>
      %c1024 = arith.constant 1024 : index
      %c0_46 = arith.constant 0 : index
      %67 = vector.load %arg8[%c1024, %c0_46] : memref<4096x128xf32, #tpu.memory_space<vmem>>, vector<256x128xf32>
      %68 = arith.truncf %67 : vector<256x128xf32> to vector<256x128xbf16>
      %c3072 = arith.constant 3072 : index
      %c0_47 = arith.constant 0 : index
      %69 = vector.load %arg8[%c3072, %c0_47] : memref<4096x128xf32, #tpu.memory_space<vmem>>, vector<256x128xf32>
      %70 = arith.truncf %69 : vector<256x128xf32> to vector<256x128xbf16>
      %c4 = arith.constant 4 : index
      %c0_48 = arith.constant 0 : index
      %c0_49 = arith.constant 0 : index
      %71 = vector.load %arg6[%c4, %c0_48, %c0_49] : memref<16x128x128xbf16, #tpu.memory_space<vmem>>, vector<1x128x128xbf16>
      %72 = vector.shape_cast %71 : vector<1x128x128xbf16> to vector<128x128xbf16>
      %cst_50 = arith.constant dense<0.000000e+00> : vector<256x128xf32>
      %73 = tpu.matmul %68, %72, %cst_50 {dimension_numbers = #tpu.dot_dimension_numbers<[1], [0], [0], [1], [0, 0, 1, 1], [], []>} : vector<256x128xbf16>, vector<128x128xbf16>, vector<256x128xf32> -> vector<256x128xf32>
      %74 = arith.addf %66, %73 : vector<256x128xf32>
      %c12 = arith.constant 12 : index
      %c0_51 = arith.constant 0 : index
      %c0_52 = arith.constant 0 : index
      %75 = vector.load %arg6[%c12, %c0_51, %c0_52] : memref<16x128x128xbf16, #tpu.memory_space<vmem>>, vector<1x128x128xbf16>
      %76 = vector.shape_cast %75 : vector<1x128x128xbf16> to vector<128x128xbf16>
      %cst_53 = arith.constant dense<0.000000e+00> : vector<256x128xf32>
      %77 = tpu.matmul %70, %76, %cst_53 {dimension_numbers = #tpu.dot_dimension_numbers<[1], [0], [0], [1], [0, 0, 1, 1], [], []>} : vector<256x128xbf16>, vector<128x128xbf16>, vector<256x128xf32> -> vector<256x128xf32>
      %78 = arith.addf %74, %77 : vector<256x128xf32>
      %c1280 = arith.constant 1280 : index
      %c0_54 = arith.constant 0 : index
      %79 = vector.load %arg8[%c1280, %c0_54] : memref<4096x128xf32, #tpu.memory_space<vmem>>, vector<256x128xf32>
      %80 = arith.truncf %79 : vector<256x128xf32> to vector<256x128xbf16>
      %c3328 = arith.constant 3328 : index
      %c0_55 = arith.constant 0 : index
      %81 = vector.load %arg8[%c3328, %c0_55] : memref<4096x128xf32, #tpu.memory_space<vmem>>, vector<256x128xf32>
      %82 = arith.truncf %81 : vector<256x128xf32> to vector<256x128xbf16>
      %c5 = arith.constant 5 : index
      %c0_56 = arith.constant 0 : index
      %c0_57 = arith.constant 0 : index
      %83 = vector.load %arg6[%c5, %c0_56, %c0_57] : memref<16x128x128xbf16, #tpu.memory_space<vmem>>, vector<1x128x128xbf16>
      %84 = vector.shape_cast %83 : vector<1x128x128xbf16> to vector<128x128xbf16>
      %cst_58 = arith.constant dense<0.000000e+00> : vector<256x128xf32>
      %85 = tpu.matmul %80, %84, %cst_58 {dimension_numbers = #tpu.dot_dimension_numbers<[1], [0], [0], [1], [0, 0, 1, 1], [], []>} : vector<256x128xbf16>, vector<128x128xbf16>, vector<256x128xf32> -> vector<256x128xf32>
      %86 = arith.addf %78, %85 : vector<256x128xf32>
      %c13 = arith.constant 13 : index
      %c0_59 = arith.constant 0 : index
      %c0_60 = arith.constant 0 : index
      %87 = vector.load %arg6[%c13, %c0_59, %c0_60] : memref<16x128x128xbf16, #tpu.memory_space<vmem>>, vector<1x128x128xbf16>
      %88 = vector.shape_cast %87 : vector<1x128x128xbf16> to vector<128x128xbf16>
      %cst_61 = arith.constant dense<0.000000e+00> : vector<256x128xf32>
      %89 = tpu.matmul %82, %88, %cst_61 {dimension_numbers = #tpu.dot_dimension_numbers<[1], [0], [0], [1], [0, 0, 1, 1], [], []>} : vector<256x128xbf16>, vector<128x128xbf16>, vector<256x128xf32> -> vector<256x128xf32>
      %90 = arith.addf %86, %89 : vector<256x128xf32>
      %c1536 = arith.constant 1536 : index
      %c0_62 = arith.constant 0 : index
      %91 = vector.load %arg8[%c1536, %c0_62] : memref<4096x128xf32, #tpu.memory_space<vmem>>, vector<256x128xf32>
      %92 = arith.truncf %91 : vector<256x128xf32> to vector<256x128xbf16>
      %c3584 = arith.constant 3584 : index
      %c0_63 = arith.constant 0 : index
      %93 = vector.load %arg8[%c3584, %c0_63] : memref<4096x128xf32, #tpu.memory_space<vmem>>, vector<256x128xf32>
      %94 = arith.truncf %93 : vector<256x128xf32> to vector<256x128xbf16>
      %c6 = arith.constant 6 : index
      %c0_64 = arith.constant 0 : index
      %c0_65 = arith.constant 0 : index
      %95 = vector.load %arg6[%c6, %c0_64, %c0_65] : memref<16x128x128xbf16, #tpu.memory_space<vmem>>, vector<1x128x128xbf16>
      %96 = vector.shape_cast %95 : vector<1x128x128xbf16> to vector<128x128xbf16>
      %cst_66 = arith.constant dense<0.000000e+00> : vector<256x128xf32>
      %97 = tpu.matmul %92, %96, %cst_66 {dimension_numbers = #tpu.dot_dimension_numbers<[1], [0], [0], [1], [0, 0, 1, 1], [], []>} : vector<256x128xbf16>, vector<128x128xbf16>, vector<256x128xf32> -> vector<256x128xf32>
      %98 = arith.addf %90, %97 : vector<256x128xf32>
      %c14 = arith.constant 14 : index
      %c0_67 = arith.constant 0 : index
      %c0_68 = arith.constant 0 : index
      %99 = vector.load %arg6[%c14, %c0_67, %c0_68] : memref<16x128x128xbf16, #tpu.memory_space<vmem>>, vector<1x128x128xbf16>
      %100 = vector.shape_cast %99 : vector<1x128x128xbf16> to vector<128x128xbf16>
      %cst_69 = arith.constant dense<0.000000e+00> : vector<256x128xf32>
      %101 = tpu.matmul %94, %100, %cst_69 {dimension_numbers = #tpu.dot_dimension_numbers<[1], [0], [0], [1], [0, 0, 1, 1], [], []>} : vector<256x128xbf16>, vector<128x128xbf16>, vector<256x128xf32> -> vector<256x128xf32>
      %102 = arith.addf %98, %101 : vector<256x128xf32>
      %c1792 = arith.constant 1792 : index
      %c0_70 = arith.constant 0 : index
      %103 = vector.load %arg8[%c1792, %c0_70] : memref<4096x128xf32, #tpu.memory_space<vmem>>, vector<256x128xf32>
      %104 = arith.truncf %103 : vector<256x128xf32> to vector<256x128xbf16>
      %c3840 = arith.constant 3840 : index
      %c0_71 = arith.constant 0 : index
      %105 = vector.load %arg8[%c3840, %c0_71] : memref<4096x128xf32, #tpu.memory_space<vmem>>, vector<256x128xf32>
      %106 = arith.truncf %105 : vector<256x128xf32> to vector<256x128xbf16>
      %c7 = arith.constant 7 : index
      %c0_72 = arith.constant 0 : index
      %c0_73 = arith.constant 0 : index
      %107 = vector.load %arg6[%c7, %c0_72, %c0_73] : memref<16x128x128xbf16, #tpu.memory_space<vmem>>, vector<1x128x128xbf16>
      %108 = vector.shape_cast %107 : vector<1x128x128xbf16> to vector<128x128xbf16>
      %cst_74 = arith.constant dense<0.000000e+00> : vector<256x128xf32>
      %109 = tpu.matmul %104, %108, %cst_74 {dimension_numbers = #tpu.dot_dimension_numbers<[1], [0], [0], [1], [0, 0, 1, 1], [], []>} : vector<256x128xbf16>, vector<128x128xbf16>, vector<256x128xf32> -> vector<256x128xf32>
      %110 = arith.addf %102, %109 : vector<256x128xf32>
      %c15 = arith.constant 15 : index
      %c0_75 = arith.constant 0 : index
      %c0_76 = arith.constant 0 : index
      %111 = vector.load %arg6[%c15, %c0_75, %c0_76] : memref<16x128x128xbf16, #tpu.memory_space<vmem>>, vector<1x128x128xbf16>
      %112 = vector.shape_cast %111 : vector<1x128x128xbf16> to vector<128x128xbf16>
      %cst_77 = arith.constant dense<0.000000e+00> : vector<256x128xf32>
      %113 = tpu.matmul %106, %112, %cst_77 {dimension_numbers = #tpu.dot_dimension_numbers<[1], [0], [0], [1], [0, 0, 1, 1], [], []>} : vector<256x128xbf16>, vector<128x128xbf16>, vector<256x128xf32> -> vector<256x128xf32>
      %114 = arith.addf %110, %113 : vector<256x128xf32>
      %c0_78 = arith.constant 0 : index
      %c0_79 = arith.constant 0 : index
      %c0_80 = arith.constant 0 : index
      %115 = vector.load %arg7[%c0_78, %c0_79, %c0_80] : memref<1x256x128xf32, #tpu.memory_space<vmem>>, vector<1x256x128xf32>
      %116 = vector.shape_cast %115 : vector<1x256x128xf32> to vector<256x128xf32>
      %117 = vector.shape_cast %114 : vector<256x128xf32> to vector<1x256x128xf32>
      tpu.vector_store %arg7[%c0_78, %c0_79, %c0_80], %117 {strides = array<i32>} : memref<1x256x128xf32, #tpu.memory_space<vmem>>, vector<1x256x128xf32>,
    } else {
    }
    return
  }
  func.func @transform_0(%arg0: i32, %arg1: i32, %arg2: memref<3xi32, #tpu.memory_space<smem>>, %arg3: memref<3xi32, #tpu.memory_space<smem>>) -> (i32, i32, i32) {
    %0 = arith.index_cast %arg1 : i32 to index
    %1 = memref.load %arg2[%0] : memref<3xi32, #tpu.memory_space<smem>>
    %2 = arith.index_cast %arg1 : i32 to index
    %3 = memref.load %arg3[%2] : memref<3xi32, #tpu.memory_space<smem>>
    %4 = arith.subi %1, %3 : i32
    %c0_i32 = arith.constant 0 : i32
    %c0_i32_0 = arith.constant 0 : i32
    %c0_i32_1 = arith.constant 0 : i32
    return %4, %c0_i32, %c0_i32_0 : i32, i32, i32
  }
  func.func @transform_1(%arg0: i32, %arg1: i32, %arg2: memref<3xi32, #tpu.memory_space<smem>>, %arg3: memref<3xi32, #tpu.memory_space<smem>>) -> (i32, i32, i32) {
    %0 = arith.index_cast %arg1 : i32 to index
    %1 = memref.load %arg3[%0] : memref<3xi32, #tpu.memory_space<smem>>
    %c0_i32 = arith.constant 0 : i32
    %c0_i32_0 = arith.constant 0 : i32
    return %arg0, %1, %c0_i32 : i32, i32, i32
  }
  func.func @transform_2(%arg0: i32, %arg1: i32, %arg2: memref<3xi32, #tpu.memory_space<smem>>, %arg3: memref<3xi32, #tpu.memory_space<smem>>) -> (i32, i32, i32) {
    %c0_i32 = arith.constant 0 : i32
    %c0_i32_0 = arith.constant 0 : i32
    %c0_i32_1 = arith.constant 0 : i32
    %c0_i32_2 = arith.constant 0 : i32
    return %c0_i32, %c0_i32_0, %c0_i32_1 : i32, i32, i32
  }
  func.func @transform_3(%arg0: i32, %arg1: i32, %arg2: memref<3xi32, #tpu.memory_space<smem>>, %arg3: memref<3xi32, #tpu.memory_space<smem>>) -> (i32, i32, i32) {
    %0 = arith.index_cast %arg1 : i32 to index
    %1 = memref.load %arg2[%0] : memref<3xi32, #tpu.memory_space<smem>>
    %c0_i32 = arith.constant 0 : i32
    %c0_i32_0 = arith.constant 0 : i32
    return %arg0, %1, %c0_i32 : i32, i32, i32
  }
}

</mosaic_0001>

<bundles_post_ra>
// kernel: stu_forward.1
= control target key start
LH: loop header
LB: loop body
LE: loop exit
PB: predicated region body
PF: predicated region fallthrough
CT: control target
= control target key end

     0   :  { %s18105_s0 = inlined_call_operand.vmem [shape: s32[3], index: 0, kind: input, shape index: {}]   ;;  %s18106_s2 = inlined_call_operand.vmem [shape: bf16[2,4096,256], index: 2, kind: input, shape index: {}]   ;;  %s18107_s3 = inlined_call_operand.vmem [shape: bf16[2,512,128], index: 3, kind: input, shape index: {}]   ;;  %s18108_s4 = inlined_call_operand.vmem [shape: bf16[16,128,128], index: 4, kind: input, shape index: {}]   ;;  %s18109_s5 = inlined_call_operand.vmem [shape: f32[2,512,128], index: 5, kind: output, shape index: {}]   ;;  %s18110_s1 = inlined_call_operand.vmem [shape: s32[3], index: 1, kind: input, shape index: {}]  }
   0x1   :  { %s10_s20 = sshll.u32 %s18105_s0, 4  ;;  %s14_s23 = sshll.u32 %s18110_s1, 4  ;;  %s11_s20 = int_to_ptr.vmem [resolvable:$true] %s10_s20  ;;  %s15_s23 = int_to_ptr.vmem [resolvable:$true] %s14_s23 }
   0x2   :  { %s15637_s24 = scalar_lea.vmem %s11_s20, 16  ;;  %p15642_p1 = scmp.lt.s32.totalorder %s11_s20, %s11_s20 }
   0x3   :  { %p15638_p0 = scmp.ne.s32.totalorder %s11_s20, %s15637_s24  ;;  %p15643_p2 = scmp.lt.s32.totalorder %s15637_s24, %s15637_s24 }
   0x5   :  { %p15644_p3 = por %p15643_p2, %p15642_p1 }
   0x7   :  { %p15645_p4 = pnand %p15644_p3, %p15638_p0 }
   0x9   :  { %15648 = shalt.err (!%p15645_p4)  }
   0xa   :  { %s15703_s25 = smov [#allocation4]   ;;  %s15649_s26 = scalar_lea.vmem %s15_s23, 16 }
   0xb   :  { %13 = dma.vmem_to_smem %s11_s20, 16, %s15703_s25, [#allocation3] }
   0xc   :  { %p15650_p5 = scmp.ne.s32.totalorder %s15_s23, %s15649_s26  ;;  %p15654_p6 = scmp.lt.s32.totalorder %s15_s23, %s15_s23 }
   0xd   :  { %p15655_p7 = scmp.lt.s32.totalorder %s15649_s26, %s15649_s26 }
   0xf   :  { %p15656_p8 = por %p15655_p7, %p15654_p6 }
  0x11   :  { %p15657_p9 = pnand %p15656_p8, %p15650_p5 }
  0x13   :  { %15660 = shalt.err (!%p15657_p9)  }
  0x14   :  { %s15704_s0 = smov [#allocation5]  }
  0x15   :  { %17 = dma.vmem_to_smem %s15_s23, 16, %s15704_s0, [#allocation3] }
  0x16   :  { %15681 = dma.done.wait [#allocation3], 32 }
  0x17   :  { %15682 = vsyncadd [#allocation3], 4294967264 }
  0x18   :  { %19 = sfence }
  0x19   :  { %s15743_s1 = smov 0   ;;  %s15745_s27 = smov 0  }
  0x1a   :  { %s15747_s28 = smov 0   ;;  %s15749_s29 = smov 0  }
  0x1b   :  { %s15751_s30 = smov 0  }
  0x1c LB: > { %s34_s6 = sadd.s32 1, %s15693_s28  ;;  %s37_s7 = sadd.s32 1, %s15697_s29  ;;  %s15701_s30 = sphi %s15751_s30, %s25_s30   ;;  %s15697_s29 = sphi %s15749_s29, %s18196_s29   ;;  %s15693_s28 = sphi %s15747_s28, %s18195_s28   ;;  %s15689_s27 = sphi %s15745_s27, %s18194_s27   ;;  %s15685_s1 = sphi %s15743_s1, %s18193_s1  }
  0x1d   : > { %p35_p10 = scmp.ge.s32.totalorder %s34_s6, 3  ;;  %p12587_p11 = scmp.ge.s32.totalorder %s15701_s30, 1 }
  0x1e   : > { %p198_p12 = scmp.lt.s32.totalorder %s15701_s30, 7 }
  0x1f   : > { %s18198_s6 = smov (%p35_p10, %s34_s6), 0  ;;  %s18200_s7 = smov (!%p35_p10, %s37_s7), %s15697_s29 }
  0x20   : > { %p199_p13 = pnand %p12587_p11, %p198_p12  ;;  %p39_p0 = scmp.ge.s32.totalorder %s18200_s7, 2 }
  0x21   : > { %s240_s8 = sld [smem:[#allocation4 + %s15685_s1]] (!%p199_p13)  ;;  %p253_p1 = scmp.lt.s32.totalorder (!%p199_p13), %s15689_s27, 1 }
  0x22   : > { %s18202_s7 = smov (%p39_p0, %s18200_s7), 0  ;;  %202 = sbr.rel (%p199_p13) target bundleno = 2335 (0x91f), region = 32 }
  0x23   : > { %s241_s9 = sld [smem:[#allocation5 + %s15685_s1]] (!%p199_p13) }
  0x24   : > { %s251_s10 = sld [smem:[#allocation5 + %s15685_s1]] (!%p199_p13) }
  0x25   : > { %s263_s11 = sld [smem:[#allocation4 + %s15685_s1]] (!%p199_p13) }
  0x26   : > { %s15773_s12 = sld [smem:[#allocation4 + %s15685_s1]] (!%p199_p13) }
  0x27   : > { %s18204_s27 = smov (!%p253_p1, %s15689_s27), 1  ;;  %s15775_s13 = sld [smem:[#allocation5 + %s15685_s1]] }
  0x28   : > { %s12591_s16 = sshll.u32 %s18204_s27, 6 }
  0x29   : > { %s242_s14 = ssub.s32 %s240_s8, %s241_s9 }
  0x2a   : > { %p243_p2 = scmp.lt.s32.totalorder %s242_s14, 1  ;;  %s12590_s15 = sshll.u32 %s251_s10, 5 }
  0x2b   : > { %p255_p3 = scmp.lt.s32.totalorder %s12590_s15, 63  ;;  %s12593_s18 = sshll.u32 %s263_s11, 5 }
  0x2c   : > { %s18206_s14 = smov (!%p243_p2, %s242_s14), 1  ;;  %p267_p4 = scmp.lt.s32.totalorder %s12593_s18, 63 }
  0x2d   : > { %s18208_s15 = smov (!%p255_p3, %s12590_s15), 63  ;;  %s13496_s17 = sshll.u32 %s18206_s14, 12 }
  0x2e   : > { %s15780_s21 = scalar_lea.vmem %s18106_s2, %s13496_s17  ;;  %s258_s22 = sadd.s32 %s12591_s16, %s18208_s15 }
  0x2f   : > { %s12592_s23 = sshll.u32 %s258_s22, 2  ;;  %s18210_s18 = smov (!%p267_p4, %s12593_s18), 63 }
  0x30   : > { %s15785_s26 = scalar_lea.vmem %s18107_s3, %s12592_s23  ;;  %s270_s0 = sadd.s32 %s12591_s16, %s18210_s18 }
  0x31   : > { %s12595_s1 = sshll.u32 %s270_s0, 3  ;;  %p12596_p5 = scmp.ne.s32.totalorder %s15775_s13, 0 }
  0x32   : > { %s15790_s9 = scalar_lea.vmem %s18109_s5, %s12595_s1 }
  0x33   : > { %281 = sbr.rel (%p12596_p5) target bundleno = 313 (0x139), region = 36 }
  0x38   : > { %v15705_v0 = vmov 0.0  }
  0x39   : > { %282 = vst [vmem:[#allocation2 + $0xab0] sm:$0xff] %v15705_v0  ;;  %283 = vst [vmem:[#allocation2 + $0xbb0] sm:$0xff] %v15705_v0 }
  0x3a   : > { %284 = vst [vmem:[#allocation2 + $0x4d8] sm:$0xff] %v15705_v0  ;;  %285 = vst [vmem:[#allocation2 + $0x818] sm:$0xff] %v15705_v0 }
  0x3b   : > { %286 = vst [vmem:[#allocation2 + $0xc50] sm:$0xff] %v15705_v0  ;;  %287 = vst [vmem:[#allocation2 + $0x810] sm:$0xff] %v15705_v0 }
  0x3c   : > { %288 = vst [vmem:[#allocation2 + $0x770] sm:$0xff] %v15705_v0  ;;  %289 = vst [vmem:[#allocation2 + $0x338] sm:$0xff] %v15705_v0 }
  0x3d   : > { %290 = vst [vmem:[#allocation2 + $0x450] sm:$0xff] %v15705_v0  ;;  %291 = vst [vmem:[#allocation2 + $0xb88] sm:$0xff] %v15705_v0 }
  0x3e   : > { %292 = vst [vmem:[#allocation2 + $0x918] sm:$0xff] %v15705_v0  ;;  %293 = vst [vmem:[#allocation2 + $0xd20] sm:$0xff] %v15705_v0 }
  0x3f   : > { %294 = vst [vmem:[#allocation2 + $0xca0] sm:$0xff] %v15705_v0  ;;  %295 = vst [vmem:[#allocation2 + $0xb28] sm:$0xff] %v15705_v0 }
  0x40   : > { %296 = vst [vmem:[#allocation2 + $0xd58] sm:$0xff] %v15705_v0  ;;  %297 = vst [vmem:[#allocation2 + $0x510] sm:$0xff] %v15705_v0 }
  0x41   : > { %298 = vst [vmem:[#allocation2 + $0x728] sm:$0xff] %v15705_v0  ;;  %299 = vst [vmem:[#allocation2 + $0x6e8] sm:$0xff] %v15705_v0 }
  0x42   : > { %300 = vst [vmem:[#allocation2 + $0x790] sm:$0xff] %v15705_v0  ;;  %301 = vst [vmem:[#allocation2 + $0x340] sm:$0xff] %v15705_v0 }
  0x43   : > { %302 = vst [vmem:[#allocation2 + $0x748] sm:$0xff] %v15705_v0  ;;  %303 = vst [vmem:[#allocation2 + $0x830] sm:$0xff] %v15705_v0 }
  0x44   : > { %304 = vst [vmem:[#allocation2 + $0xaf0] sm:$0xff] %v15705_v0  ;;  %305 = vst [vmem:[#allocation2 + $0x5b8] sm:$0xff] %v15705_v0 }
  0x45   : > { %306 = vst [vmem:[#allocation2 + $0x5c8] sm:$0xff] %v15705_v0  ;;  %307 = vst [vmem:[#allocation2 + $0xd78] sm:$0xff] %v15705_v0 }
  0x46   : > { %308 = vst [vmem:[#allocation2 + $0x3f8] sm:$0xff] %v15705_v0  ;;  %309 = vst [vmem:[#allocation2 + $0xf08] sm:$0xff] %v15705_v0 }
  0x47   : > { %310 = vst [vmem:[#allocation2 + $0xea0] sm:$0xff] %v15705_v0  ;;  %311 = vst [vmem:[#allocation2 + $0xb78] sm:$0xff] %v15705_v0 }
  0x48   : > { %312 = vst [vmem:[#allocation2 + $0x948] sm:$0xff] %v15705_v0  ;;  %313 = vst [vmem:[#allocation2 + $0xbf8] sm:$0xff] %v15705_v0 }
  0x49   : > { %314 = vst [vmem:[#allocation2 + $0x9d0] sm:$0xff] %v15705_v0  ;;  %315 = vst [vmem:[#allocation2 + $0xa90] sm:$0xff] %v15705_v0 }
  0x4a   : > { %316 = vst [vmem:[#allocation2 + $0x910] sm:$0xff] %v15705_v0  ;;  %317 = vst [vmem:[#allocation2 + $0xbd0] sm:$0xff] %v15705_v0 }
  0x4b   : > { %318 = vst [vmem:[#allocation2 + $0xd68] sm:$0xff] %v15705_v0  ;;  %319 = vst [vmem:[#allocation2 + $0xbf0] sm:$0xff] %v15705_v0 }
  0x4c   : > { %320 = vst [vmem:[#allocation2 + $0x868] sm:$0xff] %v15705_v0  ;;  %321 = vst [vmem:[#allocation2 + $0xe30] sm:$0xff] %v15705_v0 }
  0x4d   : > { %322 = vst [vmem:[#allocation2 + $0xcd8] sm:$0xff] %v15705_v0  ;;  %323 = vst [vmem:[#allocation2 + $0x18] sm:$0xff] %v15705_v0 }
  0x4e   : > { %324 = vst [vmem:[#allocation2 + $0x528] sm:$0xff] %v15705_v0  ;;  %325 = vst [vmem:[#allocation2 + $0xfd8] sm:$0xff] %v15705_v0 }
  0x4f   : > { %326 = vst [vmem:[#allocation2 + $0x420] sm:$0xff] %v15705_v0  ;;  %327 = vst [vmem:[#allocation2 + $0x940] sm:$0xff] %v15705_v0 }
  0x50   : > { %328 = vst [vmem:[#allocation2 + $0xed0] sm:$0xff] %v15705_v0  ;;  %329 = vst [vmem:[#allocation2 + $0x160] sm:$0xff] %v15705_v0 }
  0x51   : > { %330 = vst [vmem:[#allocation2 + $0x8e8] sm:$0xff] %v15705_v0  ;;  %331 = vst [vmem:[#allocation2 + $0x8b0] sm:$0xff] %v15705_v0 }
  0x52   : > { %332 = vst [vmem:[#allocation2 + $0x320] sm:$0xff] %v15705_v0  ;;  %333 = vst [vmem:[#allocation2 + $0x700] sm:$0xff] %v15705_v0 }
  0x53   : > { %334 = vst [vmem:[#allocation2 + $0x5f8] sm:$0xff] %v15705_v0  ;;  %335 = vst [vmem:[#allocation2 + $0x620] sm:$0xff] %v15705_v0 }
  0x54   : > { %336 = vst [vmem:[#allocation2 + $0x630] sm:$0xff] %v15705_v0  ;;  %337 = vst [vmem:[#allocation2 + $0x7a8] sm:$0xff] %v15705_v0 }
  0x55   : > { %338 = vst [vmem:[#allocation2 + $0x70] sm:$0xff] %v15705_v0  ;;  %339 = vst [vmem:[#allocation2 + $0x678] sm:$0xff] %v15705_v0 }
  0x56   : > { %340 = vst [vmem:[#allocation2 + $0xa88] sm:$0xff] %v15705_v0  ;;  %341 = vst [vmem:[#allocation2 + $0xb80] sm:$0xff] %v15705_v0 }
  0x57   : > { %342 = vst [vmem:[#allocation2 + $0xc58] sm:$0xff] %v15705_v0  ;;  %343 = vst [vmem:[#allocation2 + $0x8d8] sm:$0xff] %v15705_v0 }
  0x58   : > { %344 = vst [vmem:[#allocation2 + $0x9d8] sm:$0xff] %v15705_v0  ;;  %345 = vst [vmem:[#allocation2 + $0x800] sm:$0xff] %v15705_v0 }
  0x59   : > { %346 = vst [vmem:[#allocation2 + $0xe68] sm:$0xff] %v15705_v0  ;;  %347 = vst [vmem:[#allocation2 + $0x6f0] sm:$0xff] %v15705_v0 }
  0x5a   : > { %348 = vst [vmem:[#allocation2 + $0xbe8] sm:$0xff] %v15705_v0  ;;  %349 = vst [vmem:[#allocation2 + $0xd30] sm:$0xff] %v15705_v0 }
  0x5b   : > { %350 = vst [vmem:[#allocation2 + $0x358] sm:$0xff] %v15705_v0  ;;  %351 = vst [vmem:[#allocation2 + $0x490] sm:$0xff] %v15705_v0 }
  0x5c   : > { %352 = vst [vmem:[#allocation2 + $0x488] sm:$0xff] %v15705_v0  ;;  %353 = vst [vmem:[#allocation2 + $0xd60] sm:$0xff] %v15705_v0 }
  0x5d   : > { %354 = vst [vmem:[#allocation2 + $0xbd8] sm:$0xff] %v15705_v0  ;;  %355 = vst [vmem:[#allocation2 + $0x580] sm:$0xff] %v15705_v0 }
  0x5e   : > { %356 = vst [vmem:[#allocation2 + $0x208] sm:$0xff] %v15705_v0  ;;  %357 = vst [vmem:[#allocation2 + $0x158] sm:$0xff] %v15705_v0 }
  0x5f   : > { %358 = vst [vmem:[#allocation2 + $0xec8] sm:$0xff] %v15705_v0  ;;  %359 = vst [vmem:[#allocation2 + $0xdb0] sm:$0xff] %v15705_v0 }
  0x60   : > { %360 = vst [vmem:[#allocation2 + $0x660] sm:$0xff] %v15705_v0  ;;  %361 = vst [vmem:[#allocation2 + $0x6d8] sm:$0xff] %v15705_v0 }
  0x61   : > { %362 = vst [vmem:[#allocation2 + $0xbc8] sm:$0xff] %v15705_v0  ;;  %363 = vst [vmem:[#allocation2 + $0xf38] sm:$0xff] %v15705_v0 }
  0x62   : > { %364 = vst [vmem:[#allocation2 + $0x98] sm:$0xff] %v15705_v0  ;;  %365 = vst [vmem:[#allocation2 + $0xa48] sm:$0xff] %v15705_v0 }
  0x63   : > { %366 = vst [vmem:[#allocation2 + $0x1b8] sm:$0xff] %v15705_v0  ;;  %367 = vst [vmem:[#allocation2 + $0x188] sm:$0xff] %v15705_v0 }
  0x64   : > { %368 = vst [vmem:[#allocation2 + $0x650] sm:$0xff] %v15705_v0  ;;  %369 = vst [vmem:[#allocation2 + $0x90] sm:$0xff] %v15705_v0 }
  0x65   : > { %370 = vst [vmem:[#allocation2 + $0xdf0] sm:$0xff] %v15705_v0  ;;  %371 = vst [vmem:[#allocation2 + $0x9b0] sm:$0xff] %v15705_v0 }
  0x66   : > { %372 = vst [vmem:[#allocation2 + $0x180] sm:$0xff] %v15705_v0  ;;  %373 = vst [vmem:[#allocation2 + $0x288] sm:$0xff] %v15705_v0 }
  0x67   : > { %374 = vst [vmem:[#allocation2 + $0x8e0] sm:$0xff] %v15705_v0  ;;  %375 = vst [vmem:[#allocation2 + $0xc00] sm:$0xff] %v15705_v0 }
  0x68   : > { %376 = vst [vmem:[#allocation2 + $0x230] sm:$0xff] %v15705_v0  ;;  %377 = vst [vmem:[#allocation2 + $0x2e0] sm:$0xff] %v15705_v0 }
  0x69   : > { %378 = vst [vmem:[#allocation2 + $0x708] sm:$0xff] %v15705_v0  ;;  %379 = vst [vmem:[#allocation2 + $0x428] sm:$0xff] %v15705_v0 }
  0x6a   : > { %380 = vst [vmem:[#allocation2 + $0xe48] sm:$0xff] %v15705_v0  ;;  %381 = vst [vmem:[#allocation2 + $0xe80] sm:$0xff] %v15705_v0 }
  0x6b   : > { %382 = vst [vmem:[#allocation2 + $0x250] sm:$0xff] %v15705_v0  ;;  %383 = vst [vmem:[#allocation2 + $0x380] sm:$0xff] %v15705_v0 }
  0x6c   : > { %384 = vst [vmem:[#allocation2 + $0xa58] sm:$0xff] %v15705_v0  ;;  %385 = vst [vmem:[#allocation2 + $0xae0] sm:$0xff] %v15705_v0 }
  0x6d   : > { %386 = vst [vmem:[#allocation2 + $0xea8] sm:$0xff] %v15705_v0  ;;  %387 = vst [vmem:[#allocation2 + $0x9c0] sm:$0xff] %v15705_v0 }
  0x6e   : > { %388 = vst [vmem:[#allocation2 + $0x418] sm:$0xff] %v15705_v0  ;;  %389 = vst [vmem:[#allocation2 + $0x410] sm:$0xff] %v15705_v0 }
  0x6f   : > { %390 = vst [vmem:[#allocation2 + $0x760] sm:$0xff] %v15705_v0  ;;  %391 = vst [vmem:[#allocation2 + $0x9e0] sm:$0xff] %v15705_v0 }
  0x70   : > { %392 = vst [vmem:[#allocation2 + $0x100] sm:$0xff] %v15705_v0  ;;  %393 = vst [vmem:[#allocation2 + $0x78] sm:$0xff] %v15705_v0 }
  0x71   : > { %394 = vst [vmem:[#allocation2 + $0xec0] sm:$0xff] %v15705_v0  ;;  %395 = vst [vmem:[#allocation2 + $0x438] sm:$0xff] %v15705_v0 }
  0x72   : > { %396 = vst [vmem:[#allocation2 + $0xca8] sm:$0xff] %v15705_v0  ;;  %397 = vst [vmem:[#allocation2 + $0xaf8] sm:$0xff] %v15705_v0 }
  0x73   : > { %398 = vst [vmem:[#allocation2 + $0xa28] sm:$0xff] %v15705_v0  ;;  %399 = vst [vmem:[#allocation2 + $0xa20] sm:$0xff] %v15705_v0 }
  0x74   : > { %400 = vst [vmem:[#allocation2 + $0xd50] sm:$0xff] %v15705_v0  ;;  %401 = vst [vmem:[#allocation2 + $0xbb8] sm:$0xff] %v15705_v0 }
  0x75   : > { %402 = vst [vmem:[#allocation2 + $0x3d8] sm:$0xff] %v15705_v0  ;;  %403 = vst [vmem:[#allocation2 + $0x5e0] sm:$0xff] %v15705_v0 }
  0x76   : > { %404 = vst [vmem:[#allocation2 + $0x980] sm:$0xff] %v15705_v0  ;;  %405 = vst [vmem:[#allocation2 + $0x990] sm:$0xff] %v15705_v0 }
  0x77   : > { %406 = vst [vmem:[#allocation2 + $0xb10] sm:$0xff] %v15705_v0  ;;  %407 = vst [vmem:[#allocation2 + $0x960] sm:$0xff] %v15705_v0 }
  0x78   : > { %408 = vst [vmem:[#allocation2 + $0x310] sm:$0xff] %v15705_v0  ;;  %409 = vst [vmem:[#allocation2 + $0xd8] sm:$0xff] %v15705_v0 }
  0x79   : > { %410 = vst [vmem:[#allocation2 + $0x1c0] sm:$0xff] %v15705_v0  ;;  %411 = vst [vmem:[#allocation2 + $0xac8] sm:$0xff] %v15705_v0 }
  0x7a   : > { %412 = vst [vmem:[#allocation2 + $0x820] sm:$0xff] %v15705_v0  ;;  %413 = vst [vmem:[#allocation2 + $0x8c8] sm:$0xff] %v15705_v0 }
  0x7b   : > { %414 = vst [vmem:[#allocation2 + $0xe20] sm:$0xff] %v15705_v0  ;;  %415 = vst [vmem:[#allocation2 + $0xb60] sm:$0xff] %v15705_v0 }
  0x7c   : > { %416 = vst [vmem:[#allocation2 + $0xed8] sm:$0xff] %v15705_v0  ;;  %417 = vst [vmem:[#allocation2 + $0xc80] sm:$0xff] %v15705_v0 }
  0x7d   : > { %418 = vst [vmem:[#allocation2 + $0x950] sm:$0xff] %v15705_v0  ;;  %419 = vst [vmem:[#allocation2 + $0x698] sm:$0xff] %v15705_v0 }
  0x7e   : > { %420 = vst [vmem:[#allocation2 + $0x2d0] sm:$0xff] %v15705_v0  ;;  %421 = vst [vmem:[#allocation2 + $0xf18] sm:$0xff] %v15705_v0 }
  0x7f   : > { %422 = vst [vmem:[#allocation2 + $0xb90] sm:$0xff] %v15705_v0  ;;  %423 = vst [vmem:[#allocation2 + $0x458] sm:$0xff] %v15705_v0 }
  0x80   : > { %424 = vst [vmem:[#allocation2 + $0xf20] sm:$0xff] %v15705_v0  ;;  %425 = vst [vmem:[#allocation2 + $0x8] sm:$0xff] %v15705_v0 }
  0x81   : > { %426 = vst [vmem:[#allocation2 + $0xc40] sm:$0xff] %v15705_v0  ;;  %427 = vst [vmem:[#allocation2 + $0xd48] sm:$0xff] %v15705_v0 }
  0x82   : > { %428 = vst [vmem:[#allocation2 + $0x7b8] sm:$0xff] %v15705_v0  ;;  %429 = vst [vmem:[#allocation2 + $0x6b0] sm:$0xff] %v15705_v0 }
  0x83   : > { %430 = vst [vmem:[#allocation2 + $0x3d0] sm:$0xff] %v15705_v0  ;;  %431 = vst [vmem:[#allocation2 + $0x228] sm:$0xff] %v15705_v0 }
  0x84   : > { %432 = vst [vmem:[#allocation2 + $0xd00] sm:$0xff] %v15705_v0  ;;  %433 = vst [vmem:[#allocation2 + $0x498] sm:$0xff] %v15705_v0 }
  0x85   : > { %434 = vst [vmem:[#allocation2 + $0x688] sm:$0xff] %v15705_v0  ;;  %435 = vst [vmem:[#allocation2 + $0x5c0] sm:$0xff] %v15705_v0 }
  0x86   : > { %436 = vst [vmem:[#allocation2 + $0x858] sm:$0xff] %v15705_v0  ;;  %437 = vst [vmem:[#allocation2 + $0x478] sm:$0xff] %v15705_v0 }
  0x87   : > { %438 = vst [vmem:[#allocation2 + $0x6f8] sm:$0xff] %v15705_v0  ;;  %439 = vst [vmem:[#allocation2 + $0xc70] sm:$0xff] %v15705_v0 }
  0x88   : > { %440 = vst [vmem:[#allocation2 + $0x780] sm:$0xff] %v15705_v0  ;;  %441 = vst [vmem:[#allocation2 + $0x1f8] sm:$0xff] %v15705_v0 }
  0x89   : > { %442 = vst [vmem:[#allocation2 + $0xbc0] sm:$0xff] %v15705_v0  ;;  %443 = vst [vmem:[#allocation2 + $0x788] sm:$0xff] %v15705_v0 }
  0x8a   : > { %444 = vst [vmem:[#allocation2 + $0x4b8] sm:$0xff] %v15705_v0  ;;  %445 = vst [vmem:[#allocation2 + $0x4c8] sm:$0xff] %v15705_v0 }
  0x8b   : > { %446 = vst [vmem:[#allocation2 + $0x38] sm:$0xff] %v15705_v0  ;;  %447 = vst [vmem:[#allocation2 + $0x3b0] sm:$0xff] %v15705_v0 }
  0x8c   : > { %448 = vst [vmem:[#allocation2 + $0x7c8] sm:$0xff] %v15705_v0  ;;  %449 = vst [vmem:[#allocation2 + $0xd90] sm:$0xff] %v15705_v0 }
  0x8d   : > { %450 = vst [vmem:[#allocation2 + $0xba8] sm:$0xff] %v15705_v0  ;;  %451 = vst [vmem:[#allocation2 + $0x9c8] sm:$0xff] %v15705_v0 }
  0x8e   : > { %452 = vst [vmem:[#allocation2 + $0x2f0] sm:$0xff] %v15705_v0  ;;  %453 = vst [vmem:[#allocation2 + $0x5d0] sm:$0xff] %v15705_v0 }
  0x8f   : > { %454 = vst [vmem:[#allocation2 + $0xfe0] sm:$0xff] %v15705_v0  ;;  %455 = vst [vmem:[#allocation2 + $0xb98] sm:$0xff] %v15705_v0 }
  0x90   : > { %456 = vst [vmem:[#allocation2 + $0x840] sm:$0xff] %v15705_v0  ;;  %457 = vst [vmem:[#allocation2 + $0x768] sm:$0xff] %v15705_v0 }
  0x91   : > { %458 = vst [vmem:[#allocation2 + $0x568] sm:$0xff] %v15705_v0  ;;  %459 = vst [vmem:[#allocation2 + $0xb30] sm:$0xff] %v15705_v0 }
  0x92   : > { %460 = vst [vmem:[#allocation2 + $0x9f8] sm:$0xff] %v15705_v0  ;;  %461 = vst [vmem:[#allocation2 + $0x138] sm:$0xff] %v15705_v0 }
  0x93   : > { %462 = vst [vmem:[#allocation2 + $0xf00] sm:$0xff] %v15705_v0  ;;  %463 = vst [vmem:[#allocation2 + $0xd08] sm:$0xff] %v15705_v0 }
  0x94   : > { %464 = vst [vmem:[#allocation2 + $0xe00] sm:$0xff] %v15705_v0  ;;  %465 = vst [vmem:[#allocation2 + $0xc28] sm:$0xff] %v15705_v0 }
  0x95   : > { %466 = vst [vmem:[#allocation2 + $0x6e0] sm:$0xff] %v15705_v0  ;;  %467 = vst [vmem:[#allocation2 + $0x970] sm:$0xff] %v15705_v0 }
  0x96   : > { %468 = vst [vmem:[#allocation2 + $0x628] sm:$0xff] %v15705_v0  ;;  %469 = vst [vmem:[#allocation2 + $0xb50] sm:$0xff] %v15705_v0 }
  0x97   : > { %470 = vst [vmem:[#allocation2 + $0x920] sm:$0xff] %v15705_v0  ;;  %471 = vst [vmem:[#allocation2 + $0xef8] sm:$0xff] %v15705_v0 }
  0x98   : > { %472 = vst [vmem:[#allocation2 + $0x370] sm:$0xff] %v15705_v0  ;;  %473 = vst [vmem:[#allocation2 + $0x2e8] sm:$0xff] %v15705_v0 }
  0x99   : > { %474 = vst [vmem:[#allocation2 + $0x398] sm:$0xff] %v15705_v0  ;;  %475 = vst [vmem:[#allocation2 + $0xe0] sm:$0xff] %v15705_v0 }
  0x9a   : > { %476 = vst [vmem:[#allocation2 + $0x1e0] sm:$0xff] %v15705_v0  ;;  %477 = vst [vmem:[#allocation2 + $0xf90] sm:$0xff] %v15705_v0 }
  0x9b   : > { %478 = vst [vmem:[#allocation2 + $0x270] sm:$0xff] %v15705_v0  ;;  %479 = vst [vmem:[#allocation2 + $0x8f8] sm:$0xff] %v15705_v0 }
  0x9c   : > { %480 = vst [vmem:[#allocation2 + $0x598] sm:$0xff] %v15705_v0  ;;  %481 = vst [vmem:[#allocation2 + $0x750] sm:$0xff] %v15705_v0 }
  0x9d   : > { %482 = vst [vmem:[#allocation2 + $0xb08] sm:$0xff] %v15705_v0  ;;  %483 = vst [vmem:[#allocation2 + $0xde8] sm:$0xff] %v15705_v0 }
  0x9e   : > { %484 = vst [vmem:[#allocation2 + $0x308] sm:$0xff] %v15705_v0  ;;  %485 = vst [vmem:[#allocation2 + $0x9a8] sm:$0xff] %v15705_v0 }
  0x9f   : > { %486 = vst [vmem:[#allocation2 + $0xe98] sm:$0xff] %v15705_v0  ;;  %487 = vst [vmem:[#allocation2 + $0x268] sm:$0xff] %v15705_v0 }
  0xa0   : > { %488 = vst [vmem:[#allocation2 + $0x610] sm:$0xff] %v15705_v0  ;;  %489 = vst [vmem:[#allocation2 + $0x50] sm:$0xff] %v15705_v0 }
  0xa1   : > { %490 = vst [vmem:[#allocation2 + $0x6d0] sm:$0xff] %v15705_v0  ;;  %491 = vst [vmem:[#allocation2 + $0xa60] sm:$0xff] %v15705_v0 }
  0xa2   : > { %492 = vst [vmem:[#allocation2 + $0x470] sm:$0xff] %v15705_v0  ;;  %493 = vst [vmem:[#allocation2 + $0x928] sm:$0xff] %v15705_v0 }
  0xa3   : > { %494 = vst [vmem:[#allocation2 + $0x8a0] sm:$0xff] %v15705_v0  ;;  %495 = vst [vmem:[#allocation2 + $0xe88] sm:$0xff] %v15705_v0 }
  0xa4   : > { %496 = vst [vmem:[#allocation2 + $0xb68] sm:$0xff] %v15705_v0  ;;  %497 = vst [vmem:[#allocation2 + $0x6a8] sm:$0xff] %v15705_v0 }
  0xa5   : > { %498 = vst [vmem:[#allocation2 + $0xe50] sm:$0xff] %v15705_v0  ;;  %499 = vst [vmem:[#allocation2 + $0x7c0] sm:$0xff] %v15705_v0 }
  0xa6   : > { %500 = vst [vmem:[#allocation2 + $0xe90] sm:$0xff] %v15705_v0  ;;  %501 = vst [vmem:[#allocation2 + $0xc38] sm:$0xff] %v15705_v0 }
  0xa7   : > { %502 = vst [vmem:[#allocation2 + $0xb8] sm:$0xff] %v15705_v0  ;;  %503 = vst [vmem:[#allocation2 + $0xc48] sm:$0xff] %v15705_v0 }
  0xa8   : > { %504 = vst [vmem:[#allocation2 + $0xb20] sm:$0xff] %v15705_v0  ;;  %505 = vst [vmem:[#allocation2 + $0x30] sm:$0xff] %v15705_v0 }
  0xa9   : > { %506 = vst [vmem:[#allocation2 + $0xc8] sm:$0xff] %v15705_v0  ;;  %507 = vst [vmem:[#allocation2 + $0x2b8] sm:$0xff] %v15705_v0 }
  0xaa   : > { %508 = vst [vmem:[#allocation2 + $0x2a8] sm:$0xff] %v15705_v0  ;;  %509 = vst [vmem:[#allocation2 + $0xf78] sm:$0xff] %v15705_v0 }
  0xab   : > { %510 = vst [vmem:[#allocation2 + $0x210] sm:$0xff] %v15705_v0  ;;  %511 = vst [vmem:[#allocation2 + $0x998] sm:$0xff] %v15705_v0 }
  0xac   : > { %512 = vst [vmem:[#allocation2 + $0xc88] sm:$0xff] %v15705_v0  ;;  %513 = vst [vmem:[#allocation2 + $0xab8] sm:$0xff] %v15705_v0 }
  0xad   : > { %514 = vst [vmem:[#allocation2 + $0x5a8] sm:$0xff] %v15705_v0  ;;  %515 = vst [vmem:[#allocation2 + $0x668] sm:$0xff] %v15705_v0 }
  0xae   : > { %516 = vst [vmem:[#allocation2 + $0xb18] sm:$0xff] %v15705_v0  ;;  %517 = vst [vmem:[#allocation2 + $0x468] sm:$0xff] %v15705_v0 }
  0xaf   : > { %518 = vst [vmem:[#allocation2 + $0x578] sm:$0xff] %v15705_v0  ;;  %519 = vst [vmem:[#allocation2 + $0x600] sm:$0xff] %v15705_v0 }
  0xb0   : > { %520 = vst [vmem:[#allocation2 + $0x570] sm:$0xff] %v15705_v0  ;;  %521 = vst [vmem:[#allocation2 + $0xb40] sm:$0xff] %v15705_v0 }
  0xb1   : > { %522 = vst [vmem:[#allocation2 + $0x170] sm:$0xff] %v15705_v0  ;;  %523 = vst [vmem:[#allocation2 + $0x838] sm:$0xff] %v15705_v0 }
  0xb2   : > { %524 = vst [vmem:[#allocation2 + $0xcb8] sm:$0xff] %v15705_v0  ;;  %525 = vst [vmem:[#allocation2 + $0xe28] sm:$0xff] %v15705_v0 }
  0xb3   : > { %526 = vst [vmem:[#allocation2 + $0x500] sm:$0xff] %v15705_v0  ;;  %527 = vst [vmem:[#allocation2 + $0xe60] sm:$0xff] %v15705_v0 }
  0xb4   : > { %528 = vst [vmem:[#allocation2 + $0x8c0] sm:$0xff] %v15705_v0  ;;  %529 = vst [vmem:[#allocation2 + $0xe08] sm:$0xff] %v15705_v0 }
  0xb5   : > { %530 = vst [vmem:[#allocation2 + $0xb58] sm:$0xff] %v15705_v0  ;;  %531 = vst [vmem:[#allocation2 + $0x618] sm:$0xff] %v15705_v0 }
  0xb6   : > { %532 = vst [vmem:[#allocation2 + $0x200] sm:$0xff] %v15705_v0  ;;  %533 = vst [vmem:[#allocation2 + $0x5b0] sm:$0xff] %v15705_v0 }
  0xb7   : > { %534 = vst [vmem:[#allocation2 + $0x140] sm:$0xff] %v15705_v0  ;;  %535 = vst [vmem:[#allocation2 + $0xc0] sm:$0xff] %v15705_v0 }
  0xb8   : > { %536 = vst [vmem:[#allocation2 + $0xba0] sm:$0xff] %v15705_v0  ;;  %537 = vst [vmem:[#allocation2 + $0xd0] sm:$0xff] %v15705_v0 }
  0xb9   : > { %538 = vst [vmem:[#allocation2 + $0xd70] sm:$0xff] %v15705_v0  ;;  %539 = vst [vmem:[#allocation2 + $0x448] sm:$0xff] %v15705_v0 }
  0xba   : > { %540 = vst [vmem:[#allocation2 + $0x5a0] sm:$0xff] %v15705_v0  ;;  %541 = vst [vmem:[#allocation2 + $0xc60] sm:$0xff] %v15705_v0 }
  0xbb   : > { %542 = vst [vmem:[#allocation2 + $0x360] sm:$0xff] %v15705_v0  ;;  %543 = vst [vmem:[#allocation2 + $0xde0] sm:$0xff] %v15705_v0 }
  0xbc   : > { %544 = vst [vmem:[#allocation2 + $0x118] sm:$0xff] %v15705_v0  ;;  %545 = vst [vmem:[#allocation2 + $0x690] sm:$0xff] %v15705_v0 }
  0xbd   : > { %546 = vst [vmem:[#allocation2 + $0xb48] sm:$0xff] %v15705_v0  ;;  %547 = vst [vmem:[#allocation2 + $0xeb0] sm:$0xff] %v15705_v0 }
  0xbe   : > { %548 = vst [vmem:[#allocation2 + $0x860] sm:$0xff] %v15705_v0  ;;  %549 = vst [vmem:[#allocation2 + $0xcc8] sm:$0xff] %v15705_v0 }
  0xbf   : > { %550 = vst [vmem:[#allocation2 + $0xff8] sm:$0xff] %v15705_v0  ;;  %551 = vst [vmem:[#allocation2 + $0x758] sm:$0xff] %v15705_v0 }
  0xc0   : > { %552 = vst [vmem:[#allocation2 + $0x590] sm:$0xff] %v15705_v0  ;;  %553 = vst [vmem:[#allocation2 + $0xb00] sm:$0xff] %v15705_v0 }
  0xc1   : > { %554 = vst [vmem:[#allocation2 + $0x6c8] sm:$0xff] %v15705_v0  ;;  %555 = vst [vmem:[#allocation2 + $0xee8] sm:$0xff] %v15705_v0 }
  0xc2   : > { %556 = vst [vmem:[#allocation2 + $0x848] sm:$0xff] %v15705_v0  ;;  %557 = vst [vmem:[#allocation2 + $0xe78] sm:$0xff] %v15705_v0 }
  0xc3   : > { %558 = vst [vmem:[#allocation2 + $0x640] sm:$0xff] %v15705_v0  ;;  %559 = vst [vmem:[#allocation2 + $0x258] sm:$0xff] %v15705_v0 }
  0xc4   : > { %560 = vst [vmem:[#allocation2 + $0x7f8] sm:$0xff] %v15705_v0  ;;  %561 = vst [vmem:[#allocation2 + $0x278] sm:$0xff] %v15705_v0 }
  0xc5   : > { %562 = vst [vmem:[#allocation2 + $0x648] sm:$0xff] %v15705_v0  ;;  %563 = vst [vmem:[#allocation2 + $0x120] sm:$0xff] %v15705_v0 }
  0xc6   : > { %564 = vst [vmem:[#allocation2 + $0x330] sm:$0xff] %v15705_v0  ;;  %565 = vst [vmem:[#allocation2 + $0x718] sm:$0xff] %v15705_v0 }
  0xc7   : > { %566 = vst [vmem:[#allocation2 + $0x968] sm:$0xff] %v15705_v0  ;;  %567 = vst [vmem:[#allocation2 + $0x7f0] sm:$0xff] %v15705_v0 }
  0xc8   : > { %568 = vst [vmem:[#allocation2 + $0x2f8] sm:$0xff] %v15705_v0  ;;  %569 = vst [vmem:[#allocation2 + $0xc20] sm:$0xff] %v15705_v0 }
  0xc9   : > { %570 = vst [vmem:[#allocation2] sm:$0xff] %v15705_v0  ;;  %571 = vst [vmem:[#allocation2 + $0xe8] sm:$0xff] %v15705_v0 }
  0xca   : > { %572 = vst [vmem:[#allocation2 + $0xfd0] sm:$0xff] %v15705_v0  ;;  %573 = vst [vmem:[#allocation2 + $0x8a8] sm:$0xff] %v15705_v0 }
  0xcb   : > { %574 = vst [vmem:[#allocation2 + $0xad8] sm:$0xff] %v15705_v0  ;;  %575 = vst [vmem:[#allocation2 + $0x878] sm:$0xff] %v15705_v0 }
  0xcc   : > { %576 = vst [vmem:[#allocation2 + $0x80] sm:$0xff] %v15705_v0  ;;  %577 = vst [vmem:[#allocation2 + $0xda8] sm:$0xff] %v15705_v0 }
  0xcd   : > { %578 = vst [vmem:[#allocation2 + $0x670] sm:$0xff] %v15705_v0  ;;  %579 = vst [vmem:[#allocation2 + $0xda0] sm:$0xff] %v15705_v0 }
  0xce   : > { %580 = vst [vmem:[#allocation2 + $0x530] sm:$0xff] %v15705_v0  ;;  %581 = vst [vmem:[#allocation2 + $0x20] sm:$0xff] %v15705_v0 }
  0xcf   : > { %582 = vst [vmem:[#allocation2 + $0xf70] sm:$0xff] %v15705_v0  ;;  %583 = vst [vmem:[#allocation2 + $0xeb8] sm:$0xff] %v15705_v0 }
  0xd0   : > { %584 = vst [vmem:[#allocation2 + $0x88] sm:$0xff] %v15705_v0  ;;  %585 = vst [vmem:[#allocation2 + $0x318] sm:$0xff] %v15705_v0 }
  0xd1   : > { %586 = vst [vmem:[#allocation2 + $0x520] sm:$0xff] %v15705_v0  ;;  %587 = vst [vmem:[#allocation2 + $0x430] sm:$0xff] %v15705_v0 }
  0xd2   : > { %588 = vst [vmem:[#allocation2 + $0x8b8] sm:$0xff] %v15705_v0  ;;  %589 = vst [vmem:[#allocation2 + $0x4b0] sm:$0xff] %v15705_v0 }
  0xd3   : > { %590 = vst [vmem:[#allocation2 + $0xa38] sm:$0xff] %v15705_v0  ;;  %591 = vst [vmem:[#allocation2 + $0x588] sm:$0xff] %v15705_v0 }
  0xd4   : > { %592 = vst [vmem:[#allocation2 + $0xd80] sm:$0xff] %v15705_v0  ;;  %593 = vst [vmem:[#allocation2 + $0xa0] sm:$0xff] %v15705_v0 }
  0xd5   : > { %594 = vst [vmem:[#allocation2 + $0x550] sm:$0xff] %v15705_v0  ;;  %595 = vst [vmem:[#allocation2 + $0xf98] sm:$0xff] %v15705_v0 }
  0xd6   : > { %596 = vst [vmem:[#allocation2 + $0x4f8] sm:$0xff] %v15705_v0  ;;  %597 = vst [vmem:[#allocation2 + $0xce0] sm:$0xff] %v15705_v0 }
  0xd7   : > { %598 = vst [vmem:[#allocation2 + $0xfc8] sm:$0xff] %v15705_v0  ;;  %599 = vst [vmem:[#allocation2 + $0xf48] sm:$0xff] %v15705_v0 }
  0xd8   : > { %600 = vst [vmem:[#allocation2 + $0x828] sm:$0xff] %v15705_v0  ;;  %601 = vst [vmem:[#allocation2 + $0xe40] sm:$0xff] %v15705_v0 }
  0xd9   : > { %602 = vst [vmem:[#allocation2 + $0x978] sm:$0xff] %v15705_v0  ;;  %603 = vst [vmem:[#allocation2 + $0x3e0] sm:$0xff] %v15705_v0 }
  0xda   : > { %604 = vst [vmem:[#allocation2 + $0xf80] sm:$0xff] %v15705_v0  ;;  %605 = vst [vmem:[#allocation2 + $0xf50] sm:$0xff] %v15705_v0 }
  0xdb   : > { %606 = vst [vmem:[#allocation2 + $0x1b0] sm:$0xff] %v15705_v0  ;;  %607 = vst [vmem:[#allocation2 + $0xdc0] sm:$0xff] %v15705_v0 }
  0xdc   : > { %608 = vst [vmem:[#allocation2 + $0xfb0] sm:$0xff] %v15705_v0  ;;  %609 = vst [vmem:[#allocation2 + $0xdb8] sm:$0xff] %v15705_v0 }
  0xdd   : > { %610 = vst [vmem:[#allocation2 + $0x350] sm:$0xff] %v15705_v0  ;;  %611 = vst [vmem:[#allocation2 + $0x388] sm:$0xff] %v15705_v0 }
  0xde   : > { %612 = vst [vmem:[#allocation2 + $0xa78] sm:$0xff] %v15705_v0  ;;  %613 = vst [vmem:[#allocation2 + $0xcc0] sm:$0xff] %v15705_v0 }
  0xdf   : > { %614 = vst [vmem:[#allocation2 + $0xf40] sm:$0xff] %v15705_v0  ;;  %615 = vst [vmem:[#allocation2 + $0x908] sm:$0xff] %v15705_v0 }
  0xe0   : > { %616 = vst [vmem:[#allocation2 + $0xc10] sm:$0xff] %v15705_v0  ;;  %617 = vst [vmem:[#allocation2 + $0x1a0] sm:$0xff] %v15705_v0 }
  0xe1   : > { %618 = vst [vmem:[#allocation2 + $0x4d0] sm:$0xff] %v15705_v0  ;;  %619 = vst [vmem:[#allocation2 + $0xfa0] sm:$0xff] %v15705_v0 }
  0xe2   : > { %620 = vst [vmem:[#allocation2 + $0xcb0] sm:$0xff] %v15705_v0  ;;  %621 = vst [vmem:[#allocation2 + $0x168] sm:$0xff] %v15705_v0 }
  0xe3   : > { %622 = vst [vmem:[#allocation2 + $0xf28] sm:$0xff] %v15705_v0  ;;  %623 = vst [vmem:[#allocation2 + $0xf88] sm:$0xff] %v15705_v0 }
  0xe4   : > { %624 = vst [vmem:[#allocation2 + $0xdc8] sm:$0xff] %v15705_v0  ;;  %625 = vst [vmem:[#allocation2 + $0x560] sm:$0xff] %v15705_v0 }
  0xe5   : > { %626 = vst [vmem:[#allocation2 + $0x888] sm:$0xff] %v15705_v0  ;;  %627 = vst [vmem:[#allocation2 + $0x608] sm:$0xff] %v15705_v0 }
  0xe6   : > { %628 = vst [vmem:[#allocation2 + $0x128] sm:$0xff] %v15705_v0  ;;  %629 = vst [vmem:[#allocation2 + $0x178] sm:$0xff] %v15705_v0 }
  0xe7   : > { %630 = vst [vmem:[#allocation2 + $0xf8] sm:$0xff] %v15705_v0  ;;  %631 = vst [vmem:[#allocation2 + $0x8d0] sm:$0xff] %v15705_v0 }
  0xe8   : > { %632 = vst [vmem:[#allocation2 + $0x130] sm:$0xff] %v15705_v0  ;;  %633 = vst [vmem:[#allocation2 + $0xa8] sm:$0xff] %v15705_v0 }
  0xe9   : > { %634 = vst [vmem:[#allocation2 + $0x1d8] sm:$0xff] %v15705_v0  ;;  %635 = vst [vmem:[#allocation2 + $0xe58] sm:$0xff] %v15705_v0 }
  0xea   : > { %636 = vst [vmem:[#allocation2 + $0x638] sm:$0xff] %v15705_v0  ;;  %637 = vst [vmem:[#allocation2 + $0x870] sm:$0xff] %v15705_v0 }
  0xeb   : > { %638 = vst [vmem:[#allocation2 + $0xa40] sm:$0xff] %v15705_v0  ;;  %639 = vst [vmem:[#allocation2 + $0x958] sm:$0xff] %v15705_v0 }
  0xec   : > { %640 = vst [vmem:[#allocation2 + $0xbe0] sm:$0xff] %v15705_v0  ;;  %641 = vst [vmem:[#allocation2 + $0xad0] sm:$0xff] %v15705_v0 }
  0xed   : > { %642 = vst [vmem:[#allocation2 + $0xa18] sm:$0xff] %v15705_v0  ;;  %643 = vst [vmem:[#allocation2 + $0x300] sm:$0xff] %v15705_v0 }
  0xee   : > { %644 = vst [vmem:[#allocation2 + $0xa10] sm:$0xff] %v15705_v0  ;;  %645 = vst [vmem:[#allocation2 + $0xd28] sm:$0xff] %v15705_v0 }
  0xef   : > { %646 = vst [vmem:[#allocation2 + $0x480] sm:$0xff] %v15705_v0  ;;  %647 = vst [vmem:[#allocation2 + $0x240] sm:$0xff] %v15705_v0 }
  0xf0   : > { %648 = vst [vmem:[#allocation2 + $0xcf0] sm:$0xff] %v15705_v0  ;;  %649 = vst [vmem:[#allocation2 + $0x48] sm:$0xff] %v15705_v0 }
  0xf1   : > { %650 = vst [vmem:[#allocation2 + $0x4e8] sm:$0xff] %v15705_v0  ;;  %651 = vst [vmem:[#allocation2 + $0x220] sm:$0xff] %v15705_v0 }
  0xf2   : > { %652 = vst [vmem:[#allocation2 + $0x890] sm:$0xff] %v15705_v0  ;;  %653 = vst [vmem:[#allocation2 + $0x3b8] sm:$0xff] %v15705_v0 }
  0xf3   : > { %654 = vst [vmem:[#allocation2 + $0x3e8] sm:$0xff] %v15705_v0  ;;  %655 = vst [vmem:[#allocation2 + $0xe10] sm:$0xff] %v15705_v0 }
  0xf4   : > { %656 = vst [vmem:[#allocation2 + $0x248] sm:$0xff] %v15705_v0  ;;  %657 = vst [vmem:[#allocation2 + $0x3f0] sm:$0xff] %v15705_v0 }
  0xf5   : > { %658 = vst [vmem:[#allocation2 + $0x3c8] sm:$0xff] %v15705_v0  ;;  %659 = vst [vmem:[#allocation2 + $0xc98] sm:$0xff] %v15705_v0 }
  0xf6   : > { %660 = vst [vmem:[#allocation2 + $0x280] sm:$0xff] %v15705_v0  ;;  %661 = vst [vmem:[#allocation2 + $0xa08] sm:$0xff] %v15705_v0 }
  0xf7   : > { %662 = vst [vmem:[#allocation2 + $0x540] sm:$0xff] %v15705_v0  ;;  %663 = vst [vmem:[#allocation2 + $0x378] sm:$0xff] %v15705_v0 }
  0xf8   : > { %664 = vst [vmem:[#allocation2 + $0x7d8] sm:$0xff] %v15705_v0  ;;  %665 = vst [vmem:[#allocation2 + $0x68] sm:$0xff] %v15705_v0 }
  0xf9   : > { %666 = vst [vmem:[#allocation2 + $0xd38] sm:$0xff] %v15705_v0  ;;  %667 = vst [vmem:[#allocation2 + $0x190] sm:$0xff] %v15705_v0 }
  0xfa   : > { %668 = vst [vmem:[#allocation2 + $0x548] sm:$0xff] %v15705_v0  ;;  %669 = vst [vmem:[#allocation2 + $0x1e8] sm:$0xff] %v15705_v0 }
  0xfb   : > { %670 = vst [vmem:[#allocation2 + $0xc08] sm:$0xff] %v15705_v0  ;;  %671 = vst [vmem:[#allocation2 + $0x2a0] sm:$0xff] %v15705_v0 }
  0xfc   : > { %672 = vst [vmem:[#allocation2 + $0x408] sm:$0xff] %v15705_v0  ;;  %673 = vst [vmem:[#allocation2 + $0x7e8] sm:$0xff] %v15705_v0 }
  0xfd   : > { %674 = vst [vmem:[#allocation2 + $0xc68] sm:$0xff] %v15705_v0  ;;  %675 = vst [vmem:[#allocation2 + $0x658] sm:$0xff] %v15705_v0 }
  0xfe   : > { %676 = vst [vmem:[#allocation2 + $0xf60] sm:$0xff] %v15705_v0  ;;  %677 = vst [vmem:[#allocation2 + $0xfc0] sm:$0xff] %v15705_v0 }
  0xff   : > { %678 = vst [vmem:[#allocation2 + $0x5e8] sm:$0xff] %v15705_v0  ;;  %679 = vst [vmem:[#allocation2 + $0x440] sm:$0xff] %v15705_v0 }
 0x100   : > { %680 = vst [vmem:[#allocation2 + $0xff0] sm:$0xff] %v15705_v0  ;;  %681 = vst [vmem:[#allocation2 + $0x720] sm:$0xff] %v15705_v0 }
 0x101   : > { %682 = vst [vmem:[#allocation2 + $0x5d8] sm:$0xff] %v15705_v0  ;;  %683 = vst [vmem:[#allocation2 + $0xb70] sm:$0xff] %v15705_v0 }
 0x102   : > { %684 = vst [vmem:[#allocation2 + $0x2c8] sm:$0xff] %v15705_v0  ;;  %685 = vst [vmem:[#allocation2 + $0x738] sm:$0xff] %v15705_v0 }
 0x103   : > { %686 = vst [vmem:[#allocation2 + $0x808] sm:$0xff] %v15705_v0  ;;  %687 = vst [vmem:[#allocation2 + $0x60] sm:$0xff] %v15705_v0 }
 0x104   : > { %688 = vst [vmem:[#allocation2 + $0x6c0] sm:$0xff] %v15705_v0  ;;  %689 = vst [vmem:[#allocation2 + $0xae8] sm:$0xff] %v15705_v0 }
 0x105   : > { %690 = vst [vmem:[#allocation2 + $0xfb8] sm:$0xff] %v15705_v0  ;;  %691 = vst [vmem:[#allocation2 + $0xb0] sm:$0xff] %v15705_v0 }
 0x106   : > { %692 = vst [vmem:[#allocation2 + $0xdd8] sm:$0xff] %v15705_v0  ;;  %693 = vst [vmem:[#allocation2 + $0xa30] sm:$0xff] %v15705_v0 }
 0x107   : > { %694 = vst [vmem:[#allocation2 + $0x1d0] sm:$0xff] %v15705_v0  ;;  %695 = vst [vmem:[#allocation2 + $0xdd0] sm:$0xff] %v15705_v0 }
 0x108   : > { %696 = vst [vmem:[#allocation2 + $0x3a0] sm:$0xff] %v15705_v0  ;;  %697 = vst [vmem:[#allocation2 + $0x9b8] sm:$0xff] %v15705_v0 }
 0x109   : > { %698 = vst [vmem:[#allocation2 + $0x198] sm:$0xff] %v15705_v0  ;;  %699 = vst [vmem:[#allocation2 + $0xcd0] sm:$0xff] %v15705_v0 }
 0x10a   : > { %700 = vst [vmem:[#allocation2 + $0x5f0] sm:$0xff] %v15705_v0  ;;  %701 = vst [vmem:[#allocation2 + $0x7a0] sm:$0xff] %v15705_v0 }
 0x10b   : > { %702 = vst [vmem:[#allocation2 + $0x1f0] sm:$0xff] %v15705_v0  ;;  %703 = vst [vmem:[#allocation2 + $0xd88] sm:$0xff] %v15705_v0 }
 0x10c   : > { %704 = vst [vmem:[#allocation2 + $0xef0] sm:$0xff] %v15705_v0  ;;  %705 = vst [vmem:[#allocation2 + $0x148] sm:$0xff] %v15705_v0 }
 0x10d   : > { %706 = vst [vmem:[#allocation2 + $0x6b8] sm:$0xff] %v15705_v0  ;;  %707 = vst [vmem:[#allocation2 + $0xf58] sm:$0xff] %v15705_v0 }
 0x10e   : > { %708 = vst [vmem:[#allocation2 + $0xa70] sm:$0xff] %v15705_v0  ;;  %709 = vst [vmem:[#allocation2 + $0xe70] sm:$0xff] %v15705_v0 }
 0x10f   : > { %710 = vst [vmem:[#allocation2 + $0x7d0] sm:$0xff] %v15705_v0  ;;  %711 = vst [vmem:[#allocation2 + $0xe18] sm:$0xff] %v15705_v0 }
 0x110   : > { %712 = vst [vmem:[#allocation2 + $0x518] sm:$0xff] %v15705_v0  ;;  %713 = vst [vmem:[#allocation2 + $0x9f0] sm:$0xff] %v15705_v0 }
 0x111   : > { %714 = vst [vmem:[#allocation2 + $0x6a0] sm:$0xff] %v15705_v0  ;;  %715 = vst [vmem:[#allocation2 + $0xf0] sm:$0xff] %v15705_v0 }
 0x112   : > { %716 = vst [vmem:[#allocation2 + $0x218] sm:$0xff] %v15705_v0  ;;  %717 = vst [vmem:[#allocation2 + $0x58] sm:$0xff] %v15705_v0 }
 0x113   : > { %718 = vst [vmem:[#allocation2 + $0x28] sm:$0xff] %v15705_v0  ;;  %719 = vst [vmem:[#allocation2 + $0xc18] sm:$0xff] %v15705_v0 }
 0x114   : > { %720 = vst [vmem:[#allocation2 + $0x290] sm:$0xff] %v15705_v0  ;;  %721 = vst [vmem:[#allocation2 + $0x4e0] sm:$0xff] %v15705_v0 }
 0x115   : > { %722 = vst [vmem:[#allocation2 + $0x10] sm:$0xff] %v15705_v0  ;;  %723 = vst [vmem:[#allocation2 + $0xa68] sm:$0xff] %v15705_v0 }
 0x116   : > { %724 = vst [vmem:[#allocation2 + $0xf30] sm:$0xff] %v15705_v0  ;;  %725 = vst [vmem:[#allocation2 + $0x680] sm:$0xff] %v15705_v0 }
 0x117   : > { %726 = vst [vmem:[#allocation2 + $0x108] sm:$0xff] %v15705_v0  ;;  %727 = vst [vmem:[#allocation2 + $0x778] sm:$0xff] %v15705_v0 }
 0x118   : > { %728 = vst [vmem:[#allocation2 + $0x368] sm:$0xff] %v15705_v0  ;;  %729 = vst [vmem:[#allocation2 + $0x110] sm:$0xff] %v15705_v0 }
 0x119   : > { %730 = vst [vmem:[#allocation2 + $0xaa0] sm:$0xff] %v15705_v0  ;;  %731 = vst [vmem:[#allocation2 + $0xee0] sm:$0xff] %v15705_v0 }
 0x11a   : > { %732 = vst [vmem:[#allocation2 + $0x260] sm:$0xff] %v15705_v0  ;;  %733 = vst [vmem:[#allocation2 + $0x3a8] sm:$0xff] %v15705_v0 }
 0x11b   : > { %734 = vst [vmem:[#allocation2 + $0xf68] sm:$0xff] %v15705_v0  ;;  %735 = vst [vmem:[#allocation2 + $0x880] sm:$0xff] %v15705_v0 }
 0x11c   : > { %736 = vst [vmem:[#allocation2 + $0x4f0] sm:$0xff] %v15705_v0  ;;  %737 = vst [vmem:[#allocation2 + $0x850] sm:$0xff] %v15705_v0 }
 0x11d   : > { %738 = vst [vmem:[#allocation2 + $0xd10] sm:$0xff] %v15705_v0  ;;  %739 = vst [vmem:[#allocation2 + $0xb38] sm:$0xff] %v15705_v0 }
 0x11e   : > { %740 = vst [vmem:[#allocation2 + $0x8f0] sm:$0xff] %v15705_v0  ;;  %741 = vst [vmem:[#allocation2 + $0x798] sm:$0xff] %v15705_v0 }
 0x11f   : > { %742 = vst [vmem:[#allocation2 + $0x238] sm:$0xff] %v15705_v0  ;;  %743 = vst [vmem:[#allocation2 + $0xa00] sm:$0xff] %v15705_v0 }
 0x120   : > { %744 = vst [vmem:[#allocation2 + $0xd18] sm:$0xff] %v15705_v0  ;;  %745 = vst [vmem:[#allocation2 + $0xd40] sm:$0xff] %v15705_v0 }
 0x121   : > { %746 = vst [vmem:[#allocation2 + $0xa80] sm:$0xff] %v15705_v0  ;;  %747 = vst [vmem:[#allocation2 + $0x2b0] sm:$0xff] %v15705_v0 }
 0x122   : > { %748 = vst [vmem:[#allocation2 + $0x740] sm:$0xff] %v15705_v0  ;;  %749 = vst [vmem:[#allocation2 + $0xaa8] sm:$0xff] %v15705_v0 }
 0x123   : > { %750 = vst [vmem:[#allocation2 + $0xfa8] sm:$0xff] %v15705_v0  ;;  %751 = vst [vmem:[#allocation2 + $0xa98] sm:$0xff] %v15705_v0 }
 0x124   : > { %752 = vst [vmem:[#allocation2 + $0xc78] sm:$0xff] %v15705_v0  ;;  %753 = vst [vmem:[#allocation2 + $0x2d8] sm:$0xff] %v15705_v0 }
 0x125   : > { %754 = vst [vmem:[#allocation2 + $0xc30] sm:$0xff] %v15705_v0  ;;  %755 = vst [vmem:[#allocation2 + $0xf10] sm:$0xff] %v15705_v0 }
 0x126   : > { %756 = vst [vmem:[#allocation2 + $0x460] sm:$0xff] %v15705_v0  ;;  %757 = vst [vmem:[#allocation2 + $0x898] sm:$0xff] %v15705_v0 }
 0x127   : > { %758 = vst [vmem:[#allocation2 + $0x538] sm:$0xff] %v15705_v0  ;;  %759 = vst [vmem:[#allocation2 + $0x328] sm:$0xff] %v15705_v0 }
 0x128   : > { %760 = vst [vmem:[#allocation2 + $0xa50] sm:$0xff] %v15705_v0  ;;  %761 = vst [vmem:[#allocation2 + $0x7b0] sm:$0xff] %v15705_v0 }
 0x129   : > { %762 = vst [vmem:[#allocation2 + $0xdf8] sm:$0xff] %v15705_v0  ;;  %763 = vst [vmem:[#allocation2 + $0x9a0] sm:$0xff] %v15705_v0 }
 0x12a   : > { %764 = vst [vmem:[#allocation2 + $0xe38] sm:$0xff] %v15705_v0  ;;  %765 = vst [vmem:[#allocation2 + $0x390] sm:$0xff] %v15705_v0 }
 0x12b   : > { %766 = vst [vmem:[#allocation2 + $0x7e0] sm:$0xff] %v15705_v0  ;;  %767 = vst [vmem:[#allocation2 + $0x900] sm:$0xff] %v15705_v0 }
 0x12c   : > { %768 = vst [vmem:[#allocation2 + $0x4c0] sm:$0xff] %v15705_v0  ;;  %769 = vst [vmem:[#allocation2 + $0x710] sm:$0xff] %v15705_v0 }
 0x12d   : > { %770 = vst [vmem:[#allocation2 + $0x508] sm:$0xff] %v15705_v0  ;;  %771 = vst [vmem:[#allocation2 + $0x9e8] sm:$0xff] %v15705_v0 }
 0x12e   : > { %772 = vst [vmem:[#allocation2 + $0x938] sm:$0xff] %v15705_v0  ;;  %773 = vst [vmem:[#allocation2 + $0x558] sm:$0xff] %v15705_v0 }
 0x12f   : > { %774 = vst [vmem:[#allocation2 + $0xac0] sm:$0xff] %v15705_v0  ;;  %775 = vst [vmem:[#allocation2 + $0x930] sm:$0xff] %v15705_v0 }
 0x130   : > { %776 = vst [vmem:[#allocation2 + $0x988] sm:$0xff] %v15705_v0  ;;  %777 = vst [vmem:[#allocation2 + $0x348] sm:$0xff] %v15705_v0 }
 0x131   : > { %778 = vst [vmem:[#allocation2 + $0xc90] sm:$0xff] %v15705_v0  ;;  %779 = vst [vmem:[#allocation2 + $0xce8] sm:$0xff] %v15705_v0 }
 0x132   : > { %780 = vst [vmem:[#allocation2 + $0xcf8] sm:$0xff] %v15705_v0  ;;  %781 = vst [vmem:[#allocation2 + $0x1a8] sm:$0xff] %v15705_v0 }
 0x133   : > { %782 = vst [vmem:[#allocation2 + $0x4a8] sm:$0xff] %v15705_v0  ;;  %783 = vst [vmem:[#allocation2 + $0x40] sm:$0xff] %v15705_v0 }
 0x134   : > { %784 = vst [vmem:[#allocation2 + $0x1c8] sm:$0xff] %v15705_v0  ;;  %785 = vst [vmem:[#allocation2 + $0xfe8] sm:$0xff] %v15705_v0 }
 0x135   : > { %786 = vst [vmem:[#allocation2 + $0xd98] sm:$0xff] %v15705_v0  ;;  %787 = vst [vmem:[#allocation2 + $0x150] sm:$0xff] %v15705_v0 }
 0x136   : > { %788 = vst [vmem:[#allocation2 + $0x400] sm:$0xff] %v15705_v0  ;;  %789 = vst [vmem:[#allocation2 + $0x298] sm:$0xff] %v15705_v0 }
 0x137   : > { %790 = vst [vmem:[#allocation2 + $0x730] sm:$0xff] %v15705_v0  ;;  %791 = vst [vmem:[#allocation2 + $0x3c0] sm:$0xff] %v15705_v0 }
 0x138   : > { %792 = vst [vmem:[#allocation2 + $0x2c0] sm:$0xff] %v15705_v0  ;;  %793 = vst [vmem:[#allocation2 + $0x4a0] sm:$0xff] %v15705_v0 }
 0x139 PF: > { %v14725_v1 = vld [vmem:[%s15785_s26 + $0x38] sm:$0xff]   ;;  %v15706_v2 = vmov 0   ;;  %v14726_v3 = vld [vmem:[%s15785_s26 + $0x30] sm:$0xff]   ;;  %v14727_v4 = vld [vmem:[%s15785_s26 + $0x28] sm:$0xff]   ;;  %p13125_p6 = scmp.ne.s32.totalorder %s15775_s13, %s15773_s12 }
 0x13a   : > { %4506 = vmatprep.subr.bf16.mxu0 %v15706_v2  ;;  %14649 = vmatprep.subr.bf16.mxu1 %v15706_v2  ;;  %v14728_v5 = vld [vmem:[%s15785_s26 + $0x20] sm:$0xff]   ;;  %v14729_v6 = vld [vmem:[%s15785_s26 + $0x18] sm:$0xff]   ;;  %v14730_v8 = vld [vmem:[%s15785_s26 + $0x10] sm:$0xff]  }
 0x13b   : > { %4507 = vmatpush1.bf16.msra.mxu0 %v14725_v1  ;;  %14665 = vmatpush1.bf16.msra.mxu1 %v14725_v1  ;;  %v14743_v7 = vld [vmem:[%s15780_s21 + $0x4] ss:$8 sps:$4 sm:$0xff]   ;;  %v14733_v12 = vld [vmem:[%s15785_s26 + $0x78] sm:$0xff]   ;;  %v14734_v13 = vld [vmem:[%s15785_s26 + $0x70] sm:$0xff]  }
 0x13c   : > { %4508 = vmatprep.subr.bf16.mxu0 %v15706_v2  ;;  %14650 = vmatprep.subr.bf16.mxu1 %v15706_v2  ;;  %v14746_v9 = vld [vmem:[%s15780_s21 + $0x804] ss:$8 sps:$4 sm:$0xff]   ;;  %v14737_v16 = vld [vmem:[%s15785_s26 + $0x58] sm:$0xff]   ;;  %v14738_v17 = vld [vmem:[%s15785_s26 + $0x50] sm:$0xff]  }
 0x13d   : > { %4538 = vmatprep.mubr.bf16.mxu0 %v14743_v7  ;;  %5562 = vmatprep.mubr.bf16.mxu1 %v14746_v9  ;;  %v14731_v10 = vld [vmem:[%s15785_s26 + $0x8] sm:$0xff]   ;;  %v14732_v11 = vld [vmem:[%s15785_s26] sm:$0xff]   ;;  %v14747_v22 = vld [vmem:[%s15780_s21 + $0x14] ss:$8 sps:$4 sm:$0xff]  }
 0x13e   : > { %v14735_v14 = vld [vmem:[%s15785_s26 + $0x68] sm:$0xff]   ;;  %v14736_v15 = vld [vmem:[%s15785_s26 + $0x60] sm:$0xff]   ;;  %v14749_v23 = vld [vmem:[%s15780_s21 + $0x814] ss:$8 sps:$4 sm:$0xff]  }
 0x13f   : > { %4509 = vmatpush1.bf16.msra.mxu0 %v14726_v3  ;;  %14666 = vmatpush1.bf16.msra.mxu1 %v14726_v3  ;;  %v14739_v18 = vld [vmem:[%s15785_s26 + $0x48] sm:$0xff]   ;;  %v14740_v19 = vld [vmem:[%s15785_s26 + $0x40] sm:$0xff]   ;;  %v14751_v24 = vld [vmem:[%s15780_s21 + $0x10] ss:$8 sps:$4 sm:$0xff]  }
 0x140   : > { %4510 = vmatprep.subr.bf16.mxu0 %v15706_v2  ;;  %14651 = vmatprep.subr.bf16.mxu1 %v15706_v2  ;;  %v14741_v20 = vld [vmem:[%s15780_s21] ss:$8 sps:$4 sm:$0xff]   ;;  %v14752_v25 = vld [vmem:[%s15780_s21 + $0x810] ss:$8 sps:$4 sm:$0xff]   ;;  %v14753_v26 = vld [vmem:[%s15780_s21 + $0x24] ss:$8 sps:$4 sm:$0xff]  }
 0x141   : > { %v14744_v21 = vld [vmem:[%s15780_s21 + $0x800] ss:$8 sps:$4 sm:$0xff]   ;;  %v14755_v27 = vld [vmem:[%s15780_s21 + $0x824] ss:$8 sps:$4 sm:$0xff]   ;;  %v14759_v30 = vld [vmem:[%s15780_s21 + $0x34] ss:$8 sps:$4 sm:$0xff]  }
 0x142   : > { %v14757_v28 = vld [vmem:[%s15780_s21 + $0x20] ss:$8 sps:$4 sm:$0xff]   ;;  %v14761_v31 = vld [vmem:[%s15780_s21 + $0x834] ss:$8 sps:$4 sm:$0xff]   ;;  %v14763_v32 = vld [vmem:[%s15780_s21 + $0x30] ss:$8 sps:$4 sm:$0xff]  }
 0x143   : > { %4511 = vmatpush1.bf16.msra.mxu0 %v14727_v4  ;;  %14667 = vmatpush1.bf16.msra.mxu1 %v14727_v4  ;;  %v14758_v29 = vld [vmem:[%s15780_s21 + $0x820] ss:$8 sps:$4 sm:$0xff]   ;;  %v14764_v33 = vld [vmem:[%s15780_s21 + $0x830] ss:$8 sps:$4 sm:$0xff]   ;;  %v14765_v34 = vld [vmem:[%s15780_s21 + $0x44] ss:$8 sps:$4 sm:$0xff]  }
 0x144   : > { %4512 = vmatprep.subr.bf16.mxu0 %v15706_v2  ;;  %14652 = vmatprep.subr.bf16.mxu1 %v15706_v2  ;;  %v14767_v35 = vld [vmem:[%s15780_s21 + $0x844] ss:$8 sps:$4 sm:$0xff]   ;;  %v14769_v36 = vld [vmem:[%s15780_s21 + $0x40] ss:$8 sps:$4 sm:$0xff]   ;;  %v14771_v38 = vld [vmem:[%s15780_s21 + $0x54] ss:$8 sps:$4 sm:$0xff]  }
 0x145   : > { %v14770_v37 = vld [vmem:[%s15780_s21 + $0x840] ss:$8 sps:$4 sm:$0xff]   ;;  %v14773_v39 = vld [vmem:[%s15780_s21 + $0x854] ss:$8 sps:$4 sm:$0xff]   ;;  %v14775_v40 = vld [vmem:[%s15780_s21 + $0x50] ss:$8 sps:$4 sm:$0xff]  }
 0x146   : > { %v14776_v41 = vld [vmem:[%s15780_s21 + $0x850] ss:$8 sps:$4 sm:$0xff]   ;;  %v14777_v42 = vld [vmem:[%s15780_s21 + $0x64] ss:$8 sps:$4 sm:$0xff]   ;;  %v14781_v44 = vld [vmem:[%s15780_s21 + $0x60] ss:$8 sps:$4 sm:$0xff]  }
 0x147   : > { %4513 = vmatpush1.bf16.msra.mxu0 %v14728_v5  ;;  %14668 = vmatpush1.bf16.msra.mxu1 %v14728_v5  ;;  %v14779_v43 = vld [vmem:[%s15780_s21 + $0x864] ss:$8 sps:$4 sm:$0xff]   ;;  %v14782_v45 = vld [vmem:[%s15780_s21 + $0x860] ss:$8 sps:$4 sm:$0xff]   ;;  %v14783_v46 = vld [vmem:[%s15780_s21 + $0x74] ss:$8 sps:$4 sm:$0xff]  }
 0x148   : > { %4514 = vmatprep.subr.bf16.mxu0 %v15706_v2  ;;  %14653 = vmatprep.subr.bf16.mxu1 %v15706_v2  ;;  %v14785_v47 = vld [vmem:[%s15780_s21 + $0x874] ss:$8 sps:$4 sm:$0xff]   ;;  %v14787_v48 = vld [vmem:[%s15780_s21 + $0x70] ss:$8 sps:$4 sm:$0xff]   ;;  %v14789_v50 = vld [vmem:[%s15780_s21 + $0x84] ss:$8 sps:$4 sm:$0xff]  }
 0x149   : > { %v14788_v49 = vld [vmem:[%s15780_s21 + $0x870] ss:$8 sps:$4 sm:$0xff]   ;;  %v14791_v51 = vld [vmem:[%s15780_s21 + $0x884] ss:$8 sps:$4 sm:$0xff]   ;;  %v14793_v52 = vld [vmem:[%s15780_s21 + $0x80] ss:$8 sps:$4 sm:$0xff]  }
 0x14a   : > { %v14794_v53 = vld [vmem:[%s15780_s21 + $0x880] ss:$8 sps:$4 sm:$0xff]   ;;  %v14795_v54 = vld [vmem:[%s15780_s21 + $0x94] ss:$8 sps:$4 sm:$0xff]   ;;  %v14799_v56 = vld [vmem:[%s15780_s21 + $0x90] ss:$8 sps:$4 sm:$0xff]  }
 0x14b   : > { %4515 = vmatpush1.bf16.msra.mxu0 %v14729_v6  ;;  %14669 = vmatpush1.bf16.msra.mxu1 %v14729_v6  ;;  %v14797_v55 = vld [vmem:[%s15780_s21 + $0x894] ss:$8 sps:$4 sm:$0xff]   ;;  %v14800_v57 = vld [vmem:[%s15780_s21 + $0x890] ss:$8 sps:$4 sm:$0xff]   ;;  %v14801_v58 = vld [vmem:[%s15780_s21 + $0xa4] ss:$8 sps:$4 sm:$0xff]  }
 0x14c   : > { %4516 = vmatprep.subr.bf16.mxu0 %v15706_v2  ;;  %14654 = vmatprep.subr.bf16.mxu1 %v15706_v2  ;;  %v14803_v59 = vld [vmem:[%s15780_s21 + $0x8a4] ss:$8 sps:$4 sm:$0xff]   ;;  %v14805_v60 = vld [vmem:[%s15780_s21 + $0xa0] ss:$8 sps:$4 sm:$0xff]   ;;  %v14807_v62 = vld [vmem:[%s15780_s21 + $0xb4] ss:$8 sps:$4 sm:$0xff]  }
 0x14d   : > { %v14806_v61 = vld [vmem:[%s15780_s21 + $0x8a0] ss:$8 sps:$4 sm:$0xff]   ;;  %v14809_v63 = vld [vmem:[%s15780_s21 + $0x8b4] ss:$8 sps:$4 sm:$0xff]   ;;  %v14811_v0 = vld [vmem:[%s15780_s21 + $0xb0] ss:$8 sps:$4 sm:$0xff]  }
 0x14e   : > { %v14812_v1 = vld [vmem:[%s15780_s21 + $0x8b0] ss:$8 sps:$4 sm:$0xff]   ;;  %v14815_v3 = vld [vmem:[%s15780_s21 + $0x8c4] ss:$8 sps:$4 sm:$0xff]   ;;  %v14817_v4 = vld [vmem:[%s15780_s21 + $0xc0] ss:$8 sps:$4 sm:$0xff]  }
 0x14f   : > { %4517 = vmatpush1.bf16.msra.mxu0 %v14730_v8  ;;  %14670 = vmatpush1.bf16.msra.mxu1 %v14730_v8  ;;  %v14818_v5 = vld [vmem:[%s15780_s21 + $0x8c0] ss:$8 sps:$4 sm:$0xff]   ;;  %v14819_v6 = vld [vmem:[%s15780_s21 + $0xd4] ss:$8 sps:$4 sm:$0xff]   ;;  %v14823_v8 = vld [vmem:[%s15780_s21 + $0xd0] ss:$8 sps:$4 sm:$0xff]  }
 0x150   : > { %4518 = vmatprep.subr.bf16.mxu0 %v15706_v2  ;;  %14655 = vmatprep.subr.bf16.mxu1 %v15706_v2  ;;  %v14821_v7 = vld [vmem:[%s15780_s21 + $0x8d4] ss:$8 sps:$4 sm:$0xff]   ;;  %v14824_v9 = vld [vmem:[%s15780_s21 + $0x8d0] ss:$8 sps:$4 sm:$0xff]  }
 0x153   : > { %4519 = vmatpush1.bf16.msra.mxu0 %v14731_v10  ;;  %14671 = vmatpush1.bf16.msra.mxu1 %v14731_v10  ;;  %v14825_v10 = vld [vmem:[%s15780_s21 + $0xe4] ss:$8 sps:$4 sm:$0xff]  }
 0x154   : > { %4520 = vmatprep.subr.bf16.mxu0 %v15706_v2  ;;  %14656 = vmatprep.subr.bf16.mxu1 %v15706_v2 }
 0x157   : > { %4521 = vmatpush1.bf16.msra.mxu0 %v14732_v11  ;;  %14672 = vmatpush1.bf16.msra.mxu1 %v14732_v11  ;;  %v14827_v11 = vld [vmem:[%s15780_s21 + $0x8e4] ss:$8 sps:$4 sm:$0xff]  }
 0x158   : > { %4522 = vmatprep.subr.bf16.mxu0 %v15706_v2  ;;  %14657 = vmatprep.subr.bf16.mxu1 %v15706_v2 }
 0x15b   : > { %4523 = vmatpush2.bf16.msra.mxu0 %v14733_v12  ;;  %14673 = vmatpush2.bf16.msra.mxu1 %v14733_v12  ;;  %v14829_v12 = vld [vmem:[%s15780_s21 + $0xe0] ss:$8 sps:$4 sm:$0xff]  }
 0x15c   : > { %4524 = vmatprep.subr.bf16.mxu0 %v15706_v2  ;;  %14658 = vmatprep.subr.bf16.mxu1 %v15706_v2 }
 0x15f   : > { %4525 = vmatpush2.bf16.msra.mxu0 %v14734_v13  ;;  %14674 = vmatpush2.bf16.msra.mxu1 %v14734_v13  ;;  %v14830_v13 = vld [vmem:[%s15780_s21 + $0x8e0] ss:$8 sps:$4 sm:$0xff]  }
 0x160   : > { %4526 = vmatprep.subr.bf16.mxu0 %v15706_v2  ;;  %14659 = vmatprep.subr.bf16.mxu1 %v15706_v2 }
 0x163   : > { %4527 = vmatpush2.bf16.msra.mxu0 %v14735_v14  ;;  %14675 = vmatpush2.bf16.msra.mxu1 %v14735_v14  ;;  %v14831_v14 = vld [vmem:[%s15780_s21 + $0xf4] ss:$8 sps:$4 sm:$0xff]  }
 0x164   : > { %4528 = vmatprep.subr.bf16.mxu0 %v15706_v2  ;;  %14660 = vmatprep.subr.bf16.mxu1 %v15706_v2 }
 0x167   : > { %4529 = vmatpush2.bf16.msra.mxu0 %v14736_v15  ;;  %14676 = vmatpush2.bf16.msra.mxu1 %v14736_v15  ;;  %v14833_v15 = vld [vmem:[%s15780_s21 + $0x8f4] ss:$8 sps:$4 sm:$0xff]  }
 0x168   : > { %4530 = vmatprep.subr.bf16.mxu0 %v15706_v2  ;;  %14661 = vmatprep.subr.bf16.mxu1 %v15706_v2 }
 0x16b   : > { %4531 = vmatpush2.bf16.msra.mxu0 %v14737_v16  ;;  %14677 = vmatpush2.bf16.msra.mxu1 %v14737_v16  ;;  %v14835_v16 = vld [vmem:[%s15780_s21 + $0xf0] ss:$8 sps:$4 sm:$0xff]  }
 0x16c   : > { %4532 = vmatprep.subr.bf16.mxu0 %v15706_v2  ;;  %14662 = vmatprep.subr.bf16.mxu1 %v15706_v2 }
 0x16f   : > { %4533 = vmatpush2.bf16.msra.mxu0 %v14738_v17  ;;  %14678 = vmatpush2.bf16.msra.mxu1 %v14738_v17  ;;  %v14836_v17 = vld [vmem:[%s15780_s21 + $0x8f0] ss:$8 sps:$4 sm:$0xff]  }
 0x170   : > { %4534 = vmatprep.subr.bf16.mxu0 %v15706_v2  ;;  %14663 = vmatprep.subr.bf16.mxu1 %v15706_v2 }
 0x173   : > { %4535 = vmatpush2.bf16.msra.mxu0 %v14739_v18  ;;  %14679 = vmatpush2.bf16.msra.mxu1 %v14739_v18  ;;  %v14837_v18 = vld [vmem:[%s15780_s21 + $0x104] ss:$8 sps:$4 sm:$0xff]  }
 0x174   : > { %4536 = vmatprep.subr.bf16.mxu0 %v15706_v2  ;;  %14664 = vmatprep.subr.bf16.mxu1 %v15706_v2  ;;  %v14813_v2 = vld [vmem:[%s15780_s21 + $0xc4] ss:$8 sps:$4 sm:$0xff]  }
 0x177   : > { %4537 = vmatpush2.bf16.msra.mxu0 %v14740_v19  ;;  %14680 = vmatpush2.bf16.msra.mxu1 %v14740_v19  ;;  %v14839_v19 = vld [vmem:[%s15780_s21 + $0x904] ss:$8 sps:$4 sm:$0xff]  }
 0x17a   : > { %4539 = vmatmul.mubr.bf16.vlgmr.msra.gmra.mxu0 %v14741_v20  ;;  %5563 = vmatmul.mubr.bf16.vlgmr.msra.gmra.mxu1 %v14744_v21  ;;  %v14841_v20 = vld [vmem:[%s15780_s21 + $0x100] ss:$8 sps:$4 sm:$0xff]  }
 0x17b   : > { %4546 = vmatprep.mubr.bf16.mxu0 %v14747_v22  ;;  %5570 = vmatprep.mubr.bf16.mxu1 %v14749_v23  ;;  %v14842_v21 = vld [vmem:[%s15780_s21 + $0x900] ss:$8 sps:$4 sm:$0xff]   ;;  %v14843_v22 = vld [vmem:[%s15780_s21 + $0x114] ss:$8 sps:$4 sm:$0xff]  }
 0x17c   : > { %v14845_v23 = vld [vmem:[%s15780_s21 + $0x914] ss:$8 sps:$4 sm:$0xff]  }
 0x182   : > { %4547 = vmatmul.mubr.bf16.gmra.mxu0 %v14751_v24  ;;  %5571 = vmatmul.mubr.bf16.gmra.mxu1 %v14752_v25  ;;  %v14847_v24 = vld [vmem:[%s15780_s21 + $0x110] ss:$8 sps:$4 sm:$0xff]  }
 0x183   : > { %4554 = vmatprep.mubr.bf16.mxu0 %v14753_v26  ;;  %5578 = vmatprep.mubr.bf16.mxu1 %v14755_v27  ;;  %v14848_v25 = vld [vmem:[%s15780_s21 + $0x910] ss:$8 sps:$4 sm:$0xff]   ;;  %v14849_v26 = vld [vmem:[%s15780_s21 + $0x124] ss:$8 sps:$4 sm:$0xff]  }
 0x184   : > { %v14851_v27 = vld [vmem:[%s15780_s21 + $0x924] ss:$8 sps:$4 sm:$0xff]  }
 0x18a   : > { %4555 = vmatmul.mubr.bf16.gmra.mxu0 %v14757_v28  ;;  %5579 = vmatmul.mubr.bf16.gmra.mxu1 %v14758_v29  ;;  %v14853_v28 = vld [vmem:[%s15780_s21 + $0x120] ss:$8 sps:$4 sm:$0xff]  }
 0x18b   : > { %4562 = vmatprep.mubr.bf16.mxu0 %v14759_v30  ;;  %5586 = vmatprep.mubr.bf16.mxu1 %v14761_v31  ;;  %v14854_v29 = vld [vmem:[%s15780_s21 + $0x920] ss:$8 sps:$4 sm:$0xff]   ;;  %v14855_v30 = vld [vmem:[%s15780_s21 + $0x134] ss:$8 sps:$4 sm:$0xff]  }
 0x18c   : > { %v14857_v31 = vld [vmem:[%s15780_s21 + $0x934] ss:$8 sps:$4 sm:$0xff]  }
 0x192   : > { %4563 = vmatmul.mubr.bf16.gmra.mxu0 %v14763_v32  ;;  %5587 = vmatmul.mubr.bf16.gmra.mxu1 %v14764_v33  ;;  %v14859_v32 = vld [vmem:[%s15780_s21 + $0x130] ss:$8 sps:$4 sm:$0xff]  }
 0x193   : > { %4570 = vmatprep.mubr.bf16.mxu0 %v14765_v34  ;;  %5594 = vmatprep.mubr.bf16.mxu1 %v14767_v35  ;;  %v14860_v33 = vld [vmem:[%s15780_s21 + $0x930] ss:$8 sps:$4 sm:$0xff]   ;;  %v14861_v34 = vld [vmem:[%s15780_s21 + $0x144] ss:$8 sps:$4 sm:$0xff]  }
 0x194   : > { %v14863_v35 = vld [vmem:[%s15780_s21 + $0x944] ss:$8 sps:$4 sm:$0xff]  }
 0x19a   : > { %4571 = vmatmul.mubr.bf16.gmra.mxu0 %v14769_v36  ;;  %5595 = vmatmul.mubr.bf16.gmra.mxu1 %v14770_v37  ;;  %v14865_v36 = vld [vmem:[%s15780_s21 + $0x140] ss:$8 sps:$4 sm:$0xff]  }
 0x19b   : > { %4578 = vmatprep.mubr.bf16.mxu0 %v14771_v38  ;;  %5602 = vmatprep.mubr.bf16.mxu1 %v14773_v39  ;;  %v14866_v37 = vld [vmem:[%s15780_s21 + $0x940] ss:$8 sps:$4 sm:$0xff]   ;;  %v14867_v38 = vld [vmem:[%s15780_s21 + $0x154] ss:$8 sps:$4 sm:$0xff]  }
 0x19c   : > { %v14869_v39 = vld [vmem:[%s15780_s21 + $0x954] ss:$8 sps:$4 sm:$0xff]  }
 0x1a2   : > { %4579 = vmatmul.mubr.bf16.gmra.mxu0 %v14775_v40  ;;  %5603 = vmatmul.mubr.bf16.gmra.mxu1 %v14776_v41  ;;  %v14871_v40 = vld [vmem:[%s15780_s21 + $0x150] ss:$8 sps:$4 sm:$0xff]  }
 0x1a3   : > { %4586 = vmatprep.mubr.bf16.mxu0 %v14777_v42  ;;  %5610 = vmatprep.mubr.bf16.mxu1 %v14779_v43  ;;  %v14872_v41 = vld [vmem:[%s15780_s21 + $0x950] ss:$8 sps:$4 sm:$0xff]   ;;  %v14873_v42 = vld [vmem:[%s15780_s21 + $0x164] ss:$8 sps:$4 sm:$0xff]  }
 0x1a4   : > { %v14875_v43 = vld [vmem:[%s15780_s21 + $0x964] ss:$8 sps:$4 sm:$0xff]  }
 0x1aa   : > { %4587 = vmatmul.mubr.bf16.gmra.mxu0 %v14781_v44  ;;  %5611 = vmatmul.mubr.bf16.gmra.mxu1 %v14782_v45  ;;  %v14877_v44 = vld [vmem:[%s15780_s21 + $0x160] ss:$8 sps:$4 sm:$0xff]  }
 0x1ab   : > { %4594 = vmatprep.mubr.bf16.mxu0 %v14783_v46  ;;  %5618 = vmatprep.mubr.bf16.mxu1 %v14785_v47  ;;  %v14878_v45 = vld [vmem:[%s15780_s21 + $0x960] ss:$8 sps:$4 sm:$0xff]   ;;  %v14879_v46 = vld [vmem:[%s15780_s21 + $0x174] ss:$8 sps:$4 sm:$0xff]  }
 0x1ac   : > { %v14881_v47 = vld [vmem:[%s15780_s21 + $0x974] ss:$8 sps:$4 sm:$0xff]  }
 0x1b2   : > { %4595 = vmatmul.mubr.bf16.gmra.mxu0 %v14787_v48  ;;  %5619 = vmatmul.mubr.bf16.gmra.mxu1 %v14788_v49  ;;  %v14883_v48 = vld [vmem:[%s15780_s21 + $0x170] ss:$8 sps:$4 sm:$0xff]  }
 0x1b3   : > { %4602 = vmatprep.mubr.bf16.mxu0 %v14789_v50  ;;  %5626 = vmatprep.mubr.bf16.mxu1 %v14791_v51  ;;  %v14884_v49 = vld [vmem:[%s15780_s21 + $0x970] ss:$8 sps:$4 sm:$0xff]   ;;  %v14885_v50 = vld [vmem:[%s15780_s21 + $0x184] ss:$8 sps:$4 sm:$0xff]  }
 0x1b4   : > { %v14887_v51 = vld [vmem:[%s15780_s21 + $0x984] ss:$8 sps:$4 sm:$0xff]  }
 0x1ba   : > { %4603 = vmatmul.mubr.bf16.gmra.mxu0 %v14793_v52  ;;  %5627 = vmatmul.mubr.bf16.gmra.mxu1 %v14794_v53  ;;  %v14889_v52 = vld [vmem:[%s15780_s21 + $0x180] ss:$8 sps:$4 sm:$0xff]  }
 0x1bb   : > { %4610 = vmatprep.mubr.bf16.mxu0 %v14795_v54  ;;  %5634 = vmatprep.mubr.bf16.mxu1 %v14797_v55  ;;  %v14890_v53 = vld [vmem:[%s15780_s21 + $0x980] ss:$8 sps:$4 sm:$0xff]   ;;  %v14891_v54 = vld [vmem:[%s15780_s21 + $0x194] ss:$8 sps:$4 sm:$0xff]  }
 0x1bc   : > { %v14893_v55 = vld [vmem:[%s15780_s21 + $0x994] ss:$8 sps:$4 sm:$0xff]  }
 0x1c2   : > { %4611 = vmatmul.mubr.bf16.gmra.mxu0 %v14799_v56  ;;  %5635 = vmatmul.mubr.bf16.gmra.mxu1 %v14800_v57  ;;  %v794_v56 = vld [vmem:[#allocation2 + $0xab0] sm:$0xff] }
 0x1c3   : > { %4618 = vmatprep.mubr.bf16.mxu0 %v14801_v58  ;;  %5642 = vmatprep.mubr.bf16.mxu1 %v14803_v59  ;;  %v1050_v57 = vld [vmem:[#allocation2 + $0xd70] sm:$0xff] }
 0x1ca   : > { %4619 = vmatmul.mubr.bf16.gmra.mxu0 %v14805_v60  ;;  %5643 = vmatmul.mubr.bf16.gmra.mxu1 %v14806_v61  ;;  %v795_v60 = vld [vmem:[#allocation2 + $0xbb0] sm:$0xff]  ;;  %v1051_v61 = vld [vmem:[#allocation2 + $0x448] sm:$0xff] }
 0x1cb   : > { %4626 = vmatprep.mubr.bf16.mxu0 %v14807_v62  ;;  %5650 = vmatprep.mubr.bf16.mxu1 %v14809_v63 }
 0x1d2   : > { %4627 = vmatmul.mubr.bf16.gmra.mxu0 %v14811_v0  ;;  %5651 = vmatmul.mubr.bf16.gmra.mxu1 %v14812_v1 }
 0x1d3   : > { %4634 = vmatprep.mubr.bf16.mxu0 %v14813_v2  ;;  %5658 = vmatprep.mubr.bf16.mxu1 %v14815_v3  ;;  %v14895_v2 = vld [vmem:[%s15780_s21 + $0x190] ss:$8 sps:$4 sm:$0xff]  }
 0x1da   : > { %4635 = vmatmul.mubr.bf16.gmra.mxu0 %v14817_v4  ;;  %5659 = vmatmul.mubr.bf16.gmra.mxu1 %v14818_v5  ;;  %v14896_v5 = vld [vmem:[%s15780_s21 + $0x990] ss:$8 sps:$4 sm:$0xff]  }
 0x1db   : > { %4642 = vmatprep.mubr.bf16.mxu0 %v14819_v6  ;;  %5666 = vmatprep.mubr.bf16.mxu1 %v14821_v7 }
 0x1e2   : > { %4643 = vmatmul.mubr.bf16.gmra.mxu0 %v14823_v8  ;;  %5667 = vmatmul.mubr.bf16.gmra.mxu1 %v14824_v9  ;;  %v14897_v8 = vld [vmem:[%s15780_s21 + $0x1a4] ss:$8 sps:$4 sm:$0xff]  }
 0x1e3   : > { %4650 = vmatprep.mubr.bf16.mxu0 %v14825_v10  ;;  %5674 = vmatprep.mubr.bf16.mxu1 %v14827_v11  ;;  %v14899_v9 = vld [vmem:[%s15780_s21 + $0x9a4] ss:$8 sps:$4 sm:$0xff]  }
 0x1ea   : > { %4651 = vmatmul.mubr.bf16.gmra.mxu0 %v14829_v12  ;;  %5675 = vmatmul.mubr.bf16.gmra.mxu1 %v14830_v13  ;;  %v796_v12 = vld [vmem:[#allocation2 + $0x4d8] sm:$0xff]  ;;  %v1052_v13 = vld [vmem:[#allocation2 + $0x5a0] sm:$0xff] }
 0x1eb   : > { %4658 = vmatprep.mubr.bf16.mxu0 %v14831_v14  ;;  %5682 = vmatprep.mubr.bf16.mxu1 %v14833_v15 }
 0x1f2   : > { %4659 = vmatmul.mubr.bf16.gmra.mxu0 %v14835_v16  ;;  %5683 = vmatmul.mubr.bf16.gmra.mxu1 %v14836_v17 }
 0x1f3   : > { %4666 = vmatprep.mubr.bf16.mxu0 %v14837_v18  ;;  %5690 = vmatprep.mubr.bf16.mxu1 %v14839_v19 }
 0x1fa   : > { %4667 = vmatmul.mubr.bf16.gmra.mxu0 %v14841_v20  ;;  %5691 = vmatmul.mubr.bf16.gmra.mxu1 %v14842_v21  ;;  %v797_v20 = vld [vmem:[#allocation2 + $0x818] sm:$0xff]  ;;  %v1053_v21 = vld [vmem:[#allocation2 + $0xc60] sm:$0xff] }
 0x1fb   : > { %4674 = vmatprep.mubr.bf16.mxu0 %v14843_v22  ;;  %5698 = vmatprep.mubr.bf16.mxu1 %v14845_v23 }
 0x202   : > { %4675 = vmatmul.mubr.bf16.gmra.mxu0 %v14847_v24  ;;  %5699 = vmatmul.mubr.bf16.gmra.mxu1 %v14848_v25  ;;  %v14901_v24 = vld [vmem:[%s15780_s21 + $0x1a0] ss:$8 sps:$4 sm:$0xff]  }
 0x203   : > { %4682 = vmatprep.mubr.bf16.mxu0 %v14849_v26  ;;  %5706 = vmatprep.mubr.bf16.mxu1 %v14851_v27  ;;  %v14902_v25 = vld [vmem:[%s15780_s21 + $0x9a0] ss:$8 sps:$4 sm:$0xff]  }
 0x20a   : > { %4683 = vmatmul.mubr.bf16.gmra.mxu0 %v14853_v28  ;;  %5707 = vmatmul.mubr.bf16.gmra.mxu1 %v14854_v29  ;;  %v14903_v28 = vld [vmem:[%s15780_s21 + $0x1b4] ss:$8 sps:$4 sm:$0xff]  }
 0x20b   : > { %4690 = vmatprep.mubr.bf16.mxu0 %v14855_v30  ;;  %5714 = vmatprep.mubr.bf16.mxu1 %v14857_v31  ;;  %v14905_v29 = vld [vmem:[%s15780_s21 + $0x9b4] ss:$8 sps:$4 sm:$0xff]  }
 0x212   : > { %4691 = vmatmul.mubr.bf16.gmra.mxu0 %v14859_v32  ;;  %5715 = vmatmul.mubr.bf16.gmra.mxu1 %v14860_v33  ;;  %v798_v32 = vld [vmem:[#allocation2 + $0xc50] sm:$0xff]  ;;  %v1054_v33 = vld [vmem:[#allocation2 + $0x360] sm:$0xff] }
 0x213   : > { %4698 = vmatprep.mubr.bf16.mxu0 %v14861_v34  ;;  %5722 = vmatprep.mubr.bf16.mxu1 %v14863_v35 }
 0x21a   : > { %4699 = vmatmul.mubr.bf16.gmra.mxu0 %v14865_v36  ;;  %5723 = vmatmul.mubr.bf16.gmra.mxu1 %v14866_v37 }
 0x21b   : > { %4706 = vmatprep.mubr.bf16.mxu0 %v14867_v38  ;;  %5730 = vmatprep.mubr.bf16.mxu1 %v14869_v39 }
 0x222   : > { %4707 = vmatmul.mubr.bf16.gmra.mxu0 %v14871_v40  ;;  %5731 = vmatmul.mubr.bf16.gmra.mxu1 %v14872_v41  ;;  %v799_v40 = vld [vmem:[#allocation2 + $0x810] sm:$0xff]  ;;  %v1055_v41 = vld [vmem:[#allocation2 + $0xde0] sm:$0xff] }
 0x223   : > { %4714 = vmatprep.mubr.bf16.mxu0 %v14873_v42  ;;  %5738 = vmatprep.mubr.bf16.mxu1 %v14875_v43 }
 0x22a   : > { %4715 = vmatmul.mubr.bf16.gmra.mxu0 %v14877_v44  ;;  %5739 = vmatmul.mubr.bf16.gmra.mxu1 %v14878_v45  ;;  %v14907_v44 = vld [vmem:[%s15780_s21 + $0x1b0] ss:$8 sps:$4 sm:$0xff]  }
 0x22b   : > { %4722 = vmatprep.mubr.bf16.mxu0 %v14879_v46  ;;  %5746 = vmatprep.mubr.bf16.mxu1 %v14881_v47  ;;  %v14908_v45 = vld [vmem:[%s15780_s21 + $0x9b0] ss:$8 sps:$4 sm:$0xff]  }
 0x232   : > { %4723 = vmatmul.mubr.bf16.gmra.mxu0 %v14883_v48  ;;  %5747 = vmatmul.mubr.bf16.gmra.mxu1 %v14884_v49  ;;  %v14911_v48 = vld [vmem:[%s15780_s21 + $0x1c4] ss:$8 sps:$4 sm:$0xff]  }
 0x233   : > { %4730 = vmatprep.mubr.bf16.mxu0 %v14885_v50  ;;  %5754 = vmatprep.mubr.bf16.mxu1 %v14887_v51  ;;  %v14914_v49 = vld [vmem:[%s15780_s21 + $0x9c4] ss:$8 sps:$4 sm:$0xff]  }
 0x23a   : > { %v4540_v58 = vpop.f32.mrf.mxu0  ;;  %4731 = vmatmul.mubr.bf16.gmra.mxu0 %v14889_v52  ;;  %v5564_v59 = vpop.f32.mrf.mxu1  ;;  %5755 = vmatmul.mubr.bf16.gmra.mxu1 %v14890_v53  ;;  %v800_v52 = vld [vmem:[#allocation2 + $0x770] sm:$0xff]  ;;  %v1056_v53 = vld [vmem:[#allocation2 + $0x118] sm:$0xff] }
 0x23b   : > { %v6587_v62 = vadd.f32 %v4540_v58, %v794_v56  ;;  %v6843_v63 = vadd.f32 %v5564_v59, %v1050_v57  ;;  %4738 = vmatprep.mubr.bf16.mxu0 %v14891_v54  ;;  %5762 = vmatprep.mubr.bf16.mxu1 %v14893_v55 }
 0x23c   : > { %v4542_v0 = vpop.f32.mrf.mxu0  ;;  %v5566_v1 = vpop.f32.mrf.mxu1 }
 0x23d   : > { %7099 = vst [vmem:[#allocation2 + $0xab0] sm:$0xff] %v6587_v62  ;;  %7355 = vst [vmem:[#allocation2 + $0xd70] sm:$0xff] %v6843_v63  ;;  %v14909_v0 = vld [vmem:[%s15780_s21 + $0x1c0] ss:$8 sps:$4 sm:$0xff]  }
 0x23e   : > { %v4543_v3 = vpop.f32.mrf.mxu0  ;;  %v5567_v4 = vpop.f32.mrf.mxu1  ;;  %v14912_v1 = vld [vmem:[%s15780_s21 + $0x9c0] ss:$8 sps:$4 sm:$0xff]  }
 0x23f   : > { %v6588_v6 = vadd.f32 %v4543_v3, %v795_v60  ;;  %v6844_v7 = vadd.f32 %v5567_v4, %v1051_v61  ;;  %v801_v60 = vld [vmem:[#allocation2 + $0x338] sm:$0xff]  ;;  %v1057_v61 = vld [vmem:[#allocation2 + $0x690] sm:$0xff] }
 0x240   : > { %v4545_v10 = vpop.f32.mrf.mxu0  ;;  %v5569_v11 = vpop.f32.mrf.mxu1  ;;  %v14917_v4 = vld [vmem:[%s15780_s21 + $0x1d4] ss:$8 sps:$4 sm:$0xff]  }
 0x241   : > { %7100 = vst [vmem:[#allocation2 + $0xbb0] sm:$0xff] %v6588_v6  ;;  %7356 = vst [vmem:[#allocation2 + $0x448] sm:$0xff] %v6844_v7 }
 0x242   : > { %v4548_v14 = vpop.f32.mrf.mxu0  ;;  %4739 = vmatmul.mubr.bf16.gmra.mxu0 %v14895_v2  ;;  %v5572_v15 = vpop.f32.mrf.mxu1  ;;  %5763 = vmatmul.mubr.bf16.gmra.mxu1 %v14896_v5  ;;  %v14920_v5 = vld [vmem:[%s15780_s21 + $0x9d4] ss:$8 sps:$4 sm:$0xff]  }
 0x243   : > { %v6589_v16 = vadd.f32 %v4548_v14, %v796_v12  ;;  %v6845_v17 = vadd.f32 %v5572_v15, %v1052_v13  ;;  %4746 = vmatprep.mubr.bf16.mxu0 %v14897_v8  ;;  %5770 = vmatprep.mubr.bf16.mxu1 %v14899_v9  ;;  %v802_v8 = vld [vmem:[#allocation2 + $0x450] sm:$0xff]  ;;  %v1058_v9 = vld [vmem:[#allocation2 + $0xb48] sm:$0xff] }
 0x244   : > { %v4550_v18 = vpop.f32.mrf.mxu0  ;;  %v5574_v19 = vpop.f32.mrf.mxu1 }
 0x245   : > { %7101 = vst [vmem:[#allocation2 + $0x4d8] sm:$0xff] %v6589_v16  ;;  %7357 = vst [vmem:[#allocation2 + $0x5a0] sm:$0xff] %v6845_v17  ;;  %v803_v16 = vld [vmem:[#allocation2 + $0xb88] sm:$0xff]  ;;  %v1059_v17 = vld [vmem:[#allocation2 + $0xeb0] sm:$0xff] }
 0x246   : > { %v4551_v22 = vpop.f32.mrf.mxu0  ;;  %v5575_v23 = vpop.f32.mrf.mxu1 }
 0x247   : > { %v6590_v26 = vadd.f32 %v4551_v22, %v797_v20  ;;  %v6846_v27 = vadd.f32 %v5575_v23, %v1053_v21  ;;  %v14915_v20 = vld [vmem:[%s15780_s21 + $0x1d0] ss:$8 sps:$4 sm:$0xff]  }
 0x248   : > { %v4553_v30 = vpop.f32.mrf.mxu0  ;;  %v5577_v31 = vpop.f32.mrf.mxu1  ;;  %v14918_v21 = vld [vmem:[%s15780_s21 + $0x9d0] ss:$8 sps:$4 sm:$0xff]  }
 0x249   : > { %7102 = vst [vmem:[#allocation2 + $0x818] sm:$0xff] %v6590_v26  ;;  %7358 = vst [vmem:[#allocation2 + $0xc60] sm:$0xff] %v6846_v27 }
 0x24a   : > { %v4556_v34 = vpop.f32.mrf.mxu0  ;;  %4747 = vmatmul.mubr.bf16.gmra.mxu0 %v14901_v24  ;;  %v5580_v35 = vpop.f32.mrf.mxu1  ;;  %5771 = vmatmul.mubr.bf16.gmra.mxu1 %v14902_v25  ;;  %v14923_v24 = vld [vmem:[%s15780_s21 + $0x1e4] ss:$8 sps:$4 sm:$0xff]  }
 0x24b   : > { %v6591_v36 = vadd.f32 %v4556_v34, %v798_v32  ;;  %v6847_v37 = vadd.f32 %v5580_v35, %v1054_v33  ;;  %4754 = vmatprep.mubr.bf16.mxu0 %v14903_v28  ;;  %5778 = vmatprep.mubr.bf16.mxu1 %v14905_v29  ;;  %v14926_v25 = vld [vmem:[%s15780_s21 + $0x9e4] ss:$8 sps:$4 sm:$0xff]   ;;  %v804_v28 = vld [vmem:[#allocation2 + $0x918] sm:$0xff] }
 0x24c   : > { %v4558_v38 = vpop.f32.mrf.mxu0  ;;  %v5582_v39 = vpop.f32.mrf.mxu1  ;;  %v1060_v29 = vld [vmem:[#allocation2 + $0x860] sm:$0xff] }
 0x24d   : > { %7103 = vst [vmem:[#allocation2 + $0xc50] sm:$0xff] %v6591_v36  ;;  %7359 = vst [vmem:[#allocation2 + $0x360] sm:$0xff] %v6847_v37  ;;  %v805_v36 = vld [vmem:[#allocation2 + $0xd20] sm:$0xff]  ;;  %v1061_v37 = vld [vmem:[#allocation2 + $0xcc8] sm:$0xff] }
 0x24e   : > { %v4559_v42 = vpop.f32.mrf.mxu0  ;;  %v5583_v43 = vpop.f32.mrf.mxu1 }
 0x24f   : > { %v6592_v46 = vadd.f32 %v4559_v42, %v799_v40  ;;  %v6848_v47 = vadd.f32 %v5583_v43, %v1055_v41  ;;  %v14921_v40 = vld [vmem:[%s15780_s21 + $0x1e0] ss:$8 sps:$4 sm:$0xff]  }
 0x250   : > { %v4561_v50 = vpop.f32.mrf.mxu0  ;;  %v5585_v51 = vpop.f32.mrf.mxu1  ;;  %v14924_v41 = vld [vmem:[%s15780_s21 + $0x9e0] ss:$8 sps:$4 sm:$0xff]  }
 0x251   : > { %7104 = vst [vmem:[#allocation2 + $0x810] sm:$0xff] %v6592_v46  ;;  %7360 = vst [vmem:[#allocation2 + $0xde0] sm:$0xff] %v6848_v47 }
 0x252   : > { %v4564_v54 = vpop.f32.mrf.mxu0  ;;  %4755 = vmatmul.mubr.bf16.gmra.mxu0 %v14907_v44  ;;  %v5588_v55 = vpop.f32.mrf.mxu1  ;;  %5779 = vmatmul.mubr.bf16.gmra.mxu1 %v14908_v45  ;;  %v14929_v44 = vld [vmem:[%s15780_s21 + $0x1f4] ss:$8 sps:$4 sm:$0xff]  }
 0x253   : > { %v6593_v56 = vadd.f32 %v4564_v54, %v800_v52  ;;  %v6849_v57 = vadd.f32 %v5588_v55, %v1056_v53  ;;  %4762 = vmatprep.mubr.bf16.mxu0 %v14911_v48  ;;  %5786 = vmatprep.mubr.bf16.mxu1 %v14914_v49  ;;  %v14932_v45 = vld [vmem:[%s15780_s21 + $0x9f4] ss:$8 sps:$4 sm:$0xff]   ;;  %v806_v48 = vld [vmem:[#allocation2 + $0xca0] sm:$0xff] }
 0x254   : > { %v4566_v58 = vpop.f32.mrf.mxu0  ;;  %v5590_v59 = vpop.f32.mrf.mxu1  ;;  %v1062_v49 = vld [vmem:[#allocation2 + $0xff8] sm:$0xff] }
 0x255   : > { %7105 = vst [vmem:[#allocation2 + $0x770] sm:$0xff] %v6593_v56  ;;  %7361 = vst [vmem:[#allocation2 + $0x118] sm:$0xff] %v6849_v57  ;;  %v807_v56 = vld [vmem:[#allocation2 + $0xb28] sm:$0xff]  ;;  %v1063_v57 = vld [vmem:[#allocation2 + $0x758] sm:$0xff] }
 0x256   : > { %v4567_v62 = vpop.f32.mrf.mxu0  ;;  %v5591_v63 = vpop.f32.mrf.mxu1 }
 0x257   : > { %v6594_v2 = vadd.f32 %v4567_v62, %v801_v60  ;;  %v6850_v3 = vadd.f32 %v5591_v63, %v1057_v61  ;;  %v14927_v60 = vld [vmem:[%s15780_s21 + $0x1f0] ss:$8 sps:$4 sm:$0xff]  }
 0x258   : > { %v4569_v6 = vpop.f32.mrf.mxu0  ;;  %v5593_v7 = vpop.f32.mrf.mxu1  ;;  %v14930_v61 = vld [vmem:[%s15780_s21 + $0x9f0] ss:$8 sps:$4 sm:$0xff]  }
 0x259   : > { %7106 = vst [vmem:[#allocation2 + $0x338] sm:$0xff] %v6594_v2  ;;  %7362 = vst [vmem:[#allocation2 + $0x690] sm:$0xff] %v6850_v3 }
 0x25a   : > { %v4572_v10 = vpop.f32.mrf.mxu0  ;;  %4763 = vmatmul.mubr.bf16.gmra.mxu0 %v14909_v0  ;;  %v5596_v11 = vpop.f32.mrf.mxu1  ;;  %5787 = vmatmul.mubr.bf16.gmra.mxu1 %v14912_v1  ;;  %v14935_v0 = vld [vmem:[%s15780_s21 + $0x204] ss:$8 sps:$4 sm:$0xff]  }
 0x25b   : > { %v6595_v12 = vadd.f32 %v4572_v10, %v802_v8  ;;  %v6851_v13 = vadd.f32 %v5596_v11, %v1058_v9  ;;  %4770 = vmatprep.mubr.bf16.mxu0 %v14917_v4  ;;  %5794 = vmatprep.mubr.bf16.mxu1 %v14920_v5  ;;  %v14938_v1 = vld [vmem:[%s15780_s21 + $0xa04] ss:$8 sps:$4 sm:$0xff]   ;;  %v808_v4 = vld [vmem:[#allocation2 + $0xd58] sm:$0xff]  ;;  %v1064_v5 = vld [vmem:[#allocation2 + $0x590] sm:$0xff] }
 0x25c   : > { %v4574_v14 = vpop.f32.mrf.mxu0  ;;  %v5598_v15 = vpop.f32.mrf.mxu1 }
 0x25d   : > { %7107 = vst [vmem:[#allocation2 + $0x450] sm:$0xff] %v6595_v12  ;;  %7363 = vst [vmem:[#allocation2 + $0xb48] sm:$0xff] %v6851_v13  ;;  %v809_v12 = vld [vmem:[#allocation2 + $0x510] sm:$0xff]  ;;  %v1065_v13 = vld [vmem:[#allocation2 + $0xb00] sm:$0xff] }
 0x25e   : > { %v4575_v18 = vpop.f32.mrf.mxu0  ;;  %v5599_v19 = vpop.f32.mrf.mxu1 }
 0x25f   : > { %v6596_v22 = vadd.f32 %v4575_v18, %v803_v16  ;;  %v6852_v23 = vadd.f32 %v5599_v19, %v1059_v17  ;;  %v14933_v16 = vld [vmem:[%s15780_s21 + $0x200] ss:$8 sps:$4 sm:$0xff]  }
 0x260   : > { %v4577_v26 = vpop.f32.mrf.mxu0  ;;  %v5601_v27 = vpop.f32.mrf.mxu1  ;;  %v14936_v17 = vld [vmem:[%s15780_s21 + $0xa00] ss:$8 sps:$4 sm:$0xff]  }
 0x261   : > { %7108 = vst [vmem:[#allocation2 + $0xb88] sm:$0xff] %v6596_v22  ;;  %7364 = vst [vmem:[#allocation2 + $0xeb0] sm:$0xff] %v6852_v23 }
 0x262   : > { %v4580_v30 = vpop.f32.mrf.mxu0  ;;  %4771 = vmatmul.mubr.bf16.gmra.mxu0 %v14915_v20  ;;  %v5604_v31 = vpop.f32.mrf.mxu1  ;;  %5795 = vmatmul.mubr.bf16.gmra.mxu1 %v14918_v21  ;;  %v14941_v20 = vld [vmem:[%s15780_s21 + $0x214] ss:$8 sps:$4 sm:$0xff]  }
 0x263   : > { %v6597_v32 = vadd.f32 %v4580_v30, %v804_v28  ;;  %v6853_v33 = vadd.f32 %v5604_v31, %v1060_v29  ;;  %4778 = vmatprep.mubr.bf16.mxu0 %v14923_v24  ;;  %5802 = vmatprep.mubr.bf16.mxu1 %v14926_v25  ;;  %v14944_v21 = vld [vmem:[%s15780_s21 + $0xa14] ss:$8 sps:$4 sm:$0xff]   ;;  %v810_v24 = vld [vmem:[#allocation2 + $0x728] sm:$0xff] }
 0x264   : > { %v4582_v34 = vpop.f32.mrf.mxu0  ;;  %v5606_v35 = vpop.f32.mrf.mxu1  ;;  %v1066_v25 = vld [vmem:[#allocation2 + $0x6c8] sm:$0xff] }
 0x265   : > { %7109 = vst [vmem:[#allocation2 + $0x918] sm:$0xff] %v6597_v32  ;;  %7365 = vst [vmem:[#allocation2 + $0x860] sm:$0xff] %v6853_v33  ;;  %v811_v32 = vld [vmem:[#allocation2 + $0x6e8] sm:$0xff] }
 0x266   : > { %v4583_v38 = vpop.f32.mrf.mxu0  ;;  %v5607_v39 = vpop.f32.mrf.mxu1  ;;  %v1067_v33 = vld [vmem:[#allocation2 + $0xee8] sm:$0xff] }
 0x267   : > { %v6598_v42 = vadd.f32 %v4583_v38, %v805_v36  ;;  %v6854_v43 = vadd.f32 %v5607_v39, %v1061_v37  ;;  %v14939_v36 = vld [vmem:[%s15780_s21 + $0x210] ss:$8 sps:$4 sm:$0xff]  }
 0x268   : > { %v4585_v46 = vpop.f32.mrf.mxu0  ;;  %v5609_v47 = vpop.f32.mrf.mxu1  ;;  %v14942_v37 = vld [vmem:[%s15780_s21 + $0xa10] ss:$8 sps:$4 sm:$0xff]  }
 0x269   : > { %7110 = vst [vmem:[#allocation2 + $0xd20] sm:$0xff] %v6598_v42  ;;  %7366 = vst [vmem:[#allocation2 + $0xcc8] sm:$0xff] %v6854_v43 }
 0x26a   : > { %v4588_v50 = vpop.f32.mrf.mxu0  ;;  %4779 = vmatmul.mubr.bf16.gmra.mxu0 %v14921_v40  ;;  %v5612_v51 = vpop.f32.mrf.mxu1  ;;  %5803 = vmatmul.mubr.bf16.gmra.mxu1 %v14924_v41  ;;  %v14947_v40 = vld [vmem:[%s15780_s21 + $0x224] ss:$8 sps:$4 sm:$0xff]  }
 0x26b   : > { %v6599_v52 = vadd.f32 %v4588_v50, %v806_v48  ;;  %v6855_v53 = vadd.f32 %v5612_v51, %v1062_v49  ;;  %4786 = vmatprep.mubr.bf16.mxu0 %v14929_v44  ;;  %5810 = vmatprep.mubr.bf16.mxu1 %v14932_v45  ;;  %v14950_v41 = vld [vmem:[%s15780_s21 + $0xa24] ss:$8 sps:$4 sm:$0xff]   ;;  %v812_v44 = vld [vmem:[#allocation2 + $0x790] sm:$0xff] }
 0x26c   : > { %v4590_v54 = vpop.f32.mrf.mxu0  ;;  %v5614_v55 = vpop.f32.mrf.mxu1  ;;  %v1068_v45 = vld [vmem:[#allocation2 + $0x848] sm:$0xff] }
 0x26d   : > { %7111 = vst [vmem:[#allocation2 + $0xca0] sm:$0xff] %v6599_v52  ;;  %7367 = vst [vmem:[#allocation2 + $0xff8] sm:$0xff] %v6855_v53  ;;  %v813_v52 = vld [vmem:[#allocation2 + $0x340] sm:$0xff]  ;;  %v1069_v53 = vld [vmem:[#allocation2 + $0xe78] sm:$0xff] }
 0x26e   : > { %v4591_v58 = vpop.f32.mrf.mxu0  ;;  %v5615_v59 = vpop.f32.mrf.mxu1 }
 0x26f   : > { %v6600_v62 = vadd.f32 %v4591_v58, %v807_v56  ;;  %v6856_v63 = vadd.f32 %v5615_v59, %v1063_v57  ;;  %v14945_v56 = vld [vmem:[%s15780_s21 + $0x220] ss:$8 sps:$4 sm:$0xff]  }
 0x270   : > { %v4593_v2 = vpop.f32.mrf.mxu0  ;;  %v5617_v3 = vpop.f32.mrf.mxu1  ;;  %v14948_v57 = vld [vmem:[%s15780_s21 + $0xa20] ss:$8 sps:$4 sm:$0xff]  }
 0x271   : > { %7112 = vst [vmem:[#allocation2 + $0xb28] sm:$0xff] %v6600_v62  ;;  %7368 = vst [vmem:[#allocation2 + $0x758] sm:$0xff] %v6856_v63 }
 0x272   : > { %v4596_v6 = vpop.f32.mrf.mxu0  ;;  %4787 = vmatmul.mubr.bf16.gmra.mxu0 %v14927_v60  ;;  %v5620_v7 = vpop.f32.mrf.mxu1  ;;  %5811 = vmatmul.mubr.bf16.gmra.mxu1 %v14930_v61  ;;  %v14953_v60 = vld [vmem:[%s15780_s21 + $0x234] ss:$8 sps:$4 sm:$0xff]  }
 0x273   : > { %v6601_v8 = vadd.f32 %v4596_v6, %v808_v4  ;;  %v6857_v9 = vadd.f32 %v5620_v7, %v1064_v5  ;;  %4794 = vmatprep.mubr.bf16.mxu0 %v14935_v0  ;;  %5818 = vmatprep.mubr.bf16.mxu1 %v14938_v1  ;;  %v14956_v61 = vld [vmem:[%s15780_s21 + $0xa34] ss:$8 sps:$4 sm:$0xff]   ;;  %v814_v0 = vld [vmem:[#allocation2 + $0x748] sm:$0xff]  ;;  %v1070_v1 = vld [vmem:[#allocation2 + $0x640] sm:$0xff] }
 0x274   : > { %v4598_v10 = vpop.f32.mrf.mxu0  ;;  %v5622_v11 = vpop.f32.mrf.mxu1 }
 0x275   : > { %7113 = vst [vmem:[#allocation2 + $0xd58] sm:$0xff] %v6601_v8  ;;  %7369 = vst [vmem:[#allocation2 + $0x590] sm:$0xff] %v6857_v9  ;;  %v815_v8 = vld [vmem:[#allocation2 + $0x830] sm:$0xff]  ;;  %v1071_v9 = vld [vmem:[#allocation2 + $0x258] sm:$0xff] }
 0x276   : > { %v4599_v14 = vpop.f32.mrf.mxu0  ;;  %v5623_v15 = vpop.f32.mrf.mxu1 }
 0x277   : > { %v6602_v18 = vadd.f32 %v4599_v14, %v809_v12  ;;  %v6858_v19 = vadd.f32 %v5623_v15, %v1065_v13  ;;  %v14951_v12 = vld [vmem:[%s15780_s21 + $0x230] ss:$8 sps:$4 sm:$0xff]  }
 0x278   : > { %v4601_v22 = vpop.f32.mrf.mxu0  ;;  %v5625_v23 = vpop.f32.mrf.mxu1  ;;  %v14954_v13 = vld [vmem:[%s15780_s21 + $0xa30] ss:$8 sps:$4 sm:$0xff]  }
 0x279   : > { %7114 = vst [vmem:[#allocation2 + $0x510] sm:$0xff] %v6602_v18  ;;  %7370 = vst [vmem:[#allocation2 + $0xb00] sm:$0xff] %v6858_v19 }
 0x27a   : > { %v4604_v26 = vpop.f32.mrf.mxu0  ;;  %4795 = vmatmul.mubr.bf16.gmra.mxu0 %v14933_v16  ;;  %v5628_v27 = vpop.f32.mrf.mxu1  ;;  %5819 = vmatmul.mubr.bf16.gmra.mxu1 %v14936_v17  ;;  %v14959_v16 = vld [vmem:[%s15780_s21 + $0x244] ss:$8 sps:$4 sm:$0xff]  }
 0x27b   : > { %v6603_v28 = vadd.f32 %v4604_v26, %v810_v24  ;;  %v6859_v29 = vadd.f32 %v5628_v27, %v1066_v25  ;;  %4802 = vmatprep.mubr.bf16.mxu0 %v14941_v20  ;;  %5826 = vmatprep.mubr.bf16.mxu1 %v14944_v21  ;;  %v14962_v17 = vld [vmem:[%s15780_s21 + $0xa44] ss:$8 sps:$4 sm:$0xff]   ;;  %v816_v20 = vld [vmem:[#allocation2 + $0xaf0] sm:$0xff]  ;;  %v1072_v21 = vld [vmem:[#allocation2 + $0x7f8] sm:$0xff] }
 0x27c   : > { %v4606_v30 = vpop.f32.mrf.mxu0  ;;  %v5630_v31 = vpop.f32.mrf.mxu1 }
 0x27d   : > { %7115 = vst [vmem:[#allocation2 + $0x728] sm:$0xff] %v6603_v28  ;;  %7371 = vst [vmem:[#allocation2 + $0x6c8] sm:$0xff] %v6859_v29  ;;  %v817_v28 = vld [vmem:[#allocation2 + $0x5b8] sm:$0xff] }
 0x27e   : > { %v4607_v34 = vpop.f32.mrf.mxu0  ;;  %v5631_v35 = vpop.f32.mrf.mxu1  ;;  %v1073_v29 = vld [vmem:[#allocation2 + $0x278] sm:$0xff] }
 0x27f   : > { %v6604_v38 = vadd.f32 %v4607_v34, %v811_v32  ;;  %v6860_v39 = vadd.f32 %v5631_v35, %v1067_v33  ;;  %v14957_v32 = vld [vmem:[%s15780_s21 + $0x240] ss:$8 sps:$4 sm:$0xff]  }
 0x280   : > { %v4609_v42 = vpop.f32.mrf.mxu0  ;;  %v5633_v43 = vpop.f32.mrf.mxu1  ;;  %v14960_v33 = vld [vmem:[%s15780_s21 + $0xa40] ss:$8 sps:$4 sm:$0xff]  }
 0x281   : > { %7116 = vst [vmem:[#allocation2 + $0x6e8] sm:$0xff] %v6604_v38  ;;  %7372 = vst [vmem:[#allocation2 + $0xee8] sm:$0xff] %v6860_v39 }
 0x282   : > { %v4612_v46 = vpop.f32.mrf.mxu0  ;;  %4803 = vmatmul.mubr.bf16.gmra.mxu0 %v14939_v36  ;;  %v5636_v47 = vpop.f32.mrf.mxu1  ;;  %5827 = vmatmul.mubr.bf16.gmra.mxu1 %v14942_v37  ;;  %v14965_v36 = vld [vmem:[%s15780_s21 + $0x254] ss:$8 sps:$4 sm:$0xff]  }
 0x283   : > { %v6605_v48 = vadd.f32 %v4612_v46, %v812_v44  ;;  %v6861_v49 = vadd.f32 %v5636_v47, %v1068_v45  ;;  %4810 = vmatprep.mubr.bf16.mxu0 %v14947_v40  ;;  %5834 = vmatprep.mubr.bf16.mxu1 %v14950_v41  ;;  %v14968_v37 = vld [vmem:[%s15780_s21 + $0xa54] ss:$8 sps:$4 sm:$0xff]   ;;  %v818_v40 = vld [vmem:[#allocation2 + $0x5c8] sm:$0xff] }
 0x284   : > { %v4614_v50 = vpop.f32.mrf.mxu0  ;;  %v5638_v51 = vpop.f32.mrf.mxu1  ;;  %v1074_v41 = vld [vmem:[#allocation2 + $0x648] sm:$0xff] }
 0x285   : > { %7117 = vst [vmem:[#allocation2 + $0x790] sm:$0xff] %v6605_v48  ;;  %7373 = vst [vmem:[#allocation2 + $0x848] sm:$0xff] %v6861_v49  ;;  %v819_v48 = vld [vmem:[#allocation2 + $0xd78] sm:$0xff]  ;;  %v1075_v49 = vld [vmem:[#allocation2 + $0x120] sm:$0xff] }
 0x286   : > { %v4615_v54 = vpop.f32.mrf.mxu0  ;;  %v5639_v55 = vpop.f32.mrf.mxu1 }
 0x287   : > { %v6606_v58 = vadd.f32 %v4615_v54, %v813_v52  ;;  %v6862_v59 = vadd.f32 %v5639_v55, %v1069_v53  ;;  %v14963_v52 = vld [vmem:[%s15780_s21 + $0x250] ss:$8 sps:$4 sm:$0xff]  }
 0x288   : > { %v4617_v62 = vpop.f32.mrf.mxu0  ;;  %v5641_v63 = vpop.f32.mrf.mxu1  ;;  %v14966_v53 = vld [vmem:[%s15780_s21 + $0xa50] ss:$8 sps:$4 sm:$0xff]  }
 0x289   : > { %7118 = vst [vmem:[#allocation2 + $0x340] sm:$0xff] %v6606_v58  ;;  %7374 = vst [vmem:[#allocation2 + $0xe78] sm:$0xff] %v6862_v59 }
 0x28a   : > { %v4620_v2 = vpop.f32.mrf.mxu0  ;;  %4811 = vmatmul.mubr.bf16.gmra.mxu0 %v14945_v56  ;;  %v5644_v3 = vpop.f32.mrf.mxu1  ;;  %5835 = vmatmul.mubr.bf16.gmra.mxu1 %v14948_v57  ;;  %v14971_v56 = vld [vmem:[%s15780_s21 + $0x264] ss:$8 sps:$4 sm:$0xff]  }
 0x28b   : > { %v6607_v4 = vadd.f32 %v4620_v2, %v814_v0  ;;  %v6863_v5 = vadd.f32 %v5644_v3, %v1070_v1  ;;  %4818 = vmatprep.mubr.bf16.mxu0 %v14953_v60  ;;  %5842 = vmatprep.mubr.bf16.mxu1 %v14956_v61  ;;  %v14974_v57 = vld [vmem:[%s15780_s21 + $0xa64] ss:$8 sps:$4 sm:$0xff]   ;;  %v820_v60 = vld [vmem:[#allocation2 + $0x3f8] sm:$0xff]  ;;  %v1076_v61 = vld [vmem:[#allocation2 + $0x330] sm:$0xff] }
 0x28c   : > { %v4622_v6 = vpop.f32.mrf.mxu0  ;;  %v5646_v7 = vpop.f32.mrf.mxu1 }
 0x28d   : > { %7119 = vst [vmem:[#allocation2 + $0x748] sm:$0xff] %v6607_v4  ;;  %7375 = vst [vmem:[#allocation2 + $0x640] sm:$0xff] %v6863_v5  ;;  %v821_v4 = vld [vmem:[#allocation2 + $0xf08] sm:$0xff]  ;;  %v1077_v5 = vld [vmem:[#allocation2 + $0x718] sm:$0xff] }
 0x28e   : > { %v4623_v10 = vpop.f32.mrf.mxu0  ;;  %v5647_v11 = vpop.f32.mrf.mxu1 }
 0x28f   : > { %v6608_v14 = vadd.f32 %v4623_v10, %v815_v8  ;;  %v6864_v15 = vadd.f32 %v5647_v11, %v1071_v9  ;;  %v14969_v8 = vld [vmem:[%s15780_s21 + $0x260] ss:$8 sps:$4 sm:$0xff]  }
 0x290   : > { %v4625_v18 = vpop.f32.mrf.mxu0  ;;  %v5649_v19 = vpop.f32.mrf.mxu1  ;;  %v14972_v9 = vld [vmem:[%s15780_s21 + $0xa60] ss:$8 sps:$4 sm:$0xff]  }
 0x291   : > { %7120 = vst [vmem:[#allocation2 + $0x830] sm:$0xff] %v6608_v14  ;;  %7376 = vst [vmem:[#allocation2 + $0x258] sm:$0xff] %v6864_v15 }
 0x292   : > { %v4628_v22 = vpop.f32.mrf.mxu0  ;;  %4819 = vmatmul.mubr.bf16.gmra.mxu0 %v14951_v12  ;;  %v5652_v23 = vpop.f32.mrf.mxu1  ;;  %5843 = vmatmul.mubr.bf16.gmra.mxu1 %v14954_v13  ;;  %v14977_v12 = vld [vmem:[%s15780_s21 + $0x274] ss:$8 sps:$4 sm:$0xff]  }
 0x293   : > { %v6609_v24 = vadd.f32 %v4628_v22, %v816_v20  ;;  %v6865_v25 = vadd.f32 %v5652_v23, %v1072_v21  ;;  %4826 = vmatprep.mubr.bf16.mxu0 %v14959_v16  ;;  %5850 = vmatprep.mubr.bf16.mxu1 %v14962_v17  ;;  %v14980_v13 = vld [vmem:[%s15780_s21 + $0xa74] ss:$8 sps:$4 sm:$0xff]   ;;  %v822_v16 = vld [vmem:[#allocation2 + $0xea0] sm:$0xff]  ;;  %v1078_v17 = vld [vmem:[#allocation2 + $0x968] sm:$0xff] }
 0x294   : > { %v4630_v26 = vpop.f32.mrf.mxu0  ;;  %v5654_v27 = vpop.f32.mrf.mxu1 }
 0x295   : > { %7121 = vst [vmem:[#allocation2 + $0xaf0] sm:$0xff] %v6609_v24  ;;  %7377 = vst [vmem:[#allocation2 + $0x7f8] sm:$0xff] %v6865_v25  ;;  %v823_v24 = vld [vmem:[#allocation2 + $0xb78] sm:$0xff]  ;;  %v1079_v25 = vld [vmem:[#allocation2 + $0x7f0] sm:$0xff] }
 0x296   : > { %v4631_v30 = vpop.f32.mrf.mxu0  ;;  %v5655_v31 = vpop.f32.mrf.mxu1 }
 0x297   : > { %v6610_v34 = vadd.f32 %v4631_v30, %v817_v28  ;;  %v6866_v35 = vadd.f32 %v5655_v31, %v1073_v29  ;;  %v14975_v28 = vld [vmem:[%s15780_s21 + $0x270] ss:$8 sps:$4 sm:$0xff]  }
 0x298   : > { %v4633_v38 = vpop.f32.mrf.mxu0  ;;  %v5657_v39 = vpop.f32.mrf.mxu1  ;;  %v14978_v29 = vld [vmem:[%s15780_s21 + $0xa70] ss:$8 sps:$4 sm:$0xff]  }
 0x299   : > { %7122 = vst [vmem:[#allocation2 + $0x5b8] sm:$0xff] %v6610_v34  ;;  %7378 = vst [vmem:[#allocation2 + $0x278] sm:$0xff] %v6866_v35 }
 0x29a   : > { %v4636_v42 = vpop.f32.mrf.mxu0  ;;  %4827 = vmatmul.mubr.bf16.gmra.mxu0 %v14957_v32  ;;  %v5660_v43 = vpop.f32.mrf.mxu1  ;;  %5851 = vmatmul.mubr.bf16.gmra.mxu1 %v14960_v33  ;;  %v14983_v32 = vld [vmem:[%s15780_s21 + $0x284] ss:$8 sps:$4 sm:$0xff]  }
 0x29b   : > { %v6611_v44 = vadd.f32 %v4636_v42, %v818_v40  ;;  %v6867_v45 = vadd.f32 %v5660_v43, %v1074_v41  ;;  %4834 = vmatprep.mubr.bf16.mxu0 %v14965_v36  ;;  %5858 = vmatprep.mubr.bf16.mxu1 %v14968_v37  ;;  %v14986_v33 = vld [vmem:[%s15780_s21 + $0xa84] ss:$8 sps:$4 sm:$0xff]   ;;  %v1080_v37 = vld [vmem:[#allocation2 + $0x2f8] sm:$0xff] }
 0x29c   : > { %v4638_v46 = vpop.f32.mrf.mxu0  ;;  %v5662_v47 = vpop.f32.mrf.mxu1  ;;  %v824_v36 = vld [vmem:[#allocation2 + $0x948] sm:$0xff] }
 0x29d   : > { %7123 = vst [vmem:[#allocation2 + $0x5c8] sm:$0xff] %v6611_v44  ;;  %7379 = vst [vmem:[#allocation2 + $0x648] sm:$0xff] %v6867_v45  ;;  %v825_v44 = vld [vmem:[#allocation2 + $0xbf8] sm:$0xff]  ;;  %v1081_v45 = vld [vmem:[#allocation2 + $0xc20] sm:$0xff] }
 0x29e   : > { %v4639_v50 = vpop.f32.mrf.mxu0  ;;  %v5663_v51 = vpop.f32.mrf.mxu1 }
 0x29f   : > { %v6612_v54 = vadd.f32 %v4639_v50, %v819_v48  ;;  %v6868_v55 = vadd.f32 %v5663_v51, %v1075_v49  ;;  %v14981_v48 = vld [vmem:[%s15780_s21 + $0x280] ss:$8 sps:$4 sm:$0xff]  }
 0x2a0   : > { %v4641_v58 = vpop.f32.mrf.mxu0  ;;  %v5665_v59 = vpop.f32.mrf.mxu1  ;;  %v14984_v49 = vld [vmem:[%s15780_s21 + $0xa80] ss:$8 sps:$4 sm:$0xff]  }
 0x2a1   : > { %7124 = vst [vmem:[#allocation2 + $0xd78] sm:$0xff] %v6612_v54  ;;  %7380 = vst [vmem:[#allocation2 + $0x120] sm:$0xff] %v6868_v55 }
 0x2a2   : > { %v4644_v62 = vpop.f32.mrf.mxu0  ;;  %4835 = vmatmul.mubr.bf16.gmra.mxu0 %v14963_v52  ;;  %v5668_v63 = vpop.f32.mrf.mxu1  ;;  %5859 = vmatmul.mubr.bf16.gmra.mxu1 %v14966_v53  ;;  %v14989_v52 = vld [vmem:[%s15780_s21 + $0x294] ss:$8 sps:$4 sm:$0xff]  }
 0x2a3   : > { %v6613_v0 = vadd.f32 %v4644_v62, %v820_v60  ;;  %v6869_v1 = vadd.f32 %v5668_v63, %v1076_v61  ;;  %4842 = vmatprep.mubr.bf16.mxu0 %v14971_v56  ;;  %5866 = vmatprep.mubr.bf16.mxu1 %v14974_v57  ;;  %v14992_v53 = vld [vmem:[%s15780_s21 + $0xa94] ss:$8 sps:$4 sm:$0xff]   ;;  %v1082_v57 = vld [vmem:[#allocation2] sm:$0xff] }
 0x2a4   : > { %v4646_v2 = vpop.f32.mrf.mxu0  ;;  %v5670_v3 = vpop.f32.mrf.mxu1  ;;  %v826_v56 = vld [vmem:[#allocation2 + $0x9d0] sm:$0xff] }
 0x2a5   : > { %7125 = vst [vmem:[#allocation2 + $0x3f8] sm:$0xff] %v6613_v0  ;;  %7381 = vst [vmem:[#allocation2 + $0x330] sm:$0xff] %v6869_v1  ;;  %v827_v0 = vld [vmem:[#allocation2 + $0xa90] sm:$0xff]  ;;  %v1083_v1 = vld [vmem:[#allocation2 + $0xe8] sm:$0xff] }
 0x2a6   : > { %v4647_v6 = vpop.f32.mrf.mxu0  ;;  %v5671_v7 = vpop.f32.mrf.mxu1 }
 0x2a7   : > { %v6614_v10 = vadd.f32 %v4647_v6, %v821_v4  ;;  %v6870_v11 = vadd.f32 %v5671_v7, %v1077_v5  ;;  %v14987_v4 = vld [vmem:[%s15780_s21 + $0x290] ss:$8 sps:$4 sm:$0xff]  }
 0x2a8   : > { %v4649_v14 = vpop.f32.mrf.mxu0  ;;  %v5673_v15 = vpop.f32.mrf.mxu1  ;;  %v14990_v5 = vld [vmem:[%s15780_s21 + $0xa90] ss:$8 sps:$4 sm:$0xff]  }
 0x2a9   : > { %7126 = vst [vmem:[#allocation2 + $0xf08] sm:$0xff] %v6614_v10  ;;  %7382 = vst [vmem:[#allocation2 + $0x718] sm:$0xff] %v6870_v11 }
 0x2aa   : > { %v4652_v18 = vpop.f32.mrf.mxu0  ;;  %4843 = vmatmul.mubr.bf16.gmra.mxu0 %v14969_v8  ;;  %v5676_v19 = vpop.f32.mrf.mxu1  ;;  %5867 = vmatmul.mubr.bf16.gmra.mxu1 %v14972_v9  ;;  %v14995_v8 = vld [vmem:[%s15780_s21 + $0x2a4] ss:$8 sps:$4 sm:$0xff]  }
 0x2ab   : > { %v6615_v20 = vadd.f32 %v4652_v18, %v822_v16  ;;  %v6871_v21 = vadd.f32 %v5676_v19, %v1078_v17  ;;  %4850 = vmatprep.mubr.bf16.mxu0 %v14977_v12  ;;  %5874 = vmatprep.mubr.bf16.mxu1 %v14980_v13  ;;  %v14998_v9 = vld [vmem:[%s15780_s21 + $0xaa4] ss:$8 sps:$4 sm:$0xff]   ;;  %v828_v12 = vld [vmem:[#allocation2 + $0x910] sm:$0xff] }
 0x2ac   : > { %v4654_v22 = vpop.f32.mrf.mxu0  ;;  %v5678_v23 = vpop.f32.mrf.mxu1  ;;  %v1084_v13 = vld [vmem:[#allocation2 + $0xfd0] sm:$0xff] }
 0x2ad   : > { %7127 = vst [vmem:[#allocation2 + $0xea0] sm:$0xff] %v6615_v20  ;;  %7383 = vst [vmem:[#allocation2 + $0x968] sm:$0xff] %v6871_v21  ;;  %v829_v20 = vld [vmem:[#allocation2 + $0xbd0] sm:$0xff]  ;;  %v1085_v21 = vld [vmem:[#allocation2 + $0x8a8] sm:$0xff] }
 0x2ae   : > { %v4655_v26 = vpop.f32.mrf.mxu0  ;;  %v5679_v27 = vpop.f32.mrf.mxu1 }
 0x2af   : > { %v6616_v30 = vadd.f32 %v4655_v26, %v823_v24  ;;  %v6872_v31 = vadd.f32 %v5679_v27, %v1079_v25  ;;  %v14993_v24 = vld [vmem:[%s15780_s21 + $0x2a0] ss:$8 sps:$4 sm:$0xff]  }
 0x2b0   : > { %v4657_v34 = vpop.f32.mrf.mxu0  ;;  %v5681_v35 = vpop.f32.mrf.mxu1  ;;  %v14996_v25 = vld [vmem:[%s15780_s21 + $0xaa0] ss:$8 sps:$4 sm:$0xff]  }
 0x2b1   : > { %7128 = vst [vmem:[#allocation2 + $0xb78] sm:$0xff] %v6616_v30  ;;  %7384 = vst [vmem:[#allocation2 + $0x7f0] sm:$0xff] %v6872_v31 }
 0x2b2   : > { %v4660_v38 = vpop.f32.mrf.mxu0  ;;  %4851 = vmatmul.mubr.bf16.gmra.mxu0 %v14975_v28  ;;  %v5684_v39 = vpop.f32.mrf.mxu1  ;;  %5875 = vmatmul.mubr.bf16.gmra.mxu1 %v14978_v29  ;;  %v15001_v28 = vld [vmem:[%s15780_s21 + $0x2b4] ss:$8 sps:$4 sm:$0xff]  }
 0x2b3   : > { %v6617_v40 = vadd.f32 %v4660_v38, %v824_v36  ;;  %v6873_v41 = vadd.f32 %v5684_v39, %v1080_v37  ;;  %4858 = vmatprep.mubr.bf16.mxu0 %v14983_v32  ;;  %5882 = vmatprep.mubr.bf16.mxu1 %v14986_v33  ;;  %v15004_v29 = vld [vmem:[%s15780_s21 + $0xab4] ss:$8 sps:$4 sm:$0xff]   ;;  %v830_v32 = vld [vmem:[#allocation2 + $0xd68] sm:$0xff] }
 0x2b4   : > { %v4662_v42 = vpop.f32.mrf.mxu0  ;;  %v5686_v43 = vpop.f32.mrf.mxu1  ;;  %v1086_v33 = vld [vmem:[#allocation2 + $0xad8] sm:$0xff] }
 0x2b5   : > { %7129 = vst [vmem:[#allocation2 + $0x948] sm:$0xff] %v6617_v40  ;;  %7385 = vst [vmem:[#allocation2 + $0x2f8] sm:$0xff] %v6873_v41  ;;  %v831_v40 = vld [vmem:[#allocation2 + $0xbf0] sm:$0xff]  ;;  %v1087_v41 = vld [vmem:[#allocation2 + $0x878] sm:$0xff] }
 0x2b6   : > { %v4663_v46 = vpop.f32.mrf.mxu0  ;;  %v5687_v47 = vpop.f32.mrf.mxu1 }
 0x2b7   : > { %v6618_v50 = vadd.f32 %v4663_v46, %v825_v44  ;;  %v6874_v51 = vadd.f32 %v5687_v47, %v1081_v45  ;;  %v14999_v44 = vld [vmem:[%s15780_s21 + $0x2b0] ss:$8 sps:$4 sm:$0xff]  }
 0x2b8   : > { %v4665_v54 = vpop.f32.mrf.mxu0  ;;  %v5689_v55 = vpop.f32.mrf.mxu1  ;;  %v15002_v45 = vld [vmem:[%s15780_s21 + $0xab0] ss:$8 sps:$4 sm:$0xff]  }
 0x2b9   : > { %7130 = vst [vmem:[#allocation2 + $0xbf8] sm:$0xff] %v6618_v50  ;;  %7386 = vst [vmem:[#allocation2 + $0xc20] sm:$0xff] %v6874_v51 }
 0x2ba   : > { %v4668_v58 = vpop.f32.mrf.mxu0  ;;  %4859 = vmatmul.mubr.bf16.gmra.mxu0 %v14981_v48  ;;  %v5692_v59 = vpop.f32.mrf.mxu1  ;;  %5883 = vmatmul.mubr.bf16.gmra.mxu1 %v14984_v49  ;;  %v15007_v48 = vld [vmem:[%s15780_s21 + $0x2c4] ss:$8 sps:$4 sm:$0xff]  }
 0x2bb   : > { %v6619_v60 = vadd.f32 %v4668_v58, %v826_v56  ;;  %v6875_v61 = vadd.f32 %v5692_v59, %v1082_v57  ;;  %4866 = vmatprep.mubr.bf16.mxu0 %v14989_v52  ;;  %5890 = vmatprep.mubr.bf16.mxu1 %v14992_v53  ;;  %v15010_v49 = vld [vmem:[%s15780_s21 + $0xac4] ss:$8 sps:$4 sm:$0xff]  }
 0x2bc   : > { %v4670_v62 = vpop.f32.mrf.mxu0  ;;  %v5694_v63 = vpop.f32.mrf.mxu1  ;;  %v832_v52 = vld [vmem:[#allocation2 + $0x868] sm:$0xff]  ;;  %v1088_v53 = vld [vmem:[#allocation2 + $0x80] sm:$0xff] }
 0x2bd   : > { %7131 = vst [vmem:[#allocation2 + $0x9d0] sm:$0xff] %v6619_v60  ;;  %7387 = vst [vmem:[#allocation2] sm:$0xff] %v6875_v61  ;;  %v833_v60 = vld [vmem:[#allocation2 + $0xe30] sm:$0xff]  ;;  %v1089_v61 = vld [vmem:[#allocation2 + $0xda8] sm:$0xff] }
 0x2be   : > { %v4671_v2 = vpop.f32.mrf.mxu0  ;;  %v5695_v3 = vpop.f32.mrf.mxu1 }
 0x2bf   : > { %v6620_v6 = vadd.f32 %v4671_v2, %v827_v0  ;;  %v6876_v7 = vadd.f32 %v5695_v3, %v1083_v1  ;;  %v15005_v0 = vld [vmem:[%s15780_s21 + $0x2c0] ss:$8 sps:$4 sm:$0xff]  }
 0x2c0   : > { %v4673_v10 = vpop.f32.mrf.mxu0  ;;  %v5697_v11 = vpop.f32.mrf.mxu1  ;;  %v15008_v1 = vld [vmem:[%s15780_s21 + $0xac0] ss:$8 sps:$4 sm:$0xff]  }
 0x2c1   : > { %7132 = vst [vmem:[#allocation2 + $0xa90] sm:$0xff] %v6620_v6  ;;  %7388 = vst [vmem:[#allocation2 + $0xe8] sm:$0xff] %v6876_v7 }
 0x2c2   : > { %v4676_v14 = vpop.f32.mrf.mxu0  ;;  %4867 = vmatmul.mubr.bf16.gmra.mxu0 %v14987_v4  ;;  %v5700_v15 = vpop.f32.mrf.mxu1  ;;  %5891 = vmatmul.mubr.bf16.gmra.mxu1 %v14990_v5  ;;  %v15013_v4 = vld [vmem:[%s15780_s21 + $0x2d4] ss:$8 sps:$4 sm:$0xff]  }
 0x2c3   : > { %v6621_v16 = vadd.f32 %v4676_v14, %v828_v12  ;;  %v6877_v17 = vadd.f32 %v5700_v15, %v1084_v13  ;;  %4874 = vmatprep.mubr.bf16.mxu0 %v14995_v8  ;;  %5898 = vmatprep.mubr.bf16.mxu1 %v14998_v9  ;;  %v15016_v5 = vld [vmem:[%s15780_s21 + $0xad4] ss:$8 sps:$4 sm:$0xff]  }
 0x2c4   : > { %v4678_v18 = vpop.f32.mrf.mxu0  ;;  %v5702_v19 = vpop.f32.mrf.mxu1  ;;  %v834_v8 = vld [vmem:[#allocation2 + $0xcd8] sm:$0xff]  ;;  %v1090_v9 = vld [vmem:[#allocation2 + $0x670] sm:$0xff] }
 0x2c5   : > { %7133 = vst [vmem:[#allocation2 + $0x910] sm:$0xff] %v6621_v16  ;;  %7389 = vst [vmem:[#allocation2 + $0xfd0] sm:$0xff] %v6877_v17  ;;  %v835_v16 = vld [vmem:[#allocation2 + $0x18] sm:$0xff]  ;;  %v1091_v17 = vld [vmem:[#allocation2 + $0xda0] sm:$0xff] }
 0x2c6   : > { %v4679_v22 = vpop.f32.mrf.mxu0  ;;  %v5703_v23 = vpop.f32.mrf.mxu1 }
 0x2c7   : > { %v6622_v26 = vadd.f32 %v4679_v22, %v829_v20  ;;  %v6878_v27 = vadd.f32 %v5703_v23, %v1085_v21  ;;  %v15011_v20 = vld [vmem:[%s15780_s21 + $0x2d0] ss:$8 sps:$4 sm:$0xff]  }
 0x2c8   : > { %v4681_v30 = vpop.f32.mrf.mxu0  ;;  %v5705_v31 = vpop.f32.mrf.mxu1  ;;  %v15014_v21 = vld [vmem:[%s15780_s21 + $0xad0] ss:$8 sps:$4 sm:$0xff]  }
 0x2c9   : > { %7134 = vst [vmem:[#allocation2 + $0xbd0] sm:$0xff] %v6622_v26  ;;  %7390 = vst [vmem:[#allocation2 + $0x8a8] sm:$0xff] %v6878_v27 }
 0x2ca   : > { %v4684_v34 = vpop.f32.mrf.mxu0  ;;  %4875 = vmatmul.mubr.bf16.gmra.mxu0 %v14993_v24  ;;  %v5708_v35 = vpop.f32.mrf.mxu1  ;;  %5899 = vmatmul.mubr.bf16.gmra.mxu1 %v14996_v25  ;;  %v15019_v24 = vld [vmem:[%s15780_s21 + $0x2e4] ss:$8 sps:$4 sm:$0xff]  }
 0x2cb   : > { %v6623_v36 = vadd.f32 %v4684_v34, %v830_v32  ;;  %v6879_v37 = vadd.f32 %v5708_v35, %v1086_v33  ;;  %4882 = vmatprep.mubr.bf16.mxu0 %v15001_v28  ;;  %5906 = vmatprep.mubr.bf16.mxu1 %v15004_v29  ;;  %v15022_v25 = vld [vmem:[%s15780_s21 + $0xae4] ss:$8 sps:$4 sm:$0xff]   ;;  %v1092_v29 = vld [vmem:[#allocation2 + $0x530] sm:$0xff] }
 0x2cc   : > { %v4686_v38 = vpop.f32.mrf.mxu0  ;;  %v5710_v39 = vpop.f32.mrf.mxu1  ;;  %v836_v28 = vld [vmem:[#allocation2 + $0x528] sm:$0xff] }
 0x2cd   : > { %7135 = vst [vmem:[#allocation2 + $0xd68] sm:$0xff] %v6623_v36  ;;  %7391 = vst [vmem:[#allocation2 + $0xad8] sm:$0xff] %v6879_v37  ;;  %v837_v36 = vld [vmem:[#allocation2 + $0xfd8] sm:$0xff]  ;;  %v1093_v37 = vld [vmem:[#allocation2 + $0x20] sm:$0xff] }
 0x2ce   : > { %v4687_v42 = vpop.f32.mrf.mxu0  ;;  %v5711_v43 = vpop.f32.mrf.mxu1 }
 0x2cf   : > { %v6624_v46 = vadd.f32 %v4687_v42, %v831_v40  ;;  %v6880_v47 = vadd.f32 %v5711_v43, %v1087_v41  ;;  %v15017_v40 = vld [vmem:[%s15780_s21 + $0x2e0] ss:$8 sps:$4 sm:$0xff]  }
 0x2d0   : > { %v4689_v50 = vpop.f32.mrf.mxu0  ;;  %v5713_v51 = vpop.f32.mrf.mxu1  ;;  %v15020_v41 = vld [vmem:[%s15780_s21 + $0xae0] ss:$8 sps:$4 sm:$0xff]  }
 0x2d1   : > { %7136 = vst [vmem:[#allocation2 + $0xbf0] sm:$0xff] %v6624_v46  ;;  %7392 = vst [vmem:[#allocation2 + $0x878] sm:$0xff] %v6880_v47 }
 0x2d2   : > { %v4692_v54 = vpop.f32.mrf.mxu0  ;;  %4883 = vmatmul.mubr.bf16.gmra.mxu0 %v14999_v44  ;;  %v5716_v55 = vpop.f32.mrf.mxu1  ;;  %5907 = vmatmul.mubr.bf16.gmra.mxu1 %v15002_v45  ;;  %v15025_v44 = vld [vmem:[%s15780_s21 + $0x2f4] ss:$8 sps:$4 sm:$0xff]  }
 0x2d3   : > { %v6625_v56 = vadd.f32 %v4692_v54, %v832_v52  ;;  %v6881_v57 = vadd.f32 %v5716_v55, %v1088_v53  ;;  %4890 = vmatprep.mubr.bf16.mxu0 %v15007_v48  ;;  %5914 = vmatprep.mubr.bf16.mxu1 %v15010_v49  ;;  %v15028_v45 = vld [vmem:[%s15780_s21 + $0xaf4] ss:$8 sps:$4 sm:$0xff]   ;;  %v838_v48 = vld [vmem:[#allocation2 + $0x420] sm:$0xff] }
 0x2d4   : > { %v4694_v58 = vpop.f32.mrf.mxu0  ;;  %v5718_v59 = vpop.f32.mrf.mxu1  ;;  %v1094_v49 = vld [vmem:[#allocation2 + $0xf70] sm:$0xff] }
 0x2d5   : > { %7137 = vst [vmem:[#allocation2 + $0x868] sm:$0xff] %v6625_v56  ;;  %7393 = vst [vmem:[#allocation2 + $0x80] sm:$0xff] %v6881_v57  ;;  %v839_v56 = vld [vmem:[#allocation2 + $0x940] sm:$0xff]  ;;  %v1095_v57 = vld [vmem:[#allocation2 + $0xeb8] sm:$0xff] }
 0x2d6   : > { %v4695_v62 = vpop.f32.mrf.mxu0  ;;  %v5719_v63 = vpop.f32.mrf.mxu1 }
 0x2d7   : > { %v6626_v2 = vadd.f32 %v4695_v62, %v833_v60  ;;  %v6882_v3 = vadd.f32 %v5719_v63, %v1089_v61  ;;  %v15023_v60 = vld [vmem:[%s15780_s21 + $0x2f0] ss:$8 sps:$4 sm:$0xff]  }
 0x2d8   : > { %v4697_v6 = vpop.f32.mrf.mxu0  ;;  %v5721_v7 = vpop.f32.mrf.mxu1  ;;  %v15026_v61 = vld [vmem:[%s15780_s21 + $0xaf0] ss:$8 sps:$4 sm:$0xff]  }
 0x2d9   : > { %7138 = vst [vmem:[#allocation2 + $0xe30] sm:$0xff] %v6626_v2  ;;  %7394 = vst [vmem:[#allocation2 + $0xda8] sm:$0xff] %v6882_v3 }
 0x2da   : > { %v4700_v10 = vpop.f32.mrf.mxu0  ;;  %4891 = vmatmul.mubr.bf16.gmra.mxu0 %v15005_v0  ;;  %v5724_v11 = vpop.f32.mrf.mxu1  ;;  %5915 = vmatmul.mubr.bf16.gmra.mxu1 %v15008_v1  ;;  %v15031_v0 = vld [vmem:[%s15780_s21 + $0x304] ss:$8 sps:$4 sm:$0xff]  }
 0x2db   : > { %v6627_v12 = vadd.f32 %v4700_v10, %v834_v8  ;;  %v6883_v13 = vadd.f32 %v5724_v11, %v1090_v9  ;;  %4898 = vmatprep.mubr.bf16.mxu0 %v15013_v4  ;;  %5922 = vmatprep.mubr.bf16.mxu1 %v15016_v5  ;;  %v15034_v1 = vld [vmem:[%s15780_s21 + $0xb04] ss:$8 sps:$4 sm:$0xff]   ;;  %v840_v4 = vld [vmem:[#allocation2 + $0xed0] sm:$0xff] }
 0x2dc   : > { %v4702_v14 = vpop.f32.mrf.mxu0  ;;  %v5726_v15 = vpop.f32.mrf.mxu1  ;;  %v1096_v5 = vld [vmem:[#allocation2 + $0x88] sm:$0xff] }
 0x2dd   : > { %7139 = vst [vmem:[#allocation2 + $0xcd8] sm:$0xff] %v6627_v12  ;;  %7395 = vst [vmem:[#allocation2 + $0x670] sm:$0xff] %v6883_v13  ;;  %v841_v12 = vld [vmem:[#allocation2 + $0x160] sm:$0xff]  ;;  %v1097_v13 = vld [vmem:[#allocation2 + $0x318] sm:$0xff] }
 0x2de   : > { %v4703_v18 = vpop.f32.mrf.mxu0  ;;  %v5727_v19 = vpop.f32.mrf.mxu1 }
 0x2df   : > { %v6628_v22 = vadd.f32 %v4703_v18, %v835_v16  ;;  %v6884_v23 = vadd.f32 %v5727_v19, %v1091_v17  ;;  %v15029_v16 = vld [vmem:[%s15780_s21 + $0x300] ss:$8 sps:$4 sm:$0xff]  }
 0x2e0   : > { %v4705_v26 = vpop.f32.mrf.mxu0  ;;  %v5729_v27 = vpop.f32.mrf.mxu1  ;;  %v15032_v17 = vld [vmem:[%s15780_s21 + $0xb00] ss:$8 sps:$4 sm:$0xff]  }
 0x2e1   : > { %7140 = vst [vmem:[#allocation2 + $0x18] sm:$0xff] %v6628_v22  ;;  %7396 = vst [vmem:[#allocation2 + $0xda0] sm:$0xff] %v6884_v23 }
 0x2e2   : > { %v4708_v30 = vpop.f32.mrf.mxu0  ;;  %4899 = vmatmul.mubr.bf16.gmra.mxu0 %v15011_v20  ;;  %v5732_v31 = vpop.f32.mrf.mxu1  ;;  %5923 = vmatmul.mubr.bf16.gmra.mxu1 %v15014_v21  ;;  %v15037_v20 = vld [vmem:[%s15780_s21 + $0x314] ss:$8 sps:$4 sm:$0xff]  }
 0x2e3   : > { %v6629_v32 = vadd.f32 %v4708_v30, %v836_v28  ;;  %v6885_v33 = vadd.f32 %v5732_v31, %v1092_v29  ;;  %4906 = vmatprep.mubr.bf16.mxu0 %v15019_v24  ;;  %5930 = vmatprep.mubr.bf16.mxu1 %v15022_v25  ;;  %v15040_v21 = vld [vmem:[%s15780_s21 + $0xb14] ss:$8 sps:$4 sm:$0xff]   ;;  %v842_v24 = vld [vmem:[#allocation2 + $0x8e8] sm:$0xff]  ;;  %v1098_v25 = vld [vmem:[#allocation2 + $0x520] sm:$0xff] }
 0x2e4   : > { %v4710_v34 = vpop.f32.mrf.mxu0  ;;  %v5734_v35 = vpop.f32.mrf.mxu1 }
 0x2e5   : > { %7141 = vst [vmem:[#allocation2 + $0x528] sm:$0xff] %v6629_v32  ;;  %7397 = vst [vmem:[#allocation2 + $0x530] sm:$0xff] %v6885_v33  ;;  %v843_v32 = vld [vmem:[#allocation2 + $0x8b0] sm:$0xff] }
 0x2e6   : > { %v4711_v38 = vpop.f32.mrf.mxu0  ;;  %v5735_v39 = vpop.f32.mrf.mxu1  ;;  %v1099_v33 = vld [vmem:[#allocation2 + $0x430] sm:$0xff] }
 0x2e7   : > { %v6630_v42 = vadd.f32 %v4711_v38, %v837_v36  ;;  %v6886_v43 = vadd.f32 %v5735_v39, %v1093_v37  ;;  %v15035_v36 = vld [vmem:[%s15780_s21 + $0x310] ss:$8 sps:$4 sm:$0xff]  }
 0x2e8   : > { %v4713_v46 = vpop.f32.mrf.mxu0  ;;  %v5737_v47 = vpop.f32.mrf.mxu1  ;;  %v15038_v37 = vld [vmem:[%s15780_s21 + $0xb10] ss:$8 sps:$4 sm:$0xff]  }
 0x2e9   : > { %7142 = vst [vmem:[#allocation2 + $0xfd8] sm:$0xff] %v6630_v42  ;;  %7398 = vst [vmem:[#allocation2 + $0x20] sm:$0xff] %v6886_v43 }
 0x2ea   : > { %v4716_v50 = vpop.f32.mrf.mxu0  ;;  %4907 = vmatmul.mubr.bf16.gmra.mxu0 %v15017_v40  ;;  %v5740_v51 = vpop.f32.mrf.mxu1  ;;  %5931 = vmatmul.mubr.bf16.gmra.mxu1 %v15020_v41  ;;  %v15043_v40 = vld [vmem:[%s15780_s21 + $0x324] ss:$8 sps:$4 sm:$0xff]  }
 0x2eb   : > { %v6631_v52 = vadd.f32 %v4716_v50, %v838_v48  ;;  %v6887_v53 = vadd.f32 %v5740_v51, %v1094_v49  ;;  %4914 = vmatprep.mubr.bf16.mxu0 %v15025_v44  ;;  %5938 = vmatprep.mubr.bf16.mxu1 %v15028_v45  ;;  %v15046_v41 = vld [vmem:[%s15780_s21 + $0xb24] ss:$8 sps:$4 sm:$0xff]   ;;  %v1100_v45 = vld [vmem:[#allocation2 + $0x8b8] sm:$0xff] }
 0x2ec   : > { %v4718_v54 = vpop.f32.mrf.mxu0  ;;  %v5742_v55 = vpop.f32.mrf.mxu1  ;;  %v844_v44 = vld [vmem:[#allocation2 + $0x320] sm:$0xff] }
 0x2ed   : > { %7143 = vst [vmem:[#allocation2 + $0x420] sm:$0xff] %v6631_v52  ;;  %7399 = vst [vmem:[#allocation2 + $0xf70] sm:$0xff] %v6887_v53  ;;  %v845_v52 = vld [vmem:[#allocation2 + $0x700] sm:$0xff]  ;;  %v1101_v53 = vld [vmem:[#allocation2 + $0x4b0] sm:$0xff] }
 0x2ee   : > { %v4719_v58 = vpop.f32.mrf.mxu0  ;;  %v5743_v59 = vpop.f32.mrf.mxu1 }
 0x2ef   : > { %v6632_v62 = vadd.f32 %v4719_v58, %v839_v56  ;;  %v6888_v63 = vadd.f32 %v5743_v59, %v1095_v57  ;;  %v15041_v56 = vld [vmem:[%s15780_s21 + $0x320] ss:$8 sps:$4 sm:$0xff]  }
 0x2f0   : > { %v4721_v2 = vpop.f32.mrf.mxu0  ;;  %v5745_v3 = vpop.f32.mrf.mxu1  ;;  %v15044_v57 = vld [vmem:[%s15780_s21 + $0xb20] ss:$8 sps:$4 sm:$0xff]  }
 0x2f1   : > { %7144 = vst [vmem:[#allocation2 + $0x940] sm:$0xff] %v6632_v62  ;;  %7400 = vst [vmem:[#allocation2 + $0xeb8] sm:$0xff] %v6888_v63 }
 0x2f2   : > { %v4724_v6 = vpop.f32.mrf.mxu0  ;;  %4915 = vmatmul.mubr.bf16.gmra.mxu0 %v15023_v60  ;;  %v5748_v7 = vpop.f32.mrf.mxu1  ;;  %5939 = vmatmul.mubr.bf16.gmra.mxu1 %v15026_v61  ;;  %v15049_v60 = vld [vmem:[%s15780_s21 + $0x334] ss:$8 sps:$4 sm:$0xff]  }
 0x2f3   : > { %v6633_v8 = vadd.f32 %v4724_v6, %v840_v4  ;;  %v6889_v9 = vadd.f32 %v5748_v7, %v1096_v5  ;;  %4922 = vmatprep.mubr.bf16.mxu0 %v15031_v0  ;;  %5946 = vmatprep.mubr.bf16.mxu1 %v15034_v1  ;;  %v15052_v61 = vld [vmem:[%s15780_s21 + $0xb34] ss:$8 sps:$4 sm:$0xff]  }
 0x2f4   : > { %v4726_v10 = vpop.f32.mrf.mxu0  ;;  %v5750_v11 = vpop.f32.mrf.mxu1  ;;  %v846_v0 = vld [vmem:[#allocation2 + $0x5f8] sm:$0xff] }
 0x2f5   : > { %7145 = vst [vmem:[#allocation2 + $0xed0] sm:$0xff] %v6633_v8  ;;  %7401 = vst [vmem:[#allocation2 + $0x88] sm:$0xff] %v6889_v9  ;;  %v1102_v1 = vld [vmem:[#allocation2 + $0xa38] sm:$0xff]  ;;  %v847_v8 = vld [vmem:[#allocation2 + $0x620] sm:$0xff] }
 0x2f6   : > { %v4727_v14 = vpop.f32.mrf.mxu0  ;;  %v5751_v15 = vpop.f32.mrf.mxu1  ;;  %v1103_v9 = vld [vmem:[#allocation2 + $0x588] sm:$0xff] }
 0x2f7   : > { %v6634_v18 = vadd.f32 %v4727_v14, %v841_v12  ;;  %v6890_v19 = vadd.f32 %v5751_v15, %v1097_v13  ;;  %v15047_v12 = vld [vmem:[%s15780_s21 + $0x330] ss:$8 sps:$4 sm:$0xff]  }
 0x2f8   : > { %v4729_v22 = vpop.f32.mrf.mxu0  ;;  %v5753_v23 = vpop.f32.mrf.mxu1  ;;  %v15050_v13 = vld [vmem:[%s15780_s21 + $0xb30] ss:$8 sps:$4 sm:$0xff]  }
 0x2f9   : > { %7146 = vst [vmem:[#allocation2 + $0x160] sm:$0xff] %v6634_v18  ;;  %7402 = vst [vmem:[#allocation2 + $0x318] sm:$0xff] %v6890_v19 }
 0x2fa   : > { %v4732_v26 = vpop.f32.mrf.mxu0  ;;  %4923 = vmatmul.mubr.bf16.gmra.mxu0 %v15029_v16  ;;  %v5756_v27 = vpop.f32.mrf.mxu1  ;;  %5947 = vmatmul.mubr.bf16.gmra.mxu1 %v15032_v17  ;;  %v15055_v16 = vld [vmem:[%s15780_s21 + $0x344] ss:$8 sps:$4 sm:$0xff]  }
 0x2fb   : > { %v6635_v28 = vadd.f32 %v4732_v26, %v842_v24  ;;  %v6891_v29 = vadd.f32 %v5756_v27, %v1098_v25  ;;  %4930 = vmatprep.mubr.bf16.mxu0 %v15037_v20  ;;  %5954 = vmatprep.mubr.bf16.mxu1 %v15040_v21  ;;  %v15058_v17 = vld [vmem:[%s15780_s21 + $0xb44] ss:$8 sps:$4 sm:$0xff]   ;;  %v848_v20 = vld [vmem:[#allocation2 + $0x630] sm:$0xff] }
 0x2fc   : > { %v4734_v30 = vpop.f32.mrf.mxu0  ;;  %v5758_v31 = vpop.f32.mrf.mxu1  ;;  %v1104_v21 = vld [vmem:[#allocation2 + $0xd80] sm:$0xff] }
 0x2fd   : > { %7147 = vst [vmem:[#allocation2 + $0x8e8] sm:$0xff] %v6635_v28  ;;  %7403 = vst [vmem:[#allocation2 + $0x520] sm:$0xff] %v6891_v29  ;;  %v849_v28 = vld [vmem:[#allocation2 + $0x7a8] sm:$0xff]  ;;  %v1105_v29 = vld [vmem:[#allocation2 + $0xa0] sm:$0xff] }
 0x2fe   : > { %v4735_v34 = vpop.f32.mrf.mxu0  ;;  %v5759_v35 = vpop.f32.mrf.mxu1 }
 0x2ff   : > { %v6636_v38 = vadd.f32 %v4735_v34, %v843_v32  ;;  %v6892_v39 = vadd.f32 %v5759_v35, %v1099_v33  ;;  %v15053_v32 = vld [vmem:[%s15780_s21 + $0x340] ss:$8 sps:$4 sm:$0xff]  }
 0x300   : > { %v4737_v42 = vpop.f32.mrf.mxu0  ;;  %v5761_v43 = vpop.f32.mrf.mxu1  ;;  %v15056_v33 = vld [vmem:[%s15780_s21 + $0xb40] ss:$8 sps:$4 sm:$0xff]  }
 0x301   : > { %7148 = vst [vmem:[#allocation2 + $0x8b0] sm:$0xff] %v6636_v38  ;;  %7404 = vst [vmem:[#allocation2 + $0x430] sm:$0xff] %v6892_v39 }
 0x302   : > { %v4740_v46 = vpop.f32.mrf.mxu0  ;;  %4931 = vmatmul.mubr.bf16.gmra.mxu0 %v15035_v36  ;;  %v5764_v47 = vpop.f32.mrf.mxu1  ;;  %5955 = vmatmul.mubr.bf16.gmra.mxu1 %v15038_v37  ;;  %v15061_v36 = vld [vmem:[%s15780_s21 + $0x354] ss:$8 sps:$4 sm:$0xff]  }
 0x303   : > { %v6637_v48 = vadd.f32 %v4740_v46, %v844_v44  ;;  %v6893_v49 = vadd.f32 %v5764_v47, %v1100_v45  ;;  %4938 = vmatprep.mubr.bf16.mxu0 %v15043_v40  ;;  %5962 = vmatprep.mubr.bf16.mxu1 %v15046_v41  ;;  %v15064_v37 = vld [vmem:[%s15780_s21 + $0xb54] ss:$8 sps:$4 sm:$0xff]  }
 0x304   : > { %v4742_v50 = vpop.f32.mrf.mxu0  ;;  %v5766_v51 = vpop.f32.mrf.mxu1  ;;  %v850_v40 = vld [vmem:[#allocation2 + $0x70] sm:$0xff] }
 0x305   : > { %7149 = vst [vmem:[#allocation2 + $0x320] sm:$0xff] %v6637_v48  ;;  %7405 = vst [vmem:[#allocation2 + $0x8b8] sm:$0xff] %v6893_v49  ;;  %v1106_v41 = vld [vmem:[#allocation2 + $0x550] sm:$0xff]  ;;  %v851_v48 = vld [vmem:[#allocation2 + $0x678] sm:$0xff] }
 0x306   : > { %v4743_v54 = vpop.f32.mrf.mxu0  ;;  %v5767_v55 = vpop.f32.mrf.mxu1  ;;  %v1107_v49 = vld [vmem:[#allocation2 + $0xf98] sm:$0xff] }
 0x307   : > { %v6638_v58 = vadd.f32 %v4743_v54, %v845_v52  ;;  %v6894_v59 = vadd.f32 %v5767_v55, %v1101_v53  ;;  %v15059_v52 = vld [vmem:[%s15780_s21 + $0x350] ss:$8 sps:$4 sm:$0xff]  }
 0x308   : > { %v4745_v62 = vpop.f32.mrf.mxu0  ;;  %v5769_v63 = vpop.f32.mrf.mxu1  ;;  %v15062_v53 = vld [vmem:[%s15780_s21 + $0xb50] ss:$8 sps:$4 sm:$0xff]  }
 0x309   : > { %7150 = vst [vmem:[#allocation2 + $0x700] sm:$0xff] %v6638_v58  ;;  %7406 = vst [vmem:[#allocation2 + $0x4b0] sm:$0xff] %v6894_v59 }
 0x30a   : > { %v4748_v2 = vpop.f32.mrf.mxu0  ;;  %4939 = vmatmul.mubr.bf16.gmra.mxu0 %v15041_v56  ;;  %v5772_v3 = vpop.f32.mrf.mxu1  ;;  %5963 = vmatmul.mubr.bf16.gmra.mxu1 %v15044_v57  ;;  %v15067_v56 = vld [vmem:[%s15780_s21 + $0x364] ss:$8 sps:$4 sm:$0xff]  }
 0x30b   : > { %v6639_v4 = vadd.f32 %v4748_v2, %v846_v0  ;;  %v6895_v5 = vadd.f32 %v5772_v3, %v1102_v1  ;;  %4946 = vmatprep.mubr.bf16.mxu0 %v15049_v60  ;;  %5970 = vmatprep.mubr.bf16.mxu1 %v15052_v61  ;;  %v15070_v57 = vld [vmem:[%s15780_s21 + $0xb64] ss:$8 sps:$4 sm:$0xff]   ;;  %v1108_v61 = vld [vmem:[#allocation2 + $0x4f8] sm:$0xff] }
 0x30c   : > { %v4750_v6 = vpop.f32.mrf.mxu0  ;;  %v5774_v7 = vpop.f32.mrf.mxu1  ;;  %v852_v60 = vld [vmem:[#allocation2 + $0xa88] sm:$0xff] }
 0x30d   : > { %7151 = vst [vmem:[#allocation2 + $0x5f8] sm:$0xff] %v6639_v4  ;;  %7407 = vst [vmem:[#allocation2 + $0xa38] sm:$0xff] %v6895_v5  ;;  %v853_v4 = vld [vmem:[#allocation2 + $0xb80] sm:$0xff] }
 0x30e   : > { %v4751_v10 = vpop.f32.mrf.mxu0  ;;  %v5775_v11 = vpop.f32.mrf.mxu1  ;;  %v1109_v5 = vld [vmem:[#allocation2 + $0xce0] sm:$0xff] }
 0x30f   : > { %v6640_v14 = vadd.f32 %v4751_v10, %v847_v8  ;;  %v6896_v15 = vadd.f32 %v5775_v11, %v1103_v9  ;;  %v15065_v8 = vld [vmem:[%s15780_s21 + $0x360] ss:$8 sps:$4 sm:$0xff]  }
 0x310   : > { %v4753_v18 = vpop.f32.mrf.mxu0  ;;  %v5777_v19 = vpop.f32.mrf.mxu1  ;;  %v15068_v9 = vld [vmem:[%s15780_s21 + $0xb60] ss:$8 sps:$4 sm:$0xff]  }
 0x311   : > { %7152 = vst [vmem:[#allocation2 + $0x620] sm:$0xff] %v6640_v14  ;;  %7408 = vst [vmem:[#allocation2 + $0x588] sm:$0xff] %v6896_v15 }
 0x312   : > { %v4756_v22 = vpop.f32.mrf.mxu0  ;;  %4947 = vmatmul.mubr.bf16.gmra.mxu0 %v15047_v12  ;;  %v5780_v23 = vpop.f32.mrf.mxu1  ;;  %5971 = vmatmul.mubr.bf16.gmra.mxu1 %v15050_v13  ;;  %v15073_v12 = vld [vmem:[%s15780_s21 + $0x374] ss:$8 sps:$4 sm:$0xff]  }
 0x313   : > { %v6641_v24 = vadd.f32 %v4756_v22, %v848_v20  ;;  %v6897_v25 = vadd.f32 %v5780_v23, %v1104_v21  ;;  %4954 = vmatprep.mubr.bf16.mxu0 %v15055_v16  ;;  %5978 = vmatprep.mubr.bf16.mxu1 %v15058_v17  ;;  %v15076_v13 = vld [vmem:[%s15780_s21 + $0xb74] ss:$8 sps:$4 sm:$0xff]   ;;  %v1110_v17 = vld [vmem:[#allocation2 + $0xfc8] sm:$0xff] }
 0x314   : > { %v4758_v26 = vpop.f32.mrf.mxu0  ;;  %v5782_v27 = vpop.f32.mrf.mxu1  ;;  %v854_v16 = vld [vmem:[#allocation2 + $0xc58] sm:$0xff] }
 0x315   : > { %7153 = vst [vmem:[#allocation2 + $0x630] sm:$0xff] %v6641_v24  ;;  %7409 = vst [vmem:[#allocation2 + $0xd80] sm:$0xff] %v6897_v25  ;;  %v855_v24 = vld [vmem:[#allocation2 + $0x8d8] sm:$0xff]  ;;  %v1111_v25 = vld [vmem:[#allocation2 + $0xf48] sm:$0xff] }
 0x316   : > { %v4759_v30 = vpop.f32.mrf.mxu0  ;;  %v5783_v31 = vpop.f32.mrf.mxu1 }
 0x317   : > { %v6642_v34 = vadd.f32 %v4759_v30, %v849_v28  ;;  %v6898_v35 = vadd.f32 %v5783_v31, %v1105_v29  ;;  %v15071_v28 = vld [vmem:[%s15780_s21 + $0x370] ss:$8 sps:$4 sm:$0xff]  }
 0x318   : > { %v4761_v38 = vpop.f32.mrf.mxu0  ;;  %v5785_v39 = vpop.f32.mrf.mxu1  ;;  %v15074_v29 = vld [vmem:[%s15780_s21 + $0xb70] ss:$8 sps:$4 sm:$0xff]  }
 0x319   : > { %7154 = vst [vmem:[#allocation2 + $0x7a8] sm:$0xff] %v6642_v34  ;;  %7410 = vst [vmem:[#allocation2 + $0xa0] sm:$0xff] %v6898_v35 }
 0x31a   : > { %v4764_v42 = vpop.f32.mrf.mxu0  ;;  %4955 = vmatmul.mubr.bf16.gmra.mxu0 %v15053_v32  ;;  %v5788_v43 = vpop.f32.mrf.mxu1  ;;  %5979 = vmatmul.mubr.bf16.gmra.mxu1 %v15056_v33  ;;  %v15079_v32 = vld [vmem:[%s15780_s21 + $0x384] ss:$8 sps:$4 sm:$0xff]  }
 0x31b   : > { %v6643_v44 = vadd.f32 %v4764_v42, %v850_v40  ;;  %v6899_v45 = vadd.f32 %v5788_v43, %v1106_v41  ;;  %4962 = vmatprep.mubr.bf16.mxu0 %v15061_v36  ;;  %5986 = vmatprep.mubr.bf16.mxu1 %v15064_v37  ;;  %v15082_v33 = vld [vmem:[%s15780_s21 + $0xb84] ss:$8 sps:$4 sm:$0xff]   ;;  %v856_v36 = vld [vmem:[#allocation2 + $0x9d8] sm:$0xff] }
 0x31c   : > { %v4766_v46 = vpop.f32.mrf.mxu0  ;;  %v5790_v47 = vpop.f32.mrf.mxu1  ;;  %v1112_v37 = vld [vmem:[#allocation2 + $0x828] sm:$0xff] }
 0x31d   : > { %7155 = vst [vmem:[#allocation2 + $0x70] sm:$0xff] %v6643_v44  ;;  %7411 = vst [vmem:[#allocation2 + $0x550] sm:$0xff] %v6899_v45  ;;  %v857_v44 = vld [vmem:[#allocation2 + $0x800] sm:$0xff] }
 0x31e   : > { %v4767_v50 = vpop.f32.mrf.mxu0  ;;  %v5791_v51 = vpop.f32.mrf.mxu1  ;;  %v1113_v45 = vld [vmem:[#allocation2 + $0xe40] sm:$0xff] }
 0x31f   : > { %v6644_v54 = vadd.f32 %v4767_v50, %v851_v48  ;;  %v6900_v55 = vadd.f32 %v5791_v51, %v1107_v49  ;;  %v15077_v48 = vld [vmem:[%s15780_s21 + $0x380] ss:$8 sps:$4 sm:$0xff]  }
 0x320   : > { %v4769_v58 = vpop.f32.mrf.mxu0  ;;  %v5793_v59 = vpop.f32.mrf.mxu1  ;;  %v15080_v49 = vld [vmem:[%s15780_s21 + $0xb80] ss:$8 sps:$4 sm:$0xff]  }
 0x321   : > { %7156 = vst [vmem:[#allocation2 + $0x678] sm:$0xff] %v6644_v54  ;;  %7412 = vst [vmem:[#allocation2 + $0xf98] sm:$0xff] %v6900_v55 }
 0x322   : > { %v4772_v62 = vpop.f32.mrf.mxu0  ;;  %4963 = vmatmul.mubr.bf16.gmra.mxu0 %v15059_v52  ;;  %v5796_v63 = vpop.f32.mrf.mxu1  ;;  %5987 = vmatmul.mubr.bf16.gmra.mxu1 %v15062_v53  ;;  %v15085_v52 = vld [vmem:[%s15780_s21 + $0x394] ss:$8 sps:$4 sm:$0xff]  }
 0x323   : > { %v6645_v0 = vadd.f32 %v4772_v62, %v852_v60  ;;  %v6901_v1 = vadd.f32 %v5796_v63, %v1108_v61  ;;  %4970 = vmatprep.mubr.bf16.mxu0 %v15067_v56  ;;  %5994 = vmatprep.mubr.bf16.mxu1 %v15070_v57  ;;  %v15088_v53 = vld [vmem:[%s15780_s21 + $0xb94] ss:$8 sps:$4 sm:$0xff]   ;;  %v858_v56 = vld [vmem:[#allocation2 + $0xe68] sm:$0xff] }
 0x324   : > { %v4774_v2 = vpop.f32.mrf.mxu0  ;;  %v5798_v3 = vpop.f32.mrf.mxu1  ;;  %v1114_v57 = vld [vmem:[#allocation2 + $0x978] sm:$0xff] }
 0x325   : > { %7157 = vst [vmem:[#allocation2 + $0xa88] sm:$0xff] %v6645_v0  ;;  %7413 = vst [vmem:[#allocation2 + $0x4f8] sm:$0xff] %v6901_v1  ;;  %v859_v0 = vld [vmem:[#allocation2 + $0x6f0] sm:$0xff]  ;;  %v1115_v1 = vld [vmem:[#allocation2 + $0x3e0] sm:$0xff] }
 0x326   : > { %v4775_v6 = vpop.f32.mrf.mxu0  ;;  %v5799_v7 = vpop.f32.mrf.mxu1 }
 0x327   : > { %v6646_v10 = vadd.f32 %v4775_v6, %v853_v4  ;;  %v6902_v11 = vadd.f32 %v5799_v7, %v1109_v5  ;;  %v15083_v4 = vld [vmem:[%s15780_s21 + $0x390] ss:$8 sps:$4 sm:$0xff]  }
 0x328   : > { %v4777_v14 = vpop.f32.mrf.mxu0  ;;  %v5801_v15 = vpop.f32.mrf.mxu1  ;;  %v15086_v5 = vld [vmem:[%s15780_s21 + $0xb90] ss:$8 sps:$4 sm:$0xff]  }
 0x329   : > { %7158 = vst [vmem:[#allocation2 + $0xb80] sm:$0xff] %v6646_v10  ;;  %7414 = vst [vmem:[#allocation2 + $0xce0] sm:$0xff] %v6902_v11 }
 0x32a   : > { %v4780_v18 = vpop.f32.mrf.mxu0  ;;  %4971 = vmatmul.mubr.bf16.gmra.mxu0 %v15065_v8  ;;  %v5804_v19 = vpop.f32.mrf.mxu1  ;;  %5995 = vmatmul.mubr.bf16.gmra.mxu1 %v15068_v9  ;;  %v15091_v8 = vld [vmem:[%s15780_s21 + $0x3a4] ss:$8 sps:$4 sm:$0xff]  }
 0x32b   : > { %v6647_v20 = vadd.f32 %v4780_v18, %v854_v16  ;;  %v6903_v21 = vadd.f32 %v5804_v19, %v1110_v17  ;;  %4978 = vmatprep.mubr.bf16.mxu0 %v15073_v12  ;;  %6002 = vmatprep.mubr.bf16.mxu1 %v15076_v13  ;;  %v15094_v9 = vld [vmem:[%s15780_s21 + $0xba4] ss:$8 sps:$4 sm:$0xff]  }
 0x32c   : > { %v4782_v22 = vpop.f32.mrf.mxu0  ;;  %v5806_v23 = vpop.f32.mrf.mxu1  ;;  %v860_v12 = vld [vmem:[#allocation2 + $0xbe8] sm:$0xff]  ;;  %v1116_v13 = vld [vmem:[#allocation2 + $0xf80] sm:$0xff] }
 0x32d   : > { %7159 = vst [vmem:[#allocation2 + $0xc58] sm:$0xff] %v6647_v20  ;;  %7415 = vst [vmem:[#allocation2 + $0xfc8] sm:$0xff] %v6903_v21  ;;  %v861_v20 = vld [vmem:[#allocation2 + $0xd30] sm:$0xff] }
 0x32e   : > { %v4783_v26 = vpop.f32.mrf.mxu0  ;;  %v5807_v27 = vpop.f32.mrf.mxu1  ;;  %v1117_v21 = vld [vmem:[#allocation2 + $0xf50] sm:$0xff] }
 0x32f   : > { %v6648_v30 = vadd.f32 %v4783_v26, %v855_v24  ;;  %v6904_v31 = vadd.f32 %v5807_v27, %v1111_v25  ;;  %v15089_v24 = vld [vmem:[%s15780_s21 + $0x3a0] ss:$8 sps:$4 sm:$0xff]  }
 0x330   : > { %v4785_v34 = vpop.f32.mrf.mxu0  ;;  %v5809_v35 = vpop.f32.mrf.mxu1  ;;  %v15092_v25 = vld [vmem:[%s15780_s21 + $0xba0] ss:$8 sps:$4 sm:$0xff]  }
 0x331   : > { %7160 = vst [vmem:[#allocation2 + $0x8d8] sm:$0xff] %v6648_v30  ;;  %7416 = vst [vmem:[#allocation2 + $0xf48] sm:$0xff] %v6904_v31 }
 0x332   : > { %v4788_v38 = vpop.f32.mrf.mxu0  ;;  %4979 = vmatmul.mubr.bf16.gmra.mxu0 %v15071_v28  ;;  %v5812_v39 = vpop.f32.mrf.mxu1  ;;  %6003 = vmatmul.mubr.bf16.gmra.mxu1 %v15074_v29  ;;  %v15097_v28 = vld [vmem:[%s15780_s21 + $0x3b4] ss:$8 sps:$4 sm:$0xff]  }
 0x333   : > { %v6649_v40 = vadd.f32 %v4788_v38, %v856_v36  ;;  %v6905_v41 = vadd.f32 %v5812_v39, %v1112_v37  ;;  %4986 = vmatprep.mubr.bf16.mxu0 %v15079_v32  ;;  %6010 = vmatprep.mubr.bf16.mxu1 %v15082_v33  ;;  %v15100_v29 = vld [vmem:[%s15780_s21 + $0xbb4] ss:$8 sps:$4 sm:$0xff]  }
 0x334   : > { %v4790_v42 = vpop.f32.mrf.mxu0  ;;  %v5814_v43 = vpop.f32.mrf.mxu1  ;;  %v862_v32 = vld [vmem:[#allocation2 + $0x358] sm:$0xff]  ;;  %v1118_v33 = vld [vmem:[#allocation2 + $0x1b0] sm:$0xff] }
 0x335   : > { %7161 = vst [vmem:[#allocation2 + $0x9d8] sm:$0xff] %v6649_v40  ;;  %7417 = vst [vmem:[#allocation2 + $0x828] sm:$0xff] %v6905_v41  ;;  %v863_v40 = vld [vmem:[#allocation2 + $0x490] sm:$0xff]  ;;  %v1119_v41 = vld [vmem:[#allocation2 + $0xdc0] sm:$0xff] }
 0x336   : > { %v4791_v46 = vpop.f32.mrf.mxu0  ;;  %v5815_v47 = vpop.f32.mrf.mxu1 }
 0x337   : > { %v6650_v50 = vadd.f32 %v4791_v46, %v857_v44  ;;  %v6906_v51 = vadd.f32 %v5815_v47, %v1113_v45  ;;  %v15095_v44 = vld [vmem:[%s15780_s21 + $0x3b0] ss:$8 sps:$4 sm:$0xff]  }
 0x338   : > { %v4793_v54 = vpop.f32.mrf.mxu0  ;;  %v5817_v55 = vpop.f32.mrf.mxu1  ;;  %v15098_v45 = vld [vmem:[%s15780_s21 + $0xbb0] ss:$8 sps:$4 sm:$0xff]  }
 0x339   : > { %7162 = vst [vmem:[#allocation2 + $0x800] sm:$0xff] %v6650_v50  ;;  %7418 = vst [vmem:[#allocation2 + $0xe40] sm:$0xff] %v6906_v51 }
 0x33a   : > { %v4796_v58 = vpop.f32.mrf.mxu0  ;;  %4987 = vmatmul.mubr.bf16.gmra.mxu0 %v15077_v48  ;;  %v5820_v59 = vpop.f32.mrf.mxu1  ;;  %6011 = vmatmul.mubr.bf16.gmra.mxu1 %v15080_v49  ;;  %v15103_v48 = vld [vmem:[%s15780_s21 + $0x3c4] ss:$8 sps:$4 sm:$0xff]  }
 0x33b   : > { %v6651_v60 = vadd.f32 %v4796_v58, %v858_v56  ;;  %v6907_v61 = vadd.f32 %v5820_v59, %v1114_v57  ;;  %4994 = vmatprep.mubr.bf16.mxu0 %v15085_v52  ;;  %6018 = vmatprep.mubr.bf16.mxu1 %v15088_v53  ;;  %v15106_v49 = vld [vmem:[%s15780_s21 + $0xbc4] ss:$8 sps:$4 sm:$0xff]   ;;  %v1120_v53 = vld [vmem:[#allocation2 + $0xfb0] sm:$0xff] }
 0x33c   : > { %v4798_v62 = vpop.f32.mrf.mxu0  ;;  %v5822_v63 = vpop.f32.mrf.mxu1  ;;  %v864_v52 = vld [vmem:[#allocation2 + $0x488] sm:$0xff] }
 0x33d   : > { %7163 = vst [vmem:[#allocation2 + $0xe68] sm:$0xff] %v6651_v60  ;;  %7419 = vst [vmem:[#allocation2 + $0x978] sm:$0xff] %v6907_v61  ;;  %v865_v60 = vld [vmem:[#allocation2 + $0xd60] sm:$0xff]  ;;  %v1121_v61 = vld [vmem:[#allocation2 + $0xdb8] sm:$0xff] }
 0x33e   : > { %v4799_v2 = vpop.f32.mrf.mxu0  ;;  %v5823_v3 = vpop.f32.mrf.mxu1 }
 0x33f   : > { %v6652_v6 = vadd.f32 %v4799_v2, %v859_v0  ;;  %v6908_v7 = vadd.f32 %v5823_v3, %v1115_v1  ;;  %v15101_v0 = vld [vmem:[%s15780_s21 + $0x3c0] ss:$8 sps:$4 sm:$0xff]  }
 0x340   : > { %v4801_v10 = vpop.f32.mrf.mxu0  ;;  %v5825_v11 = vpop.f32.mrf.mxu1  ;;  %v15104_v1 = vld [vmem:[%s15780_s21 + $0xbc0] ss:$8 sps:$4 sm:$0xff]  }
 0x341   : > { %7164 = vst [vmem:[#allocation2 + $0x6f0] sm:$0xff] %v6652_v6  ;;  %7420 = vst [vmem:[#allocation2 + $0x3e0] sm:$0xff] %v6908_v7 }
 0x342   : > { %v4804_v14 = vpop.f32.mrf.mxu0  ;;  %4995 = vmatmul.mubr.bf16.gmra.mxu0 %v15083_v4  ;;  %v5828_v15 = vpop.f32.mrf.mxu1  ;;  %6019 = vmatmul.mubr.bf16.gmra.mxu1 %v15086_v5  ;;  %v15109_v4 = vld [vmem:[%s15780_s21 + $0x3d4] ss:$8 sps:$4 sm:$0xff]  }
 0x343   : > { %v6653_v16 = vadd.f32 %v4804_v14, %v860_v12  ;;  %v6909_v17 = vadd.f32 %v5828_v15, %v1116_v13  ;;  %5002 = vmatprep.mubr.bf16.mxu0 %v15091_v8  ;;  %6026 = vmatprep.mubr.bf16.mxu1 %v15094_v9  ;;  %v15112_v5 = vld [vmem:[%s15780_s21 + $0xbd4] ss:$8 sps:$4 sm:$0xff]  }
 0x344   : > { %v4806_v18 = vpop.f32.mrf.mxu0  ;;  %v5830_v19 = vpop.f32.mrf.mxu1  ;;  %v866_v8 = vld [vmem:[#allocation2 + $0xbd8] sm:$0xff]  ;;  %v1122_v9 = vld [vmem:[#allocation2 + $0x350] sm:$0xff] }
 0x345   : > { %7165 = vst [vmem:[#allocation2 + $0xbe8] sm:$0xff] %v6653_v16  ;;  %7421 = vst [vmem:[#allocation2 + $0xf80] sm:$0xff] %v6909_v17  ;;  %v867_v16 = vld [vmem:[#allocation2 + $0x580] sm:$0xff]  ;;  %v1123_v17 = vld [vmem:[#allocation2 + $0x388] sm:$0xff] }
 0x346   : > { %v4807_v22 = vpop.f32.mrf.mxu0  ;;  %v5831_v23 = vpop.f32.mrf.mxu1 }
 0x347   : > { %v6654_v26 = vadd.f32 %v4807_v22, %v861_v20  ;;  %v6910_v27 = vadd.f32 %v5831_v23, %v1117_v21  ;;  %v15107_v20 = vld [vmem:[%s15780_s21 + $0x3d0] ss:$8 sps:$4 sm:$0xff]  }
 0x348   : > { %v4809_v30 = vpop.f32.mrf.mxu0  ;;  %v5833_v31 = vpop.f32.mrf.mxu1  ;;  %v15110_v21 = vld [vmem:[%s15780_s21 + $0xbd0] ss:$8 sps:$4 sm:$0xff]  }
 0x349   : > { %7166 = vst [vmem:[#allocation2 + $0xd30] sm:$0xff] %v6654_v26  ;;  %7422 = vst [vmem:[#allocation2 + $0xf50] sm:$0xff] %v6910_v27 }
 0x34a   : > { %v4812_v34 = vpop.f32.mrf.mxu0  ;;  %5003 = vmatmul.mubr.bf16.gmra.mxu0 %v15089_v24  ;;  %v5836_v35 = vpop.f32.mrf.mxu1  ;;  %6027 = vmatmul.mubr.bf16.gmra.mxu1 %v15092_v25  ;;  %v15115_v24 = vld [vmem:[%s15780_s21 + $0x3e4] ss:$8 sps:$4 sm:$0xff]  }
 0x34b   : > { %v6655_v36 = vadd.f32 %v4812_v34, %v862_v32  ;;  %v6911_v37 = vadd.f32 %v5836_v35, %v1118_v33  ;;  %5010 = vmatprep.mubr.bf16.mxu0 %v15097_v28  ;;  %6034 = vmatprep.mubr.bf16.mxu1 %v15100_v29  ;;  %v15118_v25 = vld [vmem:[%s15780_s21 + $0xbe4] ss:$8 sps:$4 sm:$0xff]   ;;  %v1124_v29 = vld [vmem:[#allocation2 + $0xa78] sm:$0xff] }
 0x34c   : > { %v4814_v38 = vpop.f32.mrf.mxu0  ;;  %v5838_v39 = vpop.f32.mrf.mxu1  ;;  %v868_v28 = vld [vmem:[#allocation2 + $0x208] sm:$0xff] }
 0x34d   : > { %7167 = vst [vmem:[#allocation2 + $0x358] sm:$0xff] %v6655_v36  ;;  %7423 = vst [vmem:[#allocation2 + $0x1b0] sm:$0xff] %v6911_v37  ;;  %v869_v36 = vld [vmem:[#allocation2 + $0x158] sm:$0xff]  ;;  %v1125_v37 = vld [vmem:[#allocation2 + $0xcc0] sm:$0xff] }
 0x34e   : > { %v4815_v42 = vpop.f32.mrf.mxu0  ;;  %v5839_v43 = vpop.f32.mrf.mxu1 }
 0x34f   : > { %v6656_v46 = vadd.f32 %v4815_v42, %v863_v40  ;;  %v6912_v47 = vadd.f32 %v5839_v43, %v1119_v41  ;;  %v15113_v40 = vld [vmem:[%s15780_s21 + $0x3e0] ss:$8 sps:$4 sm:$0xff]  }
 0x350   : > { %v4817_v50 = vpop.f32.mrf.mxu0  ;;  %v5841_v51 = vpop.f32.mrf.mxu1  ;;  %v15116_v41 = vld [vmem:[%s15780_s21 + $0xbe0] ss:$8 sps:$4 sm:$0xff]  }
 0x351   : > { %7168 = vst [vmem:[#allocation2 + $0x490] sm:$0xff] %v6656_v46  ;;  %7424 = vst [vmem:[#allocation2 + $0xdc0] sm:$0xff] %v6912_v47 }
 0x352   : > { %v4820_v54 = vpop.f32.mrf.mxu0  ;;  %5011 = vmatmul.mubr.bf16.gmra.mxu0 %v15095_v44  ;;  %v5844_v55 = vpop.f32.mrf.mxu1  ;;  %6035 = vmatmul.mubr.bf16.gmra.mxu1 %v15098_v45  ;;  %v15121_v44 = vld [vmem:[%s15780_s21 + $0x3f4] ss:$8 sps:$4 sm:$0xff]  }
 0x353   : > { %v6657_v56 = vadd.f32 %v4820_v54, %v864_v52  ;;  %v6913_v57 = vadd.f32 %v5844_v55, %v1120_v53  ;;  %5018 = vmatprep.mubr.bf16.mxu0 %v15103_v48  ;;  %6042 = vmatprep.mubr.bf16.mxu1 %v15106_v49  ;;  %v15124_v45 = vld [vmem:[%s15780_s21 + $0xbf4] ss:$8 sps:$4 sm:$0xff]   ;;  %v870_v48 = vld [vmem:[#allocation2 + $0xec8] sm:$0xff]  ;;  %v1126_v49 = vld [vmem:[#allocation2 + $0xf40] sm:$0xff] }
 0x354   : > { %v4822_v58 = vpop.f32.mrf.mxu0  ;;  %v5846_v59 = vpop.f32.mrf.mxu1 }
 0x355   : > { %7169 = vst [vmem:[#allocation2 + $0x488] sm:$0xff] %v6657_v56  ;;  %7425 = vst [vmem:[#allocation2 + $0xfb0] sm:$0xff] %v6913_v57  ;;  %v871_v56 = vld [vmem:[#allocation2 + $0xdb0] sm:$0xff]  ;;  %v1127_v57 = vld [vmem:[#allocation2 + $0x908] sm:$0xff] }
 0x356   : > { %v4823_v62 = vpop.f32.mrf.mxu0  ;;  %v5847_v63 = vpop.f32.mrf.mxu1 }
 0x357   : > { %v6658_v2 = vadd.f32 %v4823_v62, %v865_v60  ;;  %v6914_v3 = vadd.f32 %v5847_v63, %v1121_v61  ;;  %v15119_v60 = vld [vmem:[%s15780_s21 + $0x3f0] ss:$8 sps:$4 sm:$0xff]  }
 0x358   : > { %v4825_v6 = vpop.f32.mrf.mxu0  ;;  %v5849_v7 = vpop.f32.mrf.mxu1  ;;  %v15122_v61 = vld [vmem:[%s15780_s21 + $0xbf0] ss:$8 sps:$4 sm:$0xff]  }
 0x359   : > { %7170 = vst [vmem:[#allocation2 + $0xd60] sm:$0xff] %v6658_v2  ;;  %7426 = vst [vmem:[#allocation2 + $0xdb8] sm:$0xff] %v6914_v3 }
 0x35a   : > { %v4828_v10 = vpop.f32.mrf.mxu0  ;;  %5019 = vmatmul.mubr.bf16.gmra.mxu0 %v15101_v0  ;;  %v5852_v11 = vpop.f32.mrf.mxu1  ;;  %6043 = vmatmul.mubr.bf16.gmra.mxu1 %v15104_v1  ;;  %v15127_v0 = vld [vmem:[%s15780_s21 + $0x404] ss:$8 sps:$4 sm:$0xff]  }
 0x35b   : > { %v6659_v12 = vadd.f32 %v4828_v10, %v866_v8  ;;  %v6915_v13 = vadd.f32 %v5852_v11, %v1122_v9  ;;  %5026 = vmatprep.mubr.bf16.mxu0 %v15109_v4  ;;  %6050 = vmatprep.mubr.bf16.mxu1 %v15112_v5  ;;  %v15130_v1 = vld [vmem:[%s15780_s21 + $0xc04] ss:$8 sps:$4 sm:$0xff]   ;;  %v1128_v5 = vld [vmem:[#allocation2 + $0xc10] sm:$0xff] }
 0x35c   : > { %v4830_v14 = vpop.f32.mrf.mxu0  ;;  %v5854_v15 = vpop.f32.mrf.mxu1  ;;  %v872_v4 = vld [vmem:[#allocation2 + $0x660] sm:$0xff] }
 0x35d   : > { %7171 = vst [vmem:[#allocation2 + $0xbd8] sm:$0xff] %v6659_v12  ;;  %7427 = vst [vmem:[#allocation2 + $0x350] sm:$0xff] %v6915_v13  ;;  %v873_v12 = vld [vmem:[#allocation2 + $0x6d8] sm:$0xff]  ;;  %v1129_v13 = vld [vmem:[#allocation2 + $0x1a0] sm:$0xff] }
 0x35e   : > { %v4831_v18 = vpop.f32.mrf.mxu0  ;;  %v5855_v19 = vpop.f32.mrf.mxu1 }
 0x35f   : > { %v6660_v22 = vadd.f32 %v4831_v18, %v867_v16  ;;  %v6916_v23 = vadd.f32 %v5855_v19, %v1123_v17  ;;  %v15125_v16 = vld [vmem:[%s15780_s21 + $0x400] ss:$8 sps:$4 sm:$0xff]  }
 0x360   : > { %v4833_v26 = vpop.f32.mrf.mxu0  ;;  %v5857_v27 = vpop.f32.mrf.mxu1  ;;  %v15128_v17 = vld [vmem:[%s15780_s21 + $0xc00] ss:$8 sps:$4 sm:$0xff]  }
 0x361   : > { %7172 = vst [vmem:[#allocation2 + $0x580] sm:$0xff] %v6660_v22  ;;  %7428 = vst [vmem:[#allocation2 + $0x388] sm:$0xff] %v6916_v23 }
 0x362   : > { %v4836_v30 = vpop.f32.mrf.mxu0  ;;  %5027 = vmatmul.mubr.bf16.gmra.mxu0 %v15107_v20  ;;  %v5860_v31 = vpop.f32.mrf.mxu1  ;;  %6051 = vmatmul.mubr.bf16.gmra.mxu1 %v15110_v21  ;;  %v15133_v20 = vld [vmem:[%s15780_s21 + $0x414] ss:$8 sps:$4 sm:$0xff]  }
 0x363   : > { %v6661_v32 = vadd.f32 %v4836_v30, %v868_v28  ;;  %v6917_v33 = vadd.f32 %v5860_v31, %v1124_v29  ;;  %5034 = vmatprep.mubr.bf16.mxu0 %v15115_v24  ;;  %6058 = vmatprep.mubr.bf16.mxu1 %v15118_v25  ;;  %v15136_v21 = vld [vmem:[%s15780_s21 + $0xc14] ss:$8 sps:$4 sm:$0xff]   ;;  %v874_v24 = vld [vmem:[#allocation2 + $0xbc8] sm:$0xff] }
 0x364   : > { %v4838_v34 = vpop.f32.mrf.mxu0  ;;  %v5862_v35 = vpop.f32.mrf.mxu1  ;;  %v1130_v25 = vld [vmem:[#allocation2 + $0x4d0] sm:$0xff] }
 0x365   : > { %7173 = vst [vmem:[#allocation2 + $0x208] sm:$0xff] %v6661_v32  ;;  %7429 = vst [vmem:[#allocation2 + $0xa78] sm:$0xff] %v6917_v33  ;;  %v875_v32 = vld [vmem:[#allocation2 + $0xf38] sm:$0xff]  ;;  %v1131_v33 = vld [vmem:[#allocation2 + $0xfa0] sm:$0xff] }
 0x366   : > { %v4839_v38 = vpop.f32.mrf.mxu0  ;;  %v5863_v39 = vpop.f32.mrf.mxu1 }
 0x367   : > { %v6662_v42 = vadd.f32 %v4839_v38, %v869_v36  ;;  %v6918_v43 = vadd.f32 %v5863_v39, %v1125_v37  ;;  %v15131_v36 = vld [vmem:[%s15780_s21 + $0x410] ss:$8 sps:$4 sm:$0xff]  }
 0x368   : > { %v4841_v46 = vpop.f32.mrf.mxu0  ;;  %v5865_v47 = vpop.f32.mrf.mxu1  ;;  %v15134_v37 = vld [vmem:[%s15780_s21 + $0xc10] ss:$8 sps:$4 sm:$0xff]  }
 0x369   : > { %7174 = vst [vmem:[#allocation2 + $0x158] sm:$0xff] %v6662_v42  ;;  %7430 = vst [vmem:[#allocation2 + $0xcc0] sm:$0xff] %v6918_v43 }
 0x36a   : > { %v4844_v50 = vpop.f32.mrf.mxu0  ;;  %5035 = vmatmul.mubr.bf16.gmra.mxu0 %v15113_v40  ;;  %v5868_v51 = vpop.f32.mrf.mxu1  ;;  %6059 = vmatmul.mubr.bf16.gmra.mxu1 %v15116_v41  ;;  %v15139_v40 = vld [vmem:[%s15780_s21 + $0x424] ss:$8 sps:$4 sm:$0xff]  }
 0x36b   : > { %v6663_v52 = vadd.f32 %v4844_v50, %v870_v48  ;;  %v6919_v53 = vadd.f32 %v5868_v51, %v1126_v49  ;;  %5042 = vmatprep.mubr.bf16.mxu0 %v15121_v44  ;;  %6066 = vmatprep.mubr.bf16.mxu1 %v15124_v45  ;;  %v15142_v41 = vld [vmem:[%s15780_s21 + $0xc24] ss:$8 sps:$4 sm:$0xff]   ;;  %v876_v44 = vld [vmem:[#allocation2 + $0x98] sm:$0xff]  ;;  %v1132_v45 = vld [vmem:[#allocation2 + $0xcb0] sm:$0xff] }
 0x36c   : > { %v4846_v54 = vpop.f32.mrf.mxu0  ;;  %v5870_v55 = vpop.f32.mrf.mxu1 }
 0x36d   : > { %7175 = vst [vmem:[#allocation2 + $0xec8] sm:$0xff] %v6663_v52  ;;  %7431 = vst [vmem:[#allocation2 + $0xf40] sm:$0xff] %v6919_v53  ;;  %v877_v52 = vld [vmem:[#allocation2 + $0xa48] sm:$0xff] }
 0x36e   : > { %v4847_v58 = vpop.f32.mrf.mxu0  ;;  %v5871_v59 = vpop.f32.mrf.mxu1  ;;  %v1133_v53 = vld [vmem:[#allocation2 + $0x168] sm:$0xff] }
 0x36f   : > { %v6664_v62 = vadd.f32 %v4847_v58, %v871_v56  ;;  %v6920_v63 = vadd.f32 %v5871_v59, %v1127_v57  ;;  %v15137_v56 = vld [vmem:[%s15780_s21 + $0x420] ss:$8 sps:$4 sm:$0xff]  }
 0x370   : > { %v4849_v2 = vpop.f32.mrf.mxu0  ;;  %v5873_v3 = vpop.f32.mrf.mxu1  ;;  %v15140_v57 = vld [vmem:[%s15780_s21 + $0xc20] ss:$8 sps:$4 sm:$0xff]  }
 0x371   : > { %7176 = vst [vmem:[#allocation2 + $0xdb0] sm:$0xff] %v6664_v62  ;;  %7432 = vst [vmem:[#allocation2 + $0x908] sm:$0xff] %v6920_v63 }
 0x372   : > { %v4852_v6 = vpop.f32.mrf.mxu0  ;;  %5043 = vmatmul.mubr.bf16.gmra.mxu0 %v15119_v60  ;;  %v5876_v7 = vpop.f32.mrf.mxu1  ;;  %6067 = vmatmul.mubr.bf16.gmra.mxu1 %v15122_v61  ;;  %v15145_v60 = vld [vmem:[%s15780_s21 + $0x434] ss:$8 sps:$4 sm:$0xff]  }
 0x373   : > { %v6665_v8 = vadd.f32 %v4852_v6, %v872_v4  ;;  %v6921_v9 = vadd.f32 %v5876_v7, %v1128_v5  ;;  %5050 = vmatprep.mubr.bf16.mxu0 %v15127_v0  ;;  %6074 = vmatprep.mubr.bf16.mxu1 %v15130_v1  ;;  %v15148_v61 = vld [vmem:[%s15780_s21 + $0xc34] ss:$8 sps:$4 sm:$0xff]   ;;  %v1134_v1 = vld [vmem:[#allocation2 + $0xf28] sm:$0xff] }
 0x374   : > { %v4854_v10 = vpop.f32.mrf.mxu0  ;;  %v5878_v11 = vpop.f32.mrf.mxu1  ;;  %v878_v0 = vld [vmem:[#allocation2 + $0x1b8] sm:$0xff] }
 0x375   : > { %7177 = vst [vmem:[#allocation2 + $0x660] sm:$0xff] %v6665_v8  ;;  %7433 = vst [vmem:[#allocation2 + $0xc10] sm:$0xff] %v6921_v9  ;;  %v879_v8 = vld [vmem:[#allocation2 + $0x188] sm:$0xff] }
 0x376   : > { %v4855_v14 = vpop.f32.mrf.mxu0  ;;  %v5879_v15 = vpop.f32.mrf.mxu1  ;;  %v1135_v9 = vld [vmem:[#allocation2 + $0xf88] sm:$0xff] }
 0x377   : > { %v6666_v18 = vadd.f32 %v4855_v14, %v873_v12  ;;  %v6922_v19 = vadd.f32 %v5879_v15, %v1129_v13  ;;  %v15143_v12 = vld [vmem:[%s15780_s21 + $0x430] ss:$8 sps:$4 sm:$0xff]  }
 0x378   : > { %v4857_v22 = vpop.f32.mrf.mxu0  ;;  %v5881_v23 = vpop.f32.mrf.mxu1  ;;  %v15146_v13 = vld [vmem:[%s15780_s21 + $0xc30] ss:$8 sps:$4 sm:$0xff]  }
 0x379   : > { %7178 = vst [vmem:[#allocation2 + $0x6d8] sm:$0xff] %v6666_v18  ;;  %7434 = vst [vmem:[#allocation2 + $0x1a0] sm:$0xff] %v6922_v19 }
 0x37a   : > { %v4860_v26 = vpop.f32.mrf.mxu0  ;;  %5051 = vmatmul.mubr.bf16.gmra.mxu0 %v15125_v16  ;;  %v5884_v27 = vpop.f32.mrf.mxu1  ;;  %6075 = vmatmul.mubr.bf16.gmra.mxu1 %v15128_v17  ;;  %v15151_v16 = vld [vmem:[%s15780_s21 + $0x444] ss:$8 sps:$4 sm:$0xff]  }
 0x37b   : > { %v6667_v28 = vadd.f32 %v4860_v26, %v874_v24  ;;  %v6923_v29 = vadd.f32 %v5884_v27, %v1130_v25  ;;  %5058 = vmatprep.mubr.bf16.mxu0 %v15133_v20  ;;  %6082 = vmatprep.mubr.bf16.mxu1 %v15136_v21  ;;  %v15154_v17 = vld [vmem:[%s15780_s21 + $0xc44] ss:$8 sps:$4 sm:$0xff]   ;;  %v880_v20 = vld [vmem:[#allocation2 + $0x650] sm:$0xff] }
 0x37c   : > { %v4862_v30 = vpop.f32.mrf.mxu0  ;;  %v5886_v31 = vpop.f32.mrf.mxu1  ;;  %v1136_v21 = vld [vmem:[#allocation2 + $0xdc8] sm:$0xff] }
 0x37d   : > { %7179 = vst [vmem:[#allocation2 + $0xbc8] sm:$0xff] %v6667_v28  ;;  %7435 = vst [vmem:[#allocation2 + $0x4d0] sm:$0xff] %v6923_v29  ;;  %v881_v28 = vld [vmem:[#allocation2 + $0x90] sm:$0xff]  ;;  %v1137_v29 = vld [vmem:[#allocation2 + $0x560] sm:$0xff] }
 0x37e   : > { %v4863_v34 = vpop.f32.mrf.mxu0  ;;  %v5887_v35 = vpop.f32.mrf.mxu1 }
 0x37f   : > { %v6668_v38 = vadd.f32 %v4863_v34, %v875_v32  ;;  %v6924_v39 = vadd.f32 %v5887_v35, %v1131_v33  ;;  %v15149_v32 = vld [vmem:[%s15780_s21 + $0x440] ss:$8 sps:$4 sm:$0xff]  }
 0x380   : > { %v4865_v42 = vpop.f32.mrf.mxu0  ;;  %v5889_v43 = vpop.f32.mrf.mxu1  ;;  %v15152_v33 = vld [vmem:[%s15780_s21 + $0xc40] ss:$8 sps:$4 sm:$0xff]  }
 0x381   : > { %7180 = vst [vmem:[#allocation2 + $0xf38] sm:$0xff] %v6668_v38  ;;  %7436 = vst [vmem:[#allocation2 + $0xfa0] sm:$0xff] %v6924_v39 }
 0x382   : > { %v4868_v46 = vpop.f32.mrf.mxu0  ;;  %5059 = vmatmul.mubr.bf16.gmra.mxu0 %v15131_v36  ;;  %v5892_v47 = vpop.f32.mrf.mxu1  ;;  %6083 = vmatmul.mubr.bf16.gmra.mxu1 %v15134_v37  ;;  %v15157_v36 = vld [vmem:[%s15780_s21 + $0x454] ss:$8 sps:$4 sm:$0xff]  }
 0x383   : > { %v6669_v48 = vadd.f32 %v4868_v46, %v876_v44  ;;  %v6925_v49 = vadd.f32 %v5892_v47, %v1132_v45  ;;  %5066 = vmatprep.mubr.bf16.mxu0 %v15139_v40  ;;  %6090 = vmatprep.mubr.bf16.mxu1 %v15142_v41  ;;  %v15160_v37 = vld [vmem:[%s15780_s21 + $0xc54] ss:$8 sps:$4 sm:$0xff]   ;;  %v1138_v41 = vld [vmem:[#allocation2 + $0x888] sm:$0xff] }
 0x384   : > { %v4870_v50 = vpop.f32.mrf.mxu0  ;;  %v5894_v51 = vpop.f32.mrf.mxu1  ;;  %v882_v40 = vld [vmem:[#allocation2 + $0xdf0] sm:$0xff] }
 0x385   : > { %7181 = vst [vmem:[#allocation2 + $0x98] sm:$0xff] %v6669_v48  ;;  %7437 = vst [vmem:[#allocation2 + $0xcb0] sm:$0xff] %v6925_v49  ;;  %v883_v48 = vld [vmem:[#allocation2 + $0x9b0] sm:$0xff]  ;;  %v1139_v49 = vld [vmem:[#allocation2 + $0x608] sm:$0xff] }
 0x386   : > { %v4871_v54 = vpop.f32.mrf.mxu0  ;;  %v5895_v55 = vpop.f32.mrf.mxu1 }
 0x387   : > { %v6670_v58 = vadd.f32 %v4871_v54, %v877_v52  ;;  %v6926_v59 = vadd.f32 %v5895_v55, %v1133_v53  ;;  %v15155_v52 = vld [vmem:[%s15780_s21 + $0x450] ss:$8 sps:$4 sm:$0xff]  }
 0x388   : > { %v4873_v62 = vpop.f32.mrf.mxu0  ;;  %v5897_v63 = vpop.f32.mrf.mxu1  ;;  %v15158_v53 = vld [vmem:[%s15780_s21 + $0xc50] ss:$8 sps:$4 sm:$0xff]  }
 0x389   : > { %7182 = vst [vmem:[#allocation2 + $0xa48] sm:$0xff] %v6670_v58  ;;  %7438 = vst [vmem:[#allocation2 + $0x168] sm:$0xff] %v6926_v59 }
 0x38a   : > { %v4876_v2 = vpop.f32.mrf.mxu0  ;;  %5067 = vmatmul.mubr.bf16.gmra.mxu0 %v15137_v56  ;;  %v5900_v3 = vpop.f32.mrf.mxu1  ;;  %6091 = vmatmul.mubr.bf16.gmra.mxu1 %v15140_v57  ;;  %v15163_v56 = vld [vmem:[%s15780_s21 + $0x464] ss:$8 sps:$4 sm:$0xff]  }
 0x38b   : > { %v6671_v4 = vadd.f32 %v4876_v2, %v878_v0  ;;  %v6927_v5 = vadd.f32 %v5900_v3, %v1134_v1  ;;  %5074 = vmatprep.mubr.bf16.mxu0 %v15145_v60  ;;  %6098 = vmatprep.mubr.bf16.mxu1 %v15148_v61  ;;  %v15166_v57 = vld [vmem:[%s15780_s21 + $0xc64] ss:$8 sps:$4 sm:$0xff]  }
 0x38c   : > { %v4878_v6 = vpop.f32.mrf.mxu0  ;;  %v5902_v7 = vpop.f32.mrf.mxu1  ;;  %v884_v60 = vld [vmem:[#allocation2 + $0x180] sm:$0xff]  ;;  %v1140_v61 = vld [vmem:[#allocation2 + $0x128] sm:$0xff] }
 0x38d   : > { %7183 = vst [vmem:[#allocation2 + $0x1b8] sm:$0xff] %v6671_v4  ;;  %7439 = vst [vmem:[#allocation2 + $0xf28] sm:$0xff] %v6927_v5  ;;  %v885_v4 = vld [vmem:[#allocation2 + $0x288] sm:$0xff]  ;;  %v1141_v5 = vld [vmem:[#allocation2 + $0x178] sm:$0xff] }
 0x38e   : > { %v4879_v10 = vpop.f32.mrf.mxu0  ;;  %v5903_v11 = vpop.f32.mrf.mxu1 }
 0x38f   : > { %v6672_v14 = vadd.f32 %v4879_v10, %v879_v8  ;;  %v6928_v15 = vadd.f32 %v5903_v11, %v1135_v9  ;;  %v15161_v8 = vld [vmem:[%s15780_s21 + $0x460] ss:$8 sps:$4 sm:$0xff]  }
 0x390   : > { %v4881_v18 = vpop.f32.mrf.mxu0  ;;  %v5905_v19 = vpop.f32.mrf.mxu1  ;;  %v15164_v9 = vld [vmem:[%s15780_s21 + $0xc60] ss:$8 sps:$4 sm:$0xff]  }
 0x391   : > { %7184 = vst [vmem:[#allocation2 + $0x188] sm:$0xff] %v6672_v14  ;;  %7440 = vst [vmem:[#allocation2 + $0xf88] sm:$0xff] %v6928_v15 }
 0x392   : > { %v4884_v22 = vpop.f32.mrf.mxu0  ;;  %5075 = vmatmul.mubr.bf16.gmra.mxu0 %v15143_v12  ;;  %v5908_v23 = vpop.f32.mrf.mxu1  ;;  %6099 = vmatmul.mubr.bf16.gmra.mxu1 %v15146_v13  ;;  %v15169_v12 = vld [vmem:[%s15780_s21 + $0x474] ss:$8 sps:$4 sm:$0xff]  }
 0x393   : > { %v6673_v24 = vadd.f32 %v4884_v22, %v880_v20  ;;  %v6929_v25 = vadd.f32 %v5908_v23, %v1136_v21  ;;  %5082 = vmatprep.mubr.bf16.mxu0 %v15151_v16  ;;  %6106 = vmatprep.mubr.bf16.mxu1 %v15154_v17  ;;  %v15172_v13 = vld [vmem:[%s15780_s21 + $0xc74] ss:$8 sps:$4 sm:$0xff]   ;;  %v886_v16 = vld [vmem:[#allocation2 + $0x8e0] sm:$0xff] }
 0x394   : > { %v4886_v26 = vpop.f32.mrf.mxu0  ;;  %v5910_v27 = vpop.f32.mrf.mxu1  ;;  %v1142_v17 = vld [vmem:[#allocation2 + $0xf8] sm:$0xff] }
 0x395   : > { %7185 = vst [vmem:[#allocation2 + $0x650] sm:$0xff] %v6673_v24  ;;  %7441 = vst [vmem:[#allocation2 + $0xdc8] sm:$0xff] %v6929_v25  ;;  %v887_v24 = vld [vmem:[#allocation2 + $0xc00] sm:$0xff]  ;;  %v1143_v25 = vld [vmem:[#allocation2 + $0x8d0] sm:$0xff] }
 0x396   : > { %v4887_v30 = vpop.f32.mrf.mxu0  ;;  %v5911_v31 = vpop.f32.mrf.mxu1 }
 0x397   : > { %v6674_v34 = vadd.f32 %v4887_v30, %v881_v28  ;;  %v6930_v35 = vadd.f32 %v5911_v31, %v1137_v29  ;;  %v15167_v28 = vld [vmem:[%s15780_s21 + $0x470] ss:$8 sps:$4 sm:$0xff]  }
 0x398   : > { %v4889_v38 = vpop.f32.mrf.mxu0  ;;  %v5913_v39 = vpop.f32.mrf.mxu1  ;;  %v15170_v29 = vld [vmem:[%s15780_s21 + $0xc70] ss:$8 sps:$4 sm:$0xff]  }
 0x399   : > { %7186 = vst [vmem:[#allocation2 + $0x90] sm:$0xff] %v6674_v34  ;;  %7442 = vst [vmem:[#allocation2 + $0x560] sm:$0xff] %v6930_v35 }
 0x39a   : > { %v4892_v42 = vpop.f32.mrf.mxu0  ;;  %5083 = vmatmul.mubr.bf16.gmra.mxu0 %v15149_v32  ;;  %v5916_v43 = vpop.f32.mrf.mxu1  ;;  %6107 = vmatmul.mubr.bf16.gmra.mxu1 %v15152_v33  ;;  %v15175_v32 = vld [vmem:[%s15780_s21 + $0x484] ss:$8 sps:$4 sm:$0xff]  }
 0x39b   : > { %v6675_v44 = vadd.f32 %v4892_v42, %v882_v40  ;;  %v6931_v45 = vadd.f32 %v5916_v43, %v1138_v41  ;;  %5090 = vmatprep.mubr.bf16.mxu0 %v15157_v36  ;;  %6114 = vmatprep.mubr.bf16.mxu1 %v15160_v37  ;;  %v15178_v33 = vld [vmem:[%s15780_s21 + $0xc84] ss:$8 sps:$4 sm:$0xff]   ;;  %v888_v36 = vld [vmem:[#allocation2 + $0x230] sm:$0xff] }
 0x39c   : > { %v4894_v46 = vpop.f32.mrf.mxu0  ;;  %v5918_v47 = vpop.f32.mrf.mxu1  ;;  %v1144_v37 = vld [vmem:[#allocation2 + $0x130] sm:$0xff] }
 0x39d   : > { %7187 = vst [vmem:[#allocation2 + $0xdf0] sm:$0xff] %v6675_v44  ;;  %7443 = vst [vmem:[#allocation2 + $0x888] sm:$0xff] %v6931_v45  ;;  %v889_v44 = vld [vmem:[#allocation2 + $0x2e0] sm:$0xff]  ;;  %v1145_v45 = vld [vmem:[#allocation2 + $0xa8] sm:$0xff] }
 0x39e   : > { %v4895_v50 = vpop.f32.mrf.mxu0  ;;  %v5919_v51 = vpop.f32.mrf.mxu1 }
 0x39f   : > { %v6676_v54 = vadd.f32 %v4895_v50, %v883_v48  ;;  %v6932_v55 = vadd.f32 %v5919_v51, %v1139_v49  ;;  %v15173_v48 = vld [vmem:[%s15780_s21 + $0x480] ss:$8 sps:$4 sm:$0xff]  }
 0x3a0   : > { %v4897_v58 = vpop.f32.mrf.mxu0  ;;  %v5921_v59 = vpop.f32.mrf.mxu1  ;;  %v15176_v49 = vld [vmem:[%s15780_s21 + $0xc80] ss:$8 sps:$4 sm:$0xff]  }
 0x3a1   : > { %7188 = vst [vmem:[#allocation2 + $0x9b0] sm:$0xff] %v6676_v54  ;;  %7444 = vst [vmem:[#allocation2 + $0x608] sm:$0xff] %v6932_v55 }
 0x3a2   : > { %v4900_v62 = vpop.f32.mrf.mxu0  ;;  %5091 = vmatmul.mubr.bf16.gmra.mxu0 %v15155_v52  ;;  %v5924_v63 = vpop.f32.mrf.mxu1  ;;  %6115 = vmatmul.mubr.bf16.gmra.mxu1 %v15158_v53  ;;  %v15181_v52 = vld [vmem:[%s15780_s21 + $0x494] ss:$8 sps:$4 sm:$0xff]  }
 0x3a3   : > { %v6677_v0 = vadd.f32 %v4900_v62, %v884_v60  ;;  %v6933_v1 = vadd.f32 %v5924_v63, %v1140_v61  ;;  %5098 = vmatprep.mubr.bf16.mxu0 %v15163_v56  ;;  %6122 = vmatprep.mubr.bf16.mxu1 %v15166_v57  ;;  %v15184_v53 = vld [vmem:[%s15780_s21 + $0xc94] ss:$8 sps:$4 sm:$0xff]   ;;  %v890_v56 = vld [vmem:[#allocation2 + $0x708] sm:$0xff] }
 0x3a4   : > { %v4902_v2 = vpop.f32.mrf.mxu0  ;;  %v5926_v3 = vpop.f32.mrf.mxu1  ;;  %v1146_v57 = vld [vmem:[#allocation2 + $0x1d8] sm:$0xff] }
 0x3a5   : > { %7189 = vst [vmem:[#allocation2 + $0x180] sm:$0xff] %v6677_v0  ;;  %7445 = vst [vmem:[#allocation2 + $0x128] sm:$0xff] %v6933_v1  ;;  %v891_v0 = vld [vmem:[#allocation2 + $0x428] sm:$0xff]  ;;  %v1147_v1 = vld [vmem:[#allocation2 + $0xe58] sm:$0xff] }
 0x3a6   : > { %v4903_v6 = vpop.f32.mrf.mxu0  ;;  %v5927_v7 = vpop.f32.mrf.mxu1 }
 0x3a7   : > { %v6678_v10 = vadd.f32 %v4903_v6, %v885_v4  ;;  %v6934_v11 = vadd.f32 %v5927_v7, %v1141_v5  ;;  %v15179_v4 = vld [vmem:[%s15780_s21 + $0x490] ss:$8 sps:$4 sm:$0xff]  }
 0x3a8   : > { %v4905_v14 = vpop.f32.mrf.mxu0  ;;  %v5929_v15 = vpop.f32.mrf.mxu1  ;;  %v15182_v5 = vld [vmem:[%s15780_s21 + $0xc90] ss:$8 sps:$4 sm:$0xff]  }
 0x3a9   : > { %7190 = vst [vmem:[#allocation2 + $0x288] sm:$0xff] %v6678_v10  ;;  %7446 = vst [vmem:[#allocation2 + $0x178] sm:$0xff] %v6934_v11 }
 0x3aa   : > { %v4908_v18 = vpop.f32.mrf.mxu0  ;;  %5099 = vmatmul.mubr.bf16.gmra.mxu0 %v15161_v8  ;;  %v5932_v19 = vpop.f32.mrf.mxu1  ;;  %6123 = vmatmul.mubr.bf16.gmra.mxu1 %v15164_v9  ;;  %v15187_v8 = vld [vmem:[%s15780_s21 + $0x4a4] ss:$8 sps:$4 sm:$0xff]  }
 0x3ab   : > { %v6679_v20 = vadd.f32 %v4908_v18, %v886_v16  ;;  %v6935_v21 = vadd.f32 %v5932_v19, %v1142_v17  ;;  %5106 = vmatprep.mubr.bf16.mxu0 %v15169_v12  ;;  %6130 = vmatprep.mubr.bf16.mxu1 %v15172_v13  ;;  %v15190_v9 = vld [vmem:[%s15780_s21 + $0xca4] ss:$8 sps:$4 sm:$0xff]   ;;  %v1148_v13 = vld [vmem:[#allocation2 + $0x638] sm:$0xff] }
 0x3ac   : > { %v4910_v22 = vpop.f32.mrf.mxu0  ;;  %v5934_v23 = vpop.f32.mrf.mxu1  ;;  %v892_v12 = vld [vmem:[#allocation2 + $0xe48] sm:$0xff] }
 0x3ad   : > { %7191 = vst [vmem:[#allocation2 + $0x8e0] sm:$0xff] %v6679_v20  ;;  %7447 = vst [vmem:[#allocation2 + $0xf8] sm:$0xff] %v6935_v21  ;;  %v893_v20 = vld [vmem:[#allocation2 + $0xe80] sm:$0xff]  ;;  %v1149_v21 = vld [vmem:[#allocation2 + $0x870] sm:$0xff] }
 0x3ae   : > { %v4911_v26 = vpop.f32.mrf.mxu0  ;;  %v5935_v27 = vpop.f32.mrf.mxu1 }
 0x3af   : > { %v6680_v30 = vadd.f32 %v4911_v26, %v887_v24  ;;  %v6936_v31 = vadd.f32 %v5935_v27, %v1143_v25  ;;  %v15185_v24 = vld [vmem:[%s15780_s21 + $0x4a0] ss:$8 sps:$4 sm:$0xff]  }
 0x3b0   : > { %v4913_v34 = vpop.f32.mrf.mxu0  ;;  %v5937_v35 = vpop.f32.mrf.mxu1  ;;  %v15188_v25 = vld [vmem:[%s15780_s21 + $0xca0] ss:$8 sps:$4 sm:$0xff]  }
 0x3b1   : > { %7192 = vst [vmem:[#allocation2 + $0xc00] sm:$0xff] %v6680_v30  ;;  %7448 = vst [vmem:[#allocation2 + $0x8d0] sm:$0xff] %v6936_v31 }
 0x3b2   : > { %v4916_v38 = vpop.f32.mrf.mxu0  ;;  %5107 = vmatmul.mubr.bf16.gmra.mxu0 %v15167_v28  ;;  %v5940_v39 = vpop.f32.mrf.mxu1  ;;  %6131 = vmatmul.mubr.bf16.gmra.mxu1 %v15170_v29  ;;  %v15193_v28 = vld [vmem:[%s15780_s21 + $0x4b4] ss:$8 sps:$4 sm:$0xff]  }
 0x3b3   : > { %v6681_v40 = vadd.f32 %v4916_v38, %v888_v36  ;;  %v6937_v41 = vadd.f32 %v5940_v39, %v1144_v37  ;;  %5114 = vmatprep.mubr.bf16.mxu0 %v15175_v32  ;;  %6138 = vmatprep.mubr.bf16.mxu1 %v15178_v33  ;;  %v15196_v29 = vld [vmem:[%s15780_s21 + $0xcb4] ss:$8 sps:$4 sm:$0xff]   ;;  %v1150_v33 = vld [vmem:[#allocation2 + $0xa40] sm:$0xff] }
 0x3b4   : > { %v4918_v42 = vpop.f32.mrf.mxu0  ;;  %v5942_v43 = vpop.f32.mrf.mxu1  ;;  %v894_v32 = vld [vmem:[#allocation2 + $0x250] sm:$0xff] }
 0x3b5   : > { %7193 = vst [vmem:[#allocation2 + $0x230] sm:$0xff] %v6681_v40  ;;  %7449 = vst [vmem:[#allocation2 + $0x130] sm:$0xff] %v6937_v41  ;;  %v895_v40 = vld [vmem:[#allocation2 + $0x380] sm:$0xff]  ;;  %v1151_v41 = vld [vmem:[#allocation2 + $0x958] sm:$0xff] }
 0x3b6   : > { %v4919_v46 = vpop.f32.mrf.mxu0  ;;  %v5943_v47 = vpop.f32.mrf.mxu1 }
 0x3b7   : > { %v6682_v50 = vadd.f32 %v4919_v46, %v889_v44  ;;  %v6938_v51 = vadd.f32 %v5943_v47, %v1145_v45  ;;  %v15191_v44 = vld [vmem:[%s15780_s21 + $0x4b0] ss:$8 sps:$4 sm:$0xff]  }
 0x3b8   : > { %v4921_v54 = vpop.f32.mrf.mxu0  ;;  %v5945_v55 = vpop.f32.mrf.mxu1  ;;  %v15194_v45 = vld [vmem:[%s15780_s21 + $0xcb0] ss:$8 sps:$4 sm:$0xff]  }
 0x3b9   : > { %7194 = vst [vmem:[#allocation2 + $0x2e0] sm:$0xff] %v6682_v50  ;;  %7450 = vst [vmem:[#allocation2 + $0xa8] sm:$0xff] %v6938_v51 }
 0x3ba   : > { %v4924_v58 = vpop.f32.mrf.mxu0  ;;  %5115 = vmatmul.mubr.bf16.gmra.mxu0 %v15173_v48  ;;  %v5948_v59 = vpop.f32.mrf.mxu1  ;;  %6139 = vmatmul.mubr.bf16.gmra.mxu1 %v15176_v49  ;;  %v15199_v48 = vld [vmem:[%s15780_s21 + $0x4c4] ss:$8 sps:$4 sm:$0xff]  }
 0x3bb   : > { %v6683_v60 = vadd.f32 %v4924_v58, %v890_v56  ;;  %v6939_v61 = vadd.f32 %v5948_v59, %v1146_v57  ;;  %5122 = vmatprep.mubr.bf16.mxu0 %v15181_v52  ;;  %6146 = vmatprep.mubr.bf16.mxu1 %v15184_v53  ;;  %v15202_v49 = vld [vmem:[%s15780_s21 + $0xcc4] ss:$8 sps:$4 sm:$0xff]   ;;  %v896_v52 = vld [vmem:[#allocation2 + $0xa58] sm:$0xff] }
 0x3bc   : > { %v4926_v62 = vpop.f32.mrf.mxu0  ;;  %v5950_v63 = vpop.f32.mrf.mxu1  ;;  %v1152_v53 = vld [vmem:[#allocation2 + $0xbe0] sm:$0xff] }
 0x3bd   : > { %7195 = vst [vmem:[#allocation2 + $0x708] sm:$0xff] %v6683_v60  ;;  %7451 = vst [vmem:[#allocation2 + $0x1d8] sm:$0xff] %v6939_v61  ;;  %v897_v60 = vld [vmem:[#allocation2 + $0xae0] sm:$0xff]  ;;  %v1153_v61 = vld [vmem:[#allocation2 + $0xad0] sm:$0xff] }
 0x3be   : > { %v4927_v2 = vpop.f32.mrf.mxu0  ;;  %v5951_v3 = vpop.f32.mrf.mxu1 }
 0x3bf   : > { %v6684_v6 = vadd.f32 %v4927_v2, %v891_v0  ;;  %v6940_v7 = vadd.f32 %v5951_v3, %v1147_v1  ;;  %v15197_v0 = vld [vmem:[%s15780_s21 + $0x4c0] ss:$8 sps:$4 sm:$0xff]  }
 0x3c0   : > { %v4929_v10 = vpop.f32.mrf.mxu0  ;;  %v5953_v11 = vpop.f32.mrf.mxu1  ;;  %v15200_v1 = vld [vmem:[%s15780_s21 + $0xcc0] ss:$8 sps:$4 sm:$0xff]  }
 0x3c1   : > { %7196 = vst [vmem:[#allocation2 + $0x428] sm:$0xff] %v6684_v6  ;;  %7452 = vst [vmem:[#allocation2 + $0xe58] sm:$0xff] %v6940_v7 }
 0x3c2   : > { %v4932_v14 = vpop.f32.mrf.mxu0  ;;  %5123 = vmatmul.mubr.bf16.gmra.mxu0 %v15179_v4  ;;  %v5956_v15 = vpop.f32.mrf.mxu1  ;;  %6147 = vmatmul.mubr.bf16.gmra.mxu1 %v15182_v5  ;;  %v15205_v4 = vld [vmem:[%s15780_s21 + $0x4d4] ss:$8 sps:$4 sm:$0xff]  }
 0x3c3   : > { %v6685_v16 = vadd.f32 %v4932_v14, %v892_v12  ;;  %v6941_v17 = vadd.f32 %v5956_v15, %v1148_v13  ;;  %5130 = vmatprep.mubr.bf16.mxu0 %v15187_v8  ;;  %6154 = vmatprep.mubr.bf16.mxu1 %v15190_v9  ;;  %v15208_v5 = vld [vmem:[%s15780_s21 + $0xcd4] ss:$8 sps:$4 sm:$0xff]   ;;  %v898_v8 = vld [vmem:[#allocation2 + $0xea8] sm:$0xff] }
 0x3c4   : > { %v4934_v18 = vpop.f32.mrf.mxu0  ;;  %v5958_v19 = vpop.f32.mrf.mxu1  ;;  %v1154_v9 = vld [vmem:[#allocation2 + $0xa18] sm:$0xff] }
 0x3c5   : > { %7197 = vst [vmem:[#allocation2 + $0xe48] sm:$0xff] %v6685_v16  ;;  %7453 = vst [vmem:[#allocation2 + $0x638] sm:$0xff] %v6941_v17  ;;  %v899_v16 = vld [vmem:[#allocation2 + $0x9c0] sm:$0xff] }
 0x3c6   : > { %v4935_v22 = vpop.f32.mrf.mxu0  ;;  %v5959_v23 = vpop.f32.mrf.mxu1  ;;  %v1155_v17 = vld [vmem:[#allocation2 + $0x300] sm:$0xff] }
 0x3c7   : > { %v6686_v26 = vadd.f32 %v4935_v22, %v893_v20  ;;  %v6942_v27 = vadd.f32 %v5959_v23, %v1149_v21  ;;  %v15203_v20 = vld [vmem:[%s15780_s21 + $0x4d0] ss:$8 sps:$4 sm:$0xff]  }
 0x3c8   : > { %v4937_v30 = vpop.f32.mrf.mxu0  ;;  %v5961_v31 = vpop.f32.mrf.mxu1  ;;  %v15206_v21 = vld [vmem:[%s15780_s21 + $0xcd0] ss:$8 sps:$4 sm:$0xff]  }
 0x3c9   : > { %7198 = vst [vmem:[#allocation2 + $0xe80] sm:$0xff] %v6686_v26  ;;  %7454 = vst [vmem:[#allocation2 + $0x870] sm:$0xff] %v6942_v27 }
 0x3ca   : > { %v4940_v34 = vpop.f32.mrf.mxu0  ;;  %5131 = vmatmul.mubr.bf16.gmra.mxu0 %v15185_v24  ;;  %v5964_v35 = vpop.f32.mrf.mxu1  ;;  %6155 = vmatmul.mubr.bf16.gmra.mxu1 %v15188_v25  ;;  %v15211_v24 = vld [vmem:[%s15780_s21 + $0x4e4] ss:$8 sps:$4 sm:$0xff]  }
 0x3cb   : > { %v6687_v36 = vadd.f32 %v4940_v34, %v894_v32  ;;  %v6943_v37 = vadd.f32 %v5964_v35, %v1150_v33  ;;  %5138 = vmatprep.mubr.bf16.mxu0 %v15193_v28  ;;  %6162 = vmatprep.mubr.bf16.mxu1 %v15196_v29  ;;  %v15214_v25 = vld [vmem:[%s15780_s21 + $0xce4] ss:$8 sps:$4 sm:$0xff]   ;;  %v900_v28 = vld [vmem:[#allocation2 + $0x418] sm:$0xff]  ;;  %v1156_v29 = vld [vmem:[#allocation2 + $0xa10] sm:$0xff] }
 0x3cc   : > { %v4942_v38 = vpop.f32.mrf.mxu0  ;;  %v5966_v39 = vpop.f32.mrf.mxu1 }
 0x3cd   : > { %7199 = vst [vmem:[#allocation2 + $0x250] sm:$0xff] %v6687_v36  ;;  %7455 = vst [vmem:[#allocation2 + $0xa40] sm:$0xff] %v6943_v37  ;;  %v901_v36 = vld [vmem:[#allocation2 + $0x410] sm:$0xff]  ;;  %v1157_v37 = vld [vmem:[#allocation2 + $0xd28] sm:$0xff] }
 0x3ce   : > { %v4943_v42 = vpop.f32.mrf.mxu0  ;;  %v5967_v43 = vpop.f32.mrf.mxu1 }
 0x3cf   : > { %v6688_v46 = vadd.f32 %v4943_v42, %v895_v40  ;;  %v6944_v47 = vadd.f32 %v5967_v43, %v1151_v41  ;;  %v15209_v40 = vld [vmem:[%s15780_s21 + $0x4e0] ss:$8 sps:$4 sm:$0xff]  }
 0x3d0   : > { %v4945_v50 = vpop.f32.mrf.mxu0  ;;  %v5969_v51 = vpop.f32.mrf.mxu1  ;;  %v15212_v41 = vld [vmem:[%s15780_s21 + $0xce0] ss:$8 sps:$4 sm:$0xff]  }
 0x3d1   : > { %7200 = vst [vmem:[#allocation2 + $0x380] sm:$0xff] %v6688_v46  ;;  %7456 = vst [vmem:[#allocation2 + $0x958] sm:$0xff] %v6944_v47 }
 0x3d2   : > { %v4948_v54 = vpop.f32.mrf.mxu0  ;;  %5139 = vmatmul.mubr.bf16.gmra.mxu0 %v15191_v44  ;;  %v5972_v55 = vpop.f32.mrf.mxu1  ;;  %6163 = vmatmul.mubr.bf16.gmra.mxu1 %v15194_v45  ;;  %v15217_v44 = vld [vmem:[%s15780_s21 + $0x4f4] ss:$8 sps:$4 sm:$0xff]  }
 0x3d3   : > { %v6689_v56 = vadd.f32 %v4948_v54, %v896_v52  ;;  %v6945_v57 = vadd.f32 %v5972_v55, %v1152_v53  ;;  %5146 = vmatprep.mubr.bf16.mxu0 %v15199_v48  ;;  %6170 = vmatprep.mubr.bf16.mxu1 %v15202_v49  ;;  %v15220_v45 = vld [vmem:[%s15780_s21 + $0xcf4] ss:$8 sps:$4 sm:$0xff]   ;;  %v902_v48 = vld [vmem:[#allocation2 + $0x760] sm:$0xff] }
 0x3d4   : > { %v4950_v58 = vpop.f32.mrf.mxu0  ;;  %v5974_v59 = vpop.f32.mrf.mxu1  ;;  %v1158_v49 = vld [vmem:[#allocation2 + $0x480] sm:$0xff] }
 0x3d5   : > { %7201 = vst [vmem:[#allocation2 + $0xa58] sm:$0xff] %v6689_v56  ;;  %7457 = vst [vmem:[#allocation2 + $0xbe0] sm:$0xff] %v6945_v57  ;;  %v903_v56 = vld [vmem:[#allocation2 + $0x9e0] sm:$0xff] }
 0x3d6   : > { %v4951_v62 = vpop.f32.mrf.mxu0  ;;  %v5975_v63 = vpop.f32.mrf.mxu1  ;;  %v1159_v57 = vld [vmem:[#allocation2 + $0x240] sm:$0xff] }
 0x3d7   : > { %v6690_v2 = vadd.f32 %v4951_v62, %v897_v60  ;;  %v6946_v3 = vadd.f32 %v5975_v63, %v1153_v61  ;;  %v15215_v60 = vld [vmem:[%s15780_s21 + $0x4f0] ss:$8 sps:$4 sm:$0xff]  }
 0x3d8   : > { %v4953_v6 = vpop.f32.mrf.mxu0  ;;  %v5977_v7 = vpop.f32.mrf.mxu1  ;;  %v15218_v61 = vld [vmem:[%s15780_s21 + $0xcf0] ss:$8 sps:$4 sm:$0xff]  }
 0x3d9   : > { %7202 = vst [vmem:[#allocation2 + $0xae0] sm:$0xff] %v6690_v2  ;;  %7458 = vst [vmem:[#allocation2 + $0xad0] sm:$0xff] %v6946_v3 }
 0x3da   : > { %v4956_v10 = vpop.f32.mrf.mxu0  ;;  %5147 = vmatmul.mubr.bf16.gmra.mxu0 %v15197_v0  ;;  %v5980_v11 = vpop.f32.mrf.mxu1  ;;  %6171 = vmatmul.mubr.bf16.gmra.mxu1 %v15200_v1  ;;  %v15223_v0 = vld [vmem:[%s15780_s21 + $0x504] ss:$8 sps:$4 sm:$0xff]  }
 0x3db   : > { %v6691_v12 = vadd.f32 %v4956_v10, %v898_v8  ;;  %v6947_v13 = vadd.f32 %v5980_v11, %v1154_v9  ;;  %5154 = vmatprep.mubr.bf16.mxu0 %v15205_v4  ;;  %6178 = vmatprep.mubr.bf16.mxu1 %v15208_v5  ;;  %v15226_v1 = vld [vmem:[%s15780_s21 + $0xd04] ss:$8 sps:$4 sm:$0xff]   ;;  %v1160_v5 = vld [vmem:[#allocation2 + $0xcf0] sm:$0xff] }
 0x3dc   : > { %v4958_v14 = vpop.f32.mrf.mxu0  ;;  %v5982_v15 = vpop.f32.mrf.mxu1  ;;  %v904_v4 = vld [vmem:[#allocation2 + $0x100] sm:$0xff] }
 0x3dd   : > { %7203 = vst [vmem:[#allocation2 + $0xea8] sm:$0xff] %v6691_v12  ;;  %7459 = vst [vmem:[#allocation2 + $0xa18] sm:$0xff] %v6947_v13  ;;  %v905_v12 = vld [vmem:[#allocation2 + $0x78] sm:$0xff]  ;;  %v1161_v13 = vld [vmem:[#allocation2 + $0x48] sm:$0xff] }
 0x3de   : > { %v4959_v18 = vpop.f32.mrf.mxu0  ;;  %v5983_v19 = vpop.f32.mrf.mxu1 }
 0x3df   : > { %v6692_v22 = vadd.f32 %v4959_v18, %v899_v16  ;;  %v6948_v23 = vadd.f32 %v5983_v19, %v1155_v17  ;;  %v15221_v16 = vld [vmem:[%s15780_s21 + $0x500] ss:$8 sps:$4 sm:$0xff]  }
 0x3e0   : > { %v4961_v26 = vpop.f32.mrf.mxu0  ;;  %v5985_v27 = vpop.f32.mrf.mxu1  ;;  %v15224_v17 = vld [vmem:[%s15780_s21 + $0xd00] ss:$8 sps:$4 sm:$0xff]  }
 0x3e1   : > { %7204 = vst [vmem:[#allocation2 + $0x9c0] sm:$0xff] %v6692_v22  ;;  %7460 = vst [vmem:[#allocation2 + $0x300] sm:$0xff] %v6948_v23 }
 0x3e2   : > { %v4964_v30 = vpop.f32.mrf.mxu0  ;;  %5155 = vmatmul.mubr.bf16.gmra.mxu0 %v15203_v20  ;;  %v5988_v31 = vpop.f32.mrf.mxu1  ;;  %6179 = vmatmul.mubr.bf16.gmra.mxu1 %v15206_v21  ;;  %v15229_v20 = vld [vmem:[%s15780_s21 + $0x514] ss:$8 sps:$4 sm:$0xff]  }
 0x3e3   : > { %v6693_v32 = vadd.f32 %v4964_v30, %v900_v28  ;;  %v6949_v33 = vadd.f32 %v5988_v31, %v1156_v29  ;;  %5162 = vmatprep.mubr.bf16.mxu0 %v15211_v24  ;;  %6186 = vmatprep.mubr.bf16.mxu1 %v15214_v25  ;;  %v15232_v21 = vld [vmem:[%s15780_s21 + $0xd14] ss:$8 sps:$4 sm:$0xff]   ;;  %v906_v24 = vld [vmem:[#allocation2 + $0xec0] sm:$0xff]  ;;  %v1162_v25 = vld [vmem:[#allocation2 + $0x4e8] sm:$0xff] }
 0x3e4   : > { %v4966_v34 = vpop.f32.mrf.mxu0  ;;  %v5990_v35 = vpop.f32.mrf.mxu1 }
 0x3e5   : > { %7205 = vst [vmem:[#allocation2 + $0x418] sm:$0xff] %v6693_v32  ;;  %7461 = vst [vmem:[#allocation2 + $0xa10] sm:$0xff] %v6949_v33  ;;  %v907_v32 = vld [vmem:[#allocation2 + $0x438] sm:$0xff]  ;;  %v1163_v33 = vld [vmem:[#allocation2 + $0x220] sm:$0xff] }
 0x3e6   : > { %v4967_v38 = vpop.f32.mrf.mxu0  ;;  %v5991_v39 = vpop.f32.mrf.mxu1 }
 0x3e7   : > { %v6694_v42 = vadd.f32 %v4967_v38, %v901_v36  ;;  %v6950_v43 = vadd.f32 %v5991_v39, %v1157_v37  ;;  %v15227_v36 = vld [vmem:[%s15780_s21 + $0x510] ss:$8 sps:$4 sm:$0xff]  }
 0x3e8   : > { %v4969_v46 = vpop.f32.mrf.mxu0  ;;  %v5993_v47 = vpop.f32.mrf.mxu1  ;;  %v15230_v37 = vld [vmem:[%s15780_s21 + $0xd10] ss:$8 sps:$4 sm:$0xff]  }
 0x3e9   : > { %7206 = vst [vmem:[#allocation2 + $0x410] sm:$0xff] %v6694_v42  ;;  %7462 = vst [vmem:[#allocation2 + $0xd28] sm:$0xff] %v6950_v43 }
 0x3ea   : > { %v4972_v50 = vpop.f32.mrf.mxu0  ;;  %5163 = vmatmul.mubr.bf16.gmra.mxu0 %v15209_v40  ;;  %v5996_v51 = vpop.f32.mrf.mxu1  ;;  %6187 = vmatmul.mubr.bf16.gmra.mxu1 %v15212_v41  ;;  %v15235_v40 = vld [vmem:[%s15780_s21 + $0x524] ss:$8 sps:$4 sm:$0xff]  }
 0x3eb   : > { %v6695_v52 = vadd.f32 %v4972_v50, %v902_v48  ;;  %v6951_v53 = vadd.f32 %v5996_v51, %v1158_v49  ;;  %5170 = vmatprep.mubr.bf16.mxu0 %v15217_v44  ;;  %6194 = vmatprep.mubr.bf16.mxu1 %v15220_v45  ;;  %v15238_v41 = vld [vmem:[%s15780_s21 + $0xd24] ss:$8 sps:$4 sm:$0xff]   ;;  %v1164_v45 = vld [vmem:[#allocation2 + $0x890] sm:$0xff] }
 0x3ec   : > { %v4974_v54 = vpop.f32.mrf.mxu0  ;;  %v5998_v55 = vpop.f32.mrf.mxu1  ;;  %v908_v44 = vld [vmem:[#allocation2 + $0xca8] sm:$0xff] }
 0x3ed   : > { %7207 = vst [vmem:[#allocation2 + $0x760] sm:$0xff] %v6695_v52  ;;  %7463 = vst [vmem:[#allocation2 + $0x480] sm:$0xff] %v6951_v53  ;;  %v909_v52 = vld [vmem:[#allocation2 + $0xaf8] sm:$0xff] }
 0x3ee   : > { %v4975_v58 = vpop.f32.mrf.mxu0  ;;  %v5999_v59 = vpop.f32.mrf.mxu1  ;;  %v1165_v53 = vld [vmem:[#allocation2 + $0x3b8] sm:$0xff] }
 0x3ef   : > { %v6696_v62 = vadd.f32 %v4975_v58, %v903_v56  ;;  %v6952_v63 = vadd.f32 %v5999_v59, %v1159_v57  ;;  %v15233_v56 = vld [vmem:[%s15780_s21 + $0x520] ss:$8 sps:$4 sm:$0xff]  }
 0x3f0   : > { %v4977_v2 = vpop.f32.mrf.mxu0  ;;  %v6001_v3 = vpop.f32.mrf.mxu1  ;;  %v15236_v57 = vld [vmem:[%s15780_s21 + $0xd20] ss:$8 sps:$4 sm:$0xff]  }
 0x3f1   : > { %7208 = vst [vmem:[#allocation2 + $0x9e0] sm:$0xff] %v6696_v62  ;;  %7464 = vst [vmem:[#allocation2 + $0x240] sm:$0xff] %v6952_v63 }
 0x3f2   : > { %v4980_v6 = vpop.f32.mrf.mxu0  ;;  %5171 = vmatmul.mubr.bf16.gmra.mxu0 %v15215_v60  ;;  %v6004_v7 = vpop.f32.mrf.mxu1  ;;  %6195 = vmatmul.mubr.bf16.gmra.mxu1 %v15218_v61  ;;  %v15241_v60 = vld [vmem:[%s15780_s21 + $0x534] ss:$8 sps:$4 sm:$0xff]  }
 0x3f3   : > { %v6697_v8 = vadd.f32 %v4980_v6, %v904_v4  ;;  %v6953_v9 = vadd.f32 %v6004_v7, %v1160_v5  ;;  %5178 = vmatprep.mubr.bf16.mxu0 %v15223_v0  ;;  %6202 = vmatprep.mubr.bf16.mxu1 %v15226_v1  ;;  %v15244_v61 = vld [vmem:[%s15780_s21 + $0xd34] ss:$8 sps:$4 sm:$0xff]   ;;  %v910_v0 = vld [vmem:[#allocation2 + $0xa28] sm:$0xff] }
 0x3f4   : > { %v4982_v10 = vpop.f32.mrf.mxu0  ;;  %v6006_v11 = vpop.f32.mrf.mxu1  ;;  %v1166_v1 = vld [vmem:[#allocation2 + $0x3e8] sm:$0xff] }
 0x3f5   : > { %7209 = vst [vmem:[#allocation2 + $0x100] sm:$0xff] %v6697_v8  ;;  %7465 = vst [vmem:[#allocation2 + $0xcf0] sm:$0xff] %v6953_v9  ;;  %v911_v8 = vld [vmem:[#allocation2 + $0xa20] sm:$0xff]  ;;  %v1167_v9 = vld [vmem:[#allocation2 + $0xe10] sm:$0xff] }
 0x3f6   : > { %v4983_v14 = vpop.f32.mrf.mxu0  ;;  %v6007_v15 = vpop.f32.mrf.mxu1 }
 0x3f7   : > { %v6698_v18 = vadd.f32 %v4983_v14, %v905_v12  ;;  %v6954_v19 = vadd.f32 %v6007_v15, %v1161_v13  ;;  %v15239_v12 = vld [vmem:[%s15780_s21 + $0x530] ss:$8 sps:$4 sm:$0xff]  }
 0x3f8   : > { %v4985_v22 = vpop.f32.mrf.mxu0  ;;  %v6009_v23 = vpop.f32.mrf.mxu1  ;;  %v15242_v13 = vld [vmem:[%s15780_s21 + $0xd30] ss:$8 sps:$4 sm:$0xff]  }
 0x3f9   : > { %7210 = vst [vmem:[#allocation2 + $0x78] sm:$0xff] %v6698_v18  ;;  %7466 = vst [vmem:[#allocation2 + $0x48] sm:$0xff] %v6954_v19 }
 0x3fa   : > { %v4988_v26 = vpop.f32.mrf.mxu0  ;;  %5179 = vmatmul.mubr.bf16.gmra.mxu0 %v15221_v16  ;;  %v6012_v27 = vpop.f32.mrf.mxu1  ;;  %6203 = vmatmul.mubr.bf16.gmra.mxu1 %v15224_v17  ;;  %v15247_v16 = vld [vmem:[%s15780_s21 + $0x544] ss:$8 sps:$4 sm:$0xff]  }
 0x3fb   : > { %v6699_v28 = vadd.f32 %v4988_v26, %v906_v24  ;;  %v6955_v29 = vadd.f32 %v6012_v27, %v1162_v25  ;;  %5186 = vmatprep.mubr.bf16.mxu0 %v15229_v20  ;;  %6210 = vmatprep.mubr.bf16.mxu1 %v15232_v21  ;;  %v15250_v17 = vld [vmem:[%s15780_s21 + $0xd44] ss:$8 sps:$4 sm:$0xff]   ;;  %v912_v20 = vld [vmem:[#allocation2 + $0xd50] sm:$0xff] }
 0x3fc   : > { %v4990_v30 = vpop.f32.mrf.mxu0  ;;  %v6014_v31 = vpop.f32.mrf.mxu1  ;;  %v1168_v21 = vld [vmem:[#allocation2 + $0x248] sm:$0xff] }
 0x3fd   : > { %7211 = vst [vmem:[#allocation2 + $0xec0] sm:$0xff] %v6699_v28  ;;  %7467 = vst [vmem:[#allocation2 + $0x4e8] sm:$0xff] %v6955_v29  ;;  %v913_v28 = vld [vmem:[#allocation2 + $0xbb8] sm:$0xff]  ;;  %v1169_v29 = vld [vmem:[#allocation2 + $0x3f0] sm:$0xff] }
 0x3fe   : > { %v4991_v34 = vpop.f32.mrf.mxu0  ;;  %v6015_v35 = vpop.f32.mrf.mxu1 }
 0x3ff   : > { %v6700_v38 = vadd.f32 %v4991_v34, %v907_v32  ;;  %v6956_v39 = vadd.f32 %v6015_v35, %v1163_v33  ;;  %v15245_v32 = vld [vmem:[%s15780_s21 + $0x540] ss:$8 sps:$4 sm:$0xff]  }
 0x400   : > { %v4993_v42 = vpop.f32.mrf.mxu0  ;;  %v6017_v43 = vpop.f32.mrf.mxu1  ;;  %v15248_v33 = vld [vmem:[%s15780_s21 + $0xd40] ss:$8 sps:$4 sm:$0xff]  }
 0x401   : > { %7212 = vst [vmem:[#allocation2 + $0x438] sm:$0xff] %v6700_v38  ;;  %7468 = vst [vmem:[#allocation2 + $0x220] sm:$0xff] %v6956_v39 }
 0x402   : > { %v4996_v46 = vpop.f32.mrf.mxu0  ;;  %5187 = vmatmul.mubr.bf16.gmra.mxu0 %v15227_v36  ;;  %v6020_v47 = vpop.f32.mrf.mxu1  ;;  %6211 = vmatmul.mubr.bf16.gmra.mxu1 %v15230_v37  ;;  %v15253_v36 = vld [vmem:[%s15780_s21 + $0x554] ss:$8 sps:$4 sm:$0xff]  }
 0x403   : > { %v6701_v48 = vadd.f32 %v4996_v46, %v908_v44  ;;  %v6957_v49 = vadd.f32 %v6020_v47, %v1164_v45  ;;  %5194 = vmatprep.mubr.bf16.mxu0 %v15235_v40  ;;  %6218 = vmatprep.mubr.bf16.mxu1 %v15238_v41  ;;  %v15256_v37 = vld [vmem:[%s15780_s21 + $0xd54] ss:$8 sps:$4 sm:$0xff]   ;;  %v1170_v41 = vld [vmem:[#allocation2 + $0x3c8] sm:$0xff] }
 0x404   : > { %v4998_v50 = vpop.f32.mrf.mxu0  ;;  %v6022_v51 = vpop.f32.mrf.mxu1  ;;  %v914_v40 = vld [vmem:[#allocation2 + $0x3d8] sm:$0xff] }
 0x405   : > { %7213 = vst [vmem:[#allocation2 + $0xca8] sm:$0xff] %v6701_v48  ;;  %7469 = vst [vmem:[#allocation2 + $0x890] sm:$0xff] %v6957_v49  ;;  %v915_v48 = vld [vmem:[#allocation2 + $0x5e0] sm:$0xff]  ;;  %v1171_v49 = vld [vmem:[#allocation2 + $0xc98] sm:$0xff] }
 0x406   : > { %v4999_v54 = vpop.f32.mrf.mxu0  ;;  %v6023_v55 = vpop.f32.mrf.mxu1 }
 0x407   : > { %v6702_v58 = vadd.f32 %v4999_v54, %v909_v52  ;;  %v6958_v59 = vadd.f32 %v6023_v55, %v1165_v53  ;;  %v15251_v52 = vld [vmem:[%s15780_s21 + $0x550] ss:$8 sps:$4 sm:$0xff]  }
 0x408   : > { %v5001_v62 = vpop.f32.mrf.mxu0  ;;  %v6025_v63 = vpop.f32.mrf.mxu1  ;;  %v15254_v53 = vld [vmem:[%s15780_s21 + $0xd50] ss:$8 sps:$4 sm:$0xff]  }
 0x409   : > { %7214 = vst [vmem:[#allocation2 + $0xaf8] sm:$0xff] %v6702_v58  ;;  %7470 = vst [vmem:[#allocation2 + $0x3b8] sm:$0xff] %v6958_v59 }
 0x40a   : > { %v5004_v2 = vpop.f32.mrf.mxu0  ;;  %5195 = vmatmul.mubr.bf16.gmra.mxu0 %v15233_v56  ;;  %v6028_v3 = vpop.f32.mrf.mxu1  ;;  %6219 = vmatmul.mubr.bf16.gmra.mxu1 %v15236_v57  ;;  %v15259_v56 = vld [vmem:[%s15780_s21 + $0x564] ss:$8 sps:$4 sm:$0xff]  }
 0x40b   : > { %v6703_v4 = vadd.f32 %v5004_v2, %v910_v0  ;;  %v6959_v5 = vadd.f32 %v6028_v3, %v1166_v1  ;;  %5202 = vmatprep.mubr.bf16.mxu0 %v15241_v60  ;;  %6226 = vmatprep.mubr.bf16.mxu1 %v15244_v61  ;;  %v15262_v57 = vld [vmem:[%s15780_s21 + $0xd64] ss:$8 sps:$4 sm:$0xff]  }
 0x40c   : > { %v5006_v6 = vpop.f32.mrf.mxu0  ;;  %v6030_v7 = vpop.f32.mrf.mxu1  ;;  %v916_v60 = vld [vmem:[#allocation2 + $0x980] sm:$0xff] }
 0x40d   : > { %7215 = vst [vmem:[#allocation2 + $0xa28] sm:$0xff] %v6703_v4  ;;  %7471 = vst [vmem:[#allocation2 + $0x3e8] sm:$0xff] %v6959_v5  ;;  %v1172_v61 = vld [vmem:[#allocation2 + $0x280] sm:$0xff]  ;;  %v917_v4 = vld [vmem:[#allocation2 + $0x990] sm:$0xff] }
 0x40e   : > { %v5007_v10 = vpop.f32.mrf.mxu0  ;;  %v6031_v11 = vpop.f32.mrf.mxu1  ;;  %v1173_v5 = vld [vmem:[#allocation2 + $0xa08] sm:$0xff] }
 0x40f   : > { %v6704_v14 = vadd.f32 %v5007_v10, %v911_v8  ;;  %v6960_v15 = vadd.f32 %v6031_v11, %v1167_v9  ;;  %v15257_v8 = vld [vmem:[%s15780_s21 + $0x560] ss:$8 sps:$4 sm:$0xff]  }
 0x410   : > { %v5009_v18 = vpop.f32.mrf.mxu0  ;;  %v6033_v19 = vpop.f32.mrf.mxu1  ;;  %v15260_v9 = vld [vmem:[%s15780_s21 + $0xd60] ss:$8 sps:$4 sm:$0xff]  }
 0x411   : > { %7216 = vst [vmem:[#allocation2 + $0xa20] sm:$0xff] %v6704_v14  ;;  %7472 = vst [vmem:[#allocation2 + $0xe10] sm:$0xff] %v6960_v15 }
 0x412   : > { %v5012_v22 = vpop.f32.mrf.mxu0  ;;  %5203 = vmatmul.mubr.bf16.gmra.mxu0 %v15239_v12  ;;  %v6036_v23 = vpop.f32.mrf.mxu1  ;;  %6227 = vmatmul.mubr.bf16.gmra.mxu1 %v15242_v13  ;;  %v15265_v12 = vld [vmem:[%s15780_s21 + $0x574] ss:$8 sps:$4 sm:$0xff]  }
 0x413   : > { %v6705_v24 = vadd.f32 %v5012_v22, %v912_v20  ;;  %v6961_v25 = vadd.f32 %v6036_v23, %v1168_v21  ;;  %5210 = vmatprep.mubr.bf16.mxu0 %v15247_v16  ;;  %6234 = vmatprep.mubr.bf16.mxu1 %v15250_v17  ;;  %v15268_v13 = vld [vmem:[%s15780_s21 + $0xd74] ss:$8 sps:$4 sm:$0xff]   ;;  %v1174_v17 = vld [vmem:[#allocation2 + $0x540] sm:$0xff] }
 0x414   : > { %v5014_v26 = vpop.f32.mrf.mxu0  ;;  %v6038_v27 = vpop.f32.mrf.mxu1  ;;  %v918_v16 = vld [vmem:[#allocation2 + $0xb10] sm:$0xff] }
 0x415   : > { %7217 = vst [vmem:[#allocation2 + $0xd50] sm:$0xff] %v6705_v24  ;;  %7473 = vst [vmem:[#allocation2 + $0x248] sm:$0xff] %v6961_v25  ;;  %v919_v24 = vld [vmem:[#allocation2 + $0x960] sm:$0xff]  ;;  %v1175_v25 = vld [vmem:[#allocation2 + $0x378] sm:$0xff] }
 0x416   : > { %v5015_v30 = vpop.f32.mrf.mxu0  ;;  %v6039_v31 = vpop.f32.mrf.mxu1 }
 0x417   : > { %v6706_v34 = vadd.f32 %v5015_v30, %v913_v28  ;;  %v6962_v35 = vadd.f32 %v6039_v31, %v1169_v29  ;;  %v15263_v28 = vld [vmem:[%s15780_s21 + $0x570] ss:$8 sps:$4 sm:$0xff]  }
 0x418   : > { %v5017_v38 = vpop.f32.mrf.mxu0  ;;  %v6041_v39 = vpop.f32.mrf.mxu1  ;;  %v15266_v29 = vld [vmem:[%s15780_s21 + $0xd70] ss:$8 sps:$4 sm:$0xff]  }
 0x419   : > { %7218 = vst [vmem:[#allocation2 + $0xbb8] sm:$0xff] %v6706_v34  ;;  %7474 = vst [vmem:[#allocation2 + $0x3f0] sm:$0xff] %v6962_v35 }
 0x41a   : > { %v5020_v42 = vpop.f32.mrf.mxu0  ;;  %5211 = vmatmul.mubr.bf16.gmra.mxu0 %v15245_v32  ;;  %v6044_v43 = vpop.f32.mrf.mxu1  ;;  %6235 = vmatmul.mubr.bf16.gmra.mxu1 %v15248_v33  ;;  %v15271_v32 = vld [vmem:[%s15780_s21 + $0x584] ss:$8 sps:$4 sm:$0xff]  }
 0x41b   : > { %v6707_v44 = vadd.f32 %v5020_v42, %v914_v40  ;;  %v6963_v45 = vadd.f32 %v6044_v43, %v1170_v41  ;;  %5218 = vmatprep.mubr.bf16.mxu0 %v15253_v36  ;;  %6242 = vmatprep.mubr.bf16.mxu1 %v15256_v37  ;;  %v15274_v33 = vld [vmem:[%s15780_s21 + $0xd84] ss:$8 sps:$4 sm:$0xff]   ;;  %v920_v36 = vld [vmem:[#allocation2 + $0x310] sm:$0xff]  ;;  %v1176_v37 = vld [vmem:[#allocation2 + $0x7d8] sm:$0xff] }
 0x41c   : > { %v5022_v46 = vpop.f32.mrf.mxu0  ;;  %v6046_v47 = vpop.f32.mrf.mxu1 }
 0x41d   : > { %7219 = vst [vmem:[#allocation2 + $0x3d8] sm:$0xff] %v6707_v44  ;;  %7475 = vst [vmem:[#allocation2 + $0x3c8] sm:$0xff] %v6963_v45  ;;  %v921_v44 = vld [vmem:[#allocation2 + $0xd8] sm:$0xff]  ;;  %v1177_v45 = vld [vmem:[#allocation2 + $0x68] sm:$0xff] }
 0x41e   : > { %v5023_v50 = vpop.f32.mrf.mxu0  ;;  %v6047_v51 = vpop.f32.mrf.mxu1 }
 0x41f   : > { %v6708_v54 = vadd.f32 %v5023_v50, %v915_v48  ;;  %v6964_v55 = vadd.f32 %v6047_v51, %v1171_v49  ;;  %v15269_v48 = vld [vmem:[%s15780_s21 + $0x580] ss:$8 sps:$4 sm:$0xff]  }
 0x420   : > { %v5025_v58 = vpop.f32.mrf.mxu0  ;;  %v6049_v59 = vpop.f32.mrf.mxu1  ;;  %v15272_v49 = vld [vmem:[%s15780_s21 + $0xd80] ss:$8 sps:$4 sm:$0xff]  }
 0x421   : > { %7220 = vst [vmem:[#allocation2 + $0x5e0] sm:$0xff] %v6708_v54  ;;  %7476 = vst [vmem:[#allocation2 + $0xc98] sm:$0xff] %v6964_v55 }
 0x422   : > { %v5028_v62 = vpop.f32.mrf.mxu0  ;;  %5219 = vmatmul.mubr.bf16.gmra.mxu0 %v15251_v52  ;;  %v6052_v63 = vpop.f32.mrf.mxu1  ;;  %6243 = vmatmul.mubr.bf16.gmra.mxu1 %v15254_v53  ;;  %v15277_v52 = vld [vmem:[%s15780_s21 + $0x594] ss:$8 sps:$4 sm:$0xff]  }
 0x423   : > { %v6709_v0 = vadd.f32 %v5028_v62, %v916_v60  ;;  %v6965_v1 = vadd.f32 %v6052_v63, %v1172_v61  ;;  %5226 = vmatprep.mubr.bf16.mxu0 %v15259_v56  ;;  %6250 = vmatprep.mubr.bf16.mxu1 %v15262_v57  ;;  %v15280_v53 = vld [vmem:[%s15780_s21 + $0xd94] ss:$8 sps:$4 sm:$0xff]   ;;  %v922_v56 = vld [vmem:[#allocation2 + $0x1c0] sm:$0xff] }
 0x424   : > { %v5030_v2 = vpop.f32.mrf.mxu0  ;;  %v6054_v3 = vpop.f32.mrf.mxu1  ;;  %v1178_v57 = vld [vmem:[#allocation2 + $0xd38] sm:$0xff] }
 0x425   : > { %7221 = vst [vmem:[#allocation2 + $0x980] sm:$0xff] %v6709_v0  ;;  %7477 = vst [vmem:[#allocation2 + $0x280] sm:$0xff] %v6965_v1  ;;  %v923_v0 = vld [vmem:[#allocation2 + $0xac8] sm:$0xff]  ;;  %v1179_v1 = vld [vmem:[#allocation2 + $0x190] sm:$0xff] }
 0x426   : > { %v5031_v6 = vpop.f32.mrf.mxu0  ;;  %v6055_v7 = vpop.f32.mrf.mxu1 }
 0x427   : > { %v6710_v10 = vadd.f32 %v5031_v6, %v917_v4  ;;  %v6966_v11 = vadd.f32 %v6055_v7, %v1173_v5  ;;  %v15275_v4 = vld [vmem:[%s15780_s21 + $0x590] ss:$8 sps:$4 sm:$0xff]  }
 0x428   : > { %v5033_v14 = vpop.f32.mrf.mxu0  ;;  %v6057_v15 = vpop.f32.mrf.mxu1  ;;  %v15278_v5 = vld [vmem:[%s15780_s21 + $0xd90] ss:$8 sps:$4 sm:$0xff]  }
 0x429   : > { %7222 = vst [vmem:[#allocation2 + $0x990] sm:$0xff] %v6710_v10  ;;  %7478 = vst [vmem:[#allocation2 + $0xa08] sm:$0xff] %v6966_v11 }
 0x42a   : > { %v5036_v18 = vpop.f32.mrf.mxu0  ;;  %5227 = vmatmul.mubr.bf16.gmra.mxu0 %v15257_v8  ;;  %v6060_v19 = vpop.f32.mrf.mxu1  ;;  %6251 = vmatmul.mubr.bf16.gmra.mxu1 %v15260_v9  ;;  %v15283_v8 = vld [vmem:[%s15780_s21 + $0x5a4] ss:$8 sps:$4 sm:$0xff]  }
 0x42b   : > { %v6711_v20 = vadd.f32 %v5036_v18, %v918_v16  ;;  %v6967_v21 = vadd.f32 %v6060_v19, %v1174_v17  ;;  %5234 = vmatprep.mubr.bf16.mxu0 %v15265_v12  ;;  %6258 = vmatprep.mubr.bf16.mxu1 %v15268_v13  ;;  %v15286_v9 = vld [vmem:[%s15780_s21 + $0xda4] ss:$8 sps:$4 sm:$0xff]  }
 0x42c   : > { %v5038_v22 = vpop.f32.mrf.mxu0  ;;  %v6062_v23 = vpop.f32.mrf.mxu1  ;;  %v924_v12 = vld [vmem:[#allocation2 + $0x820] sm:$0xff]  ;;  %v1180_v13 = vld [vmem:[#allocation2 + $0x548] sm:$0xff] }
 0x42d   : > { %7223 = vst [vmem:[#allocation2 + $0xb10] sm:$0xff] %v6711_v20  ;;  %7479 = vst [vmem:[#allocation2 + $0x540] sm:$0xff] %v6967_v21  ;;  %v925_v20 = vld [vmem:[#allocation2 + $0x8c8] sm:$0xff] }
 0x42e   : > { %v5039_v26 = vpop.f32.mrf.mxu0  ;;  %v6063_v27 = vpop.f32.mrf.mxu1  ;;  %v1181_v21 = vld [vmem:[#allocation2 + $0x1e8] sm:$0xff] }
 0x42f   : > { %v6712_v30 = vadd.f32 %v5039_v26, %v919_v24  ;;  %v6968_v31 = vadd.f32 %v6063_v27, %v1175_v25  ;;  %v15281_v24 = vld [vmem:[%s15780_s21 + $0x5a0] ss:$8 sps:$4 sm:$0xff]  }
 0x430   : > { %v5041_v34 = vpop.f32.mrf.mxu0  ;;  %v6065_v35 = vpop.f32.mrf.mxu1  ;;  %v15284_v25 = vld [vmem:[%s15780_s21 + $0xda0] ss:$8 sps:$4 sm:$0xff]  }
 0x431   : > { %7224 = vst [vmem:[#allocation2 + $0x960] sm:$0xff] %v6712_v30  ;;  %7480 = vst [vmem:[#allocation2 + $0x378] sm:$0xff] %v6968_v31 }
 0x432   : > { %v5044_v38 = vpop.f32.mrf.mxu0  ;;  %5235 = vmatmul.mubr.bf16.gmra.mxu0 %v15263_v28  ;;  %v6068_v39 = vpop.f32.mrf.mxu1  ;;  %6259 = vmatmul.mubr.bf16.gmra.mxu1 %v15266_v29  ;;  %v15289_v28 = vld [vmem:[%s15780_s21 + $0x5b4] ss:$8 sps:$4 sm:$0xff]  }
 0x433   : > { %v6713_v40 = vadd.f32 %v5044_v38, %v920_v36  ;;  %v6969_v41 = vadd.f32 %v6068_v39, %v1176_v37  ;;  %5242 = vmatprep.mubr.bf16.mxu0 %v15271_v32  ;;  %6266 = vmatprep.mubr.bf16.mxu1 %v15274_v33  ;;  %v15292_v29 = vld [vmem:[%s15780_s21 + $0xdb4] ss:$8 sps:$4 sm:$0xff]   ;;  %v926_v32 = vld [vmem:[#allocation2 + $0xe20] sm:$0xff]  ;;  %v1182_v33 = vld [vmem:[#allocation2 + $0xc08] sm:$0xff] }
 0x434   : > { %v5046_v42 = vpop.f32.mrf.mxu0  ;;  %v6070_v43 = vpop.f32.mrf.mxu1 }
 0x435   : > { %7225 = vst [vmem:[#allocation2 + $0x310] sm:$0xff] %v6713_v40  ;;  %7481 = vst [vmem:[#allocation2 + $0x7d8] sm:$0xff] %v6969_v41  ;;  %v927_v40 = vld [vmem:[#allocation2 + $0xb60] sm:$0xff] }
 0x436   : > { %v5047_v46 = vpop.f32.mrf.mxu0  ;;  %v6071_v47 = vpop.f32.mrf.mxu1  ;;  %v1183_v41 = vld [vmem:[#allocation2 + $0x2a0] sm:$0xff] }
 0x437   : > { %v6714_v50 = vadd.f32 %v5047_v46, %v921_v44  ;;  %v6970_v51 = vadd.f32 %v6071_v47, %v1177_v45  ;;  %v15287_v44 = vld [vmem:[%s15780_s21 + $0x5b0] ss:$8 sps:$4 sm:$0xff]  }
 0x438   : > { %v5049_v54 = vpop.f32.mrf.mxu0  ;;  %v6073_v55 = vpop.f32.mrf.mxu1  ;;  %v15290_v45 = vld [vmem:[%s15780_s21 + $0xdb0] ss:$8 sps:$4 sm:$0xff]  }
 0x439   : > { %7226 = vst [vmem:[#allocation2 + $0xd8] sm:$0xff] %v6714_v50  ;;  %7482 = vst [vmem:[#allocation2 + $0x68] sm:$0xff] %v6970_v51 }
 0x43a   : > { %v5052_v58 = vpop.f32.mrf.mxu0  ;;  %5243 = vmatmul.mubr.bf16.gmra.mxu0 %v15269_v48  ;;  %v6076_v59 = vpop.f32.mrf.mxu1  ;;  %6267 = vmatmul.mubr.bf16.gmra.mxu1 %v15272_v49  ;;  %v15295_v48 = vld [vmem:[%s15780_s21 + $0x5c4] ss:$8 sps:$4 sm:$0xff]  }
 0x43b   : > { %v6715_v60 = vadd.f32 %v5052_v58, %v922_v56  ;;  %v6971_v61 = vadd.f32 %v6076_v59, %v1178_v57  ;;  %5250 = vmatprep.mubr.bf16.mxu0 %v15277_v52  ;;  %6274 = vmatprep.mubr.bf16.mxu1 %v15280_v53  ;;  %v15298_v49 = vld [vmem:[%s15780_s21 + $0xdc4] ss:$8 sps:$4 sm:$0xff]   ;;  %v928_v52 = vld [vmem:[#allocation2 + $0xed8] sm:$0xff] }
 0x43c   : > { %v5054_v62 = vpop.f32.mrf.mxu0  ;;  %v6078_v63 = vpop.f32.mrf.mxu1  ;;  %v1184_v53 = vld [vmem:[#allocation2 + $0x408] sm:$0xff] }
 0x43d   : > { %7227 = vst [vmem:[#allocation2 + $0x1c0] sm:$0xff] %v6715_v60  ;;  %7483 = vst [vmem:[#allocation2 + $0xd38] sm:$0xff] %v6971_v61  ;;  %v929_v60 = vld [vmem:[#allocation2 + $0xc80] sm:$0xff]  ;;  %v1185_v61 = vld [vmem:[#allocation2 + $0x7e8] sm:$0xff] }
 0x43e   : > { %v5055_v2 = vpop.f32.mrf.mxu0  ;;  %v6079_v3 = vpop.f32.mrf.mxu1 }
 0x43f   : > { %v6716_v6 = vadd.f32 %v5055_v2, %v923_v0  ;;  %v6972_v7 = vadd.f32 %v6079_v3, %v1179_v1  ;;  %v15293_v0 = vld [vmem:[%s15780_s21 + $0x5c0] ss:$8 sps:$4 sm:$0xff]  }
 0x440   : > { %v5057_v10 = vpop.f32.mrf.mxu0  ;;  %v6081_v11 = vpop.f32.mrf.mxu1  ;;  %v15296_v1 = vld [vmem:[%s15780_s21 + $0xdc0] ss:$8 sps:$4 sm:$0xff]  }
 0x441   : > { %7228 = vst [vmem:[#allocation2 + $0xac8] sm:$0xff] %v6716_v6  ;;  %7484 = vst [vmem:[#allocation2 + $0x190] sm:$0xff] %v6972_v7 }
 0x442   : > { %v5060_v14 = vpop.f32.mrf.mxu0  ;;  %5251 = vmatmul.mubr.bf16.gmra.mxu0 %v15275_v4  ;;  %v6084_v15 = vpop.f32.mrf.mxu1  ;;  %6275 = vmatmul.mubr.bf16.gmra.mxu1 %v15278_v5  ;;  %v15301_v4 = vld [vmem:[%s15780_s21 + $0x5d4] ss:$8 sps:$4 sm:$0xff]  }
 0x443   : > { %v6717_v16 = vadd.f32 %v5060_v14, %v924_v12  ;;  %v6973_v17 = vadd.f32 %v6084_v15, %v1180_v13  ;;  %5258 = vmatprep.mubr.bf16.mxu0 %v15283_v8  ;;  %6282 = vmatprep.mubr.bf16.mxu1 %v15286_v9  ;;  %v15304_v5 = vld [vmem:[%s15780_s21 + $0xdd4] ss:$8 sps:$4 sm:$0xff]   ;;  %v1186_v9 = vld [vmem:[#allocation2 + $0xc68] sm:$0xff] }
 0x444   : > { %v5062_v18 = vpop.f32.mrf.mxu0  ;;  %v6086_v19 = vpop.f32.mrf.mxu1  ;;  %v930_v8 = vld [vmem:[#allocation2 + $0x950] sm:$0xff] }
 0x445   : > { %7229 = vst [vmem:[#allocation2 + $0x820] sm:$0xff] %v6717_v16  ;;  %7485 = vst [vmem:[#allocation2 + $0x548] sm:$0xff] %v6973_v17  ;;  %v931_v16 = vld [vmem:[#allocation2 + $0x698] sm:$0xff] }
 0x446   : > { %v5063_v22 = vpop.f32.mrf.mxu0  ;;  %v6087_v23 = vpop.f32.mrf.mxu1  ;;  %v1187_v17 = vld [vmem:[#allocation2 + $0x658] sm:$0xff] }
 0x447   : > { %v6718_v26 = vadd.f32 %v5063_v22, %v925_v20  ;;  %v6974_v27 = vadd.f32 %v6087_v23, %v1181_v21  ;;  %v15299_v20 = vld [vmem:[%s15780_s21 + $0x5d0] ss:$8 sps:$4 sm:$0xff]  }
 0x448   : > { %v5065_v30 = vpop.f32.mrf.mxu0  ;;  %v6089_v31 = vpop.f32.mrf.mxu1  ;;  %v15302_v21 = vld [vmem:[%s15780_s21 + $0xdd0] ss:$8 sps:$4 sm:$0xff]  }
 0x449   : > { %7230 = vst [vmem:[#allocation2 + $0x8c8] sm:$0xff] %v6718_v26  ;;  %7486 = vst [vmem:[#allocation2 + $0x1e8] sm:$0xff] %v6974_v27 }
 0x44a   : > { %v5068_v34 = vpop.f32.mrf.mxu0  ;;  %5259 = vmatmul.mubr.bf16.gmra.mxu0 %v15281_v24  ;;  %v6092_v35 = vpop.f32.mrf.mxu1  ;;  %6283 = vmatmul.mubr.bf16.gmra.mxu1 %v15284_v25  ;;  %v15307_v24 = vld [vmem:[%s15780_s21 + $0x5e4] ss:$8 sps:$4 sm:$0xff]  }
 0x44b   : > { %v6719_v36 = vadd.f32 %v5068_v34, %v926_v32  ;;  %v6975_v37 = vadd.f32 %v6092_v35, %v1182_v33  ;;  %5266 = vmatprep.mubr.bf16.mxu0 %v15289_v28  ;;  %6290 = vmatprep.mubr.bf16.mxu1 %v15292_v29  ;;  %v15310_v25 = vld [vmem:[%s15780_s21 + $0xde4] ss:$8 sps:$4 sm:$0xff]   ;;  %v932_v28 = vld [vmem:[#allocation2 + $0x2d0] sm:$0xff] }
 0x44c   : > { %v5070_v38 = vpop.f32.mrf.mxu0  ;;  %v6094_v39 = vpop.f32.mrf.mxu1  ;;  %v1188_v29 = vld [vmem:[#allocation2 + $0xf60] sm:$0xff] }
 0x44d   : > { %7231 = vst [vmem:[#allocation2 + $0xe20] sm:$0xff] %v6719_v36  ;;  %7487 = vst [vmem:[#allocation2 + $0xc08] sm:$0xff] %v6975_v37  ;;  %v933_v36 = vld [vmem:[#allocation2 + $0xf18] sm:$0xff]  ;;  %v1189_v37 = vld [vmem:[#allocation2 + $0xfc0] sm:$0xff] }
 0x44e   : > { %v5071_v42 = vpop.f32.mrf.mxu0  ;;  %v6095_v43 = vpop.f32.mrf.mxu1 }
 0x44f   : > { %v6720_v46 = vadd.f32 %v5071_v42, %v927_v40  ;;  %v6976_v47 = vadd.f32 %v6095_v43, %v1183_v41  ;;  %v15305_v40 = vld [vmem:[%s15780_s21 + $0x5e0] ss:$8 sps:$4 sm:$0xff]  }
 0x450   : > { %v5073_v50 = vpop.f32.mrf.mxu0  ;;  %v6097_v51 = vpop.f32.mrf.mxu1  ;;  %v15308_v41 = vld [vmem:[%s15780_s21 + $0xde0] ss:$8 sps:$4 sm:$0xff]  }
 0x451   : > { %7232 = vst [vmem:[#allocation2 + $0xb60] sm:$0xff] %v6720_v46  ;;  %7488 = vst [vmem:[#allocation2 + $0x2a0] sm:$0xff] %v6976_v47 }
 0x452   : > { %v5076_v54 = vpop.f32.mrf.mxu0  ;;  %5267 = vmatmul.mubr.bf16.gmra.mxu0 %v15287_v44  ;;  %v6100_v55 = vpop.f32.mrf.mxu1  ;;  %6291 = vmatmul.mubr.bf16.gmra.mxu1 %v15290_v45  ;;  %v15313_v44 = vld [vmem:[%s15780_s21 + $0x5f4] ss:$8 sps:$4 sm:$0xff]  }
 0x453   : > { %v6721_v56 = vadd.f32 %v5076_v54, %v928_v52  ;;  %v6977_v57 = vadd.f32 %v6100_v55, %v1184_v53  ;;  %5274 = vmatprep.mubr.bf16.mxu0 %v15295_v48  ;;  %6298 = vmatprep.mubr.bf16.mxu1 %v15298_v49  ;;  %v15316_v45 = vld [vmem:[%s15780_s21 + $0xdf4] ss:$8 sps:$4 sm:$0xff]   ;;  %v1190_v49 = vld [vmem:[#allocation2 + $0x5e8] sm:$0xff] }
 0x454   : > { %v5078_v58 = vpop.f32.mrf.mxu0  ;;  %v6102_v59 = vpop.f32.mrf.mxu1  ;;  %v934_v48 = vld [vmem:[#allocation2 + $0xb90] sm:$0xff] }
 0x455   : > { %7233 = vst [vmem:[#allocation2 + $0xed8] sm:$0xff] %v6721_v56  ;;  %7489 = vst [vmem:[#allocation2 + $0x408] sm:$0xff] %v6977_v57  ;;  %v935_v56 = vld [vmem:[#allocation2 + $0x458] sm:$0xff]  ;;  %v1191_v57 = vld [vmem:[#allocation2 + $0x440] sm:$0xff] }
 0x456   : > { %v5079_v62 = vpop.f32.mrf.mxu0  ;;  %v6103_v63 = vpop.f32.mrf.mxu1 }
 0x457   : > { %v6722_v2 = vadd.f32 %v5079_v62, %v929_v60  ;;  %v6978_v3 = vadd.f32 %v6103_v63, %v1185_v61  ;;  %v15311_v60 = vld [vmem:[%s15780_s21 + $0x5f0] ss:$8 sps:$4 sm:$0xff]  }
 0x458   : > { %v5081_v6 = vpop.f32.mrf.mxu0  ;;  %v6105_v7 = vpop.f32.mrf.mxu1  ;;  %v15314_v61 = vld [vmem:[%s15780_s21 + $0xdf0] ss:$8 sps:$4 sm:$0xff]  }
 0x459   : > { %7234 = vst [vmem:[#allocation2 + $0xc80] sm:$0xff] %v6722_v2  ;;  %7490 = vst [vmem:[#allocation2 + $0x7e8] sm:$0xff] %v6978_v3 }
 0x45a   : > { %v5084_v10 = vpop.f32.mrf.mxu0  ;;  %5275 = vmatmul.mubr.bf16.gmra.mxu0 %v15293_v0  ;;  %v6108_v11 = vpop.f32.mrf.mxu1  ;;  %6299 = vmatmul.mubr.bf16.gmra.mxu1 %v15296_v1  ;;  %v15319_v0 = vld [vmem:[%s15780_s21 + $0x604] ss:$8 sps:$4 sm:$0xff]  }
 0x45b   : > { %v6723_v12 = vadd.f32 %v5084_v10, %v930_v8  ;;  %v6979_v13 = vadd.f32 %v6108_v11, %v1186_v9  ;;  %5282 = vmatprep.mubr.bf16.mxu0 %v15301_v4  ;;  %6306 = vmatprep.mubr.bf16.mxu1 %v15304_v5  ;;  %v15322_v1 = vld [vmem:[%s15780_s21 + $0xe04] ss:$8 sps:$4 sm:$0xff]   ;;  %v1192_v5 = vld [vmem:[#allocation2 + $0xff0] sm:$0xff] }
 0x45c   : > { %v5086_v14 = vpop.f32.mrf.mxu0  ;;  %v6110_v15 = vpop.f32.mrf.mxu1  ;;  %v936_v4 = vld [vmem:[#allocation2 + $0xf20] sm:$0xff] }
 0x45d   : > { %7235 = vst [vmem:[#allocation2 + $0x950] sm:$0xff] %v6723_v12  ;;  %7491 = vst [vmem:[#allocation2 + $0xc68] sm:$0xff] %v6979_v13  ;;  %v937_v12 = vld [vmem:[#allocation2 + $0x8] sm:$0xff]  ;;  %v1193_v13 = vld [vmem:[#allocation2 + $0x720] sm:$0xff] }
 0x45e   : > { %v5087_v18 = vpop.f32.mrf.mxu0  ;;  %v6111_v19 = vpop.f32.mrf.mxu1 }
 0x45f   : > { %v6724_v22 = vadd.f32 %v5087_v18, %v931_v16  ;;  %v6980_v23 = vadd.f32 %v6111_v19, %v1187_v17  ;;  %v15317_v16 = vld [vmem:[%s15780_s21 + $0x600] ss:$8 sps:$4 sm:$0xff]  }
 0x460   : > { %v5089_v26 = vpop.f32.mrf.mxu0  ;;  %v6113_v27 = vpop.f32.mrf.mxu1  ;;  %v15320_v17 = vld [vmem:[%s15780_s21 + $0xe00] ss:$8 sps:$4 sm:$0xff]  }
 0x461   : > { %7236 = vst [vmem:[#allocation2 + $0x698] sm:$0xff] %v6724_v22  ;;  %7492 = vst [vmem:[#allocation2 + $0x658] sm:$0xff] %v6980_v23 }
 0x462   : > { %v5092_v30 = vpop.f32.mrf.mxu0  ;;  %5283 = vmatmul.mubr.bf16.gmra.mxu0 %v15299_v20  ;;  %v6116_v31 = vpop.f32.mrf.mxu1  ;;  %6307 = vmatmul.mubr.bf16.gmra.mxu1 %v15302_v21  ;;  %v15325_v20 = vld [vmem:[%s15780_s21 + $0x614] ss:$8 sps:$4 sm:$0xff]  }
 0x463   : > { %v6725_v32 = vadd.f32 %v5092_v30, %v932_v28  ;;  %v6981_v33 = vadd.f32 %v6116_v31, %v1188_v29  ;;  %5290 = vmatprep.mubr.bf16.mxu0 %v15307_v24  ;;  %6314 = vmatprep.mubr.bf16.mxu1 %v15310_v25  ;;  %v15328_v21 = vld [vmem:[%s15780_s21 + $0xe14] ss:$8 sps:$4 sm:$0xff]   ;;  %v938_v24 = vld [vmem:[#allocation2 + $0xc40] sm:$0xff] }
 0x464   : > { %v5094_v34 = vpop.f32.mrf.mxu0  ;;  %v6118_v35 = vpop.f32.mrf.mxu1  ;;  %v1194_v25 = vld [vmem:[#allocation2 + $0x5d8] sm:$0xff] }
 0x465   : > { %7237 = vst [vmem:[#allocation2 + $0x2d0] sm:$0xff] %v6725_v32  ;;  %7493 = vst [vmem:[#allocation2 + $0xf60] sm:$0xff] %v6981_v33  ;;  %v939_v32 = vld [vmem:[#allocation2 + $0xd48] sm:$0xff]  ;;  %v1195_v33 = vld [vmem:[#allocation2 + $0xb70] sm:$0xff] }
 0x466   : > { %v5095_v38 = vpop.f32.mrf.mxu0  ;;  %v6119_v39 = vpop.f32.mrf.mxu1 }
 0x467   : > { %v6726_v42 = vadd.f32 %v5095_v38, %v933_v36  ;;  %v6982_v43 = vadd.f32 %v6119_v39, %v1189_v37  ;;  %v15323_v36 = vld [vmem:[%s15780_s21 + $0x610] ss:$8 sps:$4 sm:$0xff]  }
 0x468   : > { %v5097_v46 = vpop.f32.mrf.mxu0  ;;  %v6121_v47 = vpop.f32.mrf.mxu1  ;;  %v15326_v37 = vld [vmem:[%s15780_s21 + $0xe10] ss:$8 sps:$4 sm:$0xff]  }
 0x469   : > { %7238 = vst [vmem:[#allocation2 + $0xf18] sm:$0xff] %v6726_v42  ;;  %7494 = vst [vmem:[#allocation2 + $0xfc0] sm:$0xff] %v6982_v43 }
 0x46a   : > { %v5100_v50 = vpop.f32.mrf.mxu0  ;;  %5291 = vmatmul.mubr.bf16.gmra.mxu0 %v15305_v40  ;;  %v6124_v51 = vpop.f32.mrf.mxu1  ;;  %6315 = vmatmul.mubr.bf16.gmra.mxu1 %v15308_v41  ;;  %v15331_v40 = vld [vmem:[%s15780_s21 + $0x624] ss:$8 sps:$4 sm:$0xff]  }
 0x46b   : > { %v6727_v52 = vadd.f32 %v5100_v50, %v934_v48  ;;  %v6983_v53 = vadd.f32 %v6124_v51, %v1190_v49  ;;  %5298 = vmatprep.mubr.bf16.mxu0 %v15313_v44  ;;  %6322 = vmatprep.mubr.bf16.mxu1 %v15316_v45  ;;  %v15334_v41 = vld [vmem:[%s15780_s21 + $0xe24] ss:$8 sps:$4 sm:$0xff]   ;;  %v940_v44 = vld [vmem:[#allocation2 + $0x7b8] sm:$0xff] }
 0x46c   : > { %v5102_v54 = vpop.f32.mrf.mxu0  ;;  %v6126_v55 = vpop.f32.mrf.mxu1  ;;  %v1196_v45 = vld [vmem:[#allocation2 + $0x2c8] sm:$0xff] }
 0x46d   : > { %7239 = vst [vmem:[#allocation2 + $0xb90] sm:$0xff] %v6727_v52  ;;  %7495 = vst [vmem:[#allocation2 + $0x5e8] sm:$0xff] %v6983_v53  ;;  %v941_v52 = vld [vmem:[#allocation2 + $0x6b0] sm:$0xff]  ;;  %v1197_v53 = vld [vmem:[#allocation2 + $0x738] sm:$0xff] }
 0x46e   : > { %v5103_v58 = vpop.f32.mrf.mxu0  ;;  %v6127_v59 = vpop.f32.mrf.mxu1 }
 0x46f   : > { %v6728_v62 = vadd.f32 %v5103_v58, %v935_v56  ;;  %v6984_v63 = vadd.f32 %v6127_v59, %v1191_v57  ;;  %v15329_v56 = vld [vmem:[%s15780_s21 + $0x620] ss:$8 sps:$4 sm:$0xff]  }
 0x470   : > { %v5105_v2 = vpop.f32.mrf.mxu0  ;;  %v6129_v3 = vpop.f32.mrf.mxu1  ;;  %v15332_v57 = vld [vmem:[%s15780_s21 + $0xe20] ss:$8 sps:$4 sm:$0xff]  }
 0x471   : > { %7240 = vst [vmem:[#allocation2 + $0x458] sm:$0xff] %v6728_v62  ;;  %7496 = vst [vmem:[#allocation2 + $0x440] sm:$0xff] %v6984_v63 }
 0x472   : > { %v5108_v6 = vpop.f32.mrf.mxu0  ;;  %5299 = vmatmul.mubr.bf16.gmra.mxu0 %v15311_v60  ;;  %v6132_v7 = vpop.f32.mrf.mxu1  ;;  %6323 = vmatmul.mubr.bf16.gmra.mxu1 %v15314_v61  ;;  %v15337_v60 = vld [vmem:[%s15780_s21 + $0x634] ss:$8 sps:$4 sm:$0xff]  }
 0x473   : > { %v6729_v8 = vadd.f32 %v5108_v6, %v936_v4  ;;  %v6985_v9 = vadd.f32 %v6132_v7, %v1192_v5  ;;  %5306 = vmatprep.mubr.bf16.mxu0 %v15319_v0  ;;  %6330 = vmatprep.mubr.bf16.mxu1 %v15322_v1  ;;  %v15340_v61 = vld [vmem:[%s15780_s21 + $0xe34] ss:$8 sps:$4 sm:$0xff]   ;;  %v1198_v1 = vld [vmem:[#allocation2 + $0x808] sm:$0xff] }
 0x474   : > { %v5110_v10 = vpop.f32.mrf.mxu0  ;;  %v6134_v11 = vpop.f32.mrf.mxu1  ;;  %v942_v0 = vld [vmem:[#allocation2 + $0x3d0] sm:$0xff] }
 0x475   : > { %7241 = vst [vmem:[#allocation2 + $0xf20] sm:$0xff] %v6729_v8  ;;  %7497 = vst [vmem:[#allocation2 + $0xff0] sm:$0xff] %v6985_v9  ;;  %v943_v8 = vld [vmem:[#allocation2 + $0x228] sm:$0xff]  ;;  %v1199_v9 = vld [vmem:[#allocation2 + $0x60] sm:$0xff] }
 0x476   : > { %v5111_v14 = vpop.f32.mrf.mxu0  ;;  %v6135_v15 = vpop.f32.mrf.mxu1 }
 0x477   : > { %v6730_v18 = vadd.f32 %v5111_v14, %v937_v12  ;;  %v6986_v19 = vadd.f32 %v6135_v15, %v1193_v13  ;;  %v15335_v12 = vld [vmem:[%s15780_s21 + $0x630] ss:$8 sps:$4 sm:$0xff]  }
 0x478   : > { %v5113_v22 = vpop.f32.mrf.mxu0  ;;  %v6137_v23 = vpop.f32.mrf.mxu1  ;;  %v15338_v13 = vld [vmem:[%s15780_s21 + $0xe30] ss:$8 sps:$4 sm:$0xff]  }
 0x479   : > { %7242 = vst [vmem:[#allocation2 + $0x8] sm:$0xff] %v6730_v18  ;;  %7498 = vst [vmem:[#allocation2 + $0x720] sm:$0xff] %v6986_v19 }
 0x47a   : > { %v5116_v26 = vpop.f32.mrf.mxu0  ;;  %5307 = vmatmul.mubr.bf16.gmra.mxu0 %v15317_v16  ;;  %v6140_v27 = vpop.f32.mrf.mxu1  ;;  %6331 = vmatmul.mubr.bf16.gmra.mxu1 %v15320_v17  ;;  %v15343_v16 = vld [vmem:[%s15780_s21 + $0x644] ss:$8 sps:$4 sm:$0xff]  }
 0x47b   : > { %v6731_v28 = vadd.f32 %v5116_v26, %v938_v24  ;;  %v6987_v29 = vadd.f32 %v6140_v27, %v1194_v25  ;;  %5314 = vmatprep.mubr.bf16.mxu0 %v15325_v20  ;;  %6338 = vmatprep.mubr.bf16.mxu1 %v15328_v21  ;;  %v15346_v17 = vld [vmem:[%s15780_s21 + $0xe44] ss:$8 sps:$4 sm:$0xff]  }
 0x47c   : > { %v5118_v30 = vpop.f32.mrf.mxu0  ;;  %v6142_v31 = vpop.f32.mrf.mxu1  ;;  %v944_v20 = vld [vmem:[#allocation2 + $0xd00] sm:$0xff] }
 0x47d   : > { %7243 = vst [vmem:[#allocation2 + $0xc40] sm:$0xff] %v6731_v28  ;;  %7499 = vst [vmem:[#allocation2 + $0x5d8] sm:$0xff] %v6987_v29  ;;  %v1200_v21 = vld [vmem:[#allocation2 + $0x6c0] sm:$0xff]  ;;  %v945_v28 = vld [vmem:[#allocation2 + $0x498] sm:$0xff] }
 0x47e   : > { %v5119_v34 = vpop.f32.mrf.mxu0  ;;  %v6143_v35 = vpop.f32.mrf.mxu1  ;;  %v1201_v29 = vld [vmem:[#allocation2 + $0xae8] sm:$0xff] }
 0x47f   : > { %v6732_v38 = vadd.f32 %v5119_v34, %v939_v32  ;;  %v6988_v39 = vadd.f32 %v6143_v35, %v1195_v33  ;;  %v15341_v32 = vld [vmem:[%s15780_s21 + $0x640] ss:$8 sps:$4 sm:$0xff]  }
 0x480   : > { %v5121_v42 = vpop.f32.mrf.mxu0  ;;  %v6145_v43 = vpop.f32.mrf.mxu1  ;;  %v15344_v33 = vld [vmem:[%s15780_s21 + $0xe40] ss:$8 sps:$4 sm:$0xff]  }
 0x481   : > { %7244 = vst [vmem:[#allocation2 + $0xd48] sm:$0xff] %v6732_v38  ;;  %7500 = vst [vmem:[#allocation2 + $0xb70] sm:$0xff] %v6988_v39 }
 0x482   : > { %v5124_v46 = vpop.f32.mrf.mxu0  ;;  %5315 = vmatmul.mubr.bf16.gmra.mxu0 %v15323_v36  ;;  %v6148_v47 = vpop.f32.mrf.mxu1  ;;  %6339 = vmatmul.mubr.bf16.gmra.mxu1 %v15326_v37  ;;  %v15349_v36 = vld [vmem:[%s15780_s21 + $0x654] ss:$8 sps:$4 sm:$0xff]  }
 0x483   : > { %v6733_v48 = vadd.f32 %v5124_v46, %v940_v44  ;;  %v6989_v49 = vadd.f32 %v6148_v47, %v1196_v45  ;;  %5322 = vmatprep.mubr.bf16.mxu0 %v15331_v40  ;;  %6346 = vmatprep.mubr.bf16.mxu1 %v15334_v41  ;;  %v15352_v37 = vld [vmem:[%s15780_s21 + $0xe54] ss:$8 sps:$4 sm:$0xff]   ;;  %v946_v40 = vld [vmem:[#allocation2 + $0x688] sm:$0xff] }
 0x484   : > { %v5126_v50 = vpop.f32.mrf.mxu0  ;;  %v6150_v51 = vpop.f32.mrf.mxu1  ;;  %v1202_v41 = vld [vmem:[#allocation2 + $0xfb8] sm:$0xff] }
 0x485   : > { %7245 = vst [vmem:[#allocation2 + $0x7b8] sm:$0xff] %v6733_v48  ;;  %7501 = vst [vmem:[#allocation2 + $0x2c8] sm:$0xff] %v6989_v49  ;;  %v947_v48 = vld [vmem:[#allocation2 + $0x5c0] sm:$0xff]  ;;  %v1203_v49 = vld [vmem:[#allocation2 + $0xb0] sm:$0xff] }
 0x486   : > { %v5127_v54 = vpop.f32.mrf.mxu0  ;;  %v6151_v55 = vpop.f32.mrf.mxu1 }
 0x487   : > { %v6734_v58 = vadd.f32 %v5127_v54, %v941_v52  ;;  %v6990_v59 = vadd.f32 %v6151_v55, %v1197_v53  ;;  %v15347_v52 = vld [vmem:[%s15780_s21 + $0x650] ss:$8 sps:$4 sm:$0xff]  }
 0x488   : > { %v5129_v62 = vpop.f32.mrf.mxu0  ;;  %v6153_v63 = vpop.f32.mrf.mxu1  ;;  %v15350_v53 = vld [vmem:[%s15780_s21 + $0xe50] ss:$8 sps:$4 sm:$0xff]  }
 0x489   : > { %7246 = vst [vmem:[#allocation2 + $0x6b0] sm:$0xff] %v6734_v58  ;;  %7502 = vst [vmem:[#allocation2 + $0x738] sm:$0xff] %v6990_v59 }
 0x48a   : > { %v5132_v2 = vpop.f32.mrf.mxu0  ;;  %5323 = vmatmul.mubr.bf16.gmra.mxu0 %v15329_v56  ;;  %v6156_v3 = vpop.f32.mrf.mxu1  ;;  %6347 = vmatmul.mubr.bf16.gmra.mxu1 %v15332_v57  ;;  %v15355_v56 = vld [vmem:[%s15780_s21 + $0x664] ss:$8 sps:$4 sm:$0xff]  }
 0x48b   : > { %v6735_v4 = vadd.f32 %v5132_v2, %v942_v0  ;;  %v6991_v5 = vadd.f32 %v6156_v3, %v1198_v1  ;;  %5330 = vmatprep.mubr.bf16.mxu0 %v15337_v60  ;;  %6354 = vmatprep.mubr.bf16.mxu1 %v15340_v61  ;;  %v15358_v57 = vld [vmem:[%s15780_s21 + $0xe64] ss:$8 sps:$4 sm:$0xff]   ;;  %v948_v60 = vld [vmem:[#allocation2 + $0x858] sm:$0xff] }
 0x48c   : > { %v5134_v6 = vpop.f32.mrf.mxu0  ;;  %v6158_v7 = vpop.f32.mrf.mxu1  ;;  %v1204_v61 = vld [vmem:[#allocation2 + $0xdd8] sm:$0xff] }
 0x48d   : > { %7247 = vst [vmem:[#allocation2 + $0x3d0] sm:$0xff] %v6735_v4  ;;  %7503 = vst [vmem:[#allocation2 + $0x808] sm:$0xff] %v6991_v5  ;;  %v949_v4 = vld [vmem:[#allocation2 + $0x478] sm:$0xff]  ;;  %v1205_v5 = vld [vmem:[#allocation2 + $0xa30] sm:$0xff] }
 0x48e   : > { %v5135_v10 = vpop.f32.mrf.mxu0  ;;  %v6159_v11 = vpop.f32.mrf.mxu1 }
 0x48f   : > { %v6736_v14 = vadd.f32 %v5135_v10, %v943_v8  ;;  %v6992_v15 = vadd.f32 %v6159_v11, %v1199_v9  ;;  %v15353_v8 = vld [vmem:[%s15780_s21 + $0x660] ss:$8 sps:$4 sm:$0xff]  }
 0x490   : > { %v5137_v18 = vpop.f32.mrf.mxu0  ;;  %v6161_v19 = vpop.f32.mrf.mxu1  ;;  %v15356_v9 = vld [vmem:[%s15780_s21 + $0xe60] ss:$8 sps:$4 sm:$0xff]  }
 0x491   : > { %7248 = vst [vmem:[#allocation2 + $0x228] sm:$0xff] %v6736_v14  ;;  %7504 = vst [vmem:[#allocation2 + $0x60] sm:$0xff] %v6992_v15 }
 0x492   : > { %v5140_v22 = vpop.f32.mrf.mxu0  ;;  %5331 = vmatmul.mubr.bf16.gmra.mxu0 %v15335_v12  ;;  %v6164_v23 = vpop.f32.mrf.mxu1  ;;  %6355 = vmatmul.mubr.bf16.gmra.mxu1 %v15338_v13  ;;  %v15361_v12 = vld [vmem:[%s15780_s21 + $0x674] ss:$8 sps:$4 sm:$0xff]  }
 0x493   : > { %v6737_v24 = vadd.f32 %v5140_v22, %v944_v20  ;;  %v6993_v25 = vadd.f32 %v6164_v23, %v1200_v21  ;;  %5338 = vmatprep.mubr.bf16.mxu0 %v15343_v16  ;;  %6362 = vmatprep.mubr.bf16.mxu1 %v15346_v17  ;;  %v15364_v13 = vld [vmem:[%s15780_s21 + $0xe74] ss:$8 sps:$4 sm:$0xff]  }
 0x494   : > { %v5142_v26 = vpop.f32.mrf.mxu0  ;;  %v6166_v27 = vpop.f32.mrf.mxu1  ;;  %v950_v16 = vld [vmem:[#allocation2 + $0x6f8] sm:$0xff]  ;;  %v1206_v17 = vld [vmem:[#allocation2 + $0x1d0] sm:$0xff] }
 0x495   : > { %7249 = vst [vmem:[#allocation2 + $0xd00] sm:$0xff] %v6737_v24  ;;  %7505 = vst [vmem:[#allocation2 + $0x6c0] sm:$0xff] %v6993_v25  ;;  %v951_v24 = vld [vmem:[#allocation2 + $0xc70] sm:$0xff] }
 0x496   : > { %v5143_v30 = vpop.f32.mrf.mxu0  ;;  %v6167_v31 = vpop.f32.mrf.mxu1  ;;  %v1207_v25 = vld [vmem:[#allocation2 + $0xdd0] sm:$0xff] }
 0x497   : > { %v6738_v34 = vadd.f32 %v5143_v30, %v945_v28  ;;  %v6994_v35 = vadd.f32 %v6167_v31, %v1201_v29  ;;  %v15359_v28 = vld [vmem:[%s15780_s21 + $0x670] ss:$8 sps:$4 sm:$0xff]  }
 0x498   : > { %v5145_v38 = vpop.f32.mrf.mxu0  ;;  %v6169_v39 = vpop.f32.mrf.mxu1  ;;  %v15362_v29 = vld [vmem:[%s15780_s21 + $0xe70] ss:$8 sps:$4 sm:$0xff]  }
 0x499   : > { %7250 = vst [vmem:[#allocation2 + $0x498] sm:$0xff] %v6738_v34  ;;  %7506 = vst [vmem:[#allocation2 + $0xae8] sm:$0xff] %v6994_v35 }
 0x49a   : > { %v5148_v42 = vpop.f32.mrf.mxu0  ;;  %5339 = vmatmul.mubr.bf16.gmra.mxu0 %v15341_v32  ;;  %v6172_v43 = vpop.f32.mrf.mxu1  ;;  %6363 = vmatmul.mubr.bf16.gmra.mxu1 %v15344_v33  ;;  %v15367_v32 = vld [vmem:[%s15780_s21 + $0x684] ss:$8 sps:$4 sm:$0xff]  }
 0x49b   : > { %v6739_v44 = vadd.f32 %v5148_v42, %v946_v40  ;;  %v6995_v45 = vadd.f32 %v6172_v43, %v1202_v41  ;;  %5346 = vmatprep.mubr.bf16.mxu0 %v15349_v36  ;;  %6370 = vmatprep.mubr.bf16.mxu1 %v15352_v37  ;;  %v15370_v33 = vld [vmem:[%s15780_s21 + $0xe84] ss:$8 sps:$4 sm:$0xff]  }
 0x49c   : > { %v5150_v46 = vpop.f32.mrf.mxu0  ;;  %v6174_v47 = vpop.f32.mrf.mxu1  ;;  %v952_v36 = vld [vmem:[#allocation2 + $0x780] sm:$0xff] }
 0x49d   : > { %7251 = vst [vmem:[#allocation2 + $0x688] sm:$0xff] %v6739_v44  ;;  %7507 = vst [vmem:[#allocation2 + $0xfb8] sm:$0xff] %v6995_v45  ;;  %v1208_v37 = vld [vmem:[#allocation2 + $0x3a0] sm:$0xff]  ;;  %v953_v44 = vld [vmem:[#allocation2 + $0x1f8] sm:$0xff] }
 0x49e   : > { %v5151_v50 = vpop.f32.mrf.mxu0  ;;  %v6175_v51 = vpop.f32.mrf.mxu1  ;;  %v1209_v45 = vld [vmem:[#allocation2 + $0x9b8] sm:$0xff] }
 0x49f   : > { %v6740_v54 = vadd.f32 %v5151_v50, %v947_v48  ;;  %v6996_v55 = vadd.f32 %v6175_v51, %v1203_v49  ;;  %v15365_v48 = vld [vmem:[%s15780_s21 + $0x680] ss:$8 sps:$4 sm:$0xff]  }
 0x4a0   : > { %v5153_v58 = vpop.f32.mrf.mxu0  ;;  %v6177_v59 = vpop.f32.mrf.mxu1  ;;  %v15368_v49 = vld [vmem:[%s15780_s21 + $0xe80] ss:$8 sps:$4 sm:$0xff]  }
 0x4a1   : > { %7252 = vst [vmem:[#allocation2 + $0x5c0] sm:$0xff] %v6740_v54  ;;  %7508 = vst [vmem:[#allocation2 + $0xb0] sm:$0xff] %v6996_v55 }
 0x4a2   : > { %v5156_v62 = vpop.f32.mrf.mxu0  ;;  %5347 = vmatmul.mubr.bf16.gmra.mxu0 %v15347_v52  ;;  %v6180_v63 = vpop.f32.mrf.mxu1  ;;  %6371 = vmatmul.mubr.bf16.gmra.mxu1 %v15350_v53  ;;  %v15373_v52 = vld [vmem:[%s15780_s21 + $0x694] ss:$8 sps:$4 sm:$0xff]  }
 0x4a3   : > { %v6741_v0 = vadd.f32 %v5156_v62, %v948_v60  ;;  %v6997_v1 = vadd.f32 %v6180_v63, %v1204_v61  ;;  %5354 = vmatprep.mubr.bf16.mxu0 %v15355_v56  ;;  %6378 = vmatprep.mubr.bf16.mxu1 %v15358_v57  ;;  %v15376_v53 = vld [vmem:[%s15780_s21 + $0xe94] ss:$8 sps:$4 sm:$0xff]   ;;  %v954_v56 = vld [vmem:[#allocation2 + $0xbc0] sm:$0xff] }
 0x4a4   : > { %v5158_v2 = vpop.f32.mrf.mxu0  ;;  %v6182_v3 = vpop.f32.mrf.mxu1  ;;  %v1210_v57 = vld [vmem:[#allocation2 + $0x198] sm:$0xff] }
 0x4a5   : > { %7253 = vst [vmem:[#allocation2 + $0x858] sm:$0xff] %v6741_v0  ;;  %7509 = vst [vmem:[#allocation2 + $0xdd8] sm:$0xff] %v6997_v1  ;;  %v955_v0 = vld [vmem:[#allocation2 + $0x788] sm:$0xff]  ;;  %v1211_v1 = vld [vmem:[#allocation2 + $0xcd0] sm:$0xff] }
 0x4a6   : > { %v5159_v6 = vpop.f32.mrf.mxu0  ;;  %v6183_v7 = vpop.f32.mrf.mxu1 }
 0x4a7   : > { %v6742_v10 = vadd.f32 %v5159_v6, %v949_v4  ;;  %v6998_v11 = vadd.f32 %v6183_v7, %v1205_v5  ;;  %v15371_v4 = vld [vmem:[%s15780_s21 + $0x690] ss:$8 sps:$4 sm:$0xff]  }
 0x4a8   : > { %v5161_v14 = vpop.f32.mrf.mxu0  ;;  %v6185_v15 = vpop.f32.mrf.mxu1  ;;  %v15374_v5 = vld [vmem:[%s15780_s21 + $0xe90] ss:$8 sps:$4 sm:$0xff]  }
 0x4a9   : > { %7254 = vst [vmem:[#allocation2 + $0x478] sm:$0xff] %v6742_v10  ;;  %7510 = vst [vmem:[#allocation2 + $0xa30] sm:$0xff] %v6998_v11 }
 0x4aa   : > { %v5164_v18 = vpop.f32.mrf.mxu0  ;;  %5355 = vmatmul.mubr.bf16.gmra.mxu0 %v15353_v8  ;;  %v6188_v19 = vpop.f32.mrf.mxu1  ;;  %6379 = vmatmul.mubr.bf16.gmra.mxu1 %v15356_v9  ;;  %v15379_v8 = vld [vmem:[%s15780_s21 + $0x6a4] ss:$8 sps:$4 sm:$0xff]  }
 0x4ab   : > { %v6743_v20 = vadd.f32 %v5164_v18, %v950_v16  ;;  %v6999_v21 = vadd.f32 %v6188_v19, %v1206_v17  ;;  %5362 = vmatprep.mubr.bf16.mxu0 %v15361_v12  ;;  %6386 = vmatprep.mubr.bf16.mxu1 %v15364_v13  ;;  %v15382_v9 = vld [vmem:[%s15780_s21 + $0xea4] ss:$8 sps:$4 sm:$0xff]   ;;  %v956_v12 = vld [vmem:[#allocation2 + $0x4b8] sm:$0xff]  ;;  %v1212_v13 = vld [vmem:[#allocation2 + $0x5f0] sm:$0xff] }
 0x4ac   : > { %v5166_v22 = vpop.f32.mrf.mxu0  ;;  %v6190_v23 = vpop.f32.mrf.mxu1 }
 0x4ad   : > { %7255 = vst [vmem:[#allocation2 + $0x6f8] sm:$0xff] %v6743_v20  ;;  %7511 = vst [vmem:[#allocation2 + $0x1d0] sm:$0xff] %v6999_v21  ;;  %v957_v20 = vld [vmem:[#allocation2 + $0x4c8] sm:$0xff]  ;;  %v1213_v21 = vld [vmem:[#allocation2 + $0x7a0] sm:$0xff] }
 0x4ae   : > { %v5167_v26 = vpop.f32.mrf.mxu0  ;;  %v6191_v27 = vpop.f32.mrf.mxu1 }
 0x4af   : > { %v6744_v30 = vadd.f32 %v5167_v26, %v951_v24  ;;  %v7000_v31 = vadd.f32 %v6191_v27, %v1207_v25  ;;  %v15377_v24 = vld [vmem:[%s15780_s21 + $0x6a0] ss:$8 sps:$4 sm:$0xff]  }
 0x4b0   : > { %v5169_v34 = vpop.f32.mrf.mxu0  ;;  %v6193_v35 = vpop.f32.mrf.mxu1  ;;  %v15380_v25 = vld [vmem:[%s15780_s21 + $0xea0] ss:$8 sps:$4 sm:$0xff]  }
 0x4b1   : > { %7256 = vst [vmem:[#allocation2 + $0xc70] sm:$0xff] %v6744_v30  ;;  %7512 = vst [vmem:[#allocation2 + $0xdd0] sm:$0xff] %v7000_v31 }
 0x4b2   : > { %v5172_v38 = vpop.f32.mrf.mxu0  ;;  %5363 = vmatmul.mubr.bf16.gmra.mxu0 %v15359_v28  ;;  %v6196_v39 = vpop.f32.mrf.mxu1  ;;  %6387 = vmatmul.mubr.bf16.gmra.mxu1 %v15362_v29  ;;  %v15385_v28 = vld [vmem:[%s15780_s21 + $0x6b4] ss:$8 sps:$4 sm:$0xff]  }
 0x4b3   : > { %v6745_v40 = vadd.f32 %v5172_v38, %v952_v36  ;;  %v7001_v41 = vadd.f32 %v6196_v39, %v1208_v37  ;;  %5370 = vmatprep.mubr.bf16.mxu0 %v15367_v32  ;;  %6394 = vmatprep.mubr.bf16.mxu1 %v15370_v33  ;;  %v15388_v29 = vld [vmem:[%s15780_s21 + $0xeb4] ss:$8 sps:$4 sm:$0xff]  }
 0x4b4   : > { %v5174_v42 = vpop.f32.mrf.mxu0  ;;  %v6198_v43 = vpop.f32.mrf.mxu1  ;;  %v958_v32 = vld [vmem:[#allocation2 + $0x38] sm:$0xff]  ;;  %v1214_v33 = vld [vmem:[#allocation2 + $0x1f0] sm:$0xff] }
 0x4b5   : > { %7257 = vst [vmem:[#allocation2 + $0x780] sm:$0xff] %v6745_v40  ;;  %7513 = vst [vmem:[#allocation2 + $0x3a0] sm:$0xff] %v7001_v41  ;;  %v959_v40 = vld [vmem:[#allocation2 + $0x3b0] sm:$0xff]  ;;  %v1215_v41 = vld [vmem:[#allocation2 + $0xd88] sm:$0xff] }
 0x4b6   : > { %v5175_v46 = vpop.f32.mrf.mxu0  ;;  %v6199_v47 = vpop.f32.mrf.mxu1 }
 0x4b7   : > { %v6746_v50 = vadd.f32 %v5175_v46, %v953_v44  ;;  %v7002_v51 = vadd.f32 %v6199_v47, %v1209_v45  ;;  %v15383_v44 = vld [vmem:[%s15780_s21 + $0x6b0] ss:$8 sps:$4 sm:$0xff]  }
 0x4b8   : > { %v5177_v54 = vpop.f32.mrf.mxu0  ;;  %v6201_v55 = vpop.f32.mrf.mxu1  ;;  %v15386_v45 = vld [vmem:[%s15780_s21 + $0xeb0] ss:$8 sps:$4 sm:$0xff]  }
 0x4b9   : > { %7258 = vst [vmem:[#allocation2 + $0x1f8] sm:$0xff] %v6746_v50  ;;  %7514 = vst [vmem:[#allocation2 + $0x9b8] sm:$0xff] %v7002_v51 }
 0x4ba   : > { %v5180_v58 = vpop.f32.mrf.mxu0  ;;  %5371 = vmatmul.mubr.bf16.gmra.mxu0 %v15365_v48  ;;  %v6204_v59 = vpop.f32.mrf.mxu1  ;;  %6395 = vmatmul.mubr.bf16.gmra.mxu1 %v15368_v49  ;;  %v15391_v48 = vld [vmem:[%s15780_s21 + $0x6c4] ss:$8 sps:$4 sm:$0xff]  }
 0x4bb   : > { %v6747_v60 = vadd.f32 %v5180_v58, %v954_v56  ;;  %v7003_v61 = vadd.f32 %v6204_v59, %v1210_v57  ;;  %5378 = vmatprep.mubr.bf16.mxu0 %v15373_v52  ;;  %6402 = vmatprep.mubr.bf16.mxu1 %v15376_v53  ;;  %v15394_v49 = vld [vmem:[%s15780_s21 + $0xec4] ss:$8 sps:$4 sm:$0xff]   ;;  %v1216_v53 = vld [vmem:[#allocation2 + $0xef0] sm:$0xff] }
 0x4bc   : > { %v5182_v62 = vpop.f32.mrf.mxu0  ;;  %v6206_v63 = vpop.f32.mrf.mxu1  ;;  %v960_v52 = vld [vmem:[#allocation2 + $0x7c8] sm:$0xff] }
 0x4bd   : > { %7259 = vst [vmem:[#allocation2 + $0xbc0] sm:$0xff] %v6747_v60  ;;  %7515 = vst [vmem:[#allocation2 + $0x198] sm:$0xff] %v7003_v61  ;;  %v961_v60 = vld [vmem:[#allocation2 + $0xd90] sm:$0xff]  ;;  %v1217_v61 = vld [vmem:[#allocation2 + $0x148] sm:$0xff] }
 0x4be   : > { %v5183_v2 = vpop.f32.mrf.mxu0  ;;  %v6207_v3 = vpop.f32.mrf.mxu1 }
 0x4bf   : > { %v6748_v6 = vadd.f32 %v5183_v2, %v955_v0  ;;  %v7004_v7 = vadd.f32 %v6207_v3, %v1211_v1  ;;  %v15389_v0 = vld [vmem:[%s15780_s21 + $0x6c0] ss:$8 sps:$4 sm:$0xff]  }
 0x4c0   : > { %v5185_v10 = vpop.f32.mrf.mxu0  ;;  %v6209_v11 = vpop.f32.mrf.mxu1  ;;  %v15392_v1 = vld [vmem:[%s15780_s21 + $0xec0] ss:$8 sps:$4 sm:$0xff]  }
 0x4c1   : > { %7260 = vst [vmem:[#allocation2 + $0x788] sm:$0xff] %v6748_v6  ;;  %7516 = vst [vmem:[#allocation2 + $0xcd0] sm:$0xff] %v7004_v7 }
 0x4c2   : > { %v5188_v14 = vpop.f32.mrf.mxu0  ;;  %5379 = vmatmul.mubr.bf16.gmra.mxu0 %v15371_v4  ;;  %v6212_v15 = vpop.f32.mrf.mxu1  ;;  %6403 = vmatmul.mubr.bf16.gmra.mxu1 %v15374_v5  ;;  %v15397_v4 = vld [vmem:[%s15780_s21 + $0x6d4] ss:$8 sps:$4 sm:$0xff]  }
 0x4c3   : > { %v6749_v16 = vadd.f32 %v5188_v14, %v956_v12  ;;  %v7005_v17 = vadd.f32 %v6212_v15, %v1212_v13  ;;  %5386 = vmatprep.mubr.bf16.mxu0 %v15379_v8  ;;  %6410 = vmatprep.mubr.bf16.mxu1 %v15382_v9  ;;  %v15400_v5 = vld [vmem:[%s15780_s21 + $0xed4] ss:$8 sps:$4 sm:$0xff]   ;;  %v962_v8 = vld [vmem:[#allocation2 + $0xba8] sm:$0xff] }
 0x4c4   : > { %v5190_v18 = vpop.f32.mrf.mxu0  ;;  %v6214_v19 = vpop.f32.mrf.mxu1  ;;  %v1218_v9 = vld [vmem:[#allocation2 + $0x6b8] sm:$0xff] }
 0x4c5   : > { %7261 = vst [vmem:[#allocation2 + $0x4b8] sm:$0xff] %v6749_v16  ;;  %7517 = vst [vmem:[#allocation2 + $0x5f0] sm:$0xff] %v7005_v17  ;;  %v963_v16 = vld [vmem:[#allocation2 + $0x9c8] sm:$0xff]  ;;  %v1219_v17 = vld [vmem:[#allocation2 + $0xf58] sm:$0xff] }
 0x4c6   : > { %v5191_v22 = vpop.f32.mrf.mxu0  ;;  %v6215_v23 = vpop.f32.mrf.mxu1 }
 0x4c7   : > { %v6750_v26 = vadd.f32 %v5191_v22, %v957_v20  ;;  %v7006_v27 = vadd.f32 %v6215_v23, %v1213_v21  ;;  %v15395_v20 = vld [vmem:[%s15780_s21 + $0x6d0] ss:$8 sps:$4 sm:$0xff]  }
 0x4c8   : > { %v5193_v30 = vpop.f32.mrf.mxu0  ;;  %v6217_v31 = vpop.f32.mrf.mxu1  ;;  %v15398_v21 = vld [vmem:[%s15780_s21 + $0xed0] ss:$8 sps:$4 sm:$0xff]  }
 0x4c9   : > { %7262 = vst [vmem:[#allocation2 + $0x4c8] sm:$0xff] %v6750_v26  ;;  %7518 = vst [vmem:[#allocation2 + $0x7a0] sm:$0xff] %v7006_v27 }
 0x4ca   : > { %v5196_v34 = vpop.f32.mrf.mxu0  ;;  %5387 = vmatmul.mubr.bf16.gmra.mxu0 %v15377_v24  ;;  %v6220_v35 = vpop.f32.mrf.mxu1  ;;  %6411 = vmatmul.mubr.bf16.gmra.mxu1 %v15380_v25  ;;  %v15403_v24 = vld [vmem:[%s15780_s21 + $0x6e4] ss:$8 sps:$4 sm:$0xff]  }
 0x4cb   : > { %v6751_v36 = vadd.f32 %v5196_v34, %v958_v32  ;;  %v7007_v37 = vadd.f32 %v6220_v35, %v1214_v33  ;;  %5394 = vmatprep.mubr.bf16.mxu0 %v15385_v28  ;;  %6418 = vmatprep.mubr.bf16.mxu1 %v15388_v29  ;;  %v15406_v25 = vld [vmem:[%s15780_s21 + $0xee4] ss:$8 sps:$4 sm:$0xff]   ;;  %v964_v28 = vld [vmem:[#allocation2 + $0x2f0] sm:$0xff] }
 0x4cc   : > { %v5198_v38 = vpop.f32.mrf.mxu0  ;;  %v6222_v39 = vpop.f32.mrf.mxu1  ;;  %v1220_v29 = vld [vmem:[#allocation2 + $0xa70] sm:$0xff] }
 0x4cd   : > { %7263 = vst [vmem:[#allocation2 + $0x38] sm:$0xff] %v6751_v36  ;;  %7519 = vst [vmem:[#allocation2 + $0x1f0] sm:$0xff] %v7007_v37  ;;  %v965_v36 = vld [vmem:[#allocation2 + $0x5d0] sm:$0xff] }
 0x4ce   : > { %v5199_v42 = vpop.f32.mrf.mxu0  ;;  %v6223_v43 = vpop.f32.mrf.mxu1  ;;  %v1221_v37 = vld [vmem:[#allocation2 + $0xe70] sm:$0xff] }
 0x4cf   : > { %v6752_v46 = vadd.f32 %v5199_v42, %v959_v40  ;;  %v7008_v47 = vadd.f32 %v6223_v43, %v1215_v41  ;;  %v15401_v40 = vld [vmem:[%s15780_s21 + $0x6e0] ss:$8 sps:$4 sm:$0xff]  }
 0x4d0   : > { %v5201_v50 = vpop.f32.mrf.mxu0  ;;  %v6225_v51 = vpop.f32.mrf.mxu1  ;;  %v15404_v41 = vld [vmem:[%s15780_s21 + $0xee0] ss:$8 sps:$4 sm:$0xff]  }
 0x4d1   : > { %7264 = vst [vmem:[#allocation2 + $0x3b0] sm:$0xff] %v6752_v46  ;;  %7520 = vst [vmem:[#allocation2 + $0xd88] sm:$0xff] %v7008_v47 }
 0x4d2   : > { %v5204_v54 = vpop.f32.mrf.mxu0  ;;  %5395 = vmatmul.mubr.bf16.gmra.mxu0 %v15383_v44  ;;  %v6228_v55 = vpop.f32.mrf.mxu1  ;;  %6419 = vmatmul.mubr.bf16.gmra.mxu1 %v15386_v45  ;;  %v15409_v44 = vld [vmem:[%s15780_s21 + $0x6f4] ss:$8 sps:$4 sm:$0xff]  }
 0x4d3   : > { %v6753_v56 = vadd.f32 %v5204_v54, %v960_v52  ;;  %v7009_v57 = vadd.f32 %v6228_v55, %v1216_v53  ;;  %5402 = vmatprep.mubr.bf16.mxu0 %v15391_v48  ;;  %6426 = vmatprep.mubr.bf16.mxu1 %v15394_v49  ;;  %v15412_v45 = vld [vmem:[%s15780_s21 + $0xef4] ss:$8 sps:$4 sm:$0xff]   ;;  %v966_v48 = vld [vmem:[#allocation2 + $0xfe0] sm:$0xff] }
 0x4d4   : > { %v5206_v58 = vpop.f32.mrf.mxu0  ;;  %v6230_v59 = vpop.f32.mrf.mxu1  ;;  %v1222_v49 = vld [vmem:[#allocation2 + $0x7d0] sm:$0xff] }
 0x4d5   : > { %7265 = vst [vmem:[#allocation2 + $0x7c8] sm:$0xff] %v6753_v56  ;;  %7521 = vst [vmem:[#allocation2 + $0xef0] sm:$0xff] %v7009_v57  ;;  %v967_v56 = vld [vmem:[#allocation2 + $0xb98] sm:$0xff] }
 0x4d6   : > { %v5207_v62 = vpop.f32.mrf.mxu0  ;;  %v6231_v63 = vpop.f32.mrf.mxu1  ;;  %v1223_v57 = vld [vmem:[#allocation2 + $0xe18] sm:$0xff] }
 0x4d7   : > { %v6754_v2 = vadd.f32 %v5207_v62, %v961_v60  ;;  %v7010_v3 = vadd.f32 %v6231_v63, %v1217_v61  ;;  %v15407_v60 = vld [vmem:[%s15780_s21 + $0x6f0] ss:$8 sps:$4 sm:$0xff]  }
 0x4d8   : > { %v5209_v6 = vpop.f32.mrf.mxu0  ;;  %v6233_v7 = vpop.f32.mrf.mxu1  ;;  %v15410_v61 = vld [vmem:[%s15780_s21 + $0xef0] ss:$8 sps:$4 sm:$0xff]  }
 0x4d9   : > { %7266 = vst [vmem:[#allocation2 + $0xd90] sm:$0xff] %v6754_v2  ;;  %7522 = vst [vmem:[#allocation2 + $0x148] sm:$0xff] %v7010_v3 }
 0x4da   : > { %v5212_v10 = vpop.f32.mrf.mxu0  ;;  %5403 = vmatmul.mubr.bf16.gmra.mxu0 %v15389_v0  ;;  %v6236_v11 = vpop.f32.mrf.mxu1  ;;  %6427 = vmatmul.mubr.bf16.gmra.mxu1 %v15392_v1  ;;  %v15415_v0 = vld [vmem:[%s15780_s21 + $0x704] ss:$8 sps:$4 sm:$0xff]  }
 0x4db   : > { %v6755_v12 = vadd.f32 %v5212_v10, %v962_v8  ;;  %v7011_v13 = vadd.f32 %v6236_v11, %v1218_v9  ;;  %5410 = vmatprep.mubr.bf16.mxu0 %v15397_v4  ;;  %6434 = vmatprep.mubr.bf16.mxu1 %v15400_v5  ;;  %v15418_v1 = vld [vmem:[%s15780_s21 + $0xf04] ss:$8 sps:$4 sm:$0xff]   ;;  %v1224_v5 = vld [vmem:[#allocation2 + $0x518] sm:$0xff] }
 0x4dc   : > { %v5214_v14 = vpop.f32.mrf.mxu0  ;;  %v6238_v15 = vpop.f32.mrf.mxu1  ;;  %v968_v4 = vld [vmem:[#allocation2 + $0x840] sm:$0xff] }
 0x4dd   : > { %7267 = vst [vmem:[#allocation2 + $0xba8] sm:$0xff] %v6755_v12  ;;  %7523 = vst [vmem:[#allocation2 + $0x6b8] sm:$0xff] %v7011_v13  ;;  %v969_v12 = vld [vmem:[#allocation2 + $0x768] sm:$0xff]  ;;  %v1225_v13 = vld [vmem:[#allocation2 + $0x9f0] sm:$0xff] }
 0x4de   : > { %v5215_v18 = vpop.f32.mrf.mxu0  ;;  %v6239_v19 = vpop.f32.mrf.mxu1 }
 0x4df   : > { %v6756_v22 = vadd.f32 %v5215_v18, %v963_v16  ;;  %v7012_v23 = vadd.f32 %v6239_v19, %v1219_v17  ;;  %v15413_v16 = vld [vmem:[%s15780_s21 + $0x700] ss:$8 sps:$4 sm:$0xff]  }
 0x4e0   : > { %v5217_v26 = vpop.f32.mrf.mxu0  ;;  %v6241_v27 = vpop.f32.mrf.mxu1  ;;  %v15416_v17 = vld [vmem:[%s15780_s21 + $0xf00] ss:$8 sps:$4 sm:$0xff]  }
 0x4e1   : > { %7268 = vst [vmem:[#allocation2 + $0x9c8] sm:$0xff] %v6756_v22  ;;  %7524 = vst [vmem:[#allocation2 + $0xf58] sm:$0xff] %v7012_v23 }
 0x4e2   : > { %v5220_v30 = vpop.f32.mrf.mxu0  ;;  %5411 = vmatmul.mubr.bf16.gmra.mxu0 %v15395_v20  ;;  %v6244_v31 = vpop.f32.mrf.mxu1  ;;  %6435 = vmatmul.mubr.bf16.gmra.mxu1 %v15398_v21  ;;  %v15421_v20 = vld [vmem:[%s15780_s21 + $0x714] ss:$8 sps:$4 sm:$0xff]  }
 0x4e3   : > { %v6757_v32 = vadd.f32 %v5220_v30, %v964_v28  ;;  %v7013_v33 = vadd.f32 %v6244_v31, %v1220_v29  ;;  %5418 = vmatprep.mubr.bf16.mxu0 %v15403_v24  ;;  %6442 = vmatprep.mubr.bf16.mxu1 %v15406_v25  ;;  %v15424_v21 = vld [vmem:[%s15780_s21 + $0xf14] ss:$8 sps:$4 sm:$0xff]   ;;  %v970_v24 = vld [vmem:[#allocation2 + $0x568] sm:$0xff]  ;;  %v1226_v25 = vld [vmem:[#allocation2 + $0x6a0] sm:$0xff] }
 0x4e4   : > { %v5222_v34 = vpop.f32.mrf.mxu0  ;;  %v6246_v35 = vpop.f32.mrf.mxu1 }
 0x4e5   : > { %7269 = vst [vmem:[#allocation2 + $0x2f0] sm:$0xff] %v6757_v32  ;;  %7525 = vst [vmem:[#allocation2 + $0xa70] sm:$0xff] %v7013_v33  ;;  %v971_v32 = vld [vmem:[#allocation2 + $0xb30] sm:$0xff] }
 0x4e6   : > { %v5223_v38 = vpop.f32.mrf.mxu0  ;;  %v6247_v39 = vpop.f32.mrf.mxu1  ;;  %v1227_v33 = vld [vmem:[#allocation2 + $0xf0] sm:$0xff] }
 0x4e7   : > { %v6758_v42 = vadd.f32 %v5223_v38, %v965_v36  ;;  %v7014_v43 = vadd.f32 %v6247_v39, %v1221_v37  ;;  %v15419_v36 = vld [vmem:[%s15780_s21 + $0x710] ss:$8 sps:$4 sm:$0xff]  }
 0x4e8   : > { %v5225_v46 = vpop.f32.mrf.mxu0  ;;  %v6249_v47 = vpop.f32.mrf.mxu1  ;;  %v15422_v37 = vld [vmem:[%s15780_s21 + $0xf10] ss:$8 sps:$4 sm:$0xff]  }
 0x4e9   : > { %7270 = vst [vmem:[#allocation2 + $0x5d0] sm:$0xff] %v6758_v42  ;;  %7526 = vst [vmem:[#allocation2 + $0xe70] sm:$0xff] %v7014_v43 }
 0x4ea   : > { %v5228_v50 = vpop.f32.mrf.mxu0  ;;  %5419 = vmatmul.mubr.bf16.gmra.mxu0 %v15401_v40  ;;  %v6252_v51 = vpop.f32.mrf.mxu1  ;;  %6443 = vmatmul.mubr.bf16.gmra.mxu1 %v15404_v41  ;;  %v15427_v40 = vld [vmem:[%s15780_s21 + $0x724] ss:$8 sps:$4 sm:$0xff]  }
 0x4eb   : > { %v6759_v52 = vadd.f32 %v5228_v50, %v966_v48  ;;  %v7015_v53 = vadd.f32 %v6252_v51, %v1222_v49  ;;  %5426 = vmatprep.mubr.bf16.mxu0 %v15409_v44  ;;  %6450 = vmatprep.mubr.bf16.mxu1 %v15412_v45  ;;  %v15430_v41 = vld [vmem:[%s15780_s21 + $0xf24] ss:$8 sps:$4 sm:$0xff]   ;;  %v972_v44 = vld [vmem:[#allocation2 + $0x9f8] sm:$0xff] }
 0x4ec   : > { %v5230_v54 = vpop.f32.mrf.mxu0  ;;  %v6254_v55 = vpop.f32.mrf.mxu1  ;;  %v1228_v45 = vld [vmem:[#allocation2 + $0x218] sm:$0xff] }
 0x4ed   : > { %7271 = vst [vmem:[#allocation2 + $0xfe0] sm:$0xff] %v6759_v52  ;;  %7527 = vst [vmem:[#allocation2 + $0x7d0] sm:$0xff] %v7015_v53  ;;  %v973_v52 = vld [vmem:[#allocation2 + $0x138] sm:$0xff] }
 0x4ee   : > { %v5231_v58 = vpop.f32.mrf.mxu0  ;;  %v6255_v59 = vpop.f32.mrf.mxu1  ;;  %v1229_v53 = vld [vmem:[#allocation2 + $0x58] sm:$0xff] }
 0x4ef   : > { %v6760_v62 = vadd.f32 %v5231_v58, %v967_v56  ;;  %v7016_v63 = vadd.f32 %v6255_v59, %v1223_v57  ;;  %v15425_v56 = vld [vmem:[%s15780_s21 + $0x720] ss:$8 sps:$4 sm:$0xff]  }
 0x4f0   : > { %v5233_v2 = vpop.f32.mrf.mxu0  ;;  %v6257_v3 = vpop.f32.mrf.mxu1  ;;  %v15428_v57 = vld [vmem:[%s15780_s21 + $0xf20] ss:$8 sps:$4 sm:$0xff]  }
 0x4f1   : > { %7272 = vst [vmem:[#allocation2 + $0xb98] sm:$0xff] %v6760_v62  ;;  %7528 = vst [vmem:[#allocation2 + $0xe18] sm:$0xff] %v7016_v63 }
 0x4f2   : > { %v5236_v6 = vpop.f32.mrf.mxu0  ;;  %5427 = vmatmul.mubr.bf16.gmra.mxu0 %v15407_v60  ;;  %v6260_v7 = vpop.f32.mrf.mxu1  ;;  %6451 = vmatmul.mubr.bf16.gmra.mxu1 %v15410_v61  ;;  %v15433_v60 = vld [vmem:[%s15780_s21 + $0x734] ss:$8 sps:$4 sm:$0xff]  }
 0x4f3   : > { %v6761_v8 = vadd.f32 %v5236_v6, %v968_v4  ;;  %v7017_v9 = vadd.f32 %v6260_v7, %v1224_v5  ;;  %5434 = vmatprep.mubr.bf16.mxu0 %v15415_v0  ;;  %6458 = vmatprep.mubr.bf16.mxu1 %v15418_v1  ;;  %v15436_v61 = vld [vmem:[%s15780_s21 + $0xf34] ss:$8 sps:$4 sm:$0xff]   ;;  %v974_v0 = vld [vmem:[#allocation2 + $0xf00] sm:$0xff]  ;;  %v1230_v1 = vld [vmem:[#allocation2 + $0x28] sm:$0xff] }
 0x4f4   : > { %v5238_v10 = vpop.f32.mrf.mxu0  ;;  %v6262_v11 = vpop.f32.mrf.mxu1 }
 0x4f5   : > { %7273 = vst [vmem:[#allocation2 + $0x840] sm:$0xff] %v6761_v8  ;;  %7529 = vst [vmem:[#allocation2 + $0x518] sm:$0xff] %v7017_v9  ;;  %v975_v8 = vld [vmem:[#allocation2 + $0xd08] sm:$0xff]  ;;  %v1231_v9 = vld [vmem:[#allocation2 + $0xc18] sm:$0xff] }
 0x4f6   : > { %v5239_v14 = vpop.f32.mrf.mxu0  ;;  %v6263_v15 = vpop.f32.mrf.mxu1 }
 0x4f7   : > { %v6762_v18 = vadd.f32 %v5239_v14, %v969_v12  ;;  %v7018_v19 = vadd.f32 %v6263_v15, %v1225_v13  ;;  %v15431_v12 = vld [vmem:[%s15780_s21 + $0x730] ss:$8 sps:$4 sm:$0xff]  }
 0x4f8   : > { %v5241_v22 = vpop.f32.mrf.mxu0  ;;  %v6265_v23 = vpop.f32.mrf.mxu1  ;;  %v15434_v13 = vld [vmem:[%s15780_s21 + $0xf30] ss:$8 sps:$4 sm:$0xff]  }
 0x4f9   : > { %7274 = vst [vmem:[#allocation2 + $0x768] sm:$0xff] %v6762_v18  ;;  %7530 = vst [vmem:[#allocation2 + $0x9f0] sm:$0xff] %v7018_v19 }
 0x4fa   : > { %v5244_v26 = vpop.f32.mrf.mxu0  ;;  %5435 = vmatmul.mubr.bf16.gmra.mxu0 %v15413_v16  ;;  %v6268_v27 = vpop.f32.mrf.mxu1  ;;  %6459 = vmatmul.mubr.bf16.gmra.mxu1 %v15416_v17  ;;  %v15439_v16 = vld [vmem:[%s15780_s21 + $0x744] ss:$8 sps:$4 sm:$0xff]  }
 0x4fb   : > { %v6763_v28 = vadd.f32 %v5244_v26, %v970_v24  ;;  %v7019_v29 = vadd.f32 %v6268_v27, %v1226_v25  ;;  %5442 = vmatprep.mubr.bf16.mxu0 %v15421_v20  ;;  %6466 = vmatprep.mubr.bf16.mxu1 %v15424_v21  ;;  %v15442_v17 = vld [vmem:[%s15780_s21 + $0xf44] ss:$8 sps:$4 sm:$0xff]   ;;  %v1232_v21 = vld [vmem:[#allocation2 + $0x290] sm:$0xff] }
 0x4fc   : > { %v5246_v30 = vpop.f32.mrf.mxu0  ;;  %v6270_v31 = vpop.f32.mrf.mxu1  ;;  %v976_v20 = vld [vmem:[#allocation2 + $0xe00] sm:$0xff] }
 0x4fd   : > { %7275 = vst [vmem:[#allocation2 + $0x568] sm:$0xff] %v6763_v28  ;;  %7531 = vst [vmem:[#allocation2 + $0x6a0] sm:$0xff] %v7019_v29  ;;  %v977_v28 = vld [vmem:[#allocation2 + $0xc28] sm:$0xff]  ;;  %v1233_v29 = vld [vmem:[#allocation2 + $0x4e0] sm:$0xff] }
 0x4fe   : > { %v5247_v34 = vpop.f32.mrf.mxu0  ;;  %v6271_v35 = vpop.f32.mrf.mxu1 }
 0x4ff   : > { %v6764_v38 = vadd.f32 %v5247_v34, %v971_v32  ;;  %v7020_v39 = vadd.f32 %v6271_v35, %v1227_v33  ;;  %v15437_v32 = vld [vmem:[%s15780_s21 + $0x740] ss:$8 sps:$4 sm:$0xff]  }
 0x500   : > { %v5249_v42 = vpop.f32.mrf.mxu0  ;;  %v6273_v43 = vpop.f32.mrf.mxu1  ;;  %v15440_v33 = vld [vmem:[%s15780_s21 + $0xf40] ss:$8 sps:$4 sm:$0xff]  }
 0x501   : > { %7276 = vst [vmem:[#allocation2 + $0xb30] sm:$0xff] %v6764_v38  ;;  %7532 = vst [vmem:[#allocation2 + $0xf0] sm:$0xff] %v7020_v39 }
 0x502   : > { %v5252_v46 = vpop.f32.mrf.mxu0  ;;  %5443 = vmatmul.mubr.bf16.gmra.mxu0 %v15419_v36  ;;  %v6276_v47 = vpop.f32.mrf.mxu1  ;;  %6467 = vmatmul.mubr.bf16.gmra.mxu1 %v15422_v37  ;;  %v15445_v36 = vld [vmem:[%s15780_s21 + $0x754] ss:$8 sps:$4 sm:$0xff]  }
 0x503   : > { %v6765_v48 = vadd.f32 %v5252_v46, %v972_v44  ;;  %v7021_v49 = vadd.f32 %v6276_v47, %v1228_v45  ;;  %5450 = vmatprep.mubr.bf16.mxu0 %v15427_v40  ;;  %6474 = vmatprep.mubr.bf16.mxu1 %v15430_v41  ;;  %v15448_v37 = vld [vmem:[%s15780_s21 + $0xf54] ss:$8 sps:$4 sm:$0xff]   ;;  %v978_v40 = vld [vmem:[#allocation2 + $0x6e0] sm:$0xff] }
 0x504   : > { %v5254_v50 = vpop.f32.mrf.mxu0  ;;  %v6278_v51 = vpop.f32.mrf.mxu1  ;;  %v1234_v41 = vld [vmem:[#allocation2 + $0x10] sm:$0xff] }
 0x505   : > { %7277 = vst [vmem:[#allocation2 + $0x9f8] sm:$0xff] %v6765_v48  ;;  %7533 = vst [vmem:[#allocation2 + $0x218] sm:$0xff] %v7021_v49  ;;  %v979_v48 = vld [vmem:[#allocation2 + $0x970] sm:$0xff]  ;;  %v1235_v49 = vld [vmem:[#allocation2 + $0xa68] sm:$0xff] }
 0x506   : > { %v5255_v54 = vpop.f32.mrf.mxu0  ;;  %v6279_v55 = vpop.f32.mrf.mxu1 }
 0x507   : > { %v6766_v58 = vadd.f32 %v5255_v54, %v973_v52  ;;  %v7022_v59 = vadd.f32 %v6279_v55, %v1229_v53  ;;  %v15443_v52 = vld [vmem:[%s15780_s21 + $0x750] ss:$8 sps:$4 sm:$0xff]  }
 0x508   : > { %v5257_v62 = vpop.f32.mrf.mxu0  ;;  %v6281_v63 = vpop.f32.mrf.mxu1  ;;  %v15446_v53 = vld [vmem:[%s15780_s21 + $0xf50] ss:$8 sps:$4 sm:$0xff]  }
 0x509   : > { %7278 = vst [vmem:[#allocation2 + $0x138] sm:$0xff] %v6766_v58  ;;  %7534 = vst [vmem:[#allocation2 + $0x58] sm:$0xff] %v7022_v59 }
 0x50a   : > { %v5260_v2 = vpop.f32.mrf.mxu0  ;;  %5451 = vmatmul.mubr.bf16.gmra.mxu0 %v15425_v56  ;;  %v6284_v3 = vpop.f32.mrf.mxu1  ;;  %6475 = vmatmul.mubr.bf16.gmra.mxu1 %v15428_v57  ;;  %v15451_v56 = vld [vmem:[%s15780_s21 + $0x764] ss:$8 sps:$4 sm:$0xff]  }
 0x50b   : > { %v6767_v4 = vadd.f32 %v5260_v2, %v974_v0  ;;  %v7023_v5 = vadd.f32 %v6284_v3, %v1230_v1  ;;  %5458 = vmatprep.mubr.bf16.mxu0 %v15433_v60  ;;  %6482 = vmatprep.mubr.bf16.mxu1 %v15436_v61  ;;  %v15454_v57 = vld [vmem:[%s15780_s21 + $0xf64] ss:$8 sps:$4 sm:$0xff]   ;;  %v1236_v61 = vld [vmem:[#allocation2 + $0xf30] sm:$0xff] }
 0x50c   : > { %v5262_v6 = vpop.f32.mrf.mxu0  ;;  %v6286_v7 = vpop.f32.mrf.mxu1  ;;  %v980_v60 = vld [vmem:[#allocation2 + $0x628] sm:$0xff] }
 0x50d   : > { %7279 = vst [vmem:[#allocation2 + $0xf00] sm:$0xff] %v6767_v4  ;;  %7535 = vst [vmem:[#allocation2 + $0x28] sm:$0xff] %v7023_v5  ;;  %v981_v4 = vld [vmem:[#allocation2 + $0xb50] sm:$0xff]  ;;  %v1237_v5 = vld [vmem:[#allocation2 + $0x680] sm:$0xff] }
 0x50e   : > { %v5263_v10 = vpop.f32.mrf.mxu0  ;;  %v6287_v11 = vpop.f32.mrf.mxu1 }
 0x50f   : > { %v6768_v14 = vadd.f32 %v5263_v10, %v975_v8  ;;  %v7024_v15 = vadd.f32 %v6287_v11, %v1231_v9  ;;  %v15449_v8 = vld [vmem:[%s15780_s21 + $0x760] ss:$8 sps:$4 sm:$0xff]  }
 0x510   : > { %v5265_v18 = vpop.f32.mrf.mxu0  ;;  %v6289_v19 = vpop.f32.mrf.mxu1  ;;  %v15452_v9 = vld [vmem:[%s15780_s21 + $0xf60] ss:$8 sps:$4 sm:$0xff]  }
 0x511   : > { %7280 = vst [vmem:[#allocation2 + $0xd08] sm:$0xff] %v6768_v14  ;;  %7536 = vst [vmem:[#allocation2 + $0xc18] sm:$0xff] %v7024_v15 }
 0x512   : > { %v5268_v22 = vpop.f32.mrf.mxu0  ;;  %5459 = vmatmul.mubr.bf16.gmra.mxu0 %v15431_v12  ;;  %v6292_v23 = vpop.f32.mrf.mxu1  ;;  %6483 = vmatmul.mubr.bf16.gmra.mxu1 %v15434_v13  ;;  %v15457_v12 = vld [vmem:[%s15780_s21 + $0x774] ss:$8 sps:$4 sm:$0xff]  }
 0x513   : > { %v6769_v24 = vadd.f32 %v5268_v22, %v976_v20  ;;  %v7025_v25 = vadd.f32 %v6292_v23, %v1232_v21  ;;  %5466 = vmatprep.mubr.bf16.mxu0 %v15439_v16  ;;  %6490 = vmatprep.mubr.bf16.mxu1 %v15442_v17  ;;  %v15460_v13 = vld [vmem:[%s15780_s21 + $0xf74] ss:$8 sps:$4 sm:$0xff]   ;;  %v982_v16 = vld [vmem:[#allocation2 + $0x920] sm:$0xff]  ;;  %v1238_v17 = vld [vmem:[#allocation2 + $0x108] sm:$0xff] }
 0x514   : > { %v5270_v26 = vpop.f32.mrf.mxu0  ;;  %v6294_v27 = vpop.f32.mrf.mxu1 }
 0x515   : > { %7281 = vst [vmem:[#allocation2 + $0xe00] sm:$0xff] %v6769_v24  ;;  %7537 = vst [vmem:[#allocation2 + $0x290] sm:$0xff] %v7025_v25  ;;  %v983_v24 = vld [vmem:[#allocation2 + $0xef8] sm:$0xff] }
 0x516   : > { %v5271_v30 = vpop.f32.mrf.mxu0  ;;  %v6295_v31 = vpop.f32.mrf.mxu1  ;;  %v1239_v25 = vld [vmem:[#allocation2 + $0x778] sm:$0xff] }
 0x517   : > { %v6770_v34 = vadd.f32 %v5271_v30, %v977_v28  ;;  %v7026_v35 = vadd.f32 %v6295_v31, %v1233_v29  ;;  %v15455_v28 = vld [vmem:[%s15780_s21 + $0x770] ss:$8 sps:$4 sm:$0xff]  }
 0x518   : > { %v5273_v38 = vpop.f32.mrf.mxu0  ;;  %v6297_v39 = vpop.f32.mrf.mxu1  ;;  %v15458_v29 = vld [vmem:[%s15780_s21 + $0xf70] ss:$8 sps:$4 sm:$0xff]  }
 0x519   : > { %7282 = vst [vmem:[#allocation2 + $0xc28] sm:$0xff] %v6770_v34  ;;  %7538 = vst [vmem:[#allocation2 + $0x4e0] sm:$0xff] %v7026_v35 }
 0x51a   : > { %v5276_v42 = vpop.f32.mrf.mxu0  ;;  %5467 = vmatmul.mubr.bf16.gmra.mxu0 %v15437_v32  ;;  %v6300_v43 = vpop.f32.mrf.mxu1  ;;  %6491 = vmatmul.mubr.bf16.gmra.mxu1 %v15440_v33  ;;  %v15463_v32 = vld [vmem:[%s15780_s21 + $0x784] ss:$8 sps:$4 sm:$0xff]  }
 0x51b   : > { %v6771_v44 = vadd.f32 %v5276_v42, %v978_v40  ;;  %v7027_v45 = vadd.f32 %v6300_v43, %v1234_v41  ;;  %5474 = vmatprep.mubr.bf16.mxu0 %v15445_v36  ;;  %6498 = vmatprep.mubr.bf16.mxu1 %v15448_v37  ;;  %v15466_v33 = vld [vmem:[%s15780_s21 + $0xf84] ss:$8 sps:$4 sm:$0xff]   ;;  %v984_v36 = vld [vmem:[#allocation2 + $0x370] sm:$0xff] }
 0x51c   : > { %v5278_v46 = vpop.f32.mrf.mxu0  ;;  %v6302_v47 = vpop.f32.mrf.mxu1  ;;  %v1240_v37 = vld [vmem:[#allocation2 + $0x368] sm:$0xff] }
 0x51d   : > { %7283 = vst [vmem:[#allocation2 + $0x6e0] sm:$0xff] %v6771_v44  ;;  %7539 = vst [vmem:[#allocation2 + $0x10] sm:$0xff] %v7027_v45  ;;  %v985_v44 = vld [vmem:[#allocation2 + $0x2e8] sm:$0xff]  ;;  %v1241_v45 = vld [vmem:[#allocation2 + $0x110] sm:$0xff] }
 0x51e   : > { %v5279_v50 = vpop.f32.mrf.mxu0  ;;  %v6303_v51 = vpop.f32.mrf.mxu1 }
 0x51f   : > { %v6772_v54 = vadd.f32 %v5279_v50, %v979_v48  ;;  %v7028_v55 = vadd.f32 %v6303_v51, %v1235_v49  ;;  %v15461_v48 = vld [vmem:[%s15780_s21 + $0x780] ss:$8 sps:$4 sm:$0xff]  }
 0x520   : > { %v5281_v58 = vpop.f32.mrf.mxu0  ;;  %v6305_v59 = vpop.f32.mrf.mxu1  ;;  %v15464_v49 = vld [vmem:[%s15780_s21 + $0xf80] ss:$8 sps:$4 sm:$0xff]  }
 0x521   : > { %7284 = vst [vmem:[#allocation2 + $0x970] sm:$0xff] %v6772_v54  ;;  %7540 = vst [vmem:[#allocation2 + $0xa68] sm:$0xff] %v7028_v55 }
 0x522   : > { %v5284_v62 = vpop.f32.mrf.mxu0  ;;  %5475 = vmatmul.mubr.bf16.gmra.mxu0 %v15443_v52  ;;  %v6308_v63 = vpop.f32.mrf.mxu1  ;;  %6499 = vmatmul.mubr.bf16.gmra.mxu1 %v15446_v53  ;;  %v15469_v52 = vld [vmem:[%s15780_s21 + $0x794] ss:$8 sps:$4 sm:$0xff]  }
 0x523   : > { %v6773_v0 = vadd.f32 %v5284_v62, %v980_v60  ;;  %v7029_v1 = vadd.f32 %v6308_v63, %v1236_v61  ;;  %5482 = vmatprep.mubr.bf16.mxu0 %v15451_v56  ;;  %6506 = vmatprep.mubr.bf16.mxu1 %v15454_v57  ;;  %v15472_v53 = vld [vmem:[%s15780_s21 + $0xf94] ss:$8 sps:$4 sm:$0xff]   ;;  %v1242_v57 = vld [vmem:[#allocation2 + $0xaa0] sm:$0xff] }
 0x524   : > { %v5286_v2 = vpop.f32.mrf.mxu0  ;;  %v6310_v3 = vpop.f32.mrf.mxu1  ;;  %v986_v56 = vld [vmem:[#allocation2 + $0x398] sm:$0xff] }
 0x525   : > { %7285 = vst [vmem:[#allocation2 + $0x628] sm:$0xff] %v6773_v0  ;;  %7541 = vst [vmem:[#allocation2 + $0xf30] sm:$0xff] %v7029_v1  ;;  %v987_v0 = vld [vmem:[#allocation2 + $0xe0] sm:$0xff] }
 0x526   : > { %v5287_v6 = vpop.f32.mrf.mxu0  ;;  %v6311_v7 = vpop.f32.mrf.mxu1  ;;  %v1243_v1 = vld [vmem:[#allocation2 + $0xee0] sm:$0xff] }
 0x527   : > { %v6774_v10 = vadd.f32 %v5287_v6, %v981_v4  ;;  %v7030_v11 = vadd.f32 %v6311_v7, %v1237_v5  ;;  %v15467_v4 = vld [vmem:[%s15780_s21 + $0x790] ss:$8 sps:$4 sm:$0xff]  }
 0x528   : > { %v5289_v14 = vpop.f32.mrf.mxu0  ;;  %v6313_v15 = vpop.f32.mrf.mxu1  ;;  %v15470_v5 = vld [vmem:[%s15780_s21 + $0xf90] ss:$8 sps:$4 sm:$0xff]  }
 0x529   : > { %7286 = vst [vmem:[#allocation2 + $0xb50] sm:$0xff] %v6774_v10  ;;  %7542 = vst [vmem:[#allocation2 + $0x680] sm:$0xff] %v7030_v11 }
 0x52a   : > { %v5292_v18 = vpop.f32.mrf.mxu0  ;;  %5483 = vmatmul.mubr.bf16.gmra.mxu0 %v15449_v8  ;;  %v6316_v19 = vpop.f32.mrf.mxu1  ;;  %6507 = vmatmul.mubr.bf16.gmra.mxu1 %v15452_v9  ;;  %v15475_v8 = vld [vmem:[%s15780_s21 + $0x7a4] ss:$8 sps:$4 sm:$0xff]  }
 0x52b   : > { %v6775_v20 = vadd.f32 %v5292_v18, %v982_v16  ;;  %v7031_v21 = vadd.f32 %v6316_v19, %v1238_v17  ;;  %5490 = vmatprep.mubr.bf16.mxu0 %v15457_v12  ;;  %6514 = vmatprep.mubr.bf16.mxu1 %v15460_v13  ;;  %v15478_v9 = vld [vmem:[%s15780_s21 + $0xfa4] ss:$8 sps:$4 sm:$0xff]  }
 0x52c   : > { %v5294_v22 = vpop.f32.mrf.mxu0  ;;  %v6318_v23 = vpop.f32.mrf.mxu1  ;;  %v988_v12 = vld [vmem:[#allocation2 + $0x1e0] sm:$0xff] }
 0x52d   : > { %7287 = vst [vmem:[#allocation2 + $0x920] sm:$0xff] %v6775_v20  ;;  %7543 = vst [vmem:[#allocation2 + $0x108] sm:$0xff] %v7031_v21  ;;  %v1244_v13 = vld [vmem:[#allocation2 + $0x260] sm:$0xff]  ;;  %v989_v20 = vld [vmem:[#allocation2 + $0xf90] sm:$0xff] }
 0x52e   : > { %v5295_v26 = vpop.f32.mrf.mxu0  ;;  %v6319_v27 = vpop.f32.mrf.mxu1  ;;  %v1245_v21 = vld [vmem:[#allocation2 + $0x3a8] sm:$0xff] }
 0x52f   : > { %v6776_v30 = vadd.f32 %v5295_v26, %v983_v24  ;;  %v7032_v31 = vadd.f32 %v6319_v27, %v1239_v25  ;;  %v15473_v24 = vld [vmem:[%s15780_s21 + $0x7a0] ss:$8 sps:$4 sm:$0xff]  }
 0x530   : > { %v5297_v34 = vpop.f32.mrf.mxu0  ;;  %v6321_v35 = vpop.f32.mrf.mxu1  ;;  %v15476_v25 = vld [vmem:[%s15780_s21 + $0xfa0] ss:$8 sps:$4 sm:$0xff]  }
 0x531   : > { %7288 = vst [vmem:[#allocation2 + $0xef8] sm:$0xff] %v6776_v30  ;;  %7544 = vst [vmem:[#allocation2 + $0x778] sm:$0xff] %v7032_v31 }
 0x532   : > { %v5300_v38 = vpop.f32.mrf.mxu0  ;;  %5491 = vmatmul.mubr.bf16.gmra.mxu0 %v15455_v28  ;;  %v6324_v39 = vpop.f32.mrf.mxu1  ;;  %6515 = vmatmul.mubr.bf16.gmra.mxu1 %v15458_v29  ;;  %v15481_v28 = vld [vmem:[%s15780_s21 + $0x7b4] ss:$8 sps:$4 sm:$0xff]  }
 0x533   : > { %v6777_v40 = vadd.f32 %v5300_v38, %v984_v36  ;;  %v7033_v41 = vadd.f32 %v6324_v39, %v1240_v37  ;;  %5498 = vmatprep.mubr.bf16.mxu0 %v15463_v32  ;;  %6522 = vmatprep.mubr.bf16.mxu1 %v15466_v33  ;;  %v15484_v29 = vld [vmem:[%s15780_s21 + $0xfb4] ss:$8 sps:$4 sm:$0xff]   ;;  %v1246_v33 = vld [vmem:[#allocation2 + $0xf68] sm:$0xff] }
 0x534   : > { %v5302_v42 = vpop.f32.mrf.mxu0  ;;  %v6326_v43 = vpop.f32.mrf.mxu1  ;;  %v990_v32 = vld [vmem:[#allocation2 + $0x270] sm:$0xff] }
 0x535   : > { %7289 = vst [vmem:[#allocation2 + $0x370] sm:$0xff] %v6777_v40  ;;  %7545 = vst [vmem:[#allocation2 + $0x368] sm:$0xff] %v7033_v41  ;;  %v991_v40 = vld [vmem:[#allocation2 + $0x8f8] sm:$0xff]  ;;  %v1247_v41 = vld [vmem:[#allocation2 + $0x880] sm:$0xff] }
 0x536   : > { %v5303_v46 = vpop.f32.mrf.mxu0  ;;  %v6327_v47 = vpop.f32.mrf.mxu1 }
 0x537   : > { %v6778_v50 = vadd.f32 %v5303_v46, %v985_v44  ;;  %v7034_v51 = vadd.f32 %v6327_v47, %v1241_v45  ;;  %v15479_v44 = vld [vmem:[%s15780_s21 + $0x7b0] ss:$8 sps:$4 sm:$0xff]  }
 0x538   : > { %v5305_v54 = vpop.f32.mrf.mxu0  ;;  %v6329_v55 = vpop.f32.mrf.mxu1  ;;  %v15482_v45 = vld [vmem:[%s15780_s21 + $0xfb0] ss:$8 sps:$4 sm:$0xff]  }
 0x539   : > { %7290 = vst [vmem:[#allocation2 + $0x2e8] sm:$0xff] %v6778_v50  ;;  %7546 = vst [vmem:[#allocation2 + $0x110] sm:$0xff] %v7034_v51 }
 0x53a   : > { %v5308_v58 = vpop.f32.mrf.mxu0  ;;  %5499 = vmatmul.mubr.bf16.gmra.mxu0 %v15461_v48  ;;  %v6332_v59 = vpop.f32.mrf.mxu1  ;;  %6523 = vmatmul.mubr.bf16.gmra.mxu1 %v15464_v49  ;;  %v15487_v48 = vld [vmem:[%s15780_s21 + $0x7c4] ss:$8 sps:$4 sm:$0xff]  }
 0x53b   : > { %v6779_v60 = vadd.f32 %v5308_v58, %v986_v56  ;;  %v7035_v61 = vadd.f32 %v6332_v59, %v1242_v57  ;;  %5506 = vmatprep.mubr.bf16.mxu0 %v15469_v52  ;;  %6530 = vmatprep.mubr.bf16.mxu1 %v15472_v53  ;;  %v15490_v49 = vld [vmem:[%s15780_s21 + $0xfc4] ss:$8 sps:$4 sm:$0xff]   ;;  %v992_v52 = vld [vmem:[#allocation2 + $0x598] sm:$0xff]  ;;  %v1248_v53 = vld [vmem:[#allocation2 + $0x4f0] sm:$0xff] }
 0x53c   : > { %v5310_v62 = vpop.f32.mrf.mxu0  ;;  %v6334_v63 = vpop.f32.mrf.mxu1 }
 0x53d   : > { %7291 = vst [vmem:[#allocation2 + $0x398] sm:$0xff] %v6779_v60  ;;  %7547 = vst [vmem:[#allocation2 + $0xaa0] sm:$0xff] %v7035_v61  ;;  %v993_v60 = vld [vmem:[#allocation2 + $0x750] sm:$0xff] }
 0x53e   : > { %v5311_v2 = vpop.f32.mrf.mxu0  ;;  %v6335_v3 = vpop.f32.mrf.mxu1  ;;  %v1249_v61 = vld [vmem:[#allocation2 + $0x850] sm:$0xff] }
 0x53f   : > { %v6780_v6 = vadd.f32 %v5311_v2, %v987_v0  ;;  %v7036_v7 = vadd.f32 %v6335_v3, %v1243_v1  ;;  %v15485_v0 = vld [vmem:[%s15780_s21 + $0x7c0] ss:$8 sps:$4 sm:$0xff]  }
 0x540   : > { %v5313_v10 = vpop.f32.mrf.mxu0  ;;  %v6337_v11 = vpop.f32.mrf.mxu1  ;;  %v15488_v1 = vld [vmem:[%s15780_s21 + $0xfc0] ss:$8 sps:$4 sm:$0xff]  }
 0x541   : > { %7292 = vst [vmem:[#allocation2 + $0xe0] sm:$0xff] %v6780_v6  ;;  %7548 = vst [vmem:[#allocation2 + $0xee0] sm:$0xff] %v7036_v7 }
 0x542   : > { %v5316_v14 = vpop.f32.mrf.mxu0  ;;  %5507 = vmatmul.mubr.bf16.gmra.mxu0 %v15467_v4  ;;  %v6340_v15 = vpop.f32.mrf.mxu1  ;;  %6531 = vmatmul.mubr.bf16.gmra.mxu1 %v15470_v5  ;;  %v15493_v4 = vld [vmem:[%s15780_s21 + $0x7d4] ss:$8 sps:$4 sm:$0xff]  }
 0x543   : > { %v6781_v16 = vadd.f32 %v5316_v14, %v988_v12  ;;  %v7037_v17 = vadd.f32 %v6340_v15, %v1244_v13  ;;  %5514 = vmatprep.mubr.bf16.mxu0 %v15475_v8  ;;  %6538 = vmatprep.mubr.bf16.mxu1 %v15478_v9  ;;  %v15496_v5 = vld [vmem:[%s15780_s21 + $0xfd4] ss:$8 sps:$4 sm:$0xff]   ;;  %v994_v8 = vld [vmem:[#allocation2 + $0xb08] sm:$0xff] }
 0x544   : > { %v5318_v18 = vpop.f32.mrf.mxu0  ;;  %v6342_v19 = vpop.f32.mrf.mxu1  ;;  %v1250_v9 = vld [vmem:[#allocation2 + $0xd10] sm:$0xff] }
 0x545   : > { %7293 = vst [vmem:[#allocation2 + $0x1e0] sm:$0xff] %v6781_v16  ;;  %7549 = vst [vmem:[#allocation2 + $0x260] sm:$0xff] %v7037_v17  ;;  %v995_v16 = vld [vmem:[#allocation2 + $0xde8] sm:$0xff]  ;;  %v1251_v17 = vld [vmem:[#allocation2 + $0xb38] sm:$0xff] }
 0x546   : > { %v5319_v22 = vpop.f32.mrf.mxu0  ;;  %v6343_v23 = vpop.f32.mrf.mxu1 }
 0x547   : > { %v6782_v26 = vadd.f32 %v5319_v22, %v989_v20  ;;  %v7038_v27 = vadd.f32 %v6343_v23, %v1245_v21  ;;  %v15491_v20 = vld [vmem:[%s15780_s21 + $0x7d0] ss:$8 sps:$4 sm:$0xff]  }
 0x548   : > { %v5321_v30 = vpop.f32.mrf.mxu0  ;;  %v6345_v31 = vpop.f32.mrf.mxu1  ;;  %v15494_v21 = vld [vmem:[%s15780_s21 + $0xfd0] ss:$8 sps:$4 sm:$0xff]  }
 0x549   : > { %7294 = vst [vmem:[#allocation2 + $0xf90] sm:$0xff] %v6782_v26  ;;  %7550 = vst [vmem:[#allocation2 + $0x3a8] sm:$0xff] %v7038_v27 }
 0x54a   : > { %v5324_v34 = vpop.f32.mrf.mxu0  ;;  %5515 = vmatmul.mubr.bf16.gmra.mxu0 %v15473_v24  ;;  %v6348_v35 = vpop.f32.mrf.mxu1  ;;  %6539 = vmatmul.mubr.bf16.gmra.mxu1 %v15476_v25  ;;  %v15499_v24 = vld [vmem:[%s15780_s21 + $0x7e4] ss:$8 sps:$4 sm:$0xff]  }
 0x54b   : > { %v6783_v36 = vadd.f32 %v5324_v34, %v990_v32  ;;  %v7039_v37 = vadd.f32 %v6348_v35, %v1246_v33  ;;  %5522 = vmatprep.mubr.bf16.mxu0 %v15481_v28  ;;  %6546 = vmatprep.mubr.bf16.mxu1 %v15484_v29  ;;  %v15502_v25 = vld [vmem:[%s15780_s21 + $0xfe4] ss:$8 sps:$4 sm:$0xff]   ;;  %v1252_v29 = vld [vmem:[#allocation2 + $0x8f0] sm:$0xff] }
 0x54c   : > { %v5326_v38 = vpop.f32.mrf.mxu0  ;;  %v6350_v39 = vpop.f32.mrf.mxu1  ;;  %v996_v28 = vld [vmem:[#allocation2 + $0x308] sm:$0xff] }
 0x54d   : > { %7295 = vst [vmem:[#allocation2 + $0x270] sm:$0xff] %v6783_v36  ;;  %7551 = vst [vmem:[#allocation2 + $0xf68] sm:$0xff] %v7039_v37  ;;  %v997_v36 = vld [vmem:[#allocation2 + $0x9a8] sm:$0xff]  ;;  %v1253_v37 = vld [vmem:[#allocation2 + $0x798] sm:$0xff] }
 0x54e   : > { %v5327_v42 = vpop.f32.mrf.mxu0  ;;  %v6351_v43 = vpop.f32.mrf.mxu1 }
 0x54f   : > { %v6784_v46 = vadd.f32 %v5327_v42, %v991_v40  ;;  %v7040_v47 = vadd.f32 %v6351_v43, %v1247_v41  ;;  %v15497_v40 = vld [vmem:[%s15780_s21 + $0x7e0] ss:$8 sps:$4 sm:$0xff]  }
 0x550   : > { %v5329_v50 = vpop.f32.mrf.mxu0  ;;  %v6353_v51 = vpop.f32.mrf.mxu1  ;;  %v15500_v41 = vld [vmem:[%s15780_s21 + $0xfe0] ss:$8 sps:$4 sm:$0xff]  }
 0x551   : > { %7296 = vst [vmem:[#allocation2 + $0x8f8] sm:$0xff] %v6784_v46  ;;  %7552 = vst [vmem:[#allocation2 + $0x880] sm:$0xff] %v7040_v47 }
 0x552   : > { %v5332_v54 = vpop.f32.mrf.mxu0  ;;  %5523 = vmatmul.mubr.bf16.gmra.mxu0 %v15479_v44  ;;  %v6356_v55 = vpop.f32.mrf.mxu1  ;;  %6547 = vmatmul.mubr.bf16.gmra.mxu1 %v15482_v45  ;;  %v15505_v44 = vld [vmem:[%s15780_s21 + $0x7f4] ss:$8 sps:$4 sm:$0xff]  }
 0x553   : > { %v6785_v56 = vadd.f32 %v5332_v54, %v992_v52  ;;  %v7041_v57 = vadd.f32 %v6356_v55, %v1248_v53  ;;  %5530 = vmatprep.mubr.bf16.mxu0 %v15487_v48  ;;  %6554 = vmatprep.mubr.bf16.mxu1 %v15490_v49  ;;  %v15508_v45 = vld [vmem:[%s15780_s21 + $0xff4] ss:$8 sps:$4 sm:$0xff]  }
 0x554   : > { %v5334_v58 = vpop.f32.mrf.mxu0  ;;  %v6358_v59 = vpop.f32.mrf.mxu1  ;;  %v998_v48 = vld [vmem:[#allocation2 + $0xe98] sm:$0xff] }
 0x555   : > { %7297 = vst [vmem:[#allocation2 + $0x598] sm:$0xff] %v6785_v56  ;;  %7553 = vst [vmem:[#allocation2 + $0x4f0] sm:$0xff] %v7041_v57  ;;  %v1254_v49 = vld [vmem:[#allocation2 + $0x238] sm:$0xff]  ;;  %v999_v56 = vld [vmem:[#allocation2 + $0x268] sm:$0xff] }
 0x556   : > { %v5335_v62 = vpop.f32.mrf.mxu0  ;;  %v6359_v63 = vpop.f32.mrf.mxu1  ;;  %v1255_v57 = vld [vmem:[#allocation2 + $0xa00] sm:$0xff] }
 0x557   : > { %v6786_v2 = vadd.f32 %v5335_v62, %v993_v60  ;;  %v7042_v3 = vadd.f32 %v6359_v63, %v1249_v61  ;;  %v15503_v60 = vld [vmem:[%s15780_s21 + $0x7f0] ss:$8 sps:$4 sm:$0xff]  }
 0x558   : > { %v5337_v6 = vpop.f32.mrf.mxu0  ;;  %v6361_v7 = vpop.f32.mrf.mxu1  ;;  %v15506_v61 = vld [vmem:[%s15780_s21 + $0xff0] ss:$8 sps:$4 sm:$0xff]  }
 0x559   : > { %7298 = vst [vmem:[#allocation2 + $0x750] sm:$0xff] %v6786_v2  ;;  %7554 = vst [vmem:[#allocation2 + $0x850] sm:$0xff] %v7042_v3  ;;  %v1000_v2 = vld [vmem:[#allocation2 + $0x610] sm:$0xff]  ;;  %v1256_v3 = vld [vmem:[#allocation2 + $0xd18] sm:$0xff] }
 0x55a   : > { %v5340_v10 = vpop.f32.mrf.mxu0  ;;  %5531 = vmatmul.mubr.bf16.gmra.mxu0 %v15485_v0  ;;  %v6364_v11 = vpop.f32.mrf.mxu1  ;;  %6555 = vmatmul.mubr.bf16.gmra.mxu1 %v15488_v1 }
 0x55b   : > { %v6787_v12 = vadd.f32 %v5340_v10, %v994_v8  ;;  %v7043_v13 = vadd.f32 %v6364_v11, %v1250_v9  ;;  %5538 = vmatprep.mubr.bf16.mxu0 %v15493_v4  ;;  %6562 = vmatprep.mubr.bf16.mxu1 %v15496_v5  ;;  %v1001_v10 = vld [vmem:[#allocation2 + $0x50] sm:$0xff]  ;;  %v1257_v11 = vld [vmem:[#allocation2 + $0xd40] sm:$0xff] }
 0x55c   : > { %v5342_v14 = vpop.f32.mrf.mxu0  ;;  %v6366_v15 = vpop.f32.mrf.mxu1 }
 0x55d   : > { %7299 = vst [vmem:[#allocation2 + $0xb08] sm:$0xff] %v6787_v12  ;;  %7555 = vst [vmem:[#allocation2 + $0xd10] sm:$0xff] %v7043_v13 }
 0x55e   : > { %v5343_v18 = vpop.f32.mrf.mxu0  ;;  %v6367_v19 = vpop.f32.mrf.mxu1 }
 0x55f   : > { %v6788_v22 = vadd.f32 %v5343_v18, %v995_v16  ;;  %v7044_v23 = vadd.f32 %v6367_v19, %v1251_v17  ;;  %v1002_v18 = vld [vmem:[#allocation2 + $0x6d0] sm:$0xff]  ;;  %v1258_v19 = vld [vmem:[#allocation2 + $0xa80] sm:$0xff] }
 0x560   : > { %v5345_v26 = vpop.f32.mrf.mxu0  ;;  %v6369_v27 = vpop.f32.mrf.mxu1 }
 0x561   : > { %7300 = vst [vmem:[#allocation2 + $0xde8] sm:$0xff] %v6788_v22  ;;  %7556 = vst [vmem:[#allocation2 + $0xb38] sm:$0xff] %v7044_v23  ;;  %v1003_v26 = vld [vmem:[#allocation2 + $0xa60] sm:$0xff]  ;;  %v1259_v27 = vld [vmem:[#allocation2 + $0x2b0] sm:$0xff] }
 0x562   : > { %v5348_v30 = vpop.f32.mrf.mxu0  ;;  %5539 = vmatmul.mubr.bf16.gmra.mxu0 %v15491_v20  ;;  %v6372_v31 = vpop.f32.mrf.mxu1  ;;  %6563 = vmatmul.mubr.bf16.gmra.mxu1 %v15494_v21 }
 0x563   : > { %v6789_v32 = vadd.f32 %v5348_v30, %v996_v28  ;;  %v7045_v33 = vadd.f32 %v6372_v31, %v1252_v29  ;;  %5546 = vmatprep.mubr.bf16.mxu0 %v15499_v24  ;;  %6570 = vmatprep.mubr.bf16.mxu1 %v15502_v25 }
 0x564   : > { %v5350_v34 = vpop.f32.mrf.mxu0  ;;  %v6374_v35 = vpop.f32.mrf.mxu1 }
 0x565   : > { %7301 = vst [vmem:[#allocation2 + $0x308] sm:$0xff] %v6789_v32  ;;  %7557 = vst [vmem:[#allocation2 + $0x8f0] sm:$0xff] %v7045_v33  ;;  %v1004_v34 = vld [vmem:[#allocation2 + $0x470] sm:$0xff]  ;;  %v1260_v35 = vld [vmem:[#allocation2 + $0x740] sm:$0xff] }
 0x566   : > { %v5351_v38 = vpop.f32.mrf.mxu0  ;;  %v6375_v39 = vpop.f32.mrf.mxu1 }
 0x567   : > { %v6790_v42 = vadd.f32 %v5351_v38, %v997_v36  ;;  %v7046_v43 = vadd.f32 %v6375_v39, %v1253_v37 }
 0x568   : > { %v5353_v46 = vpop.f32.mrf.mxu0  ;;  %v6377_v47 = vpop.f32.mrf.mxu1 }
 0x569   : > { %7302 = vst [vmem:[#allocation2 + $0x9a8] sm:$0xff] %v6790_v42  ;;  %7558 = vst [vmem:[#allocation2 + $0x798] sm:$0xff] %v7046_v43  ;;  %v1005_v42 = vld [vmem:[#allocation2 + $0x928] sm:$0xff] }
 0x56a   : > { %v5356_v50 = vpop.f32.mrf.mxu0  ;;  %5547 = vmatmul.mubr.bf16.gmra.mxu0 %v15497_v40  ;;  %v6380_v51 = vpop.f32.mrf.mxu1  ;;  %6571 = vmatmul.mubr.bf16.gmra.mxu1 %v15500_v41  ;;  %v1261_v43 = vld [vmem:[#allocation2 + $0xaa8] sm:$0xff] }
 0x56b   : > { %v6791_v52 = vadd.f32 %v5356_v50, %v998_v48  ;;  %v7047_v53 = vadd.f32 %v6380_v51, %v1254_v49  ;;  %5554 = vmatprep.mubr.bf16.mxu0 %v15505_v44  ;;  %6578 = vmatprep.mubr.bf16.mxu1 %v15508_v45  ;;  %v1006_v50 = vld [vmem:[#allocation2 + $0x8a0] sm:$0xff]  ;;  %v1262_v51 = vld [vmem:[#allocation2 + $0xfa8] sm:$0xff] }
 0x56c   : > { %v5358_v54 = vpop.f32.mrf.mxu0  ;;  %v6382_v55 = vpop.f32.mrf.mxu1 }
 0x56d   : > { %7303 = vst [vmem:[#allocation2 + $0xe98] sm:$0xff] %v6791_v52  ;;  %7559 = vst [vmem:[#allocation2 + $0x238] sm:$0xff] %v7047_v53 }
 0x56e   : > { %v5359_v58 = vpop.f32.mrf.mxu0  ;;  %v6383_v59 = vpop.f32.mrf.mxu1 }
 0x56f   : > { %v6792_v62 = vadd.f32 %v5359_v58, %v999_v56  ;;  %v7048_v63 = vadd.f32 %v6383_v59, %v1255_v57  ;;  %v1007_v58 = vld [vmem:[#allocation2 + $0xe88] sm:$0xff]  ;;  %v1263_v59 = vld [vmem:[#allocation2 + $0xa98] sm:$0xff] }
 0x570   : > { %v5361_v0 = vpop.f32.mrf.mxu0  ;;  %v6385_v1 = vpop.f32.mrf.mxu1 }
 0x571   : > { %7304 = vst [vmem:[#allocation2 + $0x268] sm:$0xff] %v6792_v62  ;;  %7560 = vst [vmem:[#allocation2 + $0xa00] sm:$0xff] %v7048_v63 }
 0x572   : > { %v5364_v4 = vpop.f32.mrf.mxu0  ;;  %5555 = vmatmul.mubr.bf16.gmra.mxu0 %v15503_v60  ;;  %v6388_v5 = vpop.f32.mrf.mxu1  ;;  %6579 = vmatmul.mubr.bf16.gmra.mxu1 %v15506_v61 }
 0x573   : > { %v6793_v6 = vadd.f32 %v5364_v4, %v1000_v2  ;;  %v7049_v7 = vadd.f32 %v6388_v5, %v1256_v3  ;;  %v1008_v2 = vld [vmem:[#allocation2 + $0xb68] sm:$0xff]  ;;  %v1264_v3 = vld [vmem:[#allocation2 + $0xc78] sm:$0xff] }
 0x574   : > { %v5366_v8 = vpop.f32.mrf.mxu0  ;;  %v6390_v9 = vpop.f32.mrf.mxu1 }
 0x575   : > { %7305 = vst [vmem:[#allocation2 + $0x610] sm:$0xff] %v6793_v6  ;;  %7561 = vst [vmem:[#allocation2 + $0xd18] sm:$0xff] %v7049_v7 }
 0x576   : > { %v5367_v12 = vpop.f32.mrf.mxu0  ;;  %v6391_v13 = vpop.f32.mrf.mxu1 }
 0x577   : > { %v6794_v14 = vadd.f32 %v5367_v12, %v1001_v10  ;;  %v7050_v15 = vadd.f32 %v6391_v13, %v1257_v11  ;;  %v1009_v10 = vld [vmem:[#allocation2 + $0x6a8] sm:$0xff]  ;;  %v1265_v11 = vld [vmem:[#allocation2 + $0x2d8] sm:$0xff] }
 0x578   : > { %v5369_v16 = vpop.f32.mrf.mxu0  ;;  %v6393_v17 = vpop.f32.mrf.mxu1 }
 0x579   : > { %7306 = vst [vmem:[#allocation2 + $0x50] sm:$0xff] %v6794_v14  ;;  %7562 = vst [vmem:[#allocation2 + $0xd40] sm:$0xff] %v7050_v15 }
 0x57a   : > { %v5372_v20 = vpop.f32.mrf.mxu0  ;;  %v6396_v21 = vpop.f32.mrf.mxu1 }
 0x57b   : > { %v6795_v22 = vadd.f32 %v5372_v20, %v1002_v18  ;;  %v7051_v23 = vadd.f32 %v6396_v21, %v1258_v19  ;;  %v1010_v18 = vld [vmem:[#allocation2 + $0xe50] sm:$0xff] }
 0x57c   : > { %v5374_v24 = vpop.f32.mrf.mxu0  ;;  %v6398_v25 = vpop.f32.mrf.mxu1  ;;  %v1266_v19 = vld [vmem:[#allocation2 + $0xc30] sm:$0xff] }
 0x57d   : > { %7307 = vst [vmem:[#allocation2 + $0x6d0] sm:$0xff] %v6795_v22  ;;  %7563 = vst [vmem:[#allocation2 + $0xa80] sm:$0xff] %v7051_v23 }
 0x57e   : > { %v5375_v28 = vpop.f32.mrf.mxu0  ;;  %v6399_v29 = vpop.f32.mrf.mxu1 }
 0x57f   : > { %v6796_v30 = vadd.f32 %v5375_v28, %v1003_v26  ;;  %v7052_v31 = vadd.f32 %v6399_v29, %v1259_v27  ;;  %v1011_v26 = vld [vmem:[#allocation2 + $0x7c0] sm:$0xff]  ;;  %v1267_v27 = vld [vmem:[#allocation2 + $0xf10] sm:$0xff] }
 0x580   : > { %v5377_v32 = vpop.f32.mrf.mxu0  ;;  %v6401_v33 = vpop.f32.mrf.mxu1 }
 0x581   : > { %7308 = vst [vmem:[#allocation2 + $0xa60] sm:$0xff] %v6796_v30  ;;  %7564 = vst [vmem:[#allocation2 + $0x2b0] sm:$0xff] %v7052_v31 }
 0x582   : > { %v5380_v36 = vpop.f32.mrf.mxu0  ;;  %v6404_v37 = vpop.f32.mrf.mxu1 }
 0x583   : > { %v6797_v38 = vadd.f32 %v5380_v36, %v1004_v34  ;;  %v7053_v39 = vadd.f32 %v6404_v37, %v1260_v35  ;;  %v1012_v34 = vld [vmem:[#allocation2 + $0xe90] sm:$0xff]  ;;  %v1268_v35 = vld [vmem:[#allocation2 + $0x460] sm:$0xff] }
 0x584   : > { %v5382_v40 = vpop.f32.mrf.mxu0  ;;  %v6406_v41 = vpop.f32.mrf.mxu1 }
 0x585   : > { %7309 = vst [vmem:[#allocation2 + $0x470] sm:$0xff] %v6797_v38  ;;  %7565 = vst [vmem:[#allocation2 + $0x740] sm:$0xff] %v7053_v39 }
 0x586   : > { %v5383_v44 = vpop.f32.mrf.mxu0  ;;  %v6407_v45 = vpop.f32.mrf.mxu1 }
 0x587   : > { %v6798_v46 = vadd.f32 %v5383_v44, %v1005_v42  ;;  %v7054_v47 = vadd.f32 %v6407_v45, %v1261_v43  ;;  %v1013_v42 = vld [vmem:[#allocation2 + $0xc38] sm:$0xff] }
 0x588   : > { %v5385_v48 = vpop.f32.mrf.mxu0  ;;  %v6409_v49 = vpop.f32.mrf.mxu1  ;;  %v1269_v43 = vld [vmem:[#allocation2 + $0x898] sm:$0xff] }
 0x589   : > { %7310 = vst [vmem:[#allocation2 + $0x928] sm:$0xff] %v6798_v46  ;;  %7566 = vst [vmem:[#allocation2 + $0xaa8] sm:$0xff] %v7054_v47 }
 0x58a   : > { %v5388_v52 = vpop.f32.mrf.mxu0  ;;  %v6412_v53 = vpop.f32.mrf.mxu1 }
 0x58b   : > { %v6799_v54 = vadd.f32 %v5388_v52, %v1006_v50  ;;  %v7055_v55 = vadd.f32 %v6412_v53, %v1262_v51  ;;  %v1014_v50 = vld [vmem:[#allocation2 + $0xb8] sm:$0xff] }
 0x58c   : > { %v5390_v56 = vpop.f32.mrf.mxu0  ;;  %v6414_v57 = vpop.f32.mrf.mxu1  ;;  %v1270_v51 = vld [vmem:[#allocation2 + $0x538] sm:$0xff] }
 0x58d   : > { %7311 = vst [vmem:[#allocation2 + $0x8a0] sm:$0xff] %v6799_v54  ;;  %7567 = vst [vmem:[#allocation2 + $0xfa8] sm:$0xff] %v7055_v55 }
 0x58e   : > { %v5391_v60 = vpop.f32.mrf.mxu0  ;;  %v6415_v61 = vpop.f32.mrf.mxu1 }
 0x58f   : > { %v6800_v62 = vadd.f32 %v5391_v60, %v1007_v58  ;;  %v7056_v63 = vadd.f32 %v6415_v61, %v1263_v59  ;;  %v1015_v58 = vld [vmem:[#allocation2 + $0xc48] sm:$0xff] }
 0x590   : > { %v5393_v0 = vpop.f32.mrf.mxu0  ;;  %v6417_v1 = vpop.f32.mrf.mxu1  ;;  %v1271_v59 = vld [vmem:[#allocation2 + $0x328] sm:$0xff] }
 0x591   : > { %7312 = vst [vmem:[#allocation2 + $0xe88] sm:$0xff] %v6800_v62  ;;  %7568 = vst [vmem:[#allocation2 + $0xa98] sm:$0xff] %v7056_v63 }
 0x592   : > { %v5396_v4 = vpop.f32.mrf.mxu0  ;;  %v6420_v5 = vpop.f32.mrf.mxu1 }
 0x593   : > { %v6801_v6 = vadd.f32 %v5396_v4, %v1008_v2  ;;  %v7057_v7 = vadd.f32 %v6420_v5, %v1264_v3  ;;  %v1016_v2 = vld [vmem:[#allocation2 + $0xb20] sm:$0xff]  ;;  %v1272_v3 = vld [vmem:[#allocation2 + $0xa50] sm:$0xff] }
 0x594   : > { %v5398_v8 = vpop.f32.mrf.mxu0  ;;  %v6422_v9 = vpop.f32.mrf.mxu1 }
 0x595   : > { %7313 = vst [vmem:[#allocation2 + $0xb68] sm:$0xff] %v6801_v6  ;;  %7569 = vst [vmem:[#allocation2 + $0xc78] sm:$0xff] %v7057_v7 }
 0x596   : > { %v5399_v12 = vpop.f32.mrf.mxu0  ;;  %v6423_v13 = vpop.f32.mrf.mxu1 }
 0x597   : > { %v6802_v14 = vadd.f32 %v5399_v12, %v1009_v10  ;;  %v7058_v15 = vadd.f32 %v6423_v13, %v1265_v11  ;;  %v1017_v10 = vld [vmem:[#allocation2 + $0x30] sm:$0xff] }
 0x598   : > { %v5401_v16 = vpop.f32.mrf.mxu0  ;;  %v6425_v17 = vpop.f32.mrf.mxu1  ;;  %v1273_v11 = vld [vmem:[#allocation2 + $0x7b0] sm:$0xff] }
 0x599   : > { %7314 = vst [vmem:[#allocation2 + $0x6a8] sm:$0xff] %v6802_v14  ;;  %7570 = vst [vmem:[#allocation2 + $0x2d8] sm:$0xff] %v7058_v15 }
 0x59a   : > { %v5404_v20 = vpop.f32.mrf.mxu0  ;;  %v6428_v21 = vpop.f32.mrf.mxu1 }
 0x59b   : > { %v6803_v22 = vadd.f32 %v5404_v20, %v1010_v18  ;;  %v7059_v23 = vadd.f32 %v6428_v21, %v1266_v19  ;;  %v1018_v18 = vld [vmem:[#allocation2 + $0xc8] sm:$0xff]  ;;  %v1274_v19 = vld [vmem:[#allocation2 + $0xdf8] sm:$0xff] }
 0x59c   : > { %v5406_v24 = vpop.f32.mrf.mxu0  ;;  %v6430_v25 = vpop.f32.mrf.mxu1 }
 0x59d   : > { %7315 = vst [vmem:[#allocation2 + $0xe50] sm:$0xff] %v6803_v22  ;;  %7571 = vst [vmem:[#allocation2 + $0xc30] sm:$0xff] %v7059_v23 }
 0x59e   : > { %v5407_v28 = vpop.f32.mrf.mxu0  ;;  %v6431_v29 = vpop.f32.mrf.mxu1 }
 0x59f   : > { %v6804_v30 = vadd.f32 %v5407_v28, %v1011_v26  ;;  %v7060_v31 = vadd.f32 %v6431_v29, %v1267_v27  ;;  %v1019_v26 = vld [vmem:[#allocation2 + $0x2b8] sm:$0xff]  ;;  %v1275_v27 = vld [vmem:[#allocation2 + $0x9a0] sm:$0xff] }
 0x5a0   : > { %v5409_v32 = vpop.f32.mrf.mxu0  ;;  %v6433_v33 = vpop.f32.mrf.mxu1 }
 0x5a1   : > { %7316 = vst [vmem:[#allocation2 + $0x7c0] sm:$0xff] %v6804_v30  ;;  %7572 = vst [vmem:[#allocation2 + $0xf10] sm:$0xff] %v7060_v31 }
 0x5a2   : > { %v5412_v36 = vpop.f32.mrf.mxu0  ;;  %v6436_v37 = vpop.f32.mrf.mxu1 }
 0x5a3   : > { %v6805_v38 = vadd.f32 %v5412_v36, %v1012_v34  ;;  %v7061_v39 = vadd.f32 %v6436_v37, %v1268_v35  ;;  %v1020_v34 = vld [vmem:[#allocation2 + $0x2a8] sm:$0xff]  ;;  %v1276_v35 = vld [vmem:[#allocation2 + $0xe38] sm:$0xff] }
 0x5a4   : > { %v5414_v40 = vpop.f32.mrf.mxu0  ;;  %v6438_v41 = vpop.f32.mrf.mxu1 }
 0x5a5   : > { %7317 = vst [vmem:[#allocation2 + $0xe90] sm:$0xff] %v6805_v38  ;;  %7573 = vst [vmem:[#allocation2 + $0x460] sm:$0xff] %v7061_v39 }
 0x5a6   : > { %v5415_v44 = vpop.f32.mrf.mxu0  ;;  %v6439_v45 = vpop.f32.mrf.mxu1 }
 0x5a7   : > { %v6806_v46 = vadd.f32 %v5415_v44, %v1013_v42  ;;  %v7062_v47 = vadd.f32 %v6439_v45, %v1269_v43  ;;  %v1021_v42 = vld [vmem:[#allocation2 + $0xf78] sm:$0xff]  ;;  %v1277_v43 = vld [vmem:[#allocation2 + $0x390] sm:$0xff] }
 0x5a8   : > { %v5417_v48 = vpop.f32.mrf.mxu0  ;;  %v6441_v49 = vpop.f32.mrf.mxu1 }
 0x5a9   : > { %7318 = vst [vmem:[#allocation2 + $0xc38] sm:$0xff] %v6806_v46  ;;  %7574 = vst [vmem:[#allocation2 + $0x898] sm:$0xff] %v7062_v47 }
 0x5aa   : > { %v5420_v52 = vpop.f32.mrf.mxu0  ;;  %v6444_v53 = vpop.f32.mrf.mxu1 }
 0x5ab   : > { %v6807_v54 = vadd.f32 %v5420_v52, %v1014_v50  ;;  %v7063_v55 = vadd.f32 %v6444_v53, %v1270_v51  ;;  %v1022_v50 = vld [vmem:[#allocation2 + $0x210] sm:$0xff]  ;;  %v1278_v51 = vld [vmem:[#allocation2 + $0x7e0] sm:$0xff] }
 0x5ac   : > { %v5422_v56 = vpop.f32.mrf.mxu0  ;;  %v6446_v57 = vpop.f32.mrf.mxu1 }
 0x5ad   : > { %7319 = vst [vmem:[#allocation2 + $0xb8] sm:$0xff] %v6807_v54  ;;  %7575 = vst [vmem:[#allocation2 + $0x538] sm:$0xff] %v7063_v55 }
 0x5ae   : > { %v5423_v60 = vpop.f32.mrf.mxu0  ;;  %v6447_v61 = vpop.f32.mrf.mxu1 }
 0x5af   : > { %v6808_v62 = vadd.f32 %v5423_v60, %v1015_v58  ;;  %v7064_v63 = vadd.f32 %v6447_v61, %v1271_v59  ;;  %v1023_v58 = vld [vmem:[#allocation2 + $0x998] sm:$0xff]  ;;  %v1279_v59 = vld [vmem:[#allocation2 + $0x900] sm:$0xff] }
 0x5b0   : > { %v5425_v0 = vpop.f32.mrf.mxu0  ;;  %v6449_v1 = vpop.f32.mrf.mxu1 }
 0x5b1   : > { %7320 = vst [vmem:[#allocation2 + $0xc48] sm:$0xff] %v6808_v62  ;;  %7576 = vst [vmem:[#allocation2 + $0x328] sm:$0xff] %v7064_v63 }
 0x5b2   : > { %v5428_v4 = vpop.f32.mrf.mxu0  ;;  %v6452_v5 = vpop.f32.mrf.mxu1 }
 0x5b3   : > { %v6809_v6 = vadd.f32 %v5428_v4, %v1016_v2  ;;  %v7065_v7 = vadd.f32 %v6452_v5, %v1272_v3  ;;  %v1024_v2 = vld [vmem:[#allocation2 + $0xc88] sm:$0xff]  ;;  %v1280_v3 = vld [vmem:[#allocation2 + $0x4c0] sm:$0xff] }
 0x5b4   : > { %v5430_v8 = vpop.f32.mrf.mxu0  ;;  %v6454_v9 = vpop.f32.mrf.mxu1 }
 0x5b5   : > { %7321 = vst [vmem:[#allocation2 + $0xb20] sm:$0xff] %v6809_v6  ;;  %7577 = vst [vmem:[#allocation2 + $0xa50] sm:$0xff] %v7065_v7 }
 0x5b6   : > { %v5431_v12 = vpop.f32.mrf.mxu0  ;;  %v6455_v13 = vpop.f32.mrf.mxu1 }
 0x5b7   : > { %v6810_v14 = vadd.f32 %v5431_v12, %v1017_v10  ;;  %v7066_v15 = vadd.f32 %v6455_v13, %v1273_v11  ;;  %v1025_v10 = vld [vmem:[#allocation2 + $0xab8] sm:$0xff]  ;;  %v1281_v11 = vld [vmem:[#allocation2 + $0x710] sm:$0xff] }
 0x5b8   : > { %v5433_v16 = vpop.f32.mrf.mxu0  ;;  %v6457_v17 = vpop.f32.mrf.mxu1 }
 0x5b9   : > { %7322 = vst [vmem:[#allocation2 + $0x30] sm:$0xff] %v6810_v14  ;;  %7578 = vst [vmem:[#allocation2 + $0x7b0] sm:$0xff] %v7066_v15 }
 0x5ba   : > { %v5436_v20 = vpop.f32.mrf.mxu0  ;;  %v6460_v21 = vpop.f32.mrf.mxu1 }
 0x5bb   : > { %v6811_v22 = vadd.f32 %v5436_v20, %v1018_v18  ;;  %v7067_v23 = vadd.f32 %v6460_v21, %v1274_v19  ;;  %v1026_v18 = vld [vmem:[#allocation2 + $0x5a8] sm:$0xff] }
 0x5bc   : > { %v5438_v24 = vpop.f32.mrf.mxu0  ;;  %v6462_v25 = vpop.f32.mrf.mxu1  ;;  %v1282_v19 = vld [vmem:[#allocation2 + $0x508] sm:$0xff] }
 0x5bd   : > { %7323 = vst [vmem:[#allocation2 + $0xc8] sm:$0xff] %v6811_v22  ;;  %7579 = vst [vmem:[#allocation2 + $0xdf8] sm:$0xff] %v7067_v23 }
 0x5be   : > { %v5439_v28 = vpop.f32.mrf.mxu0  ;;  %v6463_v29 = vpop.f32.mrf.mxu1 }
 0x5bf   : > { %v6812_v30 = vadd.f32 %v5439_v28, %v1019_v26  ;;  %v7068_v31 = vadd.f32 %v6463_v29, %v1275_v27  ;;  %v1027_v26 = vld [vmem:[#allocation2 + $0x668] sm:$0xff] }
 0x5c0   : > { %v5441_v32 = vpop.f32.mrf.mxu0  ;;  %v6465_v33 = vpop.f32.mrf.mxu1  ;;  %v1283_v27 = vld [vmem:[#allocation2 + $0x9e8] sm:$0xff] }
 0x5c1   : > { %7324 = vst [vmem:[#allocation2 + $0x2b8] sm:$0xff] %v6812_v30  ;;  %7580 = vst [vmem:[#allocation2 + $0x9a0] sm:$0xff] %v7068_v31 }
 0x5c2   : > { %v5444_v36 = vpop.f32.mrf.mxu0  ;;  %v6468_v37 = vpop.f32.mrf.mxu1 }
 0x5c3   : > { %v6813_v38 = vadd.f32 %v5444_v36, %v1020_v34  ;;  %v7069_v39 = vadd.f32 %v6468_v37, %v1276_v35  ;;  %v1028_v34 = vld [vmem:[#allocation2 + $0xb18] sm:$0xff] }
 0x5c4   : > { %v5446_v40 = vpop.f32.mrf.mxu0  ;;  %v6470_v41 = vpop.f32.mrf.mxu1  ;;  %v1284_v35 = vld [vmem:[#allocation2 + $0x938] sm:$0xff] }
 0x5c5   : > { %7325 = vst [vmem:[#allocation2 + $0x2a8] sm:$0xff] %v6813_v38  ;;  %7581 = vst [vmem:[#allocation2 + $0xe38] sm:$0xff] %v7069_v39 }
 0x5c6   : > { %v5447_v44 = vpop.f32.mrf.mxu0  ;;  %v6471_v45 = vpop.f32.mrf.mxu1 }
 0x5c7   : > { %v6814_v46 = vadd.f32 %v5447_v44, %v1021_v42  ;;  %v7070_v47 = vadd.f32 %v6471_v45, %v1277_v43  ;;  %v1029_v42 = vld [vmem:[#allocation2 + $0x468] sm:$0xff]  ;;  %v1285_v43 = vld [vmem:[#allocation2 + $0x558] sm:$0xff] }
 0x5c8   : > { %v5449_v48 = vpop.f32.mrf.mxu0  ;;  %v6473_v49 = vpop.f32.mrf.mxu1 }
 0x5c9   : > { %7326 = vst [vmem:[#allocation2 + $0xf78] sm:$0xff] %v6814_v46  ;;  %7582 = vst [vmem:[#allocation2 + $0x390] sm:$0xff] %v7070_v47 }
 0x5ca   : > { %v5452_v52 = vpop.f32.mrf.mxu0  ;;  %v6476_v53 = vpop.f32.mrf.mxu1 }
 0x5cb   : > { %v6815_v54 = vadd.f32 %v5452_v52, %v1022_v50  ;;  %v7071_v55 = vadd.f32 %v6476_v53, %v1278_v51  ;;  %v1030_v50 = vld [vmem:[#allocation2 + $0x578] sm:$0xff]  ;;  %v1286_v51 = vld [vmem:[#allocation2 + $0xac0] sm:$0xff] }
 0x5cc   : > { %v5454_v56 = vpop.f32.mrf.mxu0  ;;  %v6478_v57 = vpop.f32.mrf.mxu1 }
 0x5cd   : > { %7327 = vst [vmem:[#allocation2 + $0x210] sm:$0xff] %v6815_v54  ;;  %7583 = vst [vmem:[#allocation2 + $0x7e0] sm:$0xff] %v7071_v55 }
 0x5ce   : > { %v5455_v60 = vpop.f32.mrf.mxu0  ;;  %v6479_v61 = vpop.f32.mrf.mxu1 }
 0x5cf   : > { %v6816_v62 = vadd.f32 %v5455_v60, %v1023_v58  ;;  %v7072_v63 = vadd.f32 %v6479_v61, %v1279_v59  ;;  %v1031_v58 = vld [vmem:[#allocation2 + $0x600] sm:$0xff]  ;;  %v1287_v59 = vld [vmem:[#allocation2 + $0x930] sm:$0xff] }
 0x5d0   : > { %v5457_v0 = vpop.f32.mrf.mxu0  ;;  %v6481_v1 = vpop.f32.mrf.mxu1 }
 0x5d1   : > { %7328 = vst [vmem:[#allocation2 + $0x998] sm:$0xff] %v6816_v62  ;;  %7584 = vst [vmem:[#allocation2 + $0x900] sm:$0xff] %v7072_v63 }
 0x5d2   : > { %v5460_v4 = vpop.f32.mrf.mxu0  ;;  %v6484_v5 = vpop.f32.mrf.mxu1 }
 0x5d3   : > { %v6817_v6 = vadd.f32 %v5460_v4, %v1024_v2  ;;  %v7073_v7 = vadd.f32 %v6484_v5, %v1280_v3  ;;  %v1032_v2 = vld [vmem:[#allocation2 + $0x570] sm:$0xff]  ;;  %v1288_v3 = vld [vmem:[#allocation2 + $0x988] sm:$0xff] }
 0x5d4   : > { %v5462_v8 = vpop.f32.mrf.mxu0  ;;  %v6486_v9 = vpop.f32.mrf.mxu1 }
 0x5d5   : > { %7329 = vst [vmem:[#allocation2 + $0xc88] sm:$0xff] %v6817_v6  ;;  %7585 = vst [vmem:[#allocation2 + $0x4c0] sm:$0xff] %v7073_v7 }
 0x5d6   : > { %v5463_v12 = vpop.f32.mrf.mxu0  ;;  %v6487_v13 = vpop.f32.mrf.mxu1 }
 0x5d7   : > { %v6818_v14 = vadd.f32 %v5463_v12, %v1025_v10  ;;  %v7074_v15 = vadd.f32 %v6487_v13, %v1281_v11  ;;  %v1033_v10 = vld [vmem:[#allocation2 + $0xb40] sm:$0xff]  ;;  %v1289_v11 = vld [vmem:[#allocation2 + $0x348] sm:$0xff] }
 0x5d8   : > { %v5465_v16 = vpop.f32.mrf.mxu0  ;;  %v6489_v17 = vpop.f32.mrf.mxu1 }
 0x5d9   : > { %7330 = vst [vmem:[#allocation2 + $0xab8] sm:$0xff] %v6818_v14  ;;  %7586 = vst [vmem:[#allocation2 + $0x710] sm:$0xff] %v7074_v15 }
 0x5da   : > { %v5468_v20 = vpop.f32.mrf.mxu0  ;;  %v6492_v21 = vpop.f32.mrf.mxu1 }
 0x5db   : > { %v6819_v22 = vadd.f32 %v5468_v20, %v1026_v18  ;;  %v7075_v23 = vadd.f32 %v6492_v21, %v1282_v19  ;;  %v1034_v18 = vld [vmem:[#allocation2 + $0x170] sm:$0xff] }
 0x5dc   : > { %v5470_v24 = vpop.f32.mrf.mxu0  ;;  %v6494_v25 = vpop.f32.mrf.mxu1  ;;  %v1290_v19 = vld [vmem:[#allocation2 + $0xc90] sm:$0xff] }
 0x5dd   : > { %7331 = vst [vmem:[#allocation2 + $0x5a8] sm:$0xff] %v6819_v22  ;;  %7587 = vst [vmem:[#allocation2 + $0x508] sm:$0xff] %v7075_v23 }
 0x5de   : > { %v5471_v28 = vpop.f32.mrf.mxu0  ;;  %v6495_v29 = vpop.f32.mrf.mxu1 }
 0x5df   : > { %v6820_v30 = vadd.f32 %v5471_v28, %v1027_v26  ;;  %v7076_v31 = vadd.f32 %v6495_v29, %v1283_v27  ;;  %v1035_v26 = vld [vmem:[#allocation2 + $0x838] sm:$0xff]  ;;  %v1291_v27 = vld [vmem:[#allocation2 + $0xce8] sm:$0xff] }
 0x5e0   : > { %v5473_v32 = vpop.f32.mrf.mxu0  ;;  %v6497_v33 = vpop.f32.mrf.mxu1 }
 0x5e1   : > { %7332 = vst [vmem:[#allocation2 + $0x668] sm:$0xff] %v6820_v30  ;;  %7588 = vst [vmem:[#allocation2 + $0x9e8] sm:$0xff] %v7076_v31 }
 0x5e2   : > { %v5476_v36 = vpop.f32.mrf.mxu0  ;;  %v6500_v37 = vpop.f32.mrf.mxu1 }
 0x5e3   : > { %v6821_v38 = vadd.f32 %v5476_v36, %v1028_v34  ;;  %v7077_v39 = vadd.f32 %v6500_v37, %v1284_v35  ;;  %v1036_v34 = vld [vmem:[#allocation2 + $0xcb8] sm:$0xff] }
 0x5e4   : > { %v5478_v40 = vpop.f32.mrf.mxu0  ;;  %v6502_v41 = vpop.f32.mrf.mxu1  ;;  %v1292_v35 = vld [vmem:[#allocation2 + $0xcf8] sm:$0xff] }
 0x5e5   : > { %7333 = vst [vmem:[#allocation2 + $0xb18] sm:$0xff] %v6821_v38  ;;  %7589 = vst [vmem:[#allocation2 + $0x938] sm:$0xff] %v7077_v39 }
 0x5e6   : > { %v5479_v44 = vpop.f32.mrf.mxu0  ;;  %v6503_v45 = vpop.f32.mrf.mxu1 }
 0x5e7   : > { %v6822_v46 = vadd.f32 %v5479_v44, %v1029_v42  ;;  %v7078_v47 = vadd.f32 %v6503_v45, %v1285_v43  ;;  %v1037_v42 = vld [vmem:[#allocation2 + $0xe28] sm:$0xff] }
 0x5e8   : > { %v5481_v48 = vpop.f32.mrf.mxu0  ;;  %v6505_v49 = vpop.f32.mrf.mxu1  ;;  %v1293_v43 = vld [vmem:[#allocation2 + $0x1a8] sm:$0xff] }
 0x5e9   : > { %7334 = vst [vmem:[#allocation2 + $0x468] sm:$0xff] %v6822_v46  ;;  %7590 = vst [vmem:[#allocation2 + $0x558] sm:$0xff] %v7078_v47 }
 0x5ea   : > { %v5484_v52 = vpop.f32.mrf.mxu0  ;;  %v6508_v53 = vpop.f32.mrf.mxu1 }
 0x5eb   : > { %v6823_v54 = vadd.f32 %v5484_v52, %v1030_v50  ;;  %v7079_v55 = vadd.f32 %v6508_v53, %v1286_v51  ;;  %v1038_v50 = vld [vmem:[#allocation2 + $0x500] sm:$0xff]  ;;  %v1294_v51 = vld [vmem:[#allocation2 + $0x4a8] sm:$0xff] }
 0x5ec   : > { %v5486_v56 = vpop.f32.mrf.mxu0  ;;  %v6510_v57 = vpop.f32.mrf.mxu1 }
 0x5ed   : > { %7335 = vst [vmem:[#allocation2 + $0x578] sm:$0xff] %v6823_v54  ;;  %7591 = vst [vmem:[#allocation2 + $0xac0] sm:$0xff] %v7079_v55 }
 0x5ee   : > { %v5487_v60 = vpop.f32.mrf.mxu0  ;;  %v6511_v61 = vpop.f32.mrf.mxu1 }
 0x5ef   : > { %v6824_v62 = vadd.f32 %v5487_v60, %v1031_v58  ;;  %v7080_v63 = vadd.f32 %v6511_v61, %v1287_v59  ;;  %v1039_v58 = vld [vmem:[#allocation2 + $0xe60] sm:$0xff] }
 0x5f0   : > { %v5489_v0 = vpop.f32.mrf.mxu0  ;;  %v6513_v1 = vpop.f32.mrf.mxu1  ;;  %v1295_v59 = vld [vmem:[#allocation2 + $0x40] sm:$0xff] }
 0x5f1   : > { %7336 = vst [vmem:[#allocation2 + $0x600] sm:$0xff] %v6824_v62  ;;  %7592 = vst [vmem:[#allocation2 + $0x930] sm:$0xff] %v7080_v63 }
 0x5f2   : > { %v5492_v4 = vpop.f32.mrf.mxu0  ;;  %v6516_v5 = vpop.f32.mrf.mxu1 }
 0x5f3   : > { %v6825_v6 = vadd.f32 %v5492_v4, %v1032_v2  ;;  %v7081_v7 = vadd.f32 %v6516_v5, %v1288_v3  ;;  %v1040_v2 = vld [vmem:[#allocation2 + $0x8c0] sm:$0xff]  ;;  %v1296_v3 = vld [vmem:[#allocation2 + $0x1c8] sm:$0xff] }
 0x5f4   : > { %v5494_v8 = vpop.f32.mrf.mxu0  ;;  %v6518_v9 = vpop.f32.mrf.mxu1 }
 0x5f5   : > { %7337 = vst [vmem:[#allocation2 + $0x570] sm:$0xff] %v6825_v6  ;;  %7593 = vst [vmem:[#allocation2 + $0x988] sm:$0xff] %v7081_v7 }
 0x5f6   : > { %v5495_v12 = vpop.f32.mrf.mxu0  ;;  %v6519_v13 = vpop.f32.mrf.mxu1 }
 0x5f7   : > { %v6826_v14 = vadd.f32 %v5495_v12, %v1033_v10  ;;  %v7082_v15 = vadd.f32 %v6519_v13, %v1289_v11  ;;  %v1041_v10 = vld [vmem:[#allocation2 + $0xe08] sm:$0xff] }
 0x5f8   : > { %v5497_v16 = vpop.f32.mrf.mxu0  ;;  %v6521_v17 = vpop.f32.mrf.mxu1  ;;  %v1297_v11 = vld [vmem:[#allocation2 + $0xfe8] sm:$0xff] }
 0x5f9   : > { %7338 = vst [vmem:[#allocation2 + $0xb40] sm:$0xff] %v6826_v14  ;;  %7594 = vst [vmem:[#allocation2 + $0x348] sm:$0xff] %v7082_v15 }
 0x5fa   : > { %v5500_v20 = vpop.f32.mrf.mxu0  ;;  %v6524_v21 = vpop.f32.mrf.mxu1 }
 0x5fb   : > { %v6827_v22 = vadd.f32 %v5500_v20, %v1034_v18  ;;  %v7083_v23 = vadd.f32 %v6524_v21, %v1290_v19  ;;  %v1042_v18 = vld [vmem:[#allocation2 + $0xb58] sm:$0xff] }
 0x5fc   : > { %v5502_v24 = vpop.f32.mrf.mxu0  ;;  %v6526_v25 = vpop.f32.mrf.mxu1  ;;  %v1298_v19 = vld [vmem:[#allocation2 + $0xd98] sm:$0xff] }
 0x5fd   : > { %7339 = vst [vmem:[#allocation2 + $0x170] sm:$0xff] %v6827_v22  ;;  %7595 = vst [vmem:[#allocation2 + $0xc90] sm:$0xff] %v7083_v23 }
 0x5fe   : > { %v5503_v28 = vpop.f32.mrf.mxu0  ;;  %v6527_v29 = vpop.f32.mrf.mxu1 }
 0x5ff   : > { %v6828_v30 = vadd.f32 %v5503_v28, %v1035_v26  ;;  %v7084_v31 = vadd.f32 %v6527_v29, %v1291_v27  ;;  %v1043_v26 = vld [vmem:[#allocation2 + $0x618] sm:$0xff]  ;;  %v1299_v27 = vld [vmem:[#allocation2 + $0x150] sm:$0xff] }
 0x600   : > { %v5505_v32 = vpop.f32.mrf.mxu0  ;;  %v6529_v33 = vpop.f32.mrf.mxu1 }
 0x601   : > { %7340 = vst [vmem:[#allocation2 + $0x838] sm:$0xff] %v6828_v30  ;;  %7596 = vst [vmem:[#allocation2 + $0xce8] sm:$0xff] %v7084_v31 }
 0x602   : > { %v5508_v36 = vpop.f32.mrf.mxu0  ;;  %v6532_v37 = vpop.f32.mrf.mxu1 }
 0x603   : > { %v6829_v38 = vadd.f32 %v5508_v36, %v1036_v34  ;;  %v7085_v39 = vadd.f32 %v6532_v37, %v1292_v35  ;;  %v1044_v34 = vld [vmem:[#allocation2 + $0x200] sm:$0xff] }
 0x604   : > { %v5510_v40 = vpop.f32.mrf.mxu0  ;;  %v6534_v41 = vpop.f32.mrf.mxu1  ;;  %v1300_v35 = vld [vmem:[#allocation2 + $0x400] sm:$0xff] }
 0x605   : > { %7341 = vst [vmem:[#allocation2 + $0xcb8] sm:$0xff] %v6829_v38  ;;  %7597 = vst [vmem:[#allocation2 + $0xcf8] sm:$0xff] %v7085_v39 }
 0x606   : > { %v5511_v44 = vpop.f32.mrf.mxu0  ;;  %v6535_v45 = vpop.f32.mrf.mxu1 }
 0x607   : > { %v6830_v46 = vadd.f32 %v5511_v44, %v1037_v42  ;;  %v7086_v47 = vadd.f32 %v6535_v45, %v1293_v43  ;;  %v1045_v42 = vld [vmem:[#allocation2 + $0x5b0] sm:$0xff]  ;;  %v1301_v43 = vld [vmem:[#allocation2 + $0x298] sm:$0xff] }
 0x608   : > { %v5513_v48 = vpop.f32.mrf.mxu0  ;;  %v6537_v49 = vpop.f32.mrf.mxu1 }
 0x609   : > { %7342 = vst [vmem:[#allocation2 + $0xe28] sm:$0xff] %v6830_v46  ;;  %7598 = vst [vmem:[#allocation2 + $0x1a8] sm:$0xff] %v7086_v47 }
 0x60a   : > { %v5516_v52 = vpop.f32.mrf.mxu0  ;;  %v6540_v53 = vpop.f32.mrf.mxu1 }
 0x60b   : > { %v6831_v54 = vadd.f32 %v5516_v52, %v1038_v50  ;;  %v7087_v55 = vadd.f32 %v6540_v53, %v1294_v51  ;;  %v1046_v50 = vld [vmem:[#allocation2 + $0x140] sm:$0xff]  ;;  %v1302_v51 = vld [vmem:[#allocation2 + $0x730] sm:$0xff] }
 0x60c   : > { %v5518_v56 = vpop.f32.mrf.mxu0  ;;  %v6542_v57 = vpop.f32.mrf.mxu1 }
 0x60d   : > { %7343 = vst [vmem:[#allocation2 + $0x500] sm:$0xff] %v6831_v54  ;;  %7599 = vst [vmem:[#allocation2 + $0x4a8] sm:$0xff] %v7087_v55 }
 0x60e   : > { %v5519_v60 = vpop.f32.mrf.mxu0  ;;  %v6543_v61 = vpop.f32.mrf.mxu1 }
 0x60f   : > { %v6832_v62 = vadd.f32 %v5519_v60, %v1039_v58  ;;  %v7088_v63 = vadd.f32 %v6543_v61, %v1295_v59  ;;  %v1047_v58 = vld [vmem:[#allocation2 + $0xc0] sm:$0xff] }
 0x610   : > { %v5521_v0 = vpop.f32.mrf.mxu0  ;;  %v6545_v1 = vpop.f32.mrf.mxu1  ;;  %v1303_v59 = vld [vmem:[#allocation2 + $0x3c0] sm:$0xff] }
 0x611   : > { %7344 = vst [vmem:[#allocation2 + $0xe60] sm:$0xff] %v6832_v62  ;;  %7600 = vst [vmem:[#allocation2 + $0x40] sm:$0xff] %v7088_v63 }
 0x612   : > { %v5524_v4 = vpop.f32.mrf.mxu0  ;;  %v6548_v5 = vpop.f32.mrf.mxu1 }
 0x613   : > { %v6833_v6 = vadd.f32 %v5524_v4, %v1040_v2  ;;  %v7089_v7 = vadd.f32 %v6548_v5, %v1296_v3  ;;  %v1048_v2 = vld [vmem:[#allocation2 + $0xba0] sm:$0xff] }
 0x614   : > { %v5526_v8 = vpop.f32.mrf.mxu0  ;;  %v6550_v9 = vpop.f32.mrf.mxu1  ;;  %v1304_v3 = vld [vmem:[#allocation2 + $0x2c0] sm:$0xff] }
 0x615   : > { %7345 = vst [vmem:[#allocation2 + $0x8c0] sm:$0xff] %v6833_v6  ;;  %7601 = vst [vmem:[#allocation2 + $0x1c8] sm:$0xff] %v7089_v7 }
 0x616   : > { %v5527_v12 = vpop.f32.mrf.mxu0  ;;  %v6551_v13 = vpop.f32.mrf.mxu1 }
 0x617   : > { %v6834_v14 = vadd.f32 %v5527_v12, %v1041_v10  ;;  %v7090_v15 = vadd.f32 %v6551_v13, %v1297_v11  ;;  %v1049_v10 = vld [vmem:[#allocation2 + $0xd0] sm:$0xff]  ;;  %v1305_v11 = vld [vmem:[#allocation2 + $0x4a0] sm:$0xff] }
 0x618   : > { %v5529_v16 = vpop.f32.mrf.mxu0  ;;  %v6553_v17 = vpop.f32.mrf.mxu1 }
 0x619   : > { %7346 = vst [vmem:[#allocation2 + $0xe08] sm:$0xff] %v6834_v14  ;;  %7602 = vst [vmem:[#allocation2 + $0xfe8] sm:$0xff] %v7090_v15 }
 0x61a   : > { %v5532_v20 = vpop.f32.mrf.mxu0  ;;  %v6556_v21 = vpop.f32.mrf.mxu1 }
 0x61b   : > { %v6835_v22 = vadd.f32 %v5532_v20, %v1042_v18  ;;  %v7091_v23 = vadd.f32 %v6556_v21, %v1298_v19 }
 0x61c   : > { %v5534_v24 = vpop.f32.mrf.mxu0  ;;  %v6558_v25 = vpop.f32.mrf.mxu1 }
 0x61d   : > { %7347 = vst [vmem:[#allocation2 + $0xb58] sm:$0xff] %v6835_v22  ;;  %7603 = vst [vmem:[#allocation2 + $0xd98] sm:$0xff] %v7091_v23 }
 0x61e   : > { %v5535_v28 = vpop.f32.mrf.mxu0  ;;  %v6559_v29 = vpop.f32.mrf.mxu1 }
 0x61f   : > { %v6836_v30 = vadd.f32 %v5535_v28, %v1043_v26  ;;  %v7092_v31 = vadd.f32 %v6559_v29, %v1299_v27 }
 0x620   : > { %v5537_v32 = vpop.f32.mrf.mxu0  ;;  %v6561_v33 = vpop.f32.mrf.mxu1 }
 0x621   : > { %7348 = vst [vmem:[#allocation2 + $0x618] sm:$0xff] %v6836_v30  ;;  %7604 = vst [vmem:[#allocation2 + $0x150] sm:$0xff] %v7092_v31 }
 0x622   : > { %v5540_v36 = vpop.f32.mrf.mxu0  ;;  %v6564_v37 = vpop.f32.mrf.mxu1 }
 0x623   : > { %v6837_v38 = vadd.f32 %v5540_v36, %v1044_v34  ;;  %v7093_v39 = vadd.f32 %v6564_v37, %v1300_v35 }
 0x624   : > { %v5542_v40 = vpop.f32.mrf.mxu0  ;;  %v6566_v41 = vpop.f32.mrf.mxu1 }
 0x625   : > { %7349 = vst [vmem:[#allocation2 + $0x200] sm:$0xff] %v6837_v38  ;;  %7605 = vst [vmem:[#allocation2 + $0x400] sm:$0xff] %v7093_v39 }
 0x626   : > { %v5543_v44 = vpop.f32.mrf.mxu0  ;;  %v6567_v45 = vpop.f32.mrf.mxu1 }
 0x627   : > { %v6838_v46 = vadd.f32 %v5543_v44, %v1045_v42  ;;  %v7094_v47 = vadd.f32 %v6567_v45, %v1301_v43 }
 0x628   : > { %v5545_v48 = vpop.f32.mrf.mxu0  ;;  %v6569_v49 = vpop.f32.mrf.mxu1 }
 0x629   : > { %7350 = vst [vmem:[#allocation2 + $0x5b0] sm:$0xff] %v6838_v46  ;;  %7606 = vst [vmem:[#allocation2 + $0x298] sm:$0xff] %v7094_v47 }
 0x62a   : > { %v5548_v52 = vpop.f32.mrf.mxu0  ;;  %v6572_v53 = vpop.f32.mrf.mxu1 }
 0x62b   : > { %v6839_v54 = vadd.f32 %v5548_v52, %v1046_v50  ;;  %v7095_v55 = vadd.f32 %v6572_v53, %v1302_v51 }
 0x62c   : > { %v5550_v56 = vpop.f32.mrf.mxu0  ;;  %v6574_v57 = vpop.f32.mrf.mxu1 }
 0x62d   : > { %7351 = vst [vmem:[#allocation2 + $0x140] sm:$0xff] %v6839_v54  ;;  %7607 = vst [vmem:[#allocation2 + $0x730] sm:$0xff] %v7095_v55 }
 0x62e   : > { %v5551_v60 = vpop.f32.mrf.mxu0  ;;  %v6575_v61 = vpop.f32.mrf.mxu1 }
 0x62f   : > { %v6840_v62 = vadd.f32 %v5551_v60, %v1047_v58  ;;  %v7096_v63 = vadd.f32 %v6575_v61, %v1303_v59 }
 0x630   : > { %v5553_v0 = vpop.f32.mrf.mxu0  ;;  %v6577_v1 = vpop.f32.mrf.mxu1 }
 0x631   : > { %7352 = vst [vmem:[#allocation2 + $0xc0] sm:$0xff] %v6840_v62  ;;  %7608 = vst [vmem:[#allocation2 + $0x3c0] sm:$0xff] %v7096_v63 }
 0x632   : > { %v5556_v4 = vpop.f32.mrf.mxu0  ;;  %v6580_v5 = vpop.f32.mrf.mxu1 }
 0x633   : > { %v6841_v6 = vadd.f32 %v5556_v4, %v1048_v2  ;;  %v7097_v7 = vadd.f32 %v6580_v5, %v1304_v3 }
 0x634   : > { %v5558_v8 = vpop.f32.mrf.mxu0  ;;  %v6582_v9 = vpop.f32.mrf.mxu1 }
 0x635   : > { %7353 = vst [vmem:[#allocation2 + $0xba0] sm:$0xff] %v6841_v6  ;;  %7609 = vst [vmem:[#allocation2 + $0x2c0] sm:$0xff] %v7097_v7  ;;  %7614 = sbr.rel (%p13125_p6) target bundleno = 2335 (0x91f), region = 40 }
 0x636   : > { %v5559_v12 = vpop.f32.mrf.mxu0  ;;  %v6583_v13 = vpop.f32.mrf.mxu1 }
 0x637   : > { %v6842_v14 = vadd.f32 %v5559_v12, %v1049_v10  ;;  %v7098_v15 = vadd.f32 %v6583_v13, %v1305_v11 }
 0x638   : > { %v5561_v16 = vpop.f32.mrf.mxu0  ;;  %v6585_v17 = vpop.f32.mrf.mxu1 }
 0x639   : > { %7354 = vst [vmem:[#allocation2 + $0xd0] sm:$0xff] %v6842_v14  ;;  %7610 = vst [vmem:[#allocation2 + $0x4a0] sm:$0xff] %v7098_v15 }
 0x63a   : > { %v15509_v18 = vld [vmem:[%s18108_s4 + $0x238] sm:$0xff]   ;;  %v15511_v20 = vld [vmem:[%s18108_s4 + $0x230] sm:$0xff]   ;;  %v15513_v22 = vld [vmem:[%s18108_s4 + $0x228] sm:$0xff]  }
 0x63b   : > { %v15510_v19 = vld [vmem:[%s18108_s4 + $0x38] sm:$0xff]   ;;  %13881 = vmatprep.subr.bf16.mxu0 %v15509_v18  ;;  %v15512_v21 = vld [vmem:[%s18108_s4 + $0x30] sm:$0xff]   ;;  %v15514_v23 = vld [vmem:[%s18108_s4 + $0x28] sm:$0xff]  }
 0x63c   : > { %13929 = vmatprep.subr.bf16.mxu1 %v15510_v19  ;;  %13882 = vmatpush3.bf16.msra.mxu0 %v15509_v18  ;;  %v15515_v24 = vld [vmem:[%s18108_s4 + $0x220] sm:$0xff]   ;;  %v15517_v26 = vld [vmem:[%s18108_s4 + $0x218] sm:$0xff]   ;;  %v15519_v28 = vld [vmem:[%s18108_s4 + $0x210] sm:$0xff]  }
 0x63d   : > { %13930 = vmatpush3.bf16.msra.mxu1 %v15510_v19  ;;  %13883 = vmatprep.subr.bf16.mxu0 %v15511_v20  ;;  %v15516_v25 = vld [vmem:[%s18108_s4 + $0x20] sm:$0xff]   ;;  %v15518_v27 = vld [vmem:[%s18108_s4 + $0x18] sm:$0xff]   ;;  %v7663_v29 = vld [vmem:[#allocation2 + $0xd70] sm:$0xff] }
 0x63e   : > { %13931 = vmatprep.subr.bf16.mxu1 %v15512_v21  ;;  %v7664_v30 = vld [vmem:[#allocation2 + $0x448] sm:$0xff]  ;;  %v7615_v31 = vld [vmem:[#allocation2 + $0xab0] sm:$0xff]  ;;  %v15523_v38 = vld [vmem:[%s18108_s4 + $0x200] sm:$0xff]  }
 0x63f   : > { %v15520_v32 = vld [vmem:[%s18108_s4 + $0x10] sm:$0xff]   ;;  %v7695_v33 = vpack.c.bf16 %v7664_v30, %v7663_v29  ;;  %v15521_v36 = vld [vmem:[%s18108_s4 + $0x208] sm:$0xff]   ;;  %v15524_v39 = vld [vmem:[%s18108_s4] sm:$0xff]  }
 0x640   : > { %13884 = vmatpush3.bf16.msra.mxu0 %v15511_v20  ;;  %v7616_v34 = vld [vmem:[#allocation2 + $0xbb0] sm:$0xff]  ;;  %v15522_v37 = vld [vmem:[%s18108_s4 + $0x8] sm:$0xff]   ;;  %v7665_v40 = vld [vmem:[#allocation2 + $0x5a0] sm:$0xff] }
 0x641   : > { %13932 = vmatpush3.bf16.msra.mxu1 %v15512_v21  ;;  %13885 = vmatprep.subr.bf16.mxu0 %v15513_v22  ;;  %v7647_v35 = vpack.c.bf16 %v7616_v34, %v7615_v31  ;;  %v7666_v41 = vld [vmem:[#allocation2 + $0xc60] sm:$0xff]  ;;  %v7617_v42 = vld [vmem:[#allocation2 + $0x4d8] sm:$0xff]  ;;  %v7619_v49 = vld [vmem:[#allocation2 + $0xc50] sm:$0xff] }
 0x642   : > { %13933 = vmatprep.subr.bf16.mxu1 %v15514_v23  ;;  %13897 = vmatprep.mubr.bf16.mxu0 %v7695_v33  ;;  %v7618_v43 = vld [vmem:[#allocation2 + $0x818] sm:$0xff]  ;;  %v7667_v46 = vld [vmem:[#allocation2 + $0x360] sm:$0xff]  ;;  %v7696_v48 = vpack.c.bf16 %v7666_v41, %v7665_v40  ;;  %v7620_v50 = vld [vmem:[#allocation2 + $0x810] sm:$0xff] }
 0x643   : > { %13945 = vmatprep.mubr.bf16.mxu1 %v7647_v35  ;;  %v15525_v44 = vld [vmem:[%s18108_s4 + $0x78] sm:$0xff]   ;;  %v7668_v47 = vld [vmem:[#allocation2 + $0xde0] sm:$0xff]  ;;  %v7648_v51 = vpack.c.bf16 %v7618_v43, %v7617_v42  ;;  %v7649_v53 = vpack.c.bf16 %v7620_v50, %v7619_v49  ;;  %v7670_v55 = vld [vmem:[#allocation2 + $0x690] sm:$0xff] }
 0x644   : > { %13886 = vmatpush3.bf16.msra.mxu0 %v15513_v22  ;;  %v15526_v45 = vld [vmem:[%s18108_s4 + $0x278] sm:$0xff]   ;;  %v7697_v52 = vpack.c.bf16 %v7668_v47, %v7667_v46  ;;  %v15527_v56 = vld [vmem:[%s18108_s4 + $0x70] sm:$0xff]   ;;  %v7671_v60 = vld [vmem:[#allocation2 + $0xb48] sm:$0xff] }
 0x645   : > { %13934 = vmatpush3.bf16.msra.mxu1 %v15514_v23  ;;  %13887 = vmatprep.subr.bf16.mxu0 %v15515_v24  ;;  %v7669_v54 = vld [vmem:[#allocation2 + $0x118] sm:$0xff]  ;;  %v7621_v57 = vld [vmem:[#allocation2 + $0x770] sm:$0xff]  ;;  %v7624_v63 = vld [vmem:[#allocation2 + $0xb88] sm:$0xff] }
 0x646   : > { %13935 = vmatprep.subr.bf16.mxu1 %v15516_v25  ;;  %v15528_v58 = vld [vmem:[%s18108_s4 + $0x270] sm:$0xff]   ;;  %v7622_v59 = vld [vmem:[#allocation2 + $0x338] sm:$0xff]  ;;  %v15529_v0 = vld [vmem:[%s18108_s4 + $0x68] sm:$0xff]   ;;  %v7698_v2 = vpack.c.bf16 %v7670_v55, %v7669_v54 }
 0x647   : > { %v7672_v61 = vld [vmem:[#allocation2 + $0xeb0] sm:$0xff]  ;;  %v15530_v1 = vld [vmem:[%s18108_s4 + $0x268] sm:$0xff]   ;;  %v7650_v3 = vpack.c.bf16 %v7622_v59, %v7621_v57  ;;  %v7673_v6 = vld [vmem:[#allocation2 + $0x860] sm:$0xff] }
 0x648   : > { %13888 = vmatpush3.bf16.msra.mxu0 %v15515_v24  ;;  %v7623_v62 = vld [vmem:[#allocation2 + $0x450] sm:$0xff]  ;;  %v7699_v4 = vpack.c.bf16 %v7672_v61, %v7671_v60  ;;  %v7674_v7 = vld [vmem:[#allocation2 + $0xcc8] sm:$0xff]  ;;  %v15531_v8 = vld [vmem:[%s18108_s4 + $0x60] sm:$0xff]  }
 0x649   : > { %13936 = vmatpush3.bf16.msra.mxu1 %v15516_v25  ;;  %13889 = vmatprep.subr.bf16.mxu0 %v15517_v26  ;;  %v7651_v5 = vpack.c.bf16 %v7624_v63, %v7623_v62  ;;  %v15532_v9 = vld [vmem:[%s18108_s4 + $0x260] sm:$0xff]   ;;  %v7625_v10 = vld [vmem:[#allocation2 + $0x918] sm:$0xff]  ;;  %v7628_v15 = vld [vmem:[#allocation2 + $0xb28] sm:$0xff]  ;;  %v7700_v17 = vpack.c.bf16 %v7674_v7, %v7673_v6 }
 0x64a   : > { %13937 = vmatprep.subr.bf16.mxu1 %v15518_v27  ;;  %v7626_v11 = vld [vmem:[#allocation2 + $0xd20] sm:$0xff]  ;;  %v7675_v12 = vld [vmem:[#allocation2 + $0xff8] sm:$0xff]  ;;  %v7677_v22 = vld [vmem:[#allocation2 + $0x590] sm:$0xff] }
 0x64b   : > { %v7676_v13 = vld [vmem:[#allocation2 + $0x758] sm:$0xff]  ;;  %v7627_v14 = vld [vmem:[#allocation2 + $0xca0] sm:$0xff]  ;;  %v7652_v19 = vpack.c.bf16 %v7626_v11, %v7625_v10  ;;  %v15535_v24 = vld [vmem:[%s18108_s4 + $0x50] sm:$0xff]  }
 0x64c   : > { %13890 = vmatpush3.bf16.msra.mxu0 %v15517_v26  ;;  %v15533_v16 = vld [vmem:[%s18108_s4 + $0x58] sm:$0xff]   ;;  %v7701_v20 = vpack.c.bf16 %v7676_v13, %v7675_v12  ;;  %v7653_v21 = vpack.c.bf16 %v7628_v15, %v7627_v14  ;;  %v7678_v23 = vld [vmem:[#allocation2 + $0xb00] sm:$0xff]  ;;  %v7630_v26 = vld [vmem:[#allocation2 + $0x510] sm:$0xff] }
 0x64d   : > { %13938 = vmatpush3.bf16.msra.mxu1 %v15518_v27  ;;  %13891 = vmatprep.subr.bf16.mxu0 %v15519_v28  ;;  %v15534_v18 = vld [vmem:[%s18108_s4 + $0x258] sm:$0xff]   ;;  %v15536_v27 = vld [vmem:[%s18108_s4 + $0x250] sm:$0xff]   ;;  %v7680_v29 = vld [vmem:[#allocation2 + $0xee8] sm:$0xff]  ;;  %v7702_v33 = vpack.c.bf16 %v7678_v23, %v7677_v22 }
 0x64e   : > { %13939 = vmatprep.subr.bf16.mxu1 %v15520_v32  ;;  %v7629_v25 = vld [vmem:[#allocation2 + $0xd58] sm:$0xff]  ;;  %v7631_v30 = vld [vmem:[#allocation2 + $0x728] sm:$0xff]  ;;  %v7633_v41 = vld [vmem:[#allocation2 + $0x790] sm:$0xff] }
 0x64f   : > { %v7632_v31 = vld [vmem:[#allocation2 + $0x6e8] sm:$0xff]  ;;  %v7654_v35 = vpack.c.bf16 %v7630_v26, %v7629_v25  ;;  %v7682_v40 = vld [vmem:[#allocation2 + $0xe78] sm:$0xff]  ;;  %v15540_v42 = vld [vmem:[%s18108_s4 + $0x240] sm:$0xff]  }
 0x650   : > { %13892 = vmatpush3.bf16.msra.mxu0 %v15519_v28  ;;  %v7679_v28 = vld [vmem:[#allocation2 + $0x6c8] sm:$0xff]  ;;  %v7634_v43 = vld [vmem:[#allocation2 + $0x340] sm:$0xff]  ;;  %v7636_v47 = vld [vmem:[#allocation2 + $0x830] sm:$0xff] }
 0x651   : > { %13940 = vmatpush3.bf16.msra.mxu1 %v15520_v32  ;;  %13893 = vmatprep.subr.bf16.mxu0 %v15521_v36  ;;  %v15537_v32 = vld [vmem:[%s18108_s4 + $0x48] sm:$0xff]   ;;  %v16971_v50 = vld [vmem:[%s18108_s4 + $0x2b8] sm:$0xff]   ;;  %v7688_v59 = vld [vmem:[#allocation2 + $0x120] sm:$0xff] }
 0x652   : > { %13941 = vmatprep.subr.bf16.mxu1 %v15522_v37  ;;  %v15538_v34 = vld [vmem:[%s18108_s4 + $0x248] sm:$0xff]   ;;  %v7685_v54 = vld [vmem:[#allocation2 + $0x7f8] sm:$0xff]  ;;  %v7692_v7 = vld [vmem:[#allocation2 + $0x7f0] sm:$0xff] }
 0x653   : > { %v7635_v46 = vld [vmem:[#allocation2 + $0x748] sm:$0xff]  ;;  %v7686_v55 = vld [vmem:[#allocation2 + $0x278] sm:$0xff]  ;;  %v7694_v15 = vld [vmem:[#allocation2 + $0xc20] sm:$0xff] }
 0x654   : > { %13894 = vmatpush3.bf16.msra.mxu0 %v15521_v36  ;;  %v7703_v36 = vpack.c.bf16 %v7680_v29, %v7679_v28  ;;  %v7638_v57 = vld [vmem:[#allocation2 + $0x5b8] sm:$0xff]  ;;  %v7639_v60 = vld [vmem:[#allocation2 + $0x5c8] sm:$0xff]  ;;  %v7706_v62 = vpack.c.bf16 %v7686_v55, %v7685_v54  ;;  %v8164_v26 = vld [vmem:[#allocation2 + $0x910] sm:$0xff] }
 0x655   : > { %13942 = vmatpush3.bf16.msra.mxu1 %v15522_v37  ;;  %13895 = vmatprep.subr.bf16.mxu0 %v15523_v38  ;;  %v7655_v37 = vpack.c.bf16 %v7632_v31, %v7631_v30  ;;  %v7640_v61 = vld [vmem:[#allocation2 + $0xd78] sm:$0xff]  ;;  %v7691_v6 = vld [vmem:[#allocation2 + $0x968] sm:$0xff]  ;;  %v8212_v28 = vld [vmem:[#allocation2 + $0xfd0] sm:$0xff] }
 0x656   : > { %13943 = vmatprep.subr.bf16.mxu1 %v15524_v39  ;;  %v7709_v12 = vpack.c.bf16 %v7692_v7, %v7691_v6  ;;  %v7693_v14 = vld [vmem:[#allocation2 + $0x2f8] sm:$0xff]  ;;  %v8213_v29 = vld [vmem:[#allocation2 + $0x8a8] sm:$0xff]  ;;  %v8167_v31 = vld [vmem:[#allocation2 + $0xbf0] sm:$0xff] }
 0x657   : > { %v7710_v22 = vpack.c.bf16 %v7694_v15, %v7693_v14  ;;  %v8166_v30 = vld [vmem:[#allocation2 + $0xd68] sm:$0xff]  ;;  %v8173_v55 = vld [vmem:[#allocation2 + $0xfd8] sm:$0xff]  ;;  %v8176_v6 = vld [vmem:[#allocation2 + $0xed0] sm:$0xff] }
 0x658   : > { %13896 = vmatpush3.bf16.msra.mxu0 %v15523_v38  ;;  %v7681_v38 = vld [vmem:[#allocation2 + $0x848] sm:$0xff]  ;;  %v15551_v7 = vld [vmem:[%s18108_s4 + $0x90] sm:$0xff]   ;;  %v8226_v14 = vld [vmem:[#allocation2 + $0x520] sm:$0xff] }
 0x659   : > { %13944 = vmatpush3.bf16.msra.mxu1 %v15524_v39  ;;  %13977 = vmatprep.subr.bf16.mxu0 %v15525_v44  ;;  %v15539_v39 = vld [vmem:[%s18108_s4 + $0x40] sm:$0xff]   ;;  %v7704_v49 = vpack.c.bf16 %v7682_v40, %v7681_v38  ;;  %v8168_v38 = vld [vmem:[#allocation2 + $0x868] sm:$0xff]  ;;  %v15543_v40 = vld [vmem:[%s18108_s4 + $0xb0] sm:$0xff]  }
 0x65a   : > { %14025 = vmatprep.subr.bf16.mxu1 %v15526_v45  ;;  %v8172_v54 = vld [vmem:[#allocation2 + $0x528] sm:$0xff]  ;;  %v8227_v15 = vld [vmem:[#allocation2 + $0x430] sm:$0xff] }
 0x65b   : > { %13898 = vmatmul.mubr.bf16.vlgmr.msra.gmra.mxu0 %v7696_v48  ;;  %v16966_v48 = vld [vmem:[%s18108_s4 + $0xb8] sm:$0xff]  }
 0x65c   : > { %13946 = vmatmul.mubr.bf16.vlgmr.msra.gmra.mxu1 %v7648_v51  ;;  %13978 = vmatpush3.bf16.msra.mxu0 %v15525_v44  ;;  %v7683_v44 = vld [vmem:[#allocation2 + $0x640] sm:$0xff]  ;;  %v7656_v51 = vpack.c.bf16 %v7634_v43, %v7633_v41  ;;  %v8217_v43 = vld [vmem:[#allocation2 + $0xda8] sm:$0xff] }
 0x65d   : > { %14026 = vmatpush3.bf16.msra.mxu1 %v15526_v45  ;;  %13901 = vmatprep.mubr.bf16.mxu0 %v7697_v52  ;;  %v7684_v45 = vld [vmem:[#allocation2 + $0x258] sm:$0xff]  ;;  %v8216_v41 = vld [vmem:[#allocation2 + $0x80] sm:$0xff] }
 0x65e   : > { %13949 = vmatprep.mubr.bf16.mxu1 %v7649_v53  ;;  %13979 = vmatprep.subr.bf16.mxu0 %v15527_v56  ;;  %v7705_v52 = vpack.c.bf16 %v7684_v45, %v7683_v44  ;;  %v7657_v53 = vpack.c.bf16 %v7636_v47, %v7635_v46  ;;  %v8170_v44 = vld [vmem:[#allocation2 + $0xcd8] sm:$0xff]  ;;  %v15545_v46 = vld [vmem:[%s18108_s4 + $0xa8] sm:$0xff]   ;;  %v8218_v47 = vld [vmem:[#allocation2 + $0x670] sm:$0xff] }
 0x65f   : > { %14027 = vmatprep.subr.bf16.mxu1 %v15528_v58  ;;  %v8171_v45 = vld [vmem:[#allocation2 + $0x18] sm:$0xff] }
 0x660   : > { %13980 = vmatpush3.bf16.msra.mxu0 %v15527_v56  ;;  %v7637_v56 = vld [vmem:[#allocation2 + $0xaf0] sm:$0xff] }
 0x661   : > { %14028 = vmatpush3.bf16.msra.mxu1 %v15528_v58  ;;  %13981 = vmatprep.subr.bf16.mxu0 %v15529_v0  ;;  %v7687_v58 = vld [vmem:[#allocation2 + $0x648] sm:$0xff]  ;;  %v7658_v63 = vpack.c.bf16 %v7638_v57, %v7637_v56  ;;  %v15547_v56 = vld [vmem:[%s18108_s4 + $0xa0] sm:$0xff]   ;;  %v8220_v57 = vld [vmem:[#allocation2 + $0x530] sm:$0xff] }
 0x662   : > { %14029 = vmatprep.subr.bf16.mxu1 %v15530_v1 }
 0x663   : > { %13902 = vmatmul.mubr.bf16.gmra.mxu0 %v7698_v2  ;;  %v7689_v2 = vld [vmem:[#allocation2 + $0x330] sm:$0xff] }
 0x664   : > { %13950 = vmatmul.mubr.bf16.gmra.mxu1 %v7650_v3  ;;  %13905 = vmatprep.mubr.bf16.mxu0 %v7699_v4  ;;  %v7690_v3 = vld [vmem:[#allocation2 + $0x718] sm:$0xff] }
 0x665   : > { %13953 = vmatprep.mubr.bf16.mxu1 %v7651_v5  ;;  %13982 = vmatpush3.bf16.msra.mxu0 %v15529_v0  ;;  %v7707_v0 = vpack.c.bf16 %v7688_v59, %v7687_v58  ;;  %v7641_v4 = vld [vmem:[#allocation2 + $0x3f8] sm:$0xff]  ;;  %v7642_v5 = vld [vmem:[#allocation2 + $0xf08] sm:$0xff]  ;;  %v7708_v10 = vpack.c.bf16 %v7690_v3, %v7689_v2  ;;  %v8221_v58 = vld [vmem:[#allocation2 + $0x20] sm:$0xff] }
 0x666   : > { %14030 = vmatpush3.bf16.msra.mxu1 %v15530_v1  ;;  %13983 = vmatprep.subr.bf16.mxu0 %v15531_v8  ;;  %v7659_v1 = vpack.c.bf16 %v7640_v61, %v7639_v60  ;;  %v7660_v11 = vpack.c.bf16 %v7642_v5, %v7641_v4  ;;  %v15548_v59 = vld [vmem:[%s18108_s4 + $0x2a0] sm:$0xff]   ;;  %v15550_v2 = vld [vmem:[%s18108_s4 + $0x298] sm:$0xff]   ;;  %v8247_v3 = vpack.c.bf16 %v8221_v58, %v8220_v57  ;;  %v8239_v57 = vld [vmem:[#allocation2 + $0xf48] sm:$0xff] }
 0x667   : > { %14031 = vmatprep.subr.bf16.mxu1 %v15532_v9  ;;  %v8174_v60 = vld [vmem:[#allocation2 + $0x420] sm:$0xff] }
 0x668   : > { %v8175_v61 = vld [vmem:[#allocation2 + $0x940] sm:$0xff] }
 0x669   : > { %13984 = vmatpush3.bf16.msra.mxu0 %v15531_v8  ;;  %v7643_v8 = vld [vmem:[#allocation2 + $0xea0] sm:$0xff]  ;;  %v8200_v4 = vpack.c.bf16 %v8175_v61, %v8174_v60 }
 0x66a   : > { %14032 = vmatpush3.bf16.msra.mxu1 %v15532_v9  ;;  %13985 = vmatprep.subr.bf16.mxu0 %v15533_v16  ;;  %v7644_v9 = vld [vmem:[#allocation2 + $0xb78] sm:$0xff] }
 0x66b   : > { %13906 = vmatmul.mubr.bf16.gmra.mxu0 %v7700_v17  ;;  %14033 = vmatprep.subr.bf16.mxu1 %v15534_v18  ;;  %v7661_v13 = vpack.c.bf16 %v7644_v9, %v7643_v8  ;;  %v7646_v17 = vld [vmem:[#allocation2 + $0xbf8] sm:$0xff]  ;;  %v8177_v8 = vld [vmem:[#allocation2 + $0x160] sm:$0xff]  ;;  %v8224_v9 = vld [vmem:[#allocation2 + $0x88] sm:$0xff] }
 0x66c   : > { %13954 = vmatmul.mubr.bf16.gmra.mxu1 %v7652_v19  ;;  %13909 = vmatprep.mubr.bf16.mxu0 %v7701_v20  ;;  %v8163_v19 = vld [vmem:[#allocation2 + $0xa90] sm:$0xff]  ;;  %v8210_v20 = vld [vmem:[#allocation2] sm:$0xff] }
 0x66d   : > { %13957 = vmatprep.mubr.bf16.mxu1 %v7653_v21  ;;  %13986 = vmatpush3.bf16.msra.mxu0 %v15533_v16  ;;  %v7645_v16 = vld [vmem:[#allocation2 + $0x948] sm:$0xff] }
 0x66e   : > { %14034 = vmatpush3.bf16.msra.mxu1 %v15534_v18  ;;  %13987 = vmatprep.subr.bf16.mxu0 %v15535_v24  ;;  %v8162_v18 = vld [vmem:[#allocation2 + $0x9d0] sm:$0xff]  ;;  %v8211_v21 = vld [vmem:[#allocation2 + $0xe8] sm:$0xff]  ;;  %v7662_v23 = vpack.c.bf16 %v7646_v17, %v7645_v16  ;;  %v8201_v17 = vpack.c.bf16 %v8177_v8, %v8176_v6 }
 0x66f   : > { %14035 = vmatprep.subr.bf16.mxu1 %v15536_v27  ;;  %v8242_v25 = vpack.c.bf16 %v8211_v21, %v8210_v20  ;;  %v15553_v16 = vld [vmem:[%s18108_s4 + $0x88] sm:$0xff]   ;;  %v8250_v21 = vpack.c.bf16 %v8227_v15, %v8226_v14  ;;  %v8778_v14 = vld [vmem:[#allocation2 + $0x358] sm:$0xff]  ;;  %v8779_v15 = vld [vmem:[#allocation2 + $0x490] sm:$0xff] }
 0x671   : > { %13988 = vmatpush3.bf16.msra.mxu0 %v15535_v24  ;;  %v8194_v24 = vpack.c.bf16 %v8163_v19, %v8162_v18  ;;  %v15554_v18 = vld [vmem:[%s18108_s4 + $0x288] sm:$0xff]  }
 0x672   : > { %14036 = vmatpush3.bf16.msra.mxu1 %v15536_v27  ;;  %13989 = vmatprep.subr.bf16.mxu0 %v15537_v32  ;;  %v8165_v27 = vld [vmem:[#allocation2 + $0xbd0] sm:$0xff] }
 0x673   : > { %13910 = vmatmul.mubr.bf16.gmra.mxu0 %v7702_v33  ;;  %14037 = vmatprep.subr.bf16.mxu1 %v15538_v34  ;;  %v8195_v33 = vpack.c.bf16 %v8165_v27, %v8164_v26  ;;  %v8228_v26 = vld [vmem:[#allocation2 + $0x8b8] sm:$0xff]  ;;  %v8229_v27 = vld [vmem:[#allocation2 + $0x4b0] sm:$0xff] }
 0x674   : > { %13958 = vmatmul.mubr.bf16.gmra.mxu1 %v7654_v35  ;;  %13913 = vmatprep.mubr.bf16.mxu0 %v7703_v36  ;;  %v8243_v35 = vpack.c.bf16 %v8213_v29, %v8212_v28  ;;  %v8196_v36 = vpack.c.bf16 %v8167_v31, %v8166_v30  ;;  %v8182_v28 = vld [vmem:[#allocation2 + $0x5f8] sm:$0xff]  ;;  %v8183_v29 = vld [vmem:[#allocation2 + $0x620] sm:$0xff]  ;;  %v8231_v31 = vld [vmem:[#allocation2 + $0x588] sm:$0xff] }
 0x675   : > { %13961 = vmatprep.mubr.bf16.mxu1 %v7655_v37  ;;  %13990 = vmatpush3.bf16.msra.mxu0 %v15537_v32  ;;  %v8214_v32 = vld [vmem:[#allocation2 + $0xad8] sm:$0xff] }
 0x676   : > { %14038 = vmatpush3.bf16.msra.mxu1 %v15538_v34  ;;  %13991 = vmatprep.subr.bf16.mxu0 %v15539_v39  ;;  %v8215_v34 = vld [vmem:[#allocation2 + $0x878] sm:$0xff] }
 0x677   : > { %14039 = vmatprep.subr.bf16.mxu1 %v15540_v42  ;;  %v8244_v37 = vpack.c.bf16 %v8215_v34, %v8214_v32  ;;  %v8230_v30 = vld [vmem:[#allocation2 + $0xa38] sm:$0xff] }
 0x678   : > { %v17022_v32 = vld [vmem:[%s18108_s4 + $0xf8] sm:$0xff]  }
 0x679   : > { %13992 = vmatpush3.bf16.msra.mxu0 %v15539_v39  ;;  %v8169_v39 = vld [vmem:[#allocation2 + $0xe30] sm:$0xff]  ;;  %v17027_v34 = vld [vmem:[%s18108_s4 + $0x2f8] sm:$0xff]  }
 0x67a   : > { %14040 = vmatpush3.bf16.msra.mxu1 %v15540_v42  ;;  %14073 = vmatprep.subr.bf16.mxu0 %v16966_v48  ;;  %v15544_v42 = vld [vmem:[%s18108_s4 + $0x2b0] sm:$0xff]  }
 0x67b   : > { %13914 = vmatmul.mubr.bf16.gmra.mxu0 %v7704_v49  ;;  %14121 = vmatprep.subr.bf16.mxu1 %v16971_v50  ;;  %v8219_v49 = vld [vmem:[#allocation2 + $0xda0] sm:$0xff] }
 0x67c   : > { %13962 = vmatmul.mubr.bf16.gmra.mxu1 %v7656_v51  ;;  %13917 = vmatprep.mubr.bf16.mxu0 %v7705_v52  ;;  %v15546_v51 = vld [vmem:[%s18108_s4 + $0x2a8] sm:$0xff]   ;;  %v8197_v52 = vpack.c.bf16 %v8169_v39, %v8168_v38  ;;  %v8184_v38 = vld [vmem:[#allocation2 + $0x630] sm:$0xff] }
 0x67d   : > { %13965 = vmatprep.mubr.bf16.mxu1 %v7657_v53  ;;  %v8246_v53 = vpack.c.bf16 %v8219_v49, %v8218_v47  ;;  %v8185_v39 = vld [vmem:[#allocation2 + $0x7a8] sm:$0xff] }
 0x683   : > { %13918 = vmatmul.mubr.bf16.gmra.mxu0 %v7706_v62  ;;  %v8222_v62 = vld [vmem:[#allocation2 + $0xf70] sm:$0xff] }
 0x684   : > { %13966 = vmatmul.mubr.bf16.gmra.mxu1 %v7658_v63  ;;  %13921 = vmatprep.mubr.bf16.mxu0 %v7707_v0  ;;  %v8223_v63 = vld [vmem:[#allocation2 + $0xeb8] sm:$0xff] }
 0x685   : > { %13969 = vmatprep.mubr.bf16.mxu1 %v7659_v1  ;;  %v15549_v0 = vld [vmem:[%s18108_s4 + $0x98] sm:$0xff]   ;;  %v8199_v1 = vpack.c.bf16 %v8173_v55, %v8172_v54  ;;  %v8248_v5 = vpack.c.bf16 %v8223_v63, %v8222_v62  ;;  %v8193_v63 = vld [vmem:[#allocation2 + $0x800] sm:$0xff] }
 0x686   : > { %v8190_v54 = vld [vmem:[#allocation2 + $0xc58] sm:$0xff] }
 0x687   : > { %v8191_v55 = vld [vmem:[#allocation2 + $0x8d8] sm:$0xff] }
 0x688   : > { %v8208_v60 = vpack.c.bf16 %v8191_v55, %v8190_v54  ;;  %v8192_v62 = vld [vmem:[#allocation2 + $0x9d8] sm:$0xff]  ;;  %v8788_v54 = vld [vmem:[#allocation2 + $0x660] sm:$0xff] }
 0x689   : > { %v8209_v6 = vpack.c.bf16 %v8193_v63, %v8192_v62  ;;  %v8789_v55 = vld [vmem:[#allocation2 + $0x6d8] sm:$0xff]  ;;  %v8838_v62 = vld [vmem:[#allocation2 + $0x4d0] sm:$0xff]  ;;  %v8839_v63 = vld [vmem:[#allocation2 + $0xfa0] sm:$0xff] }
 0x68b   : > { %13922 = vmatmul.mubr.bf16.gmra.mxu0 %v7708_v10  ;;  %v15552_v10 = vld [vmem:[%s18108_s4 + $0x290] sm:$0xff]  }
 0x68c   : > { %13970 = vmatmul.mubr.bf16.gmra.mxu1 %v7660_v11  ;;  %13925 = vmatprep.mubr.bf16.mxu0 %v7709_v12  ;;  %v8225_v11 = vld [vmem:[#allocation2 + $0x318] sm:$0xff]  ;;  %v8178_v12 = vld [vmem:[#allocation2 + $0x8e8] sm:$0xff] }
 0x68d   : > { %13973 = vmatprep.mubr.bf16.mxu1 %v7661_v13  ;;  %v8179_v13 = vld [vmem:[#allocation2 + $0x8b0] sm:$0xff]  ;;  %v8249_v19 = vpack.c.bf16 %v8225_v11, %v8224_v9 }
 0x68e   : > { %v8202_v20 = vpack.c.bf16 %v8179_v13, %v8178_v12  ;;  %v8777_v11 = vld [vmem:[#allocation2 + $0xd30] sm:$0xff]  ;;  %v8824_v12 = vld [vmem:[#allocation2 + $0xf80] sm:$0xff] }
 0x68f   : > { %v8825_v13 = vld [vmem:[#allocation2 + $0xf50] sm:$0xff] }
 0x693   : > { %13926 = vmatmul.mubr.bf16.gmra.mxu0 %v7710_v22  ;;  %v15555_v22 = vld [vmem:[%s18108_s4 + $0x80] sm:$0xff]  }
 0x694   : > { %13974 = vmatmul.mubr.bf16.gmra.mxu1 %v7662_v23  ;;  %13993 = vmatprep.mubr.bf16.mxu0 %v8194_v24  ;;  %v15556_v23 = vld [vmem:[%s18108_s4 + $0x280] sm:$0xff]  }
 0x695   : > { %14041 = vmatprep.mubr.bf16.mxu1 %v8242_v25  ;;  %v8180_v24 = vld [vmem:[#allocation2 + $0x320] sm:$0xff] }
 0x696   : > { %v8181_v25 = vld [vmem:[#allocation2 + $0x700] sm:$0xff] }
 0x69b   : > { %13994 = vmatmul.mubr.bf16.vlgmr.msra.gmra.mxu0 %v8195_v33  ;;  %v8203_v33 = vpack.c.bf16 %v8181_v25, %v8180_v24  ;;  %v15559_v24 = vld [vmem:[%s18108_s4 + $0xf0] sm:$0xff]  }
 0x69c   : > { %14042 = vmatmul.mubr.bf16.vlgmr.msra.gmra.mxu1 %v8243_v35  ;;  %14074 = vmatpush3.bf16.msra.mxu0 %v16966_v48  ;;  %v8245_v48 = vpack.c.bf16 %v8217_v43, %v8216_v41  ;;  %v8251_v35 = vpack.c.bf16 %v8229_v27, %v8228_v26  ;;  %v8233_v41 = vld [vmem:[#allocation2 + $0xa0] sm:$0xff]  ;;  %v8187_v43 = vld [vmem:[#allocation2 + $0x678] sm:$0xff]  ;;  %v8828_v25 = vld [vmem:[#allocation2 + $0xfb0] sm:$0xff] }
 0x69d   : > { %14122 = vmatpush3.bf16.msra.mxu1 %v16971_v50  ;;  %13997 = vmatprep.mubr.bf16.mxu0 %v8196_v36  ;;  %v8198_v50 = vpack.c.bf16 %v8171_v45, %v8170_v44  ;;  %v8204_v36 = vpack.c.bf16 %v8183_v29, %v8182_v28  ;;  %v8234_v44 = vld [vmem:[#allocation2 + $0x550] sm:$0xff]  ;;  %v8235_v45 = vld [vmem:[#allocation2 + $0xf98] sm:$0xff]  ;;  %v8783_v29 = vld [vmem:[#allocation2 + $0x580] sm:$0xff] }
 0x69e   : > { %14045 = vmatprep.mubr.bf16.mxu1 %v8244_v37  ;;  %14075 = vmatprep.subr.bf16.mxu0 %v15543_v40  ;;  %v8252_v37 = vpack.c.bf16 %v8231_v31, %v8230_v30  ;;  %v8829_v26 = vld [vmem:[#allocation2 + $0xdb8] sm:$0xff]  ;;  %v15560_v27 = vld [vmem:[%s18108_s4 + $0x2f0] sm:$0xff]   ;;  %v15561_v30 = vld [vmem:[%s18108_s4 + $0xe8] sm:$0xff]  }
 0x69f   : > { %14123 = vmatprep.subr.bf16.mxu1 %v15544_v42  ;;  %v8782_v28 = vld [vmem:[#allocation2 + $0xbd8] sm:$0xff]  ;;  %v8830_v31 = vld [vmem:[#allocation2 + $0x350] sm:$0xff] }
 0x6a0   : > { %14076 = vmatpush3.bf16.msra.mxu0 %v15543_v40  ;;  %v8232_v40 = vld [vmem:[#allocation2 + $0xd80] sm:$0xff] }
 0x6a1   : > { %14124 = vmatpush3.bf16.msra.mxu1 %v15544_v42  ;;  %14077 = vmatprep.subr.bf16.mxu0 %v15545_v46  ;;  %v8186_v42 = vld [vmem:[#allocation2 + $0x70] sm:$0xff]  ;;  %v8253_v47 = vpack.c.bf16 %v8233_v41, %v8232_v40  ;;  %v15563_v40 = vld [vmem:[%s18108_s4 + $0xe0] sm:$0xff]   ;;  %v8832_v41 = vld [vmem:[#allocation2 + $0xa78] sm:$0xff] }
 0x6a2   : > { %14125 = vmatprep.subr.bf16.mxu1 %v15546_v51  ;;  %v8206_v49 = vpack.c.bf16 %v8187_v43, %v8186_v42  ;;  %v8833_v42 = vld [vmem:[#allocation2 + $0xcc0] sm:$0xff] }
 0x6a3   : > { %13998 = vmatmul.mubr.bf16.gmra.mxu0 %v8197_v52  ;;  %v8188_v52 = vld [vmem:[#allocation2 + $0xa88] sm:$0xff]  ;;  %v15564_v43 = vld [vmem:[%s18108_s4 + $0x2e0] sm:$0xff]  }
 0x6a4   : > { %14046 = vmatmul.mubr.bf16.gmra.mxu1 %v8245_v48  ;;  %14001 = vmatprep.mubr.bf16.mxu0 %v8198_v50  ;;  %v8189_v48 = vld [vmem:[#allocation2 + $0xb80] sm:$0xff]  ;;  %v8236_v50 = vld [vmem:[#allocation2 + $0x4f8] sm:$0xff] }
 0x6a5   : > { %14049 = vmatprep.mubr.bf16.mxu1 %v8246_v53  ;;  %14078 = vmatpush3.bf16.msra.mxu0 %v15545_v46  ;;  %v8205_v46 = vpack.c.bf16 %v8185_v39, %v8184_v38  ;;  %v8237_v53 = vld [vmem:[#allocation2 + $0xce0] sm:$0xff]  ;;  %v8207_v58 = vpack.c.bf16 %v8189_v48, %v8188_v52  ;;  %v8784_v38 = vld [vmem:[#allocation2 + $0x208] sm:$0xff]  ;;  %v8785_v39 = vld [vmem:[#allocation2 + $0x158] sm:$0xff]  ;;  %v8859_v48 = vpack.c.bf16 %v8833_v42, %v8832_v41 }
 0x6a6   : > { %14126 = vmatpush3.bf16.msra.mxu1 %v15546_v51  ;;  %14079 = vmatprep.subr.bf16.mxu0 %v15547_v56  ;;  %v8254_v51 = vpack.c.bf16 %v8235_v45, %v8234_v44  ;;  %v8786_v44 = vld [vmem:[#allocation2 + $0xec8] sm:$0xff]  ;;  %v8787_v45 = vld [vmem:[#allocation2 + $0xdb0] sm:$0xff]  ;;  %v8811_v52 = vpack.c.bf16 %v8785_v39, %v8784_v38  ;;  %v8802_v38 = vld [vmem:[#allocation2 + $0x8e0] sm:$0xff] }
 0x6a7   : > { %14127 = vmatprep.subr.bf16.mxu1 %v15548_v59  ;;  %v8803_v39 = vld [vmem:[#allocation2 + $0xc00] sm:$0xff]  ;;  %v8851_v41 = vld [vmem:[#allocation2 + $0x8d0] sm:$0xff] }
 0x6a9   : > { %14080 = vmatpush3.bf16.msra.mxu0 %v15547_v56  ;;  %v8238_v56 = vld [vmem:[#allocation2 + $0xfc8] sm:$0xff] }
 0x6aa   : > { %14128 = vmatpush3.bf16.msra.mxu1 %v15548_v59  ;;  %14081 = vmatprep.subr.bf16.mxu0 %v15549_v0  ;;  %v8255_v59 = vpack.c.bf16 %v8237_v53, %v8236_v50  ;;  %v8256_v61 = vpack.c.bf16 %v8239_v57, %v8238_v56  ;;  %v8812_v50 = vpack.c.bf16 %v8787_v45, %v8786_v44  ;;  %v15567_v56 = vld [vmem:[%s18108_s4 + $0xd0] sm:$0xff]  }
 0x6ab   : > { %14002 = vmatmul.mubr.bf16.gmra.mxu0 %v8199_v1  ;;  %14129 = vmatprep.subr.bf16.mxu1 %v15550_v2  ;;  %v8241_v1 = vld [vmem:[#allocation2 + $0xe40] sm:$0xff]  ;;  %v15568_v57 = vld [vmem:[%s18108_s4 + $0x2d0] sm:$0xff]   ;;  %v8820_v44 = vpack.c.bf16 %v8803_v39, %v8802_v38  ;;  %v9396_v38 = vld [vmem:[#allocation2 + $0x418] sm:$0xff] }
 0x6ac   : > { %14050 = vmatmul.mubr.bf16.gmra.mxu1 %v8247_v3  ;;  %14005 = vmatprep.mubr.bf16.mxu0 %v8200_v4  ;;  %v8775_v3 = vld [vmem:[#allocation2 + $0x6f0] sm:$0xff]  ;;  %v8822_v4 = vld [vmem:[#allocation2 + $0x978] sm:$0xff] }
 0x6ad   : > { %14053 = vmatprep.mubr.bf16.mxu1 %v8248_v5  ;;  %14082 = vmatpush3.bf16.msra.mxu0 %v15549_v0  ;;  %v8240_v0 = vld [vmem:[#allocation2 + $0x828] sm:$0xff]  ;;  %v8823_v5 = vld [vmem:[#allocation2 + $0x3e0] sm:$0xff]  ;;  %v9397_v39 = vld [vmem:[#allocation2 + $0x410] sm:$0xff] }
 0x6ae   : > { %14130 = vmatpush3.bf16.msra.mxu1 %v15550_v2  ;;  %14083 = vmatprep.subr.bf16.mxu0 %v15551_v7  ;;  %v8774_v2 = vld [vmem:[#allocation2 + $0xe68] sm:$0xff]  ;;  %v8854_v9 = vpack.c.bf16 %v8823_v5, %v8822_v4  ;;  %v8862_v5 = vpack.c.bf16 %v8839_v63, %v8838_v62  ;;  %v9390_v62 = vld [vmem:[#allocation2 + $0x250] sm:$0xff]  ;;  %v9391_v63 = vld [vmem:[#allocation2 + $0x380] sm:$0xff] }
 0x6af   : > { %14131 = vmatprep.subr.bf16.mxu1 %v15552_v10  ;;  %v8806_v8 = vpack.c.bf16 %v8775_v3, %v8774_v2  ;;  %v8813_v2 = vpack.c.bf16 %v8789_v55, %v8788_v54 }
 0x6b1   : > { %14084 = vmatpush3.bf16.msra.mxu0 %v15551_v7  ;;  %v8257_v7 = vpack.c.bf16 %v8241_v1, %v8240_v0  ;;  %v15569_v0 = vld [vmem:[%s18108_s4 + $0xc8] sm:$0xff]  }
 0x6b2   : > { %14132 = vmatpush3.bf16.msra.mxu1 %v15552_v10  ;;  %14085 = vmatprep.subr.bf16.mxu0 %v15553_v16  ;;  %v8776_v10 = vld [vmem:[#allocation2 + $0xbe8] sm:$0xff] }
 0x6b3   : > { %14006 = vmatmul.mubr.bf16.gmra.mxu0 %v8201_v17  ;;  %14133 = vmatprep.subr.bf16.mxu1 %v15554_v18  ;;  %v8826_v17 = vld [vmem:[#allocation2 + $0x1b0] sm:$0xff]  ;;  %v15570_v1 = vld [vmem:[%s18108_s4 + $0x2c8] sm:$0xff]  }
 0x6b4   : > { %14054 = vmatmul.mubr.bf16.gmra.mxu1 %v8249_v19  ;;  %14009 = vmatprep.mubr.bf16.mxu0 %v8202_v20  ;;  %v8855_v19 = vpack.c.bf16 %v8825_v13, %v8824_v12  ;;  %v8808_v20 = vpack.c.bf16 %v8779_v15, %v8778_v14  ;;  %v8794_v12 = vld [vmem:[#allocation2 + $0x1b8] sm:$0xff]  ;;  %v8795_v13 = vld [vmem:[#allocation2 + $0x188] sm:$0xff] }
 0x6b5   : > { %14057 = vmatprep.mubr.bf16.mxu1 %v8250_v21  ;;  %14086 = vmatpush3.bf16.msra.mxu0 %v15553_v16  ;;  %v8807_v16 = vpack.c.bf16 %v8777_v11, %v8776_v10  ;;  %v8840_v10 = vld [vmem:[#allocation2 + $0xcb0] sm:$0xff]  ;;  %v8841_v11 = vld [vmem:[#allocation2 + $0x168] sm:$0xff] }
 0x6b6   : > { %14134 = vmatpush3.bf16.msra.mxu1 %v15554_v18  ;;  %14087 = vmatprep.subr.bf16.mxu0 %v15555_v22  ;;  %v8827_v18 = vld [vmem:[#allocation2 + $0xdc0] sm:$0xff]  ;;  %v8842_v14 = vld [vmem:[#allocation2 + $0xf28] sm:$0xff] }
 0x6b7   : > { %14135 = vmatprep.subr.bf16.mxu1 %v15556_v23  ;;  %v8856_v21 = vpack.c.bf16 %v8827_v18, %v8826_v17  ;;  %v8843_v15 = vld [vmem:[#allocation2 + $0xf88] sm:$0xff]  ;;  %v17083_v17 = vld [vmem:[%s18108_s4 + $0x338] sm:$0xff]  }
 0x6b9   : > { %14088 = vmatpush3.bf16.msra.mxu0 %v15555_v22  ;;  %v8780_v22 = vld [vmem:[#allocation2 + $0x488] sm:$0xff] }
 0x6ba   : > { %14136 = vmatpush3.bf16.msra.mxu1 %v15556_v23  ;;  %14169 = vmatprep.subr.bf16.mxu0 %v17022_v32  ;;  %v8781_v23 = vld [vmem:[#allocation2 + $0xd60] sm:$0xff] }
 0x6bb   : > { %14010 = vmatmul.mubr.bf16.gmra.mxu0 %v8203_v33  ;;  %14217 = vmatprep.subr.bf16.mxu1 %v17027_v34  ;;  %v8831_v33 = vld [vmem:[#allocation2 + $0x388] sm:$0xff] }
 0x6bc   : > { %14058 = vmatmul.mubr.bf16.gmra.mxu1 %v8251_v35  ;;  %14013 = vmatprep.mubr.bf16.mxu0 %v8204_v36  ;;  %v15562_v35 = vld [vmem:[%s18108_s4 + $0x2e8] sm:$0xff]   ;;  %v8809_v36 = vpack.c.bf16 %v8781_v23, %v8780_v22  ;;  %v8796_v22 = vld [vmem:[#allocation2 + $0x650] sm:$0xff] }
 0x6bd   : > { %14061 = vmatprep.mubr.bf16.mxu1 %v8252_v37  ;;  %v8857_v37 = vpack.c.bf16 %v8829_v26, %v8828_v25  ;;  %v8797_v23 = vld [vmem:[#allocation2 + $0x90] sm:$0xff]  ;;  %v8845_v25 = vld [vmem:[#allocation2 + $0x560] sm:$0xff] }
 0x6be   : > { %v8798_v26 = vld [vmem:[#allocation2 + $0xdf0] sm:$0xff] }
 0x6c3   : > { %14014 = vmatmul.mubr.bf16.gmra.mxu0 %v8205_v46  ;;  %v8834_v46 = vld [vmem:[#allocation2 + $0xf40] sm:$0xff] }
 0x6c4   : > { %14062 = vmatmul.mubr.bf16.gmra.mxu1 %v8253_v47  ;;  %14017 = vmatprep.mubr.bf16.mxu0 %v8206_v49  ;;  %v8835_v47 = vld [vmem:[#allocation2 + $0x908] sm:$0xff]  ;;  %v15565_v49 = vld [vmem:[%s18108_s4 + $0xd8] sm:$0xff]  }
 0x6c5   : > { %14065 = vmatprep.mubr.bf16.mxu1 %v8254_v51  ;;  %v15566_v51 = vld [vmem:[%s18108_s4 + $0x2d8] sm:$0xff]   ;;  %v8860_v53 = vpack.c.bf16 %v8835_v47, %v8834_v46  ;;  %v8804_v46 = vld [vmem:[#allocation2 + $0x230] sm:$0xff]  ;;  %v8805_v47 = vld [vmem:[#allocation2 + $0x2e0] sm:$0xff] }
 0x6c6   : > { %v8821_v54 = vpack.c.bf16 %v8805_v47, %v8804_v46  ;;  %v9446_v47 = vld [vmem:[#allocation2 + $0x480] sm:$0xff] }
 0x6cb   : > { %14018 = vmatmul.mubr.bf16.gmra.mxu0 %v8207_v58  ;;  %v8836_v58 = vld [vmem:[#allocation2 + $0xc10] sm:$0xff] }
 0x6cc   : > { %14066 = vmatmul.mubr.bf16.gmra.mxu1 %v8255_v59  ;;  %14021 = vmatprep.mubr.bf16.mxu0 %v8208_v60  ;;  %v8837_v59 = vld [vmem:[#allocation2 + $0x1a0] sm:$0xff]  ;;  %v8790_v60 = vld [vmem:[#allocation2 + $0xbc8] sm:$0xff] }
 0x6cd   : > { %14069 = vmatprep.mubr.bf16.mxu1 %v8256_v61  ;;  %v8791_v61 = vld [vmem:[#allocation2 + $0xf38] sm:$0xff]  ;;  %v8861_v3 = vpack.c.bf16 %v8837_v59, %v8836_v58  ;;  %v9388_v58 = vld [vmem:[#allocation2 + $0xe48] sm:$0xff]  ;;  %v9389_v59 = vld [vmem:[#allocation2 + $0xe80] sm:$0xff] }
 0x6ce   : > { %v8814_v4 = vpack.c.bf16 %v8791_v61, %v8790_v60  ;;  %v9436_v60 = vld [vmem:[#allocation2 + $0x638] sm:$0xff]  ;;  %v9437_v61 = vld [vmem:[#allocation2 + $0x870] sm:$0xff] }
 0x6d3   : > { %14022 = vmatmul.mubr.bf16.gmra.mxu0 %v8209_v6  ;;  %v8792_v6 = vld [vmem:[#allocation2 + $0x98] sm:$0xff] }
 0x6d4   : > { %14070 = vmatmul.mubr.bf16.gmra.mxu1 %v8257_v7  ;;  %14089 = vmatprep.mubr.bf16.mxu0 %v8806_v8  ;;  %v8793_v7 = vld [vmem:[#allocation2 + $0xa48] sm:$0xff]  ;;  %v15571_v8 = vld [vmem:[%s18108_s4 + $0xc0] sm:$0xff]  }
 0x6d5   : > { %14137 = vmatprep.mubr.bf16.mxu1 %v8854_v9  ;;  %v15572_v9 = vld [vmem:[%s18108_s4 + $0x2c0] sm:$0xff]   ;;  %v8815_v18 = vpack.c.bf16 %v8793_v7, %v8792_v6  ;;  %v9392_v6 = vld [vmem:[#allocation2 + $0xa58] sm:$0xff]  ;;  %v15575_v7 = vld [vmem:[%s18108_s4 + $0x130] sm:$0xff]  }
 0x6db   : > { %14090 = vmatmul.mubr.bf16.vlgmr.msra.gmra.mxu0 %v8807_v16  ;;  %v17078_v16 = vld [vmem:[%s18108_s4 + $0x138] sm:$0xff]  }
 0x6dc   : > { %14138 = vmatmul.mubr.bf16.vlgmr.msra.gmra.mxu1 %v8855_v19  ;;  %14170 = vmatpush3.bf16.msra.mxu0 %v17022_v32  ;;  %v8810_v32 = vpack.c.bf16 %v8783_v29, %v8782_v28  ;;  %v8863_v19 = vpack.c.bf16 %v8841_v11, %v8840_v10  ;;  %v8846_v28 = vld [vmem:[#allocation2 + $0x888] sm:$0xff]  ;;  %v9393_v11 = vld [vmem:[#allocation2 + $0xae0] sm:$0xff] }
 0x6dd   : > { %14218 = vmatpush3.bf16.msra.mxu1 %v17027_v34  ;;  %14093 = vmatprep.mubr.bf16.mxu0 %v8808_v20  ;;  %v8858_v34 = vpack.c.bf16 %v8831_v33, %v8830_v31  ;;  %v8816_v20 = vpack.c.bf16 %v8795_v13, %v8794_v12  ;;  %v8847_v29 = vld [vmem:[#allocation2 + $0x608] sm:$0xff]  ;;  %v9440_v12 = vld [vmem:[#allocation2 + $0xbe0] sm:$0xff]  ;;  %v9441_v13 = vld [vmem:[#allocation2 + $0xad0] sm:$0xff] }
 0x6de   : > { %14141 = vmatprep.mubr.bf16.mxu1 %v8856_v21  ;;  %14171 = vmatprep.subr.bf16.mxu0 %v15559_v24  ;;  %v8864_v21 = vpack.c.bf16 %v8843_v15, %v8842_v14 }
 0x6df   : > { %14219 = vmatprep.subr.bf16.mxu1 %v15560_v27 }
 0x6e0   : > { %14172 = vmatpush3.bf16.msra.mxu0 %v15559_v24  ;;  %v8844_v24 = vld [vmem:[#allocation2 + $0xdc8] sm:$0xff] }
 0x6e1   : > { %14220 = vmatpush3.bf16.msra.mxu1 %v15560_v27  ;;  %14173 = vmatprep.subr.bf16.mxu0 %v15561_v30  ;;  %v8799_v27 = vld [vmem:[#allocation2 + $0x9b0] sm:$0xff]  ;;  %v8865_v31 = vpack.c.bf16 %v8845_v25, %v8844_v24 }
 0x6e2   : > { %14221 = vmatprep.subr.bf16.mxu1 %v15562_v35  ;;  %v8818_v33 = vpack.c.bf16 %v8799_v27, %v8798_v26  ;;  %v9469_v27 = vpack.c.bf16 %v9441_v13, %v9440_v12  ;;  %v9451_v12 = vld [vmem:[#allocation2 + $0x220] sm:$0xff]  ;;  %v15585_v13 = vld [vmem:[%s18108_s4 + $0x108] sm:$0xff]  }
 0x6e3   : > { %14094 = vmatmul.mubr.bf16.gmra.mxu0 %v8809_v36  ;;  %v8800_v36 = vld [vmem:[#allocation2 + $0x180] sm:$0xff] }
 0x6e4   : > { %14142 = vmatmul.mubr.bf16.gmra.mxu1 %v8857_v37  ;;  %14097 = vmatprep.mubr.bf16.mxu0 %v8810_v32  ;;  %v8801_v37 = vld [vmem:[#allocation2 + $0x288] sm:$0xff] }
 0x6e5   : > { %14145 = vmatprep.mubr.bf16.mxu1 %v8858_v34  ;;  %14174 = vmatpush3.bf16.msra.mxu0 %v15561_v30  ;;  %v8817_v30 = vpack.c.bf16 %v8797_v23, %v8796_v22  ;;  %v8848_v32 = vld [vmem:[#allocation2 + $0x128] sm:$0xff]  ;;  %v8849_v34 = vld [vmem:[#allocation2 + $0x178] sm:$0xff]  ;;  %v8819_v42 = vpack.c.bf16 %v8801_v37, %v8800_v36 }
 0x6e6   : > { %14222 = vmatpush3.bf16.msra.mxu1 %v15562_v35  ;;  %14175 = vmatprep.subr.bf16.mxu0 %v15563_v40  ;;  %v8866_v35 = vpack.c.bf16 %v8847_v29, %v8846_v28  ;;  %v9442_v22 = vld [vmem:[#allocation2 + $0xa18] sm:$0xff]  ;;  %v15578_v23 = vld [vmem:[%s18108_s4 + $0x328] sm:$0xff]  }
 0x6e7   : > { %14223 = vmatprep.subr.bf16.mxu1 %v15564_v43 }
 0x6e9   : > { %14176 = vmatpush3.bf16.msra.mxu0 %v15563_v40  ;;  %v8850_v40 = vld [vmem:[#allocation2 + $0xf8] sm:$0xff] }
 0x6ea   : > { %14224 = vmatpush3.bf16.msra.mxu1 %v15564_v43  ;;  %14177 = vmatprep.subr.bf16.mxu0 %v15565_v49  ;;  %v8867_v43 = vpack.c.bf16 %v8849_v34, %v8848_v32  ;;  %v8868_v45 = vpack.c.bf16 %v8851_v41, %v8850_v40  ;;  %v15580_v32 = vld [vmem:[%s18108_s4 + $0x320] sm:$0xff]   ;;  %v9444_v40 = vld [vmem:[#allocation2 + $0xa10] sm:$0xff] }
 0x6eb   : > { %14098 = vmatmul.mubr.bf16.gmra.mxu0 %v8811_v52  ;;  %14225 = vmatprep.subr.bf16.mxu1 %v15566_v51  ;;  %v9386_v52 = vld [vmem:[#allocation2 + $0x708] sm:$0xff] }
 0x6ec   : > { %14146 = vmatmul.mubr.bf16.gmra.mxu1 %v8859_v48  ;;  %14101 = vmatprep.mubr.bf16.mxu0 %v8812_v50  ;;  %v9387_v48 = vld [vmem:[#allocation2 + $0x428] sm:$0xff]  ;;  %v9434_v50 = vld [vmem:[#allocation2 + $0x1d8] sm:$0xff] }
 0x6ed   : > { %14149 = vmatprep.mubr.bf16.mxu1 %v8860_v53  ;;  %14178 = vmatpush3.bf16.msra.mxu0 %v15565_v49  ;;  %v8852_v49 = vld [vmem:[#allocation2 + $0x130] sm:$0xff]  ;;  %v9435_v53 = vld [vmem:[#allocation2 + $0xe58] sm:$0xff] }
 0x6ee   : > { %14226 = vmatpush3.bf16.msra.mxu1 %v15566_v51  ;;  %14179 = vmatprep.subr.bf16.mxu0 %v15567_v56  ;;  %v8853_v51 = vld [vmem:[#allocation2 + $0xa8] sm:$0xff] }
 0x6ef   : > { %14227 = vmatprep.subr.bf16.mxu1 %v15568_v57  ;;  %v8869_v55 = vpack.c.bf16 %v8853_v51, %v8852_v49  ;;  %v9447_v49 = vld [vmem:[#allocation2 + $0x240] sm:$0xff]  ;;  %v15581_v51 = vld [vmem:[%s18108_s4 + $0x118] sm:$0xff]  }
 0x6f1   : > { %14180 = vmatpush3.bf16.msra.mxu0 %v15567_v56  ;;  %v9418_v56 = vpack.c.bf16 %v9387_v48, %v9386_v52 }
 0x6f2   : > { %14228 = vmatpush3.bf16.msra.mxu1 %v15568_v57  ;;  %14181 = vmatprep.subr.bf16.mxu0 %v15569_v0  ;;  %v9466_v57 = vpack.c.bf16 %v9435_v53, %v9434_v50  ;;  %v9423_v50 = vpack.c.bf16 %v9397_v39, %v9396_v38  ;;  %v15582_v53 = vld [vmem:[%s18108_s4 + $0x318] sm:$0xff]  }
 0x6f3   : > { %14102 = vmatmul.mubr.bf16.gmra.mxu0 %v8813_v2  ;;  %14229 = vmatprep.subr.bf16.mxu1 %v15570_v1  ;;  %v9419_v2 = vpack.c.bf16 %v9389_v59, %v9388_v58  ;;  %v9472_v59 = vpack.c.bf16 %v9447_v49, %v9446_v47  ;;  %v9453_v39 = vld [vmem:[#allocation2 + $0x3b8] sm:$0xff] }
 0x6f4   : > { %14150 = vmatmul.mubr.bf16.gmra.mxu1 %v8861_v3  ;;  %14105 = vmatprep.mubr.bf16.mxu0 %v8814_v4  ;;  %v9467_v3 = vpack.c.bf16 %v9437_v61, %v9436_v60  ;;  %v9420_v4 = vpack.c.bf16 %v9391_v63, %v9390_v62  ;;  %v15583_v61 = vld [vmem:[%s18108_s4 + $0x110] sm:$0xff]  }
 0x6f5   : > { %14153 = vmatprep.mubr.bf16.mxu1 %v8862_v5  ;;  %14182 = vmatpush3.bf16.msra.mxu0 %v15569_v0  ;;  %v9438_v0 = vld [vmem:[#allocation2 + $0xa40] sm:$0xff] }
 0x6f6   : > { %14230 = vmatpush3.bf16.msra.mxu1 %v15570_v1  ;;  %14183 = vmatprep.subr.bf16.mxu0 %v15571_v8  ;;  %v9439_v1 = vld [vmem:[#allocation2 + $0x958] sm:$0xff] }
 0x6f7   : > { %14231 = vmatprep.subr.bf16.mxu1 %v15572_v9  ;;  %v9468_v5 = vpack.c.bf16 %v9439_v1, %v9438_v0  ;;  %v15584_v0 = vld [vmem:[%s18108_s4 + $0x310] sm:$0xff]  }
 0x6f9   : > { %14184 = vmatpush3.bf16.msra.mxu0 %v15571_v8 }
 0x6fa   : > { %14232 = vmatpush3.bf16.msra.mxu1 %v15572_v9  ;;  %14265 = vmatprep.subr.bf16.mxu0 %v17078_v16  ;;  %v15576_v9 = vld [vmem:[%s18108_s4 + $0x330] sm:$0xff]  }
 0x6fb   : > { %14106 = vmatmul.mubr.bf16.gmra.mxu0 %v8815_v18  ;;  %14313 = vmatprep.subr.bf16.mxu1 %v17083_v17  ;;  %v9394_v18 = vld [vmem:[#allocation2 + $0xea8] sm:$0xff] }
 0x6fc   : > { %14154 = vmatmul.mubr.bf16.gmra.mxu1 %v8863_v19  ;;  %14109 = vmatprep.mubr.bf16.mxu0 %v8816_v20  ;;  %v9395_v19 = vld [vmem:[#allocation2 + $0x9c0] sm:$0xff]  ;;  %v15577_v20 = vld [vmem:[%s18108_s4 + $0x128] sm:$0xff]  }
 0x6fd   : > { %14157 = vmatprep.mubr.bf16.mxu1 %v8864_v21  ;;  %v9422_v28 = vpack.c.bf16 %v9395_v19, %v9394_v18 }
 0x703   : > { %14110 = vmatmul.mubr.bf16.gmra.mxu0 %v8817_v30 }
 0x704   : > { %14158 = vmatmul.mubr.bf16.gmra.mxu1 %v8865_v31  ;;  %14113 = vmatprep.mubr.bf16.mxu0 %v8818_v33 }
 0x705   : > { %14161 = vmatprep.mubr.bf16.mxu1 %v8866_v35  ;;  %v15579_v35 = vld [vmem:[%s18108_s4 + $0x120] sm:$0xff]  }
 0x70b   : > { %14114 = vmatmul.mubr.bf16.gmra.mxu0 %v8819_v42 }
 0x70c   : > { %14162 = vmatmul.mubr.bf16.gmra.mxu1 %v8867_v43  ;;  %14117 = vmatprep.mubr.bf16.mxu0 %v8820_v44  ;;  %v9445_v43 = vld [vmem:[#allocation2 + $0xd28] sm:$0xff]  ;;  %v9398_v44 = vld [vmem:[#allocation2 + $0x760] sm:$0xff] }
 0x70d   : > { %14165 = vmatprep.mubr.bf16.mxu1 %v8868_v45  ;;  %v9399_v45 = vld [vmem:[#allocation2 + $0x9e0] sm:$0xff] }
 0x713   : > { %14118 = vmatmul.mubr.bf16.gmra.mxu0 %v8821_v54 }
 0x714   : > { %14166 = vmatmul.mubr.bf16.gmra.mxu1 %v8869_v55  ;;  %14185 = vmatprep.mubr.bf16.mxu0 %v9418_v56  ;;  %v9471_v55 = vpack.c.bf16 %v9445_v43, %v9444_v40  ;;  %v9424_v56 = vpack.c.bf16 %v9399_v45, %v9398_v44  ;;  %v9406_v40 = vld [vmem:[#allocation2 + $0xa28] sm:$0xff]  ;;  %v9455_v45 = vld [vmem:[#allocation2 + $0xe10] sm:$0xff] }
 0x715   : > { %14233 = vmatprep.mubr.bf16.mxu1 %v9466_v57  ;;  %v9454_v44 = vld [vmem:[#allocation2 + $0x3e8] sm:$0xff] }
 0x71b   : > { %v13899_v8 = vpop.f32.mrf.mxu0  ;;  %14186 = vmatmul.mubr.bf16.vlgmr.msra.gmra.mxu0 %v9419_v2  ;;  %v9400_v2 = vld [vmem:[#allocation2 + $0x100] sm:$0xff] }
 0x71c   : > { %v13947_v10 = vpop.f32.mrf.mxu1  ;;  %14234 = vmatmul.mubr.bf16.vlgmr.msra.gmra.mxu1 %v9467_v3  ;;  %14266 = vmatpush3.bf16.msra.mxu0 %v17078_v16  ;;  %v9443_v16 = vld [vmem:[#allocation2 + $0x300] sm:$0xff]  ;;  %v9401_v3 = vld [vmem:[#allocation2 + $0x78] sm:$0xff] }
 0x71d   : > { %v17094_v14 = vadd.f32 %v13947_v10, %v13899_v8  ;;  %v7826_v15 = vpop.f32.mrf.mxu0  ;;  %14314 = vmatpush3.bf16.msra.mxu1 %v17083_v17  ;;  %14189 = vmatprep.mubr.bf16.mxu0 %v9420_v4  ;;  %v9421_v17 = vpack.c.bf16 %v9393_v11, %v9392_v6  ;;  %v9470_v31 = vpack.c.bf16 %v9443_v16, %v9442_v22  ;;  %v9448_v4 = vld [vmem:[#allocation2 + $0xcf0] sm:$0xff]  ;;  %v9402_v8 = vld [vmem:[#allocation2 + $0xec0] sm:$0xff]  ;;  %v9450_v11 = vld [vmem:[#allocation2 + $0x4e8] sm:$0xff] }
 0x71e   : > { %v8035_v21 = vpop.f32.mrf.mxu1  ;;  %14237 = vmatprep.mubr.bf16.mxu1 %v9468_v5  ;;  %14267 = vmatprep.subr.bf16.mxu0 %v15575_v7  ;;  %v9425_v19 = vpack.c.bf16 %v9401_v3, %v9400_v2  ;;  %v9456_v2 = vld [vmem:[#allocation2 + $0x248] sm:$0xff] }
 0x71f   : > { %v17103_v24 = vadd.f32 %v8035_v21, %v7826_v15  ;;  %v13900_v25 = vpop.f32.mrf.mxu0  ;;  %14315 = vmatprep.subr.bf16.mxu1 %v15576_v9 }
 0x720   : > { %v13948_v26 = vpop.f32.mrf.mxu1  ;;  %14268 = vmatpush3.bf16.msra.mxu0 %v15575_v7  ;;  %v9449_v7 = vld [vmem:[#allocation2 + $0x48] sm:$0xff] }
 0x721   : > { %v17105_v29 = vadd.f32 %v13948_v26, %v13900_v25  ;;  %v7829_v30 = vpop.f32.mrf.mxu0  ;;  %14316 = vmatpush3.bf16.msra.mxu1 %v15576_v9  ;;  %14269 = vmatprep.subr.bf16.mxu0 %v15577_v20  ;;  %v9403_v9 = vld [vmem:[#allocation2 + $0x438] sm:$0xff]  ;;  %v9473_v22 = vpack.c.bf16 %v9449_v7, %v9448_v4 }
 0x722   : > { %v8038_v33 = vpop.f32.mrf.mxu1  ;;  %14317 = vmatprep.subr.bf16.mxu1 %v15578_v23  ;;  %v9426_v16 = vpack.c.bf16 %v9403_v9, %v9402_v8  ;;  %v9410_v7 = vld [vmem:[#allocation2 + $0x3d8] sm:$0xff]  ;;  %v9411_v8 = vld [vmem:[#allocation2 + $0x5e0] sm:$0xff] }
 0x723   : > { %v17110_v36 = vadd.f32 %v8038_v33, %v7829_v30  ;;  %v13903_v37 = vpop.f32.mrf.mxu0  ;;  %14190 = vmatmul.mubr.bf16.gmra.mxu0 %v9421_v17  ;;  %v9474_v17 = vpack.c.bf16 %v9451_v12, %v9450_v11  ;;  %v9459_v11 = vld [vmem:[#allocation2 + $0xc98] sm:$0xff] }
 0x724   : > { %v13951_v34 = vpop.f32.mrf.mxu1  ;;  %14238 = vmatmul.mubr.bf16.gmra.mxu1 %v9469_v27  ;;  %14193 = vmatprep.mubr.bf16.mxu0 %v9422_v28  ;;  %v15587_v27 = vld [vmem:[%s18108_s4 + $0x100] sm:$0xff]  }
 0x725   : > { %v17115_v41 = vadd.f32 %v13951_v34, %v13903_v37  ;;  %v7842_v42 = vpop.f32.mrf.mxu0  ;;  %14241 = vmatprep.mubr.bf16.mxu1 %v9470_v31  ;;  %14270 = vmatpush3.bf16.msra.mxu0 %v15577_v20  ;;  %v15586_v20 = vld [vmem:[%s18108_s4 + $0x308] sm:$0xff]   ;;  %v15588_v31 = vld [vmem:[%s18108_s4 + $0x300] sm:$0xff]   ;;  %v9405_v37 = vld [vmem:[#allocation2 + $0xaf8] sm:$0xff] }
 0x726   : > { %v8051_v46 = vpop.f32.mrf.mxu1  ;;  %14318 = vmatpush3.bf16.msra.mxu1 %v15578_v23  ;;  %14271 = vmatprep.subr.bf16.mxu0 %v15579_v35 }
 0x727   : > { %v17120_v52 = vadd.f32 %v8051_v46, %v7842_v42  ;;  %v13904_v48 = vpop.f32.mrf.mxu0  ;;  %14319 = vmatprep.subr.bf16.mxu1 %v15580_v32  ;;  %v9407_v42 = vld [vmem:[#allocation2 + $0xa20] sm:$0xff]  ;;  %v17160_v46 = vld [vmem:[%s18108_s4 + $0x178] sm:$0xff]  }
 0x728   : > { %v13952_v54 = vpop.f32.mrf.mxu1 }
 0x729   : > { %v17125_v57 = vadd.f32 %v13952_v54, %v13904_v48  ;;  %v7845_v58 = vpop.f32.mrf.mxu0  ;;  %14272 = vmatpush3.bf16.msra.mxu0 %v15579_v35  ;;  %v9404_v35 = vld [vmem:[#allocation2 + $0xca8] sm:$0xff]  ;;  %v17167_v48 = vld [vmem:[%s18108_s4 + $0x378] sm:$0xff]   ;;  %v9428_v54 = vpack.c.bf16 %v9407_v42, %v9406_v40  ;;  %v9415_v40 = vld [vmem:[#allocation2 + $0x960] sm:$0xff] }
 0x72a   : > { %v8054_v60 = vpop.f32.mrf.mxu1  ;;  %14320 = vmatpush3.bf16.msra.mxu1 %v15580_v32  ;;  %14273 = vmatprep.subr.bf16.mxu0 %v15581_v51  ;;  %v9452_v32 = vld [vmem:[#allocation2 + $0x890] sm:$0xff] }
 0x72b   : > { %v17130_v62 = vadd.f32 %v8054_v60, %v7845_v58  ;;  %v13907_v63 = vpop.f32.mrf.mxu0  ;;  %14194 = vmatmul.mubr.bf16.gmra.mxu0 %v9423_v50  ;;  %14321 = vmatprep.subr.bf16.mxu1 %v15582_v53  ;;  %v9476_v58 = vpack.c.bf16 %v9455_v45, %v9454_v44  ;;  %v9463_v44 = vld [vmem:[#allocation2 + $0x378] sm:$0xff] }
 0x72c   : > { %v13955_v1 = vpop.f32.mrf.mxu1  ;;  %14242 = vmatmul.mubr.bf16.gmra.mxu1 %v9471_v55  ;;  %14197 = vmatprep.mubr.bf16.mxu0 %v9424_v56 }
 0x72d   : > { %v17135_v5 = vadd.f32 %v13955_v1, %v13907_v63  ;;  %v7858_v6 = vpop.f32.mrf.mxu0  ;;  %14245 = vmatprep.mubr.bf16.mxu1 %v9472_v59  ;;  %14274 = vmatpush3.bf16.msra.mxu0 %v15581_v51  ;;  %v9427_v51 = vpack.c.bf16 %v9405_v37, %v9404_v35  ;;  %v9409_v1 = vld [vmem:[#allocation2 + $0xbb8] sm:$0xff]  ;;  %v9460_v35 = vld [vmem:[#allocation2 + $0x280] sm:$0xff] }
 0x72e   : > { %v8067_v10 = vpop.f32.mrf.mxu1  ;;  %14322 = vmatpush3.bf16.msra.mxu1 %v15582_v53  ;;  %14275 = vmatprep.subr.bf16.mxu0 %v15583_v61  ;;  %v9475_v53 = vpack.c.bf16 %v9453_v39, %v9452_v32  ;;  %v9414_v39 = vld [vmem:[#allocation2 + $0xb10] sm:$0xff] }
 0x72f   : > { %v17140_v15 = vadd.f32 %v8067_v10, %v7858_v6  ;;  %v13908_v18 = vpop.f32.mrf.mxu0  ;;  %14323 = vmatprep.subr.bf16.mxu1 %v15584_v0  ;;  %v9457_v6 = vld [vmem:[#allocation2 + $0x3f0] sm:$0xff]  ;;  %v9458_v10 = vld [vmem:[#allocation2 + $0x3c8] sm:$0xff] }
 0x730   : > { %v13956_v21 = vpop.f32.mrf.mxu1 }
 0x731   : > { %v17145_v23 = vadd.f32 %v13956_v21, %v13908_v18  ;;  %v7861_v25 = vpop.f32.mrf.mxu0  ;;  %14276 = vmatpush3.bf16.msra.mxu0 %v15583_v61  ;;  %v9430_v21 = vpack.c.bf16 %v9411_v8, %v9410_v7 }
 0x732   : > { %v8070_v26 = vpop.f32.mrf.mxu1  ;;  %14324 = vmatpush3.bf16.msra.mxu1 %v15584_v0  ;;  %14277 = vmatprep.subr.bf16.mxu0 %v15585_v13  ;;  %v9408_v0 = vld [vmem:[#allocation2 + $0xd50] sm:$0xff] }
 0x733   : > { %v17150_v28 = vadd.f32 %v8070_v26, %v7861_v25  ;;  %v13911_v30 = vpop.f32.mrf.mxu0  ;;  %14198 = vmatmul.mubr.bf16.gmra.mxu0 %v9425_v19  ;;  %14325 = vmatprep.subr.bf16.mxu1 %v15586_v20  ;;  %v9429_v18 = vpack.c.bf16 %v9409_v1, %v9408_v0  ;;  %v9478_v25 = vpack.c.bf16 %v9459_v11, %v9458_v10  ;;  %v9998_v10 = vld [vmem:[#allocation2 + $0x1c0] sm:$0xff]  ;;  %v9999_v11 = vld [vmem:[#allocation2 + $0xac8] sm:$0xff] }
 0x734   : > { %v13959_v33 = vpop.f32.mrf.mxu1  ;;  %14246 = vmatmul.mubr.bf16.gmra.mxu1 %v9473_v22  ;;  %14201 = vmatprep.mubr.bf16.mxu0 %v9426_v16 }
 0x735   : > { %v17155_v34 = vadd.f32 %v13959_v33, %v13911_v30  ;;  %v7874_v38 = vpop.f32.mrf.mxu0  ;;  %14249 = vmatprep.mubr.bf16.mxu1 %v9474_v17  ;;  %14278 = vmatpush3.bf16.msra.mxu0 %v15585_v13  ;;  %v9413_v33 = vld [vmem:[#allocation2 + $0x990] sm:$0xff] }
 0x736   : > { %v8083_v43 = vpop.f32.mrf.mxu1  ;;  %14326 = vmatpush3.bf16.msra.mxu1 %v15586_v20  ;;  %14279 = vmatprep.subr.bf16.mxu0 %v15587_v27  ;;  %v9477_v20 = vpack.c.bf16 %v9457_v6, %v9456_v2  ;;  %v9416_v2 = vld [vmem:[#allocation2 + $0x310] sm:$0xff]  ;;  %v9464_v6 = vld [vmem:[#allocation2 + $0x7d8] sm:$0xff] }
 0x737   : > { %v17162_v47 = vadd.f32 %v8083_v43, %v7874_v38  ;;  %v13912_v49 = vpop.f32.mrf.mxu0  ;;  %14327 = vmatprep.subr.bf16.mxu1 %v15588_v31  ;;  %v9461_v38 = vld [vmem:[#allocation2 + $0xa08] sm:$0xff]  ;;  %v9462_v43 = vld [vmem:[#allocation2 + $0x540] sm:$0xff] }
 0x738   : > { %v13960_v50 = vpop.f32.mrf.mxu1 }
 0x739   : > { %v17169_v55 = vadd.f32 %v13960_v50, %v13912_v49  ;;  %v7877_v56 = vpop.f32.mrf.mxu0  ;;  %14280 = vmatpush3.bf16.msra.mxu0 %v15587_v27 }
 0x73a   : > { %v8086_v59 = vpop.f32.mrf.mxu1  ;;  %14328 = vmatpush3.bf16.msra.mxu1 %v15588_v31  ;;  %14361 = vmatprep.subr.bf16.mxu0 %v17160_v46  ;;  %v9412_v31 = vld [vmem:[#allocation2 + $0x980] sm:$0xff] }
 0x73b   : > { %v17172_v60 = vadd.f32 %v8086_v59, %v7877_v56  ;;  %v13915_v61 = vpop.f32.mrf.mxu0  ;;  %14202 = vmatmul.mubr.bf16.gmra.mxu0 %v9427_v51  ;;  %14409 = vmatprep.subr.bf16.mxu1 %v17167_v48  ;;  %v9431_v51 = vpack.c.bf16 %v9413_v33, %v9412_v31  ;;  %v9480_v59 = vpack.c.bf16 %v9463_v44, %v9462_v43 }
 0x73c   : > { %v13963_v63 = vpop.f32.mrf.mxu1  ;;  %14250 = vmatmul.mubr.bf16.gmra.mxu1 %v9475_v53  ;;  %14205 = vmatprep.mubr.bf16.mxu0 %v9428_v54  ;;  %v9479_v53 = vpack.c.bf16 %v9461_v38, %v9460_v35  ;;  %v9432_v54 = vpack.c.bf16 %v9415_v40, %v9414_v39  ;;  %v10000_v40 = vld [vmem:[#allocation2 + $0x820] sm:$0xff] }
 0x73d   : > { %v17175_v3 = vadd.f32 %v13963_v63, %v13915_v61  ;;  %v7890_v4 = vpop.f32.mrf.mxu0  ;;  %14253 = vmatprep.mubr.bf16.mxu1 %v9476_v58 }
 0x73e   : > { %v8099_v9 = vpop.f32.mrf.mxu1 }
 0x73f   : > { %v17177_v12 = vadd.f32 %v8099_v9, %v7890_v4  ;;  %v13916_v13 = vpop.f32.mrf.mxu0  ;;  %v9417_v4 = vld [vmem:[#allocation2 + $0xd8] sm:$0xff]  ;;  %v9465_v9 = vld [vmem:[#allocation2 + $0x68] sm:$0xff] }
 0x740   : > { %v13964_v19 = vpop.f32.mrf.mxu1 }
 0x741   : > { %v17179_v22 = vadd.f32 %v13964_v19, %v13916_v13  ;;  %v7893_v16 = vpop.f32.mrf.mxu0  ;;  %v10047_v19 = vld [vmem:[#allocation2 + $0x190] sm:$0xff] }
 0x742   : > { %v8102_v17 = vpop.f32.mrf.mxu1 }
 0x743   : > { %v17181_v26 = vadd.f32 %v8102_v17, %v7893_v16  ;;  %v13919_v27 = vpop.f32.mrf.mxu0  ;;  %14206 = vmatmul.mubr.bf16.gmra.mxu0 %v9429_v18  ;;  %v10046_v18 = vld [vmem:[#allocation2 + $0xd38] sm:$0xff]  ;;  %v9433_v16 = vpack.c.bf16 %v9417_v4, %v9416_v2  ;;  %v9481_v17 = vpack.c.bf16 %v9465_v9, %v9464_v6 }
 0x744   : > { %v13967_v30 = vpop.f32.mrf.mxu1  ;;  %14254 = vmatmul.mubr.bf16.gmra.mxu1 %v9477_v20  ;;  %14209 = vmatprep.mubr.bf16.mxu0 %v9430_v21  ;;  %v10078_v33 = vpack.c.bf16 %v10047_v19, %v10046_v18 }
 0x745   : > { %v17183_v37 = vadd.f32 %v13967_v30, %v13919_v27  ;;  %v7906_v32 = vpop.f32.mrf.mxu0  ;;  %14257 = vmatprep.mubr.bf16.mxu1 %v9478_v25  ;;  %v10030_v27 = vpack.c.bf16 %v9999_v11, %v9998_v10 }
 0x746   : > { %v8115_v42 = vpop.f32.mrf.mxu1 }
 0x747   : > { %v17185_v45 = vadd.f32 %v8115_v42, %v7906_v32  ;;  %v13920_v49 = vpop.f32.mrf.mxu0  ;;  %v10001_v42 = vld [vmem:[#allocation2 + $0x8c8] sm:$0xff] }
 0x748   : > { %v13968_v50 = vpop.f32.mrf.mxu1 }
 0x749   : > { %v17187_v56 = vadd.f32 %v13968_v50, %v13920_v49  ;;  %v7909_v58 = vpop.f32.mrf.mxu0  ;;  %v10048_v49 = vld [vmem:[#allocation2 + $0x548] sm:$0xff] }
 0x74a   : > { %v8118_v61 = vpop.f32.mrf.mxu1 }
 0x74b   : > { %v17189_v63 = vadd.f32 %v8118_v61, %v7909_v58  ;;  %v13923_v0 = vpop.f32.mrf.mxu0  ;;  %14210 = vmatmul.mubr.bf16.gmra.mxu0 %v9431_v51  ;;  %v10049_v51 = vld [vmem:[#allocation2 + $0x1e8] sm:$0xff]  ;;  %v10031_v61 = vpack.c.bf16 %v10001_v42, %v10000_v40 }
 0x74c   : > { %v13971_v1 = vpop.f32.mrf.mxu1  ;;  %14258 = vmatmul.mubr.bf16.gmra.mxu1 %v9479_v53  ;;  %14213 = vmatprep.mubr.bf16.mxu0 %v9432_v54  ;;  %v10002_v53 = vld [vmem:[#allocation2 + $0xe20] sm:$0xff]  ;;  %v10079_v4 = vpack.c.bf16 %v10049_v51, %v10048_v49  ;;  %v15593_v40 = vld [vmem:[%s18108_s4 + $0x168] sm:$0xff]   ;;  %v10055_v49 = vld [vmem:[#allocation2 + $0x658] sm:$0xff] }
 0x74d   : > { %v17191_v7 = vadd.f32 %v13971_v1, %v13923_v0  ;;  %v7922_v8 = vpop.f32.mrf.mxu0  ;;  %14261 = vmatprep.mubr.bf16.mxu1 %v9480_v59  ;;  %v10003_v54 = vld [vmem:[#allocation2 + $0xb60] sm:$0xff]  ;;  %v10050_v0 = vld [vmem:[#allocation2 + $0xc08] sm:$0xff] }
 0x74e   : > { %v8131_v13 = vpop.f32.mrf.mxu1  ;;  %v10051_v1 = vld [vmem:[#allocation2 + $0x2a0] sm:$0xff]  ;;  %v10032_v9 = vpack.c.bf16 %v10003_v54, %v10002_v53 }
 0x74f   : > { %v17193_v20 = vadd.f32 %v8131_v13, %v7922_v8  ;;  %v13924_v21 = vpop.f32.mrf.mxu0  ;;  %v10080_v11 = vpack.c.bf16 %v10051_v1, %v10050_v0  ;;  %v15591_v13 = vld [vmem:[%s18108_s4 + $0x170] sm:$0xff]  }
 0x750   : > { %v13972_v25 = vpop.f32.mrf.mxu1 }
 0x751   : > { %v17195_v30 = vadd.f32 %v13972_v25, %v13924_v21  ;;  %v7925_v31 = vpop.f32.mrf.mxu0  ;;  %v10004_v21 = vld [vmem:[#allocation2 + $0xed8] sm:$0xff] }
 0x752   : > { %v8134_v35 = vpop.f32.mrf.mxu1 }
 0x753   : > { %v17197_v32 = vadd.f32 %v8134_v35, %v7925_v31  ;;  %v13927_v38 = vpop.f32.mrf.mxu0  ;;  %14214 = vmatmul.mubr.bf16.gmra.mxu0 %v9433_v16  ;;  %v15592_v16 = vld [vmem:[%s18108_s4 + $0x370] sm:$0xff]   ;;  %v10052_v31 = vld [vmem:[#allocation2 + $0x408] sm:$0xff] }
 0x754   : > { %v13975_v39 = vpop.f32.mrf.mxu1  ;;  %14262 = vmatmul.mubr.bf16.gmra.mxu1 %v9481_v17  ;;  %14281 = vmatprep.mubr.bf16.mxu0 %v10030_v27  ;;  %v10005_v27 = vld [vmem:[#allocation2 + $0xc80] sm:$0xff] }
 0x755   : > { %v17199_v43 = vadd.f32 %v13975_v39, %v13927_v38  ;;  %v7938_v44 = vpop.f32.mrf.mxu0  ;;  %14329 = vmatprep.mubr.bf16.mxu1 %v10078_v33  ;;  %v10053_v33 = vld [vmem:[#allocation2 + $0x7e8] sm:$0xff]  ;;  %v10006_v38 = vld [vmem:[#allocation2 + $0x950] sm:$0xff]  ;;  %v10007_v39 = vld [vmem:[#allocation2 + $0x698] sm:$0xff] }
 0x756   : > { %v8147_v50 = vpop.f32.mrf.mxu1 }
 0x757   : > { %v17201_v58 = vadd.f32 %v8147_v50, %v7938_v44  ;;  %v13928_v59 = vpop.f32.mrf.mxu0  ;;  %v10033_v50 = vpack.c.bf16 %v10005_v27, %v10004_v21  ;;  %v10009_v21 = vld [vmem:[#allocation2 + $0xf18] sm:$0xff]  ;;  %v10010_v27 = vld [vmem:[#allocation2 + $0xb90] sm:$0xff] }
 0x758   : > { %v13976_v2 = vpop.f32.mrf.mxu1 }
 0x759   : > { %v17203_v6 = vadd.f32 %v13976_v2, %v13928_v59  ;;  %v7941_v8 = vpop.f32.mrf.mxu0 }
 0x75a   : > { %v8150_v10 = vpop.f32.mrf.mxu1 }
 0x75b   : > { %v17208_v18 = vadd.f32 %v8150_v10, %v7941_v8  ;;  %v13995_v19 = vpop.f32.mrf.mxu0  ;;  %14282 = vmatmul.mubr.bf16.vlgmr.msra.gmra.mxu0 %v10031_v61  ;;  %v10081_v61 = vpack.c.bf16 %v10053_v33, %v10052_v31  ;;  %v10011_v31 = vld [vmem:[#allocation2 + $0x458] sm:$0xff] }
 0x75c   : > { %v8486_v25 = vadd.f32 %v13995_v19, %v17094_v14  ;;  %v14043_v17 = vpop.f32.mrf.mxu1  ;;  %14330 = vmatmul.mubr.bf16.vlgmr.msra.gmra.mxu1 %v10079_v4  ;;  %14362 = vmatpush3.bf16.msra.mxu0 %v17160_v46  ;;  %v10054_v46 = vld [vmem:[#allocation2 + $0xc68] sm:$0xff] }
 0x75d   : > { %v8357_v35 = vpop.f32.mrf.mxu0  ;;  %14410 = vmatpush3.bf16.msra.mxu1 %v17167_v48  ;;  %14285 = vmatprep.mubr.bf16.mxu0 %v10032_v9  ;;  %v15594_v48 = vld [vmem:[%s18108_s4 + $0x368] sm:$0xff]   ;;  %v10082_v1 = vpack.c.bf16 %v10055_v49, %v10054_v46  ;;  %v15595_v9 = vld [vmem:[%s18108_s4 + $0x160] sm:$0xff]  }
 0x75e   : > { %v17219_v42 = vadd.f32 %v14043_v17, %v8486_v25  ;;  %v8484_v14 = vadd.f32 %v8357_v35, %v17103_v24  ;;  %v8615_v44 = vpop.f32.mrf.mxu1  ;;  %14333 = vmatprep.mubr.bf16.mxu1 %v10080_v11  ;;  %14363 = vmatprep.subr.bf16.mxu0 %v15591_v13  ;;  %v10034_v24 = vpack.c.bf16 %v10007_v39, %v10006_v38  ;;  %v10057_v17 = vld [vmem:[#allocation2 + $0xfc0] sm:$0xff]  ;;  %v10058_v39 = vld [vmem:[#allocation2 + $0x5e8] sm:$0xff] }
 0x75f   : > { %v13996_v51 = vpop.f32.mrf.mxu0  ;;  %14411 = vmatprep.subr.bf16.mxu1 %v15592_v16 }
 0x760   : > { %v17225_v53 = vadd.f32 %v8615_v44, %v8484_v14  ;;  %v8487_v54 = vadd.f32 %v13996_v51, %v17105_v29  ;;  %v14044_v59 = vpop.f32.mrf.mxu1  ;;  %14364 = vmatpush3.bf16.msra.mxu0 %v15591_v13  ;;  %v15596_v29 = vld [vmem:[%s18108_s4 + $0x360] sm:$0xff]   ;;  %v15597_v14 = vld [vmem:[%s18108_s4 + $0x158] sm:$0xff]  }
 0x761   : > { %v8360_v0 = vpop.f32.mrf.mxu0  ;;  %14412 = vmatpush3.bf16.msra.mxu1 %v15592_v16  ;;  %14365 = vmatprep.subr.bf16.mxu0 %v15593_v40  ;;  %v10056_v16 = vld [vmem:[#allocation2 + $0xf60] sm:$0xff] }
 0x762   : > { %v17228_v2 = vadd.f32 %v14044_v59, %v8487_v54  ;;  %v8485_v4 = vadd.f32 %v8360_v0, %v17110_v36  ;;  %v8618_v8 = vpop.f32.mrf.mxu1  ;;  %14413 = vmatprep.subr.bf16.mxu1 %v15594_v48  ;;  %v10008_v36 = vld [vmem:[#allocation2 + $0x2d0] sm:$0xff] }
 0x763   : > { %v13999_v10 = vpop.f32.mrf.mxu0  ;;  %14286 = vmatmul.mubr.bf16.gmra.mxu0 %v10033_v50  ;;  %v10035_v46 = vpack.c.bf16 %v10009_v21, %v10008_v36  ;;  %v10036_v50 = vpack.c.bf16 %v10011_v31, %v10010_v27  ;;  %v10061_v36 = vld [vmem:[#allocation2 + $0x720] sm:$0xff]  ;;  %v10062_v31 = vld [vmem:[#allocation2 + $0x5d8] sm:$0xff] }
 0x764   : > { %v17237_v11 = vadd.f32 %v8618_v8, %v8485_v4  ;;  %v8490_v13 = vadd.f32 %v13999_v10, %v17115_v41  ;;  %v14047_v19 = vpop.f32.mrf.mxu1  ;;  %14334 = vmatmul.mubr.bf16.gmra.mxu1 %v10081_v61  ;;  %14289 = vmatprep.mubr.bf16.mxu0 %v10034_v24  ;;  %v10059_v41 = vld [vmem:[#allocation2 + $0x440] sm:$0xff] }
 0x765   : > { %v8373_v25 = vpop.f32.mrf.mxu0  ;;  %14337 = vmatprep.mubr.bf16.mxu1 %v10082_v1  ;;  %14366 = vmatpush3.bf16.msra.mxu0 %v15593_v40  ;;  %v15598_v40 = vld [vmem:[%s18108_s4 + $0x358] sm:$0xff]   ;;  %v10084_v59 = vpack.c.bf16 %v10059_v41, %v10058_v39  ;;  %v15599_v1 = vld [vmem:[%s18108_s4 + $0x150] sm:$0xff]   ;;  %v10014_v21 = vld [vmem:[#allocation2 + $0xc40] sm:$0xff] }
 0x766   : > { %v17240_v33 = vadd.f32 %v14047_v19, %v8490_v13  ;;  %v8488_v35 = vadd.f32 %v8373_v25, %v17120_v52  ;;  %v8631_v38 = vpop.f32.mrf.mxu1  ;;  %14414 = vmatpush3.bf16.msra.mxu1 %v15594_v48  ;;  %14367 = vmatprep.subr.bf16.mxu0 %v15595_v9  ;;  %v10083_v48 = vpack.c.bf16 %v10057_v17, %v10056_v16  ;;  %v10060_v13 = vld [vmem:[#allocation2 + $0xff0] sm:$0xff]  ;;  %v10015_v16 = vld [vmem:[#allocation2 + $0xd48] sm:$0xff] }
 0x767   : > { %v14000_v44 = vpop.f32.mrf.mxu0  ;;  %14415 = vmatprep.subr.bf16.mxu1 %v15596_v29  ;;  %v15602_v41 = vld [vmem:[%s18108_s4 + $0x348] sm:$0xff]  }
 0x768   : > { %v17249_v49 = vadd.f32 %v8631_v38, %v8488_v35  ;;  %v8491_v52 = vadd.f32 %v14000_v44, %v17125_v57  ;;  %v14048_v51 = vpop.f32.mrf.mxu1  ;;  %v15600_v57 = vld [vmem:[%s18108_s4 + $0x350] sm:$0xff]  }
 0x769   : > { %v8376_v54 = vpop.f32.mrf.mxu0  ;;  %14368 = vmatpush3.bf16.msra.mxu0 %v15595_v9  ;;  %v10063_v35 = vld [vmem:[#allocation2 + $0xb70] sm:$0xff] }
 0x76a   : > { %v17252_v61 = vadd.f32 %v14048_v51, %v8491_v52  ;;  %v8489_v24 = vadd.f32 %v8376_v54, %v17130_v62  ;;  %v8634_v0 = vpop.f32.mrf.mxu1  ;;  %14416 = vmatpush3.bf16.msra.mxu1 %v15596_v29  ;;  %14369 = vmatprep.subr.bf16.mxu0 %v15597_v14  ;;  %v10012_v62 = vld [vmem:[#allocation2 + $0xf20] sm:$0xff]  ;;  %v10013_v29 = vld [vmem:[#allocation2 + $0x8] sm:$0xff]  ;;  %v10038_v52 = vpack.c.bf16 %v10015_v16, %v10014_v21 }
 0x76b   : > { %v14003_v4 = vpop.f32.mrf.mxu0  ;;  %14290 = vmatmul.mubr.bf16.gmra.mxu0 %v10035_v46  ;;  %14417 = vmatprep.subr.bf16.mxu1 %v15598_v40  ;;  %v10037_v39 = vpack.c.bf16 %v10013_v29, %v10012_v62  ;;  %v10085_v46 = vpack.c.bf16 %v10061_v36, %v10060_v13  ;;  %v10086_v51 = vpack.c.bf16 %v10063_v35, %v10062_v31  ;;  %v10065_v62 = vld [vmem:[#allocation2 + $0x738] sm:$0xff]  ;;  %v10018_v29 = vld [vmem:[#allocation2 + $0x3d0] sm:$0xff]  ;;  %v10019_v13 = vld [vmem:[#allocation2 + $0x228] sm:$0xff] }
 0x76c   : > { %v17261_v8 = vadd.f32 %v8634_v0, %v8489_v24  ;;  %v8494_v9 = vadd.f32 %v14003_v4, %v17135_v5  ;;  %v14051_v10 = vpop.f32.mrf.mxu1  ;;  %14338 = vmatmul.mubr.bf16.gmra.mxu1 %v10083_v48  ;;  %14293 = vmatprep.mubr.bf16.mxu0 %v10036_v50  ;;  %v15601_v5 = vld [vmem:[%s18108_s4 + $0x148] sm:$0xff]   ;;  %v17299_v35 = vld [vmem:[%s18108_s4 + $0x3b8] sm:$0xff]  }
 0x76d   : > { %v8389_v19 = vpop.f32.mrf.mxu0  ;;  %14341 = vmatprep.mubr.bf16.mxu1 %v10084_v59  ;;  %14370 = vmatpush3.bf16.msra.mxu0 %v15597_v14  ;;  %v15603_v59 = vld [vmem:[%s18108_s4 + $0x140] sm:$0xff]   ;;  %v10066_v16 = vld [vmem:[#allocation2 + $0x808] sm:$0xff] }
 0x76e   : > { %v17264_v25 = vadd.f32 %v14051_v10, %v8494_v9  ;;  %v8492_v17 = vadd.f32 %v8389_v19, %v17140_v15  ;;  %v8647_v27 = vpop.f32.mrf.mxu1  ;;  %14418 = vmatpush3.bf16.msra.mxu1 %v15598_v40  ;;  %14371 = vmatprep.subr.bf16.mxu0 %v15599_v1  ;;  %v10064_v9 = vld [vmem:[#allocation2 + $0x2c8] sm:$0xff] }
 0x76f   : > { %v14004_v38 = vpop.f32.mrf.mxu0  ;;  %14419 = vmatprep.subr.bf16.mxu1 %v15600_v57 }
 0x770   : > { %v17273_v14 = vadd.f32 %v8647_v27, %v8492_v17  ;;  %v8495_v15 = vadd.f32 %v14004_v38, %v17145_v23  ;;  %v14052_v44 = vpop.f32.mrf.mxu1  ;;  %v15604_v23 = vld [vmem:[%s18108_s4 + $0x340] sm:$0xff]  }
 0x771   : > { %v8392_v40 = vpop.f32.mrf.mxu0  ;;  %14372 = vmatpush3.bf16.msra.mxu0 %v15599_v1  ;;  %v10067_v17 = vld [vmem:[#allocation2 + $0x60] sm:$0xff] }
 0x772   : > { %v17276_v48 = vadd.f32 %v14052_v44, %v8495_v15  ;;  %v8493_v50 = vadd.f32 %v8392_v40, %v17150_v28  ;;  %v8650_v54 = vpop.f32.mrf.mxu1  ;;  %14420 = vmatpush3.bf16.msra.mxu1 %v15600_v57  ;;  %14373 = vmatprep.subr.bf16.mxu0 %v15601_v5  ;;  %v10016_v28 = vld [vmem:[#allocation2 + $0x7b8] sm:$0xff]  ;;  %v10017_v57 = vld [vmem:[#allocation2 + $0x6b0] sm:$0xff]  ;;  %v10088_v44 = vpack.c.bf16 %v10067_v17, %v10066_v16 }
 0x773   : > { %v14007_v24 = vpop.f32.mrf.mxu0  ;;  %14294 = vmatmul.mubr.bf16.gmra.mxu0 %v10037_v39  ;;  %14421 = vmatprep.subr.bf16.mxu1 %v15602_v41  ;;  %v10039_v31 = vpack.c.bf16 %v10017_v57, %v10016_v28  ;;  %v10087_v39 = vpack.c.bf16 %v10065_v62, %v10064_v9  ;;  %v10023_v28 = vld [vmem:[#allocation2 + $0x5c0] sm:$0xff]  ;;  %v10070_v62 = vld [vmem:[#allocation2 + $0xfb8] sm:$0xff] }
 0x774   : > { %v17285_v0 = vadd.f32 %v8650_v54, %v8493_v50  ;;  %v8498_v1 = vadd.f32 %v14007_v24, %v17155_v34  ;;  %v14055_v4 = vpop.f32.mrf.mxu1  ;;  %14342 = vmatmul.mubr.bf16.gmra.mxu1 %v10085_v46  ;;  %14297 = vmatprep.mubr.bf16.mxu0 %v10038_v52  ;;  %v17294_v34 = vld [vmem:[%s18108_s4 + $0x1b8] sm:$0xff]  }
 0x775   : > { %v8405_v10 = vpop.f32.mrf.mxu0  ;;  %14345 = vmatprep.mubr.bf16.mxu1 %v10086_v51  ;;  %14374 = vmatpush3.bf16.msra.mxu0 %v15601_v5  ;;  %v10021_v24 = vld [vmem:[#allocation2 + $0x498] sm:$0xff] }
 0x776   : > { %v17288_v19 = vadd.f32 %v14055_v4, %v8498_v1  ;;  %v8496_v36 = vadd.f32 %v8405_v10, %v17162_v47  ;;  %v8663_v21 = vpop.f32.mrf.mxu1  ;;  %14422 = vmatpush3.bf16.msra.mxu1 %v15602_v41  ;;  %14375 = vmatprep.subr.bf16.mxu0 %v15603_v59  ;;  %v10040_v41 = vpack.c.bf16 %v10019_v13, %v10018_v29  ;;  %v10068_v1 = vld [vmem:[#allocation2 + $0x6c0] sm:$0xff]  ;;  %v10071_v29 = vld [vmem:[#allocation2 + $0xb0] sm:$0xff] }
 0x777   : > { %v14008_v27 = vpop.f32.mrf.mxu0  ;;  %14423 = vmatprep.subr.bf16.mxu1 %v15604_v23 }
 0x778   : > { %v17301_v5 = vadd.f32 %v8663_v21, %v8496_v36  ;;  %v8499_v47 = vadd.f32 %v14008_v27, %v17169_v55  ;;  %v14056_v38 = vpop.f32.mrf.mxu1 }
 0x779   : > { %v8408_v15 = vpop.f32.mrf.mxu0  ;;  %14376 = vmatpush3.bf16.msra.mxu0 %v15603_v59  ;;  %v10020_v59 = vld [vmem:[#allocation2 + $0xd00] sm:$0xff] }
 0x77a   : > { %v17304_v46 = vadd.f32 %v14056_v38, %v8499_v47  ;;  %v8497_v52 = vadd.f32 %v8408_v15, %v17172_v60  ;;  %v8666_v40 = vpop.f32.mrf.mxu1  ;;  %14424 = vmatpush3.bf16.msra.mxu1 %v15604_v23  ;;  %14457 = vmatprep.subr.bf16.mxu0 %v17294_v34  ;;  %v10069_v60 = vld [vmem:[#allocation2 + $0xae8] sm:$0xff]  ;;  %v10090_v47 = vpack.c.bf16 %v10071_v29, %v10070_v62 }
 0x77b   : > { %v14011_v51 = vpop.f32.mrf.mxu0  ;;  %14298 = vmatmul.mubr.bf16.gmra.mxu0 %v10039_v31  ;;  %14505 = vmatprep.subr.bf16.mxu1 %v17299_v35  ;;  %v10022_v23 = vld [vmem:[#allocation2 + $0x688] sm:$0xff]  ;;  %v10089_v17 = vpack.c.bf16 %v10069_v60, %v10068_v1  ;;  %v10074_v60 = vld [vmem:[#allocation2 + $0x1d0] sm:$0xff] }
 0x77c   : > { %v17309_v50 = vadd.f32 %v8666_v40, %v8497_v52  ;;  %v8502_v55 = vadd.f32 %v14011_v51, %v17175_v3  ;;  %v14059_v54 = vpop.f32.mrf.mxu1  ;;  %14346 = vmatmul.mubr.bf16.gmra.mxu1 %v10087_v39  ;;  %14301 = vmatprep.mubr.bf16.mxu0 %v10040_v41  ;;  %v10041_v3 = vpack.c.bf16 %v10021_v24, %v10020_v59  ;;  %v10025_v40 = vld [vmem:[#allocation2 + $0x478] sm:$0xff]  ;;  %v10027_v24 = vld [vmem:[#allocation2 + $0xc70] sm:$0xff] }
 0x77d   : > { %v8421_v4 = vpop.f32.mrf.mxu0  ;;  %14349 = vmatprep.mubr.bf16.mxu1 %v10088_v44  ;;  %v10042_v27 = vpack.c.bf16 %v10023_v28, %v10022_v23  ;;  %v10072_v51 = vld [vmem:[#allocation2 + $0xdd8] sm:$0xff]  ;;  %v10075_v23 = vld [vmem:[#allocation2 + $0xdd0] sm:$0xff] }
 0x77e   : > { %v17312_v57 = vadd.f32 %v14059_v54, %v8502_v55  ;;  %v8500_v9 = vadd.f32 %v8421_v4, %v17177_v12  ;;  %v8679_v10 = vpop.f32.mrf.mxu1  ;;  %v10073_v54 = vld [vmem:[#allocation2 + $0xa30] sm:$0xff]  ;;  %v10026_v59 = vld [vmem:[#allocation2 + $0x6f8] sm:$0xff] }
 0x77f   : > { %v14012_v13 = vpop.f32.mrf.mxu0  ;;  %v10091_v29 = vpack.c.bf16 %v10073_v54, %v10072_v51  ;;  %v10658_v54 = vld [vmem:[#allocation2 + $0x198] sm:$0xff] }
 0x780   : > { %v17315_v36 = vadd.f32 %v8679_v10, %v8500_v9  ;;  %v8503_v21 = vadd.f32 %v14012_v13, %v17179_v22  ;;  %v14060_v16 = vpop.f32.mrf.mxu1  ;;  %v10024_v22 = vld [vmem:[#allocation2 + $0x858] sm:$0xff]  ;;  %v10044_v13 = vpack.c.bf16 %v10027_v24, %v10026_v59  ;;  %v10659_v59 = vld [vmem:[#allocation2 + $0xcd0] sm:$0xff] }
 0x781   : > { %v8424_v31 = vpop.f32.mrf.mxu0 }
 0x782   : > { %v17318_v38 = vadd.f32 %v14060_v16, %v8503_v21  ;;  %v8501_v39 = vadd.f32 %v8424_v31, %v17181_v26  ;;  %v8682_v41 = vpop.f32.mrf.mxu1  ;;  %v10092_v21 = vpack.c.bf16 %v10075_v23, %v10074_v60 }
 0x783   : > { %v14015_v12 = vpop.f32.mrf.mxu0  ;;  %14302 = vmatmul.mubr.bf16.gmra.mxu0 %v10041_v3 }
 0x784   : > { %v17321_v15 = vadd.f32 %v8682_v41, %v8501_v39  ;;  %v8506_v44 = vadd.f32 %v14015_v12, %v17183_v37  ;;  %v14063_v52 = vpop.f32.mrf.mxu1  ;;  %14350 = vmatmul.mubr.bf16.gmra.mxu1 %v10089_v17  ;;  %14305 = vmatprep.mubr.bf16.mxu0 %v10042_v27  ;;  %v10043_v37 = vpack.c.bf16 %v10025_v40, %v10024_v22  ;;  %v10029_v41 = vld [vmem:[#allocation2 + $0x1f8] sm:$0xff]  ;;  %v10076_v12 = vld [vmem:[#allocation2 + $0x3a0] sm:$0xff]  ;;  %v10611_v40 = vld [vmem:[#allocation2 + $0x788] sm:$0xff] }
 0x785   : > { %v8437_v55 = vpop.f32.mrf.mxu0  ;;  %14353 = vmatprep.mubr.bf16.mxu1 %v10090_v47  ;;  %v10610_v22 = vld [vmem:[#allocation2 + $0xbc0] sm:$0xff] }
 0x786   : > { %v17324_v1 = vadd.f32 %v14063_v52, %v8506_v44  ;;  %v8504_v26 = vadd.f32 %v8437_v55, %v17185_v45  ;;  %v8695_v4 = vpop.f32.mrf.mxu1  ;;  %v10077_v52 = vld [vmem:[#allocation2 + $0x9b8] sm:$0xff] }
 0x787   : > { %v14016_v28 = vpop.f32.mrf.mxu0  ;;  %v10093_v23 = vpack.c.bf16 %v10077_v52, %v10076_v12  ;;  %v10614_v12 = vld [vmem:[#allocation2 + $0x38] sm:$0xff] }
 0x788   : > { %v17327_v9 = vadd.f32 %v8695_v4, %v8504_v26  ;;  %v8507_v10 = vadd.f32 %v14016_v28, %v17187_v56  ;;  %v14064_v62 = vpop.f32.mrf.mxu1  ;;  %v10028_v56 = vld [vmem:[#allocation2 + $0x780] sm:$0xff]  ;;  %v10642_v28 = vpack.c.bf16 %v10611_v40, %v10610_v22  ;;  %v10662_v40 = vld [vmem:[#allocation2 + $0x1f0] sm:$0xff] }
 0x789   : > { %v8440_v3 = vpop.f32.mrf.mxu0 }
 0x78a   : > { %v17330_v16 = vadd.f32 %v14064_v62, %v8507_v10  ;;  %v8505_v17 = vadd.f32 %v8440_v3, %v17189_v63  ;;  %v8698_v27 = vpop.f32.mrf.mxu1  ;;  %v10690_v10 = vpack.c.bf16 %v10659_v59, %v10658_v54 }
 0x78b   : > { %v14019_v45 = vpop.f32.mrf.mxu0  ;;  %14306 = vmatmul.mubr.bf16.gmra.mxu0 %v10043_v37 }
 0x78c   : > { %v17333_v31 = vadd.f32 %v8698_v27, %v8505_v17  ;;  %v8510_v47 = vadd.f32 %v14019_v45, %v17191_v7  ;;  %v14067_v39 = vpop.f32.mrf.mxu1  ;;  %14354 = vmatmul.mubr.bf16.gmra.mxu1 %v10091_v29  ;;  %14309 = vmatprep.mubr.bf16.mxu0 %v10044_v13  ;;  %v10045_v7 = vpack.c.bf16 %v10029_v41, %v10028_v56  ;;  %v10613_v27 = vld [vmem:[#allocation2 + $0x4c8] sm:$0xff] }
 0x78d   : > { %v8453_v44 = vpop.f32.mrf.mxu0  ;;  %14357 = vmatprep.mubr.bf16.mxu1 %v10092_v21 }
 0x78e   : > { %v17336_v51 = vadd.f32 %v14067_v39, %v8510_v47  ;;  %v8508_v63 = vadd.f32 %v8453_v44, %v17193_v20  ;;  %v8711_v55 = vpop.f32.mrf.mxu1  ;;  %v10660_v47 = vld [vmem:[#allocation2 + $0x5f0] sm:$0xff]  ;;  %v10661_v39 = vld [vmem:[#allocation2 + $0x7a0] sm:$0xff] }
 0x78f   : > { %v14020_v24 = vpop.f32.mrf.mxu0  ;;  %v10615_v44 = vld [vmem:[#allocation2 + $0x3b0] sm:$0xff]  ;;  %v10691_v59 = vpack.c.bf16 %v10661_v39, %v10660_v47  ;;  %v15609_v47 = vld [vmem:[%s18108_s4 + $0x1a8] sm:$0xff]  }
 0x790   : > { %v17339_v26 = vadd.f32 %v8711_v55, %v8508_v63  ;;  %v8511_v4 = vadd.f32 %v14020_v24, %v17195_v30  ;;  %v14068_v60 = vpop.f32.mrf.mxu1  ;;  %v10612_v30 = vld [vmem:[#allocation2 + $0x4b8] sm:$0xff] }
 0x791   : > { %v8456_v37 = vpop.f32.mrf.mxu0  ;;  %v10643_v22 = vpack.c.bf16 %v10613_v27, %v10612_v30  ;;  %v10618_v27 = vld [vmem:[#allocation2 + $0xba8] sm:$0xff] }
 0x792   : > { %v17342_v62 = vadd.f32 %v14068_v60, %v8511_v4  ;;  %v8509_v29 = vadd.f32 %v8456_v37, %v17197_v32  ;;  %v8714_v13 = vpop.f32.mrf.mxu1 }
 0x793   : > { %v14023_v20 = vpop.f32.mrf.mxu0  ;;  %14310 = vmatmul.mubr.bf16.gmra.mxu0 %v10045_v7  ;;  %v10644_v7 = vpack.c.bf16 %v10615_v44, %v10614_v12 }
 0x794   : > { %v17345_v3 = vadd.f32 %v8714_v13, %v8509_v29  ;;  %v8514_v21 = vadd.f32 %v14023_v20, %v17199_v43  ;;  %v14071_v17 = vpop.f32.mrf.mxu1  ;;  %14358 = vmatmul.mubr.bf16.gmra.mxu1 %v10093_v23  ;;  %14377 = vmatprep.mubr.bf16.mxu0 %v10642_v28  ;;  %v10663_v43 = vld [vmem:[#allocation2 + $0xd88] sm:$0xff]  ;;  %v15607_v28 = vld [vmem:[%s18108_s4 + $0x1b0] sm:$0xff]  }
 0x795   : > { %v8469_v45 = vpop.f32.mrf.mxu0  ;;  %14425 = vmatprep.mubr.bf16.mxu1 %v10690_v10  ;;  %v10692_v23 = vpack.c.bf16 %v10663_v43, %v10662_v40  ;;  %v10616_v10 = vld [vmem:[#allocation2 + $0x7c8] sm:$0xff] }
 0x796   : > { %v17348_v56 = vadd.f32 %v14071_v17, %v8514_v21  ;;  %v8512_v32 = vadd.f32 %v8469_v45, %v17201_v58  ;;  %v8727_v41 = vpop.f32.mrf.mxu1  ;;  %v10664_v21 = vld [vmem:[#allocation2 + $0xef0] sm:$0xff]  ;;  %v10665_v17 = vld [vmem:[#allocation2 + $0x148] sm:$0xff] }
 0x797   : > { %v14024_v52 = vpop.f32.mrf.mxu0  ;;  %v10619_v45 = vld [vmem:[#allocation2 + $0x9c8] sm:$0xff]  ;;  %v10693_v43 = vpack.c.bf16 %v10665_v17, %v10664_v21  ;;  %v10623_v21 = vld [vmem:[#allocation2 + $0xb98] sm:$0xff] }
 0x798   : > { %v17351_v63 = vadd.f32 %v8727_v41, %v8512_v32  ;;  %v8515_v55 = vadd.f32 %v14024_v52, %v17203_v6  ;;  %v14072_v54 = vpop.f32.mrf.mxu1  ;;  %v15608_v6 = vld [vmem:[%s18108_s4 + $0x3b0] sm:$0xff]   ;;  %v10667_v41 = vld [vmem:[#allocation2 + $0xf58] sm:$0xff] }
 0x799   : > { %v8472_v24 = vpop.f32.mrf.mxu0 }
 0x79a   : > { %v17354_v4 = vadd.f32 %v14072_v54, %v8515_v55  ;;  %v8513_v60 = vadd.f32 %v8472_v24, %v17208_v18  ;;  %v8730_v58 = vpop.f32.mrf.mxu1  ;;  %v10617_v18 = vld [vmem:[#allocation2 + $0xd90] sm:$0xff] }
 0x79b   : > { %v14091_v37 = vpop.f32.mrf.mxu0  ;;  %14378 = vmatmul.mubr.bf16.vlgmr.msra.gmra.mxu0 %v10643_v22  ;;  %v10645_v44 = vpack.c.bf16 %v10617_v18, %v10616_v10  ;;  %v10621_v10 = vld [vmem:[#allocation2 + $0x5d0] sm:$0xff]  ;;  %v10622_v18 = vld [vmem:[#allocation2 + $0xfe0] sm:$0xff] }
 0x79c   : > { %v17363_v29 = vadd.f32 %v8730_v58, %v8513_v60  ;;  %v9098_v13 = vadd.f32 %v14091_v37, %v17219_v42  ;;  %v14139_v20 = vpop.f32.mrf.mxu1  ;;  %14426 = vmatmul.mubr.bf16.vlgmr.msra.gmra.mxu1 %v10691_v59  ;;  %14458 = vmatpush3.bf16.msra.mxu0 %v17294_v34  ;;  %v10666_v34 = vld [vmem:[#allocation2 + $0x6b8] sm:$0xff]  ;;  %v15611_v60 = vld [vmem:[%s18108_s4 + $0x1a0] sm:$0xff]  }
 0x79d   : > { %v8969_v30 = vpop.f32.mrf.mxu0  ;;  %14506 = vmatpush3.bf16.msra.mxu1 %v17299_v35  ;;  %14381 = vmatprep.mubr.bf16.mxu0 %v10644_v7  ;;  %v15610_v35 = vld [vmem:[%s18108_s4 + $0x3a8] sm:$0xff]   ;;  %v10694_v54 = vpack.c.bf16 %v10667_v41, %v10666_v34 }
 0x79e   : > { %v17371_v39 = vadd.f32 %v14139_v20, %v9098_v13  ;;  %v9096_v42 = vadd.f32 %v8969_v30, %v17225_v53  ;;  %v9227_v32 = vpop.f32.mrf.mxu1  ;;  %14429 = vmatprep.mubr.bf16.mxu1 %v10692_v23  ;;  %14459 = vmatprep.subr.bf16.mxu0 %v15607_v28  ;;  %v10646_v53 = vpack.c.bf16 %v10619_v45, %v10618_v27  ;;  %v10669_v20 = vld [vmem:[#allocation2 + $0xe70] sm:$0xff] }
 0x79f   : > { %v14092_v12 = vpop.f32.mrf.mxu0  ;;  %14507 = vmatprep.subr.bf16.mxu1 %v15608_v6  ;;  %v10670_v45 = vld [vmem:[#allocation2 + $0x7d0] sm:$0xff] }
 0x7a0   : > { %v17377_v52 = vadd.f32 %v9227_v32, %v9096_v42  ;;  %v9099_v22 = vadd.f32 %v14092_v12, %v17228_v2  ;;  %v14140_v40 = vpop.f32.mrf.mxu1  ;;  %14460 = vmatpush3.bf16.msra.mxu0 %v15607_v28  ;;  %v15612_v2 = vld [vmem:[%s18108_s4 + $0x3a0] sm:$0xff]   ;;  %v15613_v42 = vld [vmem:[%s18108_s4 + $0x198] sm:$0xff]  }
 0x7a1   : > { %v8972_v55 = vpop.f32.mrf.mxu0  ;;  %14508 = vmatpush3.bf16.msra.mxu1 %v15608_v6  ;;  %14461 = vmatprep.subr.bf16.mxu0 %v15609_v47  ;;  %v10668_v6 = vld [vmem:[#allocation2 + $0xa70] sm:$0xff] }
 0x7a2   : > { %v17380_v59 = vadd.f32 %v14140_v40, %v9099_v22  ;;  %v9097_v24 = vadd.f32 %v8972_v55, %v17237_v11  ;;  %v9230_v7 = vpop.f32.mrf.mxu1  ;;  %14509 = vmatprep.subr.bf16.mxu1 %v15610_v35  ;;  %v10620_v11 = vld [vmem:[#allocation2 + $0x2f0] sm:$0xff] }
 0x7a3   : > { %v14095_v58 = vpop.f32.mrf.mxu0  ;;  %14382 = vmatmul.mubr.bf16.gmra.mxu0 %v10645_v44  ;;  %v10647_v34 = vpack.c.bf16 %v10621_v10, %v10620_v11  ;;  %v10648_v44 = vpack.c.bf16 %v10623_v21, %v10622_v18  ;;  %v10673_v11 = vld [vmem:[#allocation2 + $0x9f0] sm:$0xff]  ;;  %v10626_v10 = vld [vmem:[#allocation2 + $0x568] sm:$0xff]  ;;  %v10674_v21 = vld [vmem:[#allocation2 + $0x6a0] sm:$0xff] }
 0x7a4   : > { %v17389_v23 = vadd.f32 %v9230_v7, %v9097_v24  ;;  %v9102_v28 = vadd.f32 %v14095_v58, %v17240_v33  ;;  %v14143_v37 = vpop.f32.mrf.mxu1  ;;  %14430 = vmatmul.mubr.bf16.gmra.mxu1 %v10693_v43  ;;  %14385 = vmatprep.mubr.bf16.mxu0 %v10646_v53  ;;  %v10671_v33 = vld [vmem:[#allocation2 + $0xe18] sm:$0xff] }
 0x7a5   : > { %v8985_v13 = vpop.f32.mrf.mxu0  ;;  %14433 = vmatprep.mubr.bf16.mxu1 %v10694_v54  ;;  %14462 = vmatpush3.bf16.msra.mxu0 %v15609_v47  ;;  %v15614_v47 = vld [vmem:[%s18108_s4 + $0x398] sm:$0xff]   ;;  %v10696_v40 = vpack.c.bf16 %v10671_v33, %v10670_v45  ;;  %v15615_v54 = vld [vmem:[%s18108_s4 + $0x190] sm:$0xff]   ;;  %v15618_v33 = vld [vmem:[%s18108_s4 + $0x388] sm:$0xff]  }
 0x7a6   : > { %v17392_v17 = vadd.f32 %v14143_v37, %v9102_v28  ;;  %v9100_v30 = vadd.f32 %v8985_v13, %v17249_v49  ;;  %v9243_v27 = vpop.f32.mrf.mxu1  ;;  %14510 = vmatpush3.bf16.msra.mxu1 %v15610_v35  ;;  %14463 = vmatprep.subr.bf16.mxu0 %v15611_v60  ;;  %v10695_v35 = vpack.c.bf16 %v10669_v20, %v10668_v6  ;;  %v10672_v28 = vld [vmem:[#allocation2 + $0x518] sm:$0xff]  ;;  %v10627_v6 = vld [vmem:[#allocation2 + $0xb30] sm:$0xff] }
 0x7a7   : > { %v14096_v32 = vpop.f32.mrf.mxu0  ;;  %14511 = vmatprep.subr.bf16.mxu1 %v15612_v2 }
 0x7a8   : > { %v17401_v41 = vadd.f32 %v9243_v27, %v9100_v30  ;;  %v9103_v49 = vadd.f32 %v14096_v32, %v17252_v61  ;;  %v14144_v12 = vpop.f32.mrf.mxu1  ;;  %v15616_v61 = vld [vmem:[%s18108_s4 + $0x390] sm:$0xff]  }
 0x7a9   : > { %v8988_v22 = vpop.f32.mrf.mxu0  ;;  %14464 = vmatpush3.bf16.msra.mxu0 %v15611_v60  ;;  %v10675_v30 = vld [vmem:[#allocation2 + $0xf0] sm:$0xff] }
 0x7aa   : > { %v17404_v43 = vadd.f32 %v14144_v12, %v9103_v49  ;;  %v9101_v53 = vadd.f32 %v8988_v22, %v17261_v8  ;;  %v9246_v55 = vpop.f32.mrf.mxu1  ;;  %14512 = vmatpush3.bf16.msra.mxu1 %v15612_v2  ;;  %14465 = vmatprep.subr.bf16.mxu0 %v15613_v42  ;;  %v10624_v8 = vld [vmem:[#allocation2 + $0x840] sm:$0xff]  ;;  %v10625_v2 = vld [vmem:[#allocation2 + $0x768] sm:$0xff]  ;;  %v10650_v49 = vpack.c.bf16 %v10627_v6, %v10626_v10 }
 0x7ab   : > { %v14099_v24 = vpop.f32.mrf.mxu0  ;;  %14386 = vmatmul.mubr.bf16.gmra.mxu0 %v10647_v34  ;;  %14513 = vmatprep.subr.bf16.mxu1 %v15614_v47  ;;  %v10649_v45 = vpack.c.bf16 %v10625_v2, %v10624_v8  ;;  %v10697_v34 = vpack.c.bf16 %v10673_v11, %v10672_v28  ;;  %v10698_v12 = vpack.c.bf16 %v10675_v30, %v10674_v21  ;;  %v10677_v8 = vld [vmem:[#allocation2 + $0x58] sm:$0xff]  ;;  %v10630_v2 = vld [vmem:[#allocation2 + $0xf00] sm:$0xff]  ;;  %v10631_v28 = vld [vmem:[#allocation2 + $0xd08] sm:$0xff] }
 0x7ac   : > { %v17413_v7 = vadd.f32 %v9246_v55, %v9101_v53  ;;  %v9106_v60 = vadd.f32 %v14099_v24, %v17264_v25  ;;  %v14147_v58 = vpop.f32.mrf.mxu1  ;;  %14434 = vmatmul.mubr.bf16.gmra.mxu1 %v10695_v35  ;;  %14389 = vmatprep.mubr.bf16.mxu0 %v10648_v44  ;;  %v15617_v25 = vld [vmem:[%s18108_s4 + $0x188] sm:$0xff]   ;;  %v17451_v30 = vld [vmem:[%s18108_s4 + $0x3f8] sm:$0xff]  }
 0x7ad   : > { %v9001_v37 = vpop.f32.mrf.mxu0  ;;  %14437 = vmatprep.mubr.bf16.mxu1 %v10696_v40  ;;  %14466 = vmatpush3.bf16.msra.mxu0 %v15613_v42  ;;  %v15619_v40 = vld [vmem:[%s18108_s4 + $0x180] sm:$0xff]   ;;  %v10678_v6 = vld [vmem:[#allocation2 + $0x28] sm:$0xff] }
 0x7ae   : > { %v17416_v13 = vadd.f32 %v14147_v58, %v9106_v60  ;;  %v9104_v20 = vadd.f32 %v9001_v37, %v17273_v14  ;;  %v9259_v18 = vpop.f32.mrf.mxu1  ;;  %14514 = vmatpush3.bf16.msra.mxu1 %v15614_v47  ;;  %14467 = vmatprep.subr.bf16.mxu0 %v15615_v54  ;;  %v10676_v60 = vld [vmem:[#allocation2 + $0x218] sm:$0xff] }
 0x7af   : > { %v14100_v27 = vpop.f32.mrf.mxu0  ;;  %14515 = vmatprep.subr.bf16.mxu1 %v15616_v61 }
 0x7b0   : > { %v17425_v42 = vadd.f32 %v9259_v18, %v9104_v20  ;;  %v9107_v14 = vadd.f32 %v14100_v27, %v17276_v48  ;;  %v14148_v32 = vpop.f32.mrf.mxu1  ;;  %v15620_v48 = vld [vmem:[%s18108_s4 + $0x380] sm:$0xff]   ;;  %v10679_v20 = vld [vmem:[#allocation2 + $0xc18] sm:$0xff] }
 0x7b1   : > { %v9004_v47 = vpop.f32.mrf.mxu0  ;;  %14468 = vmatpush3.bf16.msra.mxu0 %v15615_v54 }
 0x7b2   : > { %v17428_v35 = vadd.f32 %v14148_v32, %v9107_v14  ;;  %v9105_v44 = vadd.f32 %v9004_v47, %v17285_v0  ;;  %v9262_v22 = vpop.f32.mrf.mxu1  ;;  %14516 = vmatpush3.bf16.msra.mxu1 %v15616_v61  ;;  %14469 = vmatprep.subr.bf16.mxu0 %v15617_v25  ;;  %v10628_v0 = vld [vmem:[#allocation2 + $0x9f8] sm:$0xff]  ;;  %v10700_v32 = vpack.c.bf16 %v10679_v20, %v10678_v6 }
 0x7b3   : > { %v14103_v53 = vpop.f32.mrf.mxu0  ;;  %14390 = vmatmul.mubr.bf16.gmra.mxu0 %v10649_v45  ;;  %14517 = vmatprep.subr.bf16.mxu1 %v15618_v33  ;;  %v10629_v61 = vld [vmem:[#allocation2 + $0x138] sm:$0xff]  ;;  %v10699_v45 = vpack.c.bf16 %v10677_v8, %v10676_v60  ;;  %v10682_v8 = vld [vmem:[#allocation2 + $0x10] sm:$0xff] }
 0x7b4   : > { %v17437_v55 = vadd.f32 %v9262_v22, %v9105_v44  ;;  %v9110_v54 = vadd.f32 %v14103_v53, %v17288_v19  ;;  %v14151_v24 = vpop.f32.mrf.mxu1  ;;  %14438 = vmatmul.mubr.bf16.gmra.mxu1 %v10697_v34  ;;  %14393 = vmatprep.mubr.bf16.mxu0 %v10650_v49  ;;  %v17446_v19 = vld [vmem:[%s18108_s4 + $0x1f8] sm:$0xff]   ;;  %v10651_v21 = vpack.c.bf16 %v10629_v61, %v10628_v0  ;;  %v10633_v53 = vld [vmem:[#allocation2 + $0xc28] sm:$0xff]  ;;  %v10635_v0 = vld [vmem:[#allocation2 + $0x970] sm:$0xff] }
 0x7b5   : > { %v9017_v58 = vpop.f32.mrf.mxu0  ;;  %14441 = vmatprep.mubr.bf16.mxu1 %v10698_v12  ;;  %14470 = vmatpush3.bf16.msra.mxu0 %v15617_v25 }
 0x7b6   : > { %v17440_v37 = vadd.f32 %v14151_v24, %v9110_v54  ;;  %v9108_v11 = vadd.f32 %v9017_v58, %v17301_v5  ;;  %v9275_v10 = vpop.f32.mrf.mxu1  ;;  %14518 = vmatpush3.bf16.msra.mxu1 %v15618_v33  ;;  %14471 = vmatprep.subr.bf16.mxu0 %v15619_v40  ;;  %v10652_v33 = vpack.c.bf16 %v10631_v28, %v10630_v2  ;;  %v10680_v54 = vld [vmem:[#allocation2 + $0x290] sm:$0xff]  ;;  %v10683_v2 = vld [vmem:[#allocation2 + $0xa68] sm:$0xff] }
 0x7b7   : > { %v14104_v18 = vpop.f32.mrf.mxu0  ;;  %14519 = vmatprep.subr.bf16.mxu1 %v15620_v48 }
 0x7b8   : > { %v17453_v25 = vadd.f32 %v9275_v10, %v9108_v11  ;;  %v9111_v5 = vadd.f32 %v14104_v18, %v17304_v46  ;;  %v14152_v27 = vpop.f32.mrf.mxu1 }
 0x7b9   : > { %v9020_v14 = vpop.f32.mrf.mxu0  ;;  %14472 = vmatpush3.bf16.msra.mxu0 %v15619_v40  ;;  %v10632_v40 = vld [vmem:[#allocation2 + $0xe00] sm:$0xff] }
 0x7ba   : > { %v17456_v34 = vadd.f32 %v14152_v27, %v9111_v5  ;;  %v9109_v49 = vadd.f32 %v9020_v14, %v17309_v50  ;;  %v9278_v47 = vpop.f32.mrf.mxu1  ;;  %14520 = vmatpush3.bf16.msra.mxu1 %v15620_v48  ;;  %14553 = vmatprep.subr.bf16.mxu0 %v17446_v19  ;;  %v10681_v50 = vld [vmem:[#allocation2 + $0x4e0] sm:$0xff]  ;;  %v10702_v5 = vpack.c.bf16 %v10683_v2, %v10682_v8 }
 0x7bb   : > { %v14107_v12 = vpop.f32.mrf.mxu0  ;;  %14394 = vmatmul.mubr.bf16.gmra.mxu0 %v10651_v21  ;;  %14601 = vmatprep.subr.bf16.mxu1 %v17451_v30  ;;  %v10634_v48 = vld [vmem:[#allocation2 + $0x6e0] sm:$0xff]  ;;  %v10701_v20 = vpack.c.bf16 %v10681_v50, %v10680_v54  ;;  %v10686_v50 = vld [vmem:[#allocation2 + $0x108] sm:$0xff] }
 0x7bc   : > { %v17461_v44 = vadd.f32 %v9278_v47, %v9109_v49  ;;  %v9114_v46 = vadd.f32 %v14107_v12, %v17312_v57  ;;  %v14155_v22 = vpop.f32.mrf.mxu1  ;;  %14442 = vmatmul.mubr.bf16.gmra.mxu1 %v10699_v45  ;;  %14397 = vmatprep.mubr.bf16.mxu0 %v10652_v33  ;;  %v10653_v57 = vpack.c.bf16 %v10633_v53, %v10632_v40  ;;  %v10637_v47 = vld [vmem:[#allocation2 + $0xb50] sm:$0xff]  ;;  %v10638_v40 = vld [vmem:[#allocation2 + $0x920] sm:$0xff]  ;;  %v10639_v53 = vld [vmem:[#allocation2 + $0xef8] sm:$0xff] }
 0x7bd   : > { %v9033_v24 = vpop.f32.mrf.mxu0  ;;  %14445 = vmatprep.mubr.bf16.mxu1 %v10700_v32  ;;  %v10654_v18 = vpack.c.bf16 %v10635_v0, %v10634_v48  ;;  %v10684_v12 = vld [vmem:[#allocation2 + $0xf30] sm:$0xff]  ;;  %v10687_v48 = vld [vmem:[#allocation2 + $0x778] sm:$0xff] }
 0x7be   : > { %v17464_v61 = vadd.f32 %v14155_v22, %v9114_v46  ;;  %v9112_v60 = vadd.f32 %v9033_v24, %v17315_v36  ;;  %v9291_v58 = vpop.f32.mrf.mxu1  ;;  %v10685_v22 = vld [vmem:[#allocation2 + $0x680] sm:$0xff] }
 0x7bf   : > { %v14108_v28 = vpop.f32.mrf.mxu0  ;;  %v10703_v2 = vpack.c.bf16 %v10685_v22, %v10684_v12  ;;  %v11270_v22 = vld [vmem:[#allocation2 + $0xaa0] sm:$0xff] }
 0x7c0   : > { %v17467_v11 = vadd.f32 %v9291_v58, %v9112_v60  ;;  %v9115_v10 = vadd.f32 %v14108_v28, %v17318_v38  ;;  %v14156_v6 = vpop.f32.mrf.mxu1  ;;  %v10636_v38 = vld [vmem:[#allocation2 + $0x628] sm:$0xff]  ;;  %v10656_v28 = vpack.c.bf16 %v10639_v53, %v10638_v40  ;;  %v11271_v40 = vld [vmem:[#allocation2 + $0xee0] sm:$0xff] }
 0x7c1   : > { %v9036_v21 = vpop.f32.mrf.mxu0 }
 0x7c2   : > { %v17470_v27 = vadd.f32 %v14156_v6, %v9115_v10  ;;  %v9113_v45 = vadd.f32 %v9036_v21, %v17321_v15  ;;  %v9294_v33 = vpop.f32.mrf.mxu1  ;;  %v10704_v10 = vpack.c.bf16 %v10687_v48, %v10686_v50 }
 0x7c3   : > { %v14111_v36 = vpop.f32.mrf.mxu0  ;;  %14398 = vmatmul.mubr.bf16.gmra.mxu0 %v10653_v57 }
 0x7c4   : > { %v17473_v14 = vadd.f32 %v9294_v33, %v9113_v45  ;;  %v9118_v32 = vadd.f32 %v14111_v36, %v17324_v1  ;;  %v14159_v49 = vpop.f32.mrf.mxu1  ;;  %14446 = vmatmul.mubr.bf16.gmra.mxu1 %v10701_v20  ;;  %14401 = vmatprep.mubr.bf16.mxu0 %v10654_v18  ;;  %v10655_v1 = vpack.c.bf16 %v10637_v47, %v10636_v38  ;;  %v10641_v33 = vld [vmem:[#allocation2 + $0x2e8] sm:$0xff]  ;;  %v11222_v38 = vld [vmem:[#allocation2 + $0x398] sm:$0xff]  ;;  %v11223_v47 = vld [vmem:[#allocation2 + $0xe0] sm:$0xff] }
 0x7c5   : > { %v9049_v46 = vpop.f32.mrf.mxu0  ;;  %14449 = vmatprep.mubr.bf16.mxu1 %v10702_v5  ;;  %v10688_v36 = vld [vmem:[#allocation2 + $0x368] sm:$0xff] }
 0x7c6   : > { %v17476_v54 = vadd.f32 %v14159_v49, %v9118_v32  ;;  %v9116_v15 = vadd.f32 %v9049_v46, %v17327_v9  ;;  %v9307_v24 = vpop.f32.mrf.mxu1  ;;  %v10689_v49 = vld [vmem:[#allocation2 + $0x110] sm:$0xff] }
 0x7c7   : > { %v14112_v0 = vpop.f32.mrf.mxu0  ;;  %v10705_v48 = vpack.c.bf16 %v10689_v49, %v10688_v36  ;;  %v11226_v36 = vld [vmem:[#allocation2 + $0x270] sm:$0xff] }
 0x7c8   : > { %v17479_v60 = vadd.f32 %v9307_v24, %v9116_v15  ;;  %v9119_v58 = vadd.f32 %v14112_v0, %v17330_v16  ;;  %v14160_v8 = vpop.f32.mrf.mxu1  ;;  %v10640_v16 = vld [vmem:[#allocation2 + $0x370] sm:$0xff]  ;;  %v11254_v0 = vpack.c.bf16 %v11223_v47, %v11222_v38  ;;  %v11274_v47 = vld [vmem:[#allocation2 + $0xf68] sm:$0xff] }
 0x7c9   : > { %v9052_v57 = vpop.f32.mrf.mxu0 }
 0x7ca   : > { %v17482_v6 = vadd.f32 %v14160_v8, %v9119_v58  ;;  %v9117_v20 = vadd.f32 %v9052_v57, %v17333_v31  ;;  %v9310_v18 = vpop.f32.mrf.mxu1  ;;  %v11302_v58 = vpack.c.bf16 %v11271_v40, %v11270_v22 }
 0x7cb   : > { %v14115_v9 = vpop.f32.mrf.mxu0  ;;  %14402 = vmatmul.mubr.bf16.gmra.mxu0 %v10655_v1 }
 0x7cc   : > { %v17485_v21 = vadd.f32 %v9310_v18, %v9117_v20  ;;  %v9122_v5 = vadd.f32 %v14115_v9, %v17336_v51  ;;  %v14163_v45 = vpop.f32.mrf.mxu1  ;;  %14450 = vmatmul.mubr.bf16.gmra.mxu1 %v10703_v2  ;;  %14405 = vmatprep.mubr.bf16.mxu0 %v10656_v28  ;;  %v10657_v51 = vpack.c.bf16 %v10641_v33, %v10640_v16  ;;  %v11225_v18 = vld [vmem:[#allocation2 + $0xf90] sm:$0xff] }
 0x7cd   : > { %v9065_v32 = vpop.f32.mrf.mxu0  ;;  %14453 = vmatprep.mubr.bf16.mxu1 %v10704_v10 }
 0x7ce   : > { %v17488_v12 = vadd.f32 %v14163_v45, %v9122_v5  ;;  %v9120_v31 = vadd.f32 %v9065_v32, %v17339_v26  ;;  %v9323_v46 = vpop.f32.mrf.mxu1  ;;  %v11272_v5 = vld [vmem:[#allocation2 + $0x260] sm:$0xff]  ;;  %v11273_v45 = vld [vmem:[#allocation2 + $0x3a8] sm:$0xff]  ;;  %v11227_v32 = vld [vmem:[#allocation2 + $0x8f8] sm:$0xff] }
 0x7cf   : > { %v14116_v53 = vpop.f32.mrf.mxu0  ;;  %v11303_v40 = vpack.c.bf16 %v11273_v45, %v11272_v5  ;;  %v15625_v5 = vld [vmem:[%s18108_s4 + $0x1e8] sm:$0xff]  }
 0x7d0   : > { %v17491_v15 = vadd.f32 %v9323_v46, %v9120_v31  ;;  %v9123_v24 = vadd.f32 %v14116_v53, %v17342_v62  ;;  %v14164_v50 = vpop.f32.mrf.mxu1  ;;  %v11224_v62 = vld [vmem:[#allocation2 + $0x1e0] sm:$0xff] }
 0x7d1   : > { %v9068_v1 = vpop.f32.mrf.mxu0  ;;  %v11255_v38 = vpack.c.bf16 %v11225_v18, %v11224_v62  ;;  %v11230_v18 = vld [vmem:[#allocation2 + $0xb08] sm:$0xff] }
 0x7d2   : > { %v17494_v8 = vadd.f32 %v14164_v50, %v9123_v24  ;;  %v9121_v2 = vadd.f32 %v9068_v1, %v17345_v3  ;;  %v9326_v28 = vpop.f32.mrf.mxu1 }
 0x7d3   : > { %v14119_v26 = vpop.f32.mrf.mxu0  ;;  %14406 = vmatmul.mubr.bf16.gmra.mxu0 %v10657_v51  ;;  %v11256_v51 = vpack.c.bf16 %v11227_v32, %v11226_v36 }
 0x7d4   : > { %v17497_v57 = vadd.f32 %v9326_v28, %v9121_v2  ;;  %v9126_v10 = vadd.f32 %v14119_v26, %v17348_v56  ;;  %v14167_v20 = vpop.f32.mrf.mxu1  ;;  %14454 = vmatmul.mubr.bf16.gmra.mxu1 %v10705_v48  ;;  %14473 = vmatprep.mubr.bf16.mxu0 %v11254_v0  ;;  %v11275_v56 = vld [vmem:[#allocation2 + $0x880] sm:$0xff]  ;;  %v15623_v0 = vld [vmem:[%s18108_s4 + $0x1f0] sm:$0xff]  }
 0x7d5   : > { %v9081_v9 = vpop.f32.mrf.mxu0  ;;  %14521 = vmatprep.mubr.bf16.mxu1 %v11302_v58  ;;  %v11304_v48 = vpack.c.bf16 %v11275_v56, %v11274_v47  ;;  %v11228_v58 = vld [vmem:[#allocation2 + $0x598] sm:$0xff] }
 0x7d6   : > { %v17500_v16 = vadd.f32 %v14167_v20, %v9126_v10  ;;  %v9124_v3 = vadd.f32 %v9081_v9, %v17351_v63  ;;  %v9339_v33 = vpop.f32.mrf.mxu1  ;;  %v11276_v10 = vld [vmem:[#allocation2 + $0x4f0] sm:$0xff]  ;;  %v11231_v9 = vld [vmem:[#allocation2 + $0xde8] sm:$0xff] }
 0x7d7   : > { %v14120_v49 = vpop.f32.mrf.mxu0  ;;  %v11277_v20 = vld [vmem:[#allocation2 + $0x850] sm:$0xff] }
 0x7d8   : > { %v17503_v31 = vadd.f32 %v9339_v33, %v9124_v3  ;;  %v9127_v46 = vadd.f32 %v14120_v49, %v17354_v4  ;;  %v14168_v22 = vpop.f32.mrf.mxu1  ;;  %v15624_v4 = vld [vmem:[%s18108_s4 + $0x3f0] sm:$0xff]   ;;  %v11279_v33 = vld [vmem:[#allocation2 + $0xb38] sm:$0xff]  ;;  %v11305_v56 = vpack.c.bf16 %v11277_v20, %v11276_v10  ;;  %v11235_v10 = vld [vmem:[#allocation2 + $0x268] sm:$0xff] }
 0x7d9   : > { %v9084_v53 = vpop.f32.mrf.mxu0 }
 0x7da   : > { %v17506_v24 = vadd.f32 %v14168_v22, %v9127_v46  ;;  %v9125_v50 = vadd.f32 %v9084_v53, %v17363_v29  ;;  %v9342_v63 = vpop.f32.mrf.mxu1  ;;  %v11229_v29 = vld [vmem:[#allocation2 + $0x750] sm:$0xff] }
 0x7db   : > { %v14187_v1 = vpop.f32.mrf.mxu0  ;;  %14474 = vmatmul.mubr.bf16.vlgmr.msra.gmra.mxu0 %v11255_v38  ;;  %v11257_v32 = vpack.c.bf16 %v11229_v29, %v11228_v58  ;;  %v11233_v58 = vld [vmem:[#allocation2 + $0x9a8] sm:$0xff]  ;;  %v11234_v29 = vld [vmem:[#allocation2 + $0xe98] sm:$0xff] }
 0x7dc   : > { %v17515_v2 = vadd.f32 %v9342_v63, %v9125_v50  ;;  %v9710_v28 = vadd.f32 %v14187_v1, %v17371_v39  ;;  %v14235_v26 = vpop.f32.mrf.mxu1  ;;  %14522 = vmatmul.mubr.bf16.vlgmr.msra.gmra.mxu1 %v11303_v40  ;;  %14554 = vmatpush3.bf16.msra.mxu0 %v17446_v19  ;;  %v11278_v19 = vld [vmem:[#allocation2 + $0xd10] sm:$0xff]  ;;  %v15627_v50 = vld [vmem:[%s18108_s4 + $0x1e0] sm:$0xff]  }
 0x7dd   : > { %v9581_v62 = vpop.f32.mrf.mxu0  ;;  %14602 = vmatpush3.bf16.msra.mxu1 %v17451_v30  ;;  %14477 = vmatprep.mubr.bf16.mxu0 %v11256_v51  ;;  %v15626_v30 = vld [vmem:[%s18108_s4 + $0x3e8] sm:$0xff]   ;;  %v11306_v22 = vpack.c.bf16 %v11279_v33, %v11278_v19 }
 0x7de   : > { %v17523_v45 = vadd.f32 %v14235_v26, %v9710_v28  ;;  %v9708_v39 = vadd.f32 %v9581_v62, %v17377_v52  ;;  %v9839_v3 = vpop.f32.mrf.mxu1  ;;  %14525 = vmatprep.mubr.bf16.mxu1 %v11304_v48  ;;  %14555 = vmatprep.subr.bf16.mxu0 %v15623_v0  ;;  %v11258_v52 = vpack.c.bf16 %v11231_v9, %v11230_v18  ;;  %v11281_v26 = vld [vmem:[#allocation2 + $0x798] sm:$0xff] }
 0x7df   : > { %v14188_v36 = vpop.f32.mrf.mxu0  ;;  %14603 = vmatprep.subr.bf16.mxu1 %v15624_v4  ;;  %v11282_v9 = vld [vmem:[#allocation2 + $0x238] sm:$0xff] }
 0x7e0   : > { %v17529_v49 = vadd.f32 %v9839_v3, %v9708_v39  ;;  %v9711_v38 = vadd.f32 %v14188_v36, %v17380_v59  ;;  %v14236_v47 = vpop.f32.mrf.mxu1  ;;  %14556 = vmatpush3.bf16.msra.mxu0 %v15623_v0  ;;  %v15628_v59 = vld [vmem:[%s18108_s4 + $0x3e0] sm:$0xff]   ;;  %v15629_v39 = vld [vmem:[%s18108_s4 + $0x1d8] sm:$0xff]  }
 0x7e1   : > { %v9584_v46 = vpop.f32.mrf.mxu0  ;;  %14604 = vmatpush3.bf16.msra.mxu1 %v15624_v4  ;;  %14557 = vmatprep.subr.bf16.mxu0 %v15625_v5  ;;  %v11280_v4 = vld [vmem:[#allocation2 + $0x8f0] sm:$0xff] }
 0x7e2   : > { %v17532_v40 = vadd.f32 %v14236_v47, %v9711_v38  ;;  %v9709_v53 = vadd.f32 %v9584_v46, %v17389_v23  ;;  %v9842_v51 = vpop.f32.mrf.mxu1  ;;  %14605 = vmatprep.subr.bf16.mxu1 %v15626_v30  ;;  %v11232_v23 = vld [vmem:[#allocation2 + $0x308] sm:$0xff] }
 0x7e3   : > { %v14191_v63 = vpop.f32.mrf.mxu0  ;;  %14478 = vmatmul.mubr.bf16.gmra.mxu0 %v11257_v32  ;;  %v11259_v19 = vpack.c.bf16 %v11233_v58, %v11232_v23  ;;  %v11260_v32 = vpack.c.bf16 %v11235_v10, %v11234_v29  ;;  %v11285_v23 = vld [vmem:[#allocation2 + $0xd40] sm:$0xff]  ;;  %v11238_v58 = vld [vmem:[#allocation2 + $0x6d0] sm:$0xff] }
 0x7e4   : > { %v17541_v48 = vadd.f32 %v9842_v51, %v9709_v53  ;;  %v9714_v0 = vadd.f32 %v14191_v63, %v17392_v17  ;;  %v14239_v1 = vpop.f32.mrf.mxu1  ;;  %14526 = vmatmul.mubr.bf16.gmra.mxu1 %v11305_v56  ;;  %14481 = vmatprep.mubr.bf16.mxu0 %v11258_v52  ;;  %v11283_v17 = vld [vmem:[#allocation2 + $0xa00] sm:$0xff] }
 0x7e5   : > { %v9597_v28 = vpop.f32.mrf.mxu0  ;;  %14529 = vmatprep.mubr.bf16.mxu1 %v11306_v22  ;;  %14558 = vmatpush3.bf16.msra.mxu0 %v15625_v5  ;;  %v15630_v5 = vld [vmem:[%s18108_s4 + $0x3d8] sm:$0xff]   ;;  %v11308_v47 = vpack.c.bf16 %v11283_v17, %v11282_v9  ;;  %v15631_v22 = vld [vmem:[%s18108_s4 + $0x1d0] sm:$0xff]   ;;  %v11286_v10 = vld [vmem:[#allocation2 + $0xa80] sm:$0xff] }
 0x7e6   : > { %v17544_v20 = vadd.f32 %v14239_v1, %v9714_v0  ;;  %v9712_v62 = vadd.f32 %v9597_v28, %v17401_v41  ;;  %v9855_v18 = vpop.f32.mrf.mxu1  ;;  %14606 = vmatpush3.bf16.msra.mxu1 %v15626_v30  ;;  %14559 = vmatprep.subr.bf16.mxu0 %v15627_v50  ;;  %v11307_v30 = vpack.c.bf16 %v11281_v26, %v11280_v4  ;;  %v11284_v0 = vld [vmem:[#allocation2 + $0xd18] sm:$0xff]  ;;  %v11239_v4 = vld [vmem:[#allocation2 + $0xa60] sm:$0xff]  ;;  %v15634_v17 = vld [vmem:[%s18108_s4 + $0x3c8] sm:$0xff]  }
 0x7e7   : > { %v14192_v3 = vpop.f32.mrf.mxu0  ;;  %14607 = vmatprep.subr.bf16.mxu1 %v15628_v59 }
 0x7e8   : > { %v17553_v33 = vadd.f32 %v9855_v18, %v9712_v62  ;;  %v9715_v41 = vadd.f32 %v14192_v3, %v17404_v43  ;;  %v14240_v36 = vpop.f32.mrf.mxu1  ;;  %v15632_v43 = vld [vmem:[%s18108_s4 + $0x3d0] sm:$0xff]  }
 0x7e9   : > { %v9600_v38 = vpop.f32.mrf.mxu0  ;;  %14560 = vmatpush3.bf16.msra.mxu0 %v15627_v50  ;;  %v11287_v62 = vld [vmem:[#allocation2 + $0x2b0] sm:$0xff] }
 0x7ea   : > { %v17556_v56 = vadd.f32 %v14240_v36, %v9715_v41  ;;  %v9713_v52 = vadd.f32 %v9600_v38, %v17413_v7  ;;  %v9858_v46 = vpop.f32.mrf.mxu1  ;;  %14608 = vmatpush3.bf16.msra.mxu1 %v15628_v59  ;;  %14561 = vmatprep.subr.bf16.mxu0 %v15629_v39  ;;  %v11236_v7 = vld [vmem:[#allocation2 + $0x610] sm:$0xff]  ;;  %v11262_v41 = vpack.c.bf16 %v11239_v4, %v11238_v58  ;;  %v11290_v4 = vld [vmem:[#allocation2 + $0xfa8] sm:$0xff] }
 0x7eb   : > { %v14195_v53 = vpop.f32.mrf.mxu0  ;;  %14482 = vmatmul.mubr.bf16.gmra.mxu0 %v11259_v19  ;;  %14609 = vmatprep.subr.bf16.mxu1 %v15630_v5  ;;  %v11237_v59 = vld [vmem:[#allocation2 + $0x50] sm:$0xff]  ;;  %v11309_v19 = vpack.c.bf16 %v11285_v23, %v11284_v0  ;;  %v11310_v36 = vpack.c.bf16 %v11287_v62, %v11286_v10  ;;  %v11243_v0 = vld [vmem:[#allocation2 + $0xe88] sm:$0xff] }
 0x7ec   : > { %v17565_v51 = vadd.f32 %v9858_v46, %v9713_v52  ;;  %v9718_v50 = vadd.f32 %v14195_v53, %v17416_v13  ;;  %v14243_v63 = vpop.f32.mrf.mxu1  ;;  %14530 = vmatmul.mubr.bf16.gmra.mxu1 %v11307_v30  ;;  %14485 = vmatprep.mubr.bf16.mxu0 %v11260_v32  ;;  %v15633_v13 = vld [vmem:[%s18108_s4 + $0x1c8] sm:$0xff]   ;;  %v11261_v9 = vpack.c.bf16 %v11237_v59, %v11236_v7  ;;  %v11242_v59 = vld [vmem:[#allocation2 + $0x8a0] sm:$0xff] }
 0x7ed   : > { %v9613_v1 = vpop.f32.mrf.mxu0  ;;  %14533 = vmatprep.mubr.bf16.mxu1 %v11308_v47  ;;  %14562 = vmatpush3.bf16.msra.mxu0 %v15629_v39  ;;  %v15635_v47 = vld [vmem:[%s18108_s4 + $0x1c0] sm:$0xff]   ;;  %v11289_v7 = vld [vmem:[#allocation2 + $0xaa8] sm:$0xff] }
 0x7ee   : > { %v17568_v28 = vadd.f32 %v14243_v63, %v9718_v50  ;;  %v9716_v26 = vadd.f32 %v9613_v1, %v17425_v42  ;;  %v9871_v29 = vpop.f32.mrf.mxu1  ;;  %14610 = vmatpush3.bf16.msra.mxu1 %v15630_v5  ;;  %14563 = vmatprep.subr.bf16.mxu0 %v15631_v22  ;;  %v11288_v50 = vld [vmem:[#allocation2 + $0x740] sm:$0xff] }
 0x7ef   : > { %v14196_v18 = vpop.f32.mrf.mxu0  ;;  %14611 = vmatprep.subr.bf16.mxu1 %v15632_v43 }
 0x7f0   : > { %v17577_v39 = vadd.f32 %v9871_v29, %v9716_v26  ;;  %v9719_v42 = vadd.f32 %v14196_v18, %v17428_v35  ;;  %v14244_v3 = vpop.f32.mrf.mxu1  ;;  %v15636_v35 = vld [vmem:[%s18108_s4 + $0x3c0] sm:$0xff]   ;;  %v11291_v26 = vld [vmem:[#allocation2 + $0xa98] sm:$0xff] }
 0x7f1   : > { %v9616_v5 = vpop.f32.mrf.mxu0  ;;  %14564 = vmatpush3.bf16.msra.mxu0 %v15631_v22 }
 0x7f2   : > { %v17580_v30 = vadd.f32 %v14244_v3, %v9719_v42  ;;  %v9717_v32 = vadd.f32 %v9616_v5, %v17437_v55  ;;  %v9874_v38 = vpop.f32.mrf.mxu1  ;;  %14612 = vmatpush3.bf16.msra.mxu1 %v15632_v43  ;;  %14565 = vmatprep.subr.bf16.mxu0 %v15633_v13  ;;  %v11240_v55 = vld [vmem:[#allocation2 + $0x470] sm:$0xff]  ;;  %v11241_v43 = vld [vmem:[#allocation2 + $0x928] sm:$0xff]  ;;  %v11264_v42 = vpack.c.bf16 %v11243_v0, %v11242_v59 }
 0x7f3   : > { %v14199_v52 = vpop.f32.mrf.mxu0  ;;  %14486 = vmatmul.mubr.bf16.gmra.mxu0 %v11261_v9  ;;  %14613 = vmatprep.subr.bf16.mxu1 %v15634_v17  ;;  %v11263_v29 = vpack.c.bf16 %v11241_v43, %v11240_v55  ;;  %v11311_v9 = vpack.c.bf16 %v11289_v7, %v11288_v50  ;;  %v11312_v3 = vpack.c.bf16 %v11291_v26, %v11290_v4  ;;  %v11247_v55 = vld [vmem:[#allocation2 + $0x7c0] sm:$0xff]  ;;  %v11294_v50 = vld [vmem:[#allocation2 + $0xc30] sm:$0xff] }
 0x7f4   : > { %v17589_v46 = vadd.f32 %v9874_v38, %v9717_v32  ;;  %v9722_v22 = vadd.f32 %v14199_v52, %v17440_v37  ;;  %v14247_v53 = vpop.f32.mrf.mxu1  ;;  %14534 = vmatmul.mubr.bf16.gmra.mxu1 %v11309_v19  ;;  %14489 = vmatprep.mubr.bf16.mxu0 %v11262_v41  ;;  %v11245_v38 = vld [vmem:[#allocation2 + $0x6a8] sm:$0xff]  ;;  %v11292_v52 = vld [vmem:[#allocation2 + $0xc78] sm:$0xff] }
 0x7f5   : > { %v9629_v63 = vpop.f32.mrf.mxu0  ;;  %14537 = vmatprep.mubr.bf16.mxu1 %v11310_v36  ;;  %14566 = vmatpush3.bf16.msra.mxu0 %v15633_v13 }
 0x7f6   : > { %v17592_v1 = vadd.f32 %v14247_v53, %v9722_v22  ;;  %v9720_v23 = vadd.f32 %v9629_v63, %v17453_v25  ;;  %v9887_v58 = vpop.f32.mrf.mxu1  ;;  %14614 = vmatpush3.bf16.msra.mxu1 %v15634_v17  ;;  %14567 = vmatprep.subr.bf16.mxu0 %v15635_v47  ;;  %v11246_v53 = vld [vmem:[#allocation2 + $0xe50] sm:$0xff] }
 0x7f7   : > { %v14200_v37 = vpop.f32.mrf.mxu0  ;;  %14615 = vmatprep.subr.bf16.mxu1 %v15636_v35  ;;  %v11295_v63 = vld [vmem:[#allocation2 + $0xf10] sm:$0xff]  ;;  %v11266_v4 = vpack.c.bf16 %v11247_v55, %v11246_v53 }
 0x7f8   : > { %v17595_v10 = vadd.f32 %v9887_v58, %v9720_v23  ;;  %v9723_v62 = vadd.f32 %v14200_v37, %v17456_v34  ;;  %v14248_v18 = vpop.f32.mrf.mxu1  ;;  %v11244_v34 = vld [vmem:[#allocation2 + $0xb68] sm:$0xff]  ;;  %v11314_v37 = vpack.c.bf16 %v11295_v63, %v11294_v50 }
 0x7f9   : > { %v9632_v13 = vpop.f32.mrf.mxu0  ;;  %14568 = vmatpush3.bf16.msra.mxu0 %v15635_v47  ;;  %v11293_v47 = vld [vmem:[#allocation2 + $0x2d8] sm:$0xff] }
 0x7fa   : > { %v17598_v19 = vadd.f32 %v14248_v18, %v9723_v62  ;;  %v9721_v25 = vadd.f32 %v9632_v13, %v17461_v44  ;;  %v9890_v41 = vpop.f32.mrf.mxu1  ;;  %14616 = vmatpush3.bf16.msra.mxu1 %v15636_v35  ;;  %v11313_v58 = vpack.c.bf16 %v11293_v47, %v11292_v52  ;;  %v11298_v52 = vld [vmem:[#allocation2 + $0x538] sm:$0xff] }
 0x7fb   : > { %v14203_v17 = vpop.f32.mrf.mxu0  ;;  %14490 = vmatmul.mubr.bf16.gmra.mxu0 %v11263_v29 }
 0x7fc   : > { %v17601_v5 = vadd.f32 %v9890_v41, %v9721_v25  ;;  %v9726_v36 = vadd.f32 %v14203_v17, %v17464_v61  ;;  %v14251_v32 = vpop.f32.mrf.mxu1  ;;  %14538 = vmatmul.mubr.bf16.gmra.mxu1 %v11311_v9  ;;  %14493 = vmatprep.mubr.bf16.mxu0 %v11264_v42  ;;  %v11265_v61 = vpack.c.bf16 %v11245_v38, %v11244_v34  ;;  %v11296_v25 = vld [vmem:[#allocation2 + $0x460] sm:$0xff]  ;;  %v11297_v17 = vld [vmem:[#allocation2 + $0x898] sm:$0xff] }
 0x7fd   : > { %v9645_v22 = vpop.f32.mrf.mxu0  ;;  %14541 = vmatprep.mubr.bf16.mxu1 %v11312_v3  ;;  %v11249_v3 = vld [vmem:[#allocation2 + $0xc38] sm:$0xff] }
 0x7fe   : > { %v17604_v44 = vadd.f32 %v14251_v32, %v9726_v36  ;;  %v9724_v35 = vadd.f32 %v9645_v22, %v17467_v11  ;;  %v9903_v43 = vpop.f32.mrf.mxu1  ;;  %v11250_v36 = vld [vmem:[#allocation2 + $0xb8] sm:$0xff]  ;;  %v11251_v32 = vld [vmem:[#allocation2 + $0xc48] sm:$0xff] }
 0x7ff   : > { %v14204_v7 = vpop.f32.mrf.mxu0  ;;  %v11299_v22 = vld [vmem:[#allocation2 + $0x328] sm:$0xff]  ;;  %v11268_v50 = vpack.c.bf16 %v11251_v32, %v11250_v36 }
 0x800   : > { %v17607_v59 = vadd.f32 %v9903_v43, %v9724_v35  ;;  %v9727_v0 = vadd.f32 %v14204_v7, %v17470_v27  ;;  %v14252_v23 = vpop.f32.mrf.mxu1  ;;  %v11248_v27 = vld [vmem:[#allocation2 + $0xe90] sm:$0xff]  ;;  %v11315_v43 = vpack.c.bf16 %v11297_v17, %v11296_v25  ;;  %v11316_v7 = vpack.c.bf16 %v11299_v22, %v11298_v52  ;;  %v11882_v25 = vld [vmem:[#allocation2 + $0xdf8] sm:$0xff] }
 0x801   : > { %v9648_v26 = vpop.f32.mrf.mxu0 }
 0x802   : > { %v17610_v29 = vadd.f32 %v14252_v23, %v9727_v0  ;;  %v9725_v62 = vadd.f32 %v9648_v26, %v17473_v14  ;;  %v9906_v18 = vpop.f32.mrf.mxu1 }
 0x803   : > { %v14207_v11 = vpop.f32.mrf.mxu0  ;;  %14494 = vmatmul.mubr.bf16.gmra.mxu0 %v11265_v61 }
 0x804   : > { %v17613_v9 = vadd.f32 %v9906_v18, %v9725_v62  ;;  %v9730_v42 = vadd.f32 %v14207_v11, %v17476_v54  ;;  %v14255_v13 = vpop.f32.mrf.mxu1  ;;  %14542 = vmatmul.mubr.bf16.gmra.mxu1 %v11313_v58  ;;  %14497 = vmatprep.mubr.bf16.mxu0 %v11266_v4  ;;  %v11267_v54 = vpack.c.bf16 %v11249_v3, %v11248_v27  ;;  %v11300_v62 = vld [vmem:[#allocation2 + $0xa50] sm:$0xff] }
 0x805   : > { %v9661_v41 = vpop.f32.mrf.mxu0  ;;  %14545 = vmatprep.mubr.bf16.mxu1 %v11314_v37  ;;  %v11253_v37 = vld [vmem:[#allocation2 + $0x30] sm:$0xff] }
 0x806   : > { %v17616_v34 = vadd.f32 %v14255_v13, %v9730_v42  ;;  %v9728_v14 = vadd.f32 %v9661_v41, %v17479_v60  ;;  %v9919_v38 = vpop.f32.mrf.mxu1  ;;  %v11301_v11 = vld [vmem:[#allocation2 + $0x7b0] sm:$0xff]  ;;  %v11834_v42 = vld [vmem:[#allocation2 + $0xc8] sm:$0xff]  ;;  %v11835_v13 = vld [vmem:[#allocation2 + $0x2b8] sm:$0xff] }
 0x807   : > { %v14208_v47 = vpop.f32.mrf.mxu0  ;;  %v11883_v41 = vld [vmem:[#allocation2 + $0x9a0] sm:$0xff]  ;;  %v11866_v52 = vpack.c.bf16 %v11835_v13, %v11834_v42 }
 0x808   : > { %v17619_v53 = vadd.f32 %v9919_v38, %v9728_v14  ;;  %v9731_v55 = vadd.f32 %v14208_v47, %v17482_v6  ;;  %v14256_v35 = vpop.f32.mrf.mxu1  ;;  %v11252_v6 = vld [vmem:[#allocation2 + $0xb20] sm:$0xff]  ;;  %v11317_v38 = vpack.c.bf16 %v11301_v11, %v11300_v62  ;;  %v11914_v47 = vpack.c.bf16 %v11883_v41, %v11882_v25 }
 0x809   : > { %v9664_v63 = vpop.f32.mrf.mxu0  ;;  %v11886_v62 = vld [vmem:[#allocation2 + $0x7e0] sm:$0xff] }
 0x80a   : > { %v17622_v61 = vadd.f32 %v14256_v35, %v9731_v55  ;;  %v9729_v0 = vadd.f32 %v9664_v63, %v17485_v21  ;;  %v9922_v23 = vpop.f32.mrf.mxu1 }
 0x80b   : > { %v14211_v60 = vpop.f32.mrf.mxu0  ;;  %14498 = vmatmul.mubr.bf16.gmra.mxu0 %v11267_v54 }
 0x80c   : > { %v17625_v58 = vadd.f32 %v9922_v23, %v9729_v0  ;;  %v9734_v4 = vadd.f32 %v14211_v60, %v17488_v12  ;;  %v14259_v26 = vpop.f32.mrf.mxu1  ;;  %14546 = vmatmul.mubr.bf16.gmra.mxu1 %v11315_v43  ;;  %14501 = vmatprep.mubr.bf16.mxu0 %v11268_v50  ;;  %v11269_v12 = vpack.c.bf16 %v11253_v37, %v11252_v6  ;;  %v11884_v0 = vld [vmem:[#allocation2 + $0xe38] sm:$0xff]  ;;  %v11885_v60 = vld [vmem:[#allocation2 + $0x390] sm:$0xff] }
 0x80d   : > { %v9677_v18 = vpop.f32.mrf.mxu0  ;;  %14549 = vmatprep.mubr.bf16.mxu1 %v11316_v7  ;;  %v11837_v7 = vld [vmem:[#allocation2 + $0xf78] sm:$0xff] }
 0x80e   : > { %v17628_v27 = vadd.f32 %v14259_v26, %v9734_v4  ;;  %v9732_v21 = vadd.f32 %v9677_v18, %v17491_v15  ;;  %v9935_v3 = vpop.f32.mrf.mxu1  ;;  %v11838_v4 = vld [vmem:[#allocation2 + $0x210] sm:$0xff]  ;;  %v11839_v26 = vld [vmem:[#allocation2 + $0x998] sm:$0xff]  ;;  %v11887_v18 = vld [vmem:[#allocation2 + $0x900] sm:$0xff] }
 0x80f   : > { %v14212_v17 = vpop.f32.mrf.mxu0  ;;  %v11868_v25 = vpack.c.bf16 %v11839_v26, %v11838_v4 }
 0x810   : > { %v17631_v36 = vadd.f32 %v9935_v3, %v9732_v21  ;;  %v9735_v32 = vadd.f32 %v14212_v17, %v17494_v8  ;;  %v14260_v14 = vpop.f32.mrf.mxu1  ;;  %v11836_v8 = vld [vmem:[#allocation2 + $0x2a8] sm:$0xff]  ;;  %v11915_v3 = vpack.c.bf16 %v11885_v60, %v11884_v0  ;;  %v11916_v17 = vpack.c.bf16 %v11887_v18, %v11886_v62 }
 0x811   : > { %v9680_v22 = vpop.f32.mrf.mxu0  ;;  %v11890_v0 = vld [vmem:[#allocation2 + $0x508] sm:$0xff] }
 0x812   : > { %v17634_v54 = vadd.f32 %v14260_v14, %v9735_v32  ;;  %v9733_v55 = vadd.f32 %v9680_v22, %v17497_v57  ;;  %v9938_v35 = vpop.f32.mrf.mxu1 }
 0x813   : > { %v14215_v15 = vpop.f32.mrf.mxu0  ;;  %14502 = vmatmul.mubr.bf16.gmra.mxu0 %v11269_v12 }
 0x814   : > { %v17637_v43 = vadd.f32 %v9938_v35, %v9733_v55  ;;  %v9738_v50 = vadd.f32 %v14215_v15, %v17500_v16  ;;  %v14263_v63 = vpop.f32.mrf.mxu1  ;;  %14550 = vmatmul.mubr.bf16.gmra.mxu1 %v11317_v38  ;;  %14569 = vmatprep.mubr.bf16.mxu0 %v11866_v52  ;;  %v11867_v16 = vpack.c.bf16 %v11837_v7, %v11836_v8  ;;  %v11888_v55 = vld [vmem:[#allocation2 + $0x4c0] sm:$0xff]  ;;  %v11889_v15 = vld [vmem:[#allocation2 + $0x710] sm:$0xff] }
 0x815   : > { %v9693_v23 = vpop.f32.mrf.mxu0  ;;  %14617 = vmatprep.mubr.bf16.mxu1 %v11914_v47  ;;  %v11841_v47 = vld [vmem:[#allocation2 + $0xab8] sm:$0xff] }
 0x816   : > { %v17640_v6 = vadd.f32 %v14263_v63, %v9738_v50  ;;  %v9736_v57 = vadd.f32 %v9693_v23, %v17503_v31  ;;  %v9951_v37 = vpop.f32.mrf.mxu1  ;;  %v11842_v50 = vld [vmem:[#allocation2 + $0x5a8] sm:$0xff] }
 0x817   : > { %v14216_v11 = vpop.f32.mrf.mxu0  ;;  %v11843_v63 = vld [vmem:[#allocation2 + $0x668] sm:$0xff] }
 0x818   : > { %v17643_v42 = vadd.f32 %v9951_v37, %v9736_v57  ;;  %v9739_v13 = vadd.f32 %v14216_v11, %v17506_v24  ;;  %v14264_v21 = vpop.f32.mrf.mxu1  ;;  %v11840_v24 = vld [vmem:[#allocation2 + $0xc88] sm:$0xff]  ;;  %v11917_v37 = vpack.c.bf16 %v11889_v15, %v11888_v55  ;;  %v11870_v62 = vpack.c.bf16 %v11843_v63, %v11842_v50  ;;  %v11894_v55 = vld [vmem:[#allocation2 + $0xac0] sm:$0xff] }
 0x819   : > { %v9696_v41 = vpop.f32.mrf.mxu0  ;;  %v11891_v23 = vld [vmem:[#allocation2 + $0x9e8] sm:$0xff] }
 0x81a   : > { %v17646_v12 = vadd.f32 %v14264_v21, %v9739_v13  ;;  %v9737_v32 = vadd.f32 %v9696_v41, %v17515_v2  ;;  %v9954_v14 = vpop.f32.mrf.mxu1  ;;  %v11918_v11 = vpack.c.bf16 %v11891_v23, %v11890_v0 }
 0x81b   : > { %v14283_v31 = vpop.f32.mrf.mxu0  ;;  %14570 = vmatmul.mubr.bf16.vlgmr.msra.gmra.mxu0 %v11867_v16 }
 0x81c   : > { %v17649_v38 = vadd.f32 %v9954_v14, %v9737_v32  ;;  %v10322_v52 = vadd.f32 %v14283_v31, %v17523_v45  ;;  %v14331_v22 = vpop.f32.mrf.mxu1  ;;  %14618 = vmatmul.mubr.bf16.vlgmr.msra.gmra.mxu1 %v11915_v3  ;;  %14573 = vmatprep.mubr.bf16.mxu0 %v11868_v25  ;;  %v11869_v45 = vpack.c.bf16 %v11841_v47, %v11840_v24  ;;  %v11892_v32 = vld [vmem:[#allocation2 + $0x938] sm:$0xff] }
 0x81d   : > { %v10193_v35 = vpop.f32.mrf.mxu0  ;;  %14621 = vmatprep.mubr.bf16.mxu1 %v11916_v17  ;;  %v11845_v17 = vld [vmem:[#allocation2 + $0x468] sm:$0xff]  ;;  %v11893_v31 = vld [vmem:[#allocation2 + $0x558] sm:$0xff] }
 0x81e   : > { %v17652_v8 = vadd.f32 %v14331_v22, %v10322_v52  ;;  %v10320_v2 = vadd.f32 %v10193_v35, %v17529_v49  ;;  %v10451_v7 = vpop.f32.mrf.mxu1  ;;  %v11846_v52 = vld [vmem:[#allocation2 + $0x578] sm:$0xff]  ;;  %v11847_v22 = vld [vmem:[#allocation2 + $0x600] sm:$0xff]  ;;  %v11895_v35 = vld [vmem:[#allocation2 + $0x930] sm:$0xff] }
 0x81f   : > { %v14284_v60 = vpop.f32.mrf.mxu0  ;;  %v11872_v0 = vpack.c.bf16 %v11847_v22, %v11846_v52 }
 0x820   : > { %v17655_v4 = vadd.f32 %v10451_v7, %v10320_v2  ;;  %v10323_v26 = vadd.f32 %v14284_v60, %v17532_v40  ;;  %v14332_v57 = vpop.f32.mrf.mxu1  ;;  %v11844_v40 = vld [vmem:[#allocation2 + $0xb18] sm:$0xff]  ;;  %v11919_v7 = vpack.c.bf16 %v11893_v31, %v11892_v32  ;;  %v11920_v60 = vpack.c.bf16 %v11895_v35, %v11894_v55  ;;  %v11898_v32 = vld [vmem:[#allocation2 + $0xc90] sm:$0xff] }
 0x821   : > { %v10196_v18 = vpop.f32.mrf.mxu0 }
 0x822   : > { %v17658_v16 = vadd.f32 %v14332_v57, %v10323_v26  ;;  %v10321_v13 = vadd.f32 %v10196_v18, %v17541_v48  ;;  %v10454_v21 = vpop.f32.mrf.mxu1 }
 0x823   : > { %v14287_v49 = vpop.f32.mrf.mxu0  ;;  %14574 = vmatmul.mubr.bf16.gmra.mxu0 %v11869_v45 }
 0x824   : > { %v17661_v3 = vadd.f32 %v10454_v21, %v10321_v13  ;;  %v10326_v25 = vadd.f32 %v14287_v49, %v17544_v20  ;;  %v14335_v41 = vpop.f32.mrf.mxu1  ;;  %14622 = vmatmul.mubr.bf16.gmra.mxu1 %v11917_v37  ;;  %14577 = vmatprep.mubr.bf16.mxu0 %v11870_v62  ;;  %v11871_v20 = vpack.c.bf16 %v11845_v17, %v11844_v40  ;;  %v11896_v13 = vld [vmem:[#allocation2 + $0x988] sm:$0xff] }
 0x825   : > { %v10209_v14 = vpop.f32.mrf.mxu0  ;;  %14625 = vmatprep.mubr.bf16.mxu1 %v11918_v11  ;;  %v11849_v11 = vld [vmem:[#allocation2 + $0xb40] sm:$0xff]  ;;  %v11897_v49 = vld [vmem:[#allocation2 + $0x348] sm:$0xff] }
 0x826   : > { %v17664_v24 = vadd.f32 %v14335_v41, %v10326_v25  ;;  %v10324_v48 = vadd.f32 %v10209_v14, %v17553_v33  ;;  %v10467_v47 = vpop.f32.mrf.mxu1  ;;  %v11850_v25 = vld [vmem:[#allocation2 + $0x170] sm:$0xff]  ;;  %v11851_v41 = vld [vmem:[#allocation2 + $0x838] sm:$0xff]  ;;  %v11899_v14 = vld [vmem:[#allocation2 + $0xce8] sm:$0xff] }
 0x827   : > { %v14288_v15 = vpop.f32.mrf.mxu0  ;;  %v11874_v55 = vpack.c.bf16 %v11851_v41, %v11850_v25 }
 0x828   : > { %v17667_v50 = vadd.f32 %v10467_v47, %v10324_v48  ;;  %v10327_v63 = vadd.f32 %v14288_v15, %v17556_v56  ;;  %v14336_v2 = vpop.f32.mrf.mxu1  ;;  %v11848_v56 = vld [vmem:[#allocation2 + $0x570] sm:$0xff]  ;;  %v11921_v47 = vpack.c.bf16 %v11897_v49, %v11896_v13  ;;  %v11922_v15 = vpack.c.bf16 %v11899_v14, %v11898_v32  ;;  %v11902_v13 = vld [vmem:[#allocation2 + $0x4a8] sm:$0xff] }
 0x829   : > { %v10212_v23 = vpop.f32.mrf.mxu0 }
 0x82a   : > { %v17670_v45 = vadd.f32 %v14336_v2, %v10327_v63  ;;  %v10325_v26 = vadd.f32 %v10212_v23, %v17565_v51  ;;  %v10470_v57 = vpop.f32.mrf.mxu1 }
 0x82b   : > { %v14291_v33 = vpop.f32.mrf.mxu0  ;;  %14578 = vmatmul.mubr.bf16.gmra.mxu0 %v11871_v20 }
 0x82c   : > { %v17673_v37 = vadd.f32 %v10470_v57, %v10325_v26  ;;  %v10330_v62 = vadd.f32 %v14291_v33, %v17568_v28  ;;  %v14339_v18 = vpop.f32.mrf.mxu1  ;;  %14626 = vmatmul.mubr.bf16.gmra.mxu1 %v11919_v7  ;;  %14581 = vmatprep.mubr.bf16.mxu0 %v11872_v0  ;;  %v11873_v28 = vpack.c.bf16 %v11849_v11, %v11848_v56  ;;  %v11900_v26 = vld [vmem:[#allocation2 + $0xcf8] sm:$0xff]  ;;  %v11901_v33 = vld [vmem:[#allocation2 + $0x1a8] sm:$0xff] }
 0x82d   : > { %v10225_v21 = vpop.f32.mrf.mxu0  ;;  %14629 = vmatprep.mubr.bf16.mxu1 %v11920_v60  ;;  %v11853_v60 = vld [vmem:[#allocation2 + $0xe28] sm:$0xff] }
 0x82e   : > { %v17676_v40 = vadd.f32 %v14339_v18, %v10330_v62  ;;  %v10328_v51 = vadd.f32 %v10225_v21, %v17577_v39  ;;  %v10483_v17 = vpop.f32.mrf.mxu1  ;;  %v11854_v62 = vld [vmem:[#allocation2 + $0x500] sm:$0xff] }
 0x82f   : > { %v14292_v31 = vpop.f32.mrf.mxu0  ;;  %v11855_v18 = vld [vmem:[#allocation2 + $0xe60] sm:$0xff] }
 0x830   : > { %v17679_v52 = vadd.f32 %v10483_v17, %v10328_v51  ;;  %v10331_v22 = vadd.f32 %v14292_v31, %v17580_v30  ;;  %v14340_v48 = vpop.f32.mrf.mxu1  ;;  %v11852_v30 = vld [vmem:[#allocation2 + $0xcb8] sm:$0xff]  ;;  %v11903_v21 = vld [vmem:[#allocation2 + $0x40] sm:$0xff]  ;;  %v11923_v17 = vpack.c.bf16 %v11901_v33, %v11900_v26  ;;  %v11876_v32 = vpack.c.bf16 %v11855_v18, %v11854_v62 }
 0x831   : > { %v10228_v35 = vpop.f32.mrf.mxu0  ;;  %v11924_v31 = vpack.c.bf16 %v11903_v21, %v11902_v13  ;;  %v11906_v26 = vld [vmem:[#allocation2 + $0xd98] sm:$0xff] }
 0x832   : > { %v17682_v20 = vadd.f32 %v14340_v48, %v10331_v22  ;;  %v10329_v63 = vadd.f32 %v10228_v35, %v17589_v46  ;;  %v10486_v2 = vpop.f32.mrf.mxu1 }
 0x833   : > { %v14295_v39 = vpop.f32.mrf.mxu0  ;;  %14582 = vmatmul.mubr.bf16.gmra.mxu0 %v11873_v28 }
 0x834   : > { %v17685_v7 = vadd.f32 %v10486_v2, %v10329_v63  ;;  %v10334_v0 = vadd.f32 %v14295_v39, %v17592_v1  ;;  %v14343_v23 = vpop.f32.mrf.mxu1  ;;  %14630 = vmatmul.mubr.bf16.gmra.mxu1 %v11921_v47  ;;  %14585 = vmatprep.mubr.bf16.mxu0 %v11874_v55  ;;  %v11875_v1 = vpack.c.bf16 %v11853_v60, %v11852_v30  ;;  %v11904_v63 = vld [vmem:[#allocation2 + $0x1c8] sm:$0xff] }
 0x835   : > { %v10241_v57 = vpop.f32.mrf.mxu0  ;;  %14633 = vmatprep.mubr.bf16.mxu1 %v11922_v15  ;;  %v11857_v15 = vld [vmem:[#allocation2 + $0xe08] sm:$0xff] }
 0x836   : > { %v17688_v56 = vadd.f32 %v14343_v23, %v10334_v0  ;;  %v10332_v46 = vadd.f32 %v10241_v57, %v17595_v10  ;;  %v10499_v11 = vpop.f32.mrf.mxu1  ;;  %v11905_v39 = vld [vmem:[#allocation2 + $0xfe8] sm:$0xff]  ;;  %v11858_v0 = vld [vmem:[#allocation2 + $0xb58] sm:$0xff]  ;;  %v11907_v57 = vld [vmem:[#allocation2 + $0x150] sm:$0xff] }
 0x837   : > { %v14296_v49 = vpop.f32.mrf.mxu0  ;;  %v11859_v23 = vld [vmem:[#allocation2 + $0x618] sm:$0xff] }
 0x838   : > { %v17691_v25 = vadd.f32 %v10499_v11, %v10332_v46  ;;  %v10335_v41 = vadd.f32 %v14296_v49, %v17598_v19  ;;  %v14344_v51 = vpop.f32.mrf.mxu1  ;;  %v11856_v19 = vld [vmem:[#allocation2 + $0x8c0] sm:$0xff]  ;;  %v11925_v11 = vpack.c.bf16 %v11905_v39, %v11904_v63  ;;  %v11878_v13 = vpack.c.bf16 %v11859_v23, %v11858_v0  ;;  %v11910_v63 = vld [vmem:[#allocation2 + $0x730] sm:$0xff] }
 0x839   : > { %v10244_v14 = vpop.f32.mrf.mxu0  ;;  %v11926_v49 = vpack.c.bf16 %v11907_v57, %v11906_v26 }
 0x83a   : > { %v17694_v28 = vadd.f32 %v14344_v51, %v10335_v41  ;;  %v10333_v22 = vadd.f32 %v10244_v14, %v17601_v5  ;;  %v10502_v48 = vpop.f32.mrf.mxu1 }
 0x83b   : > { %v14299_v10 = vpop.f32.mrf.mxu0  ;;  %14586 = vmatmul.mubr.bf16.gmra.mxu0 %v11875_v1 }
 0x83c   : > { %v17697_v47 = vadd.f32 %v10502_v48, %v10333_v22  ;;  %v10338_v55 = vadd.f32 %v14299_v10, %v17604_v44  ;;  %v14347_v35 = vpop.f32.mrf.mxu1  ;;  %14634 = vmatmul.mubr.bf16.gmra.mxu1 %v11923_v17  ;;  %14589 = vmatprep.mubr.bf16.mxu0 %v11876_v32  ;;  %v11877_v44 = vpack.c.bf16 %v11857_v15, %v11856_v19  ;;  %v11908_v22 = vld [vmem:[#allocation2 + $0x400] sm:$0xff]  ;;  %v11909_v10 = vld [vmem:[#allocation2 + $0x298] sm:$0xff] }
 0x83d   : > { %v10257_v2 = vpop.f32.mrf.mxu0  ;;  %14637 = vmatprep.mubr.bf16.mxu1 %v11924_v31  ;;  %v11861_v31 = vld [vmem:[#allocation2 + $0x5b0] sm:$0xff] }
 0x83e   : > { %v17700_v30 = vadd.f32 %v14347_v35, %v10338_v55  ;;  %v10336_v5 = vadd.f32 %v10257_v2, %v17607_v59  ;;  %v10515_v60 = vpop.f32.mrf.mxu1  ;;  %v11862_v55 = vld [vmem:[#allocation2 + $0x140] sm:$0xff] }
 0x83f   : > { %v14300_v33 = vpop.f32.mrf.mxu0  ;;  %v11863_v35 = vld [vmem:[#allocation2 + $0xc0] sm:$0xff] }
 0x840   : > { %v17703_v62 = vadd.f32 %v10515_v60, %v10336_v5  ;;  %v10339_v18 = vadd.f32 %v14300_v33, %v17610_v29  ;;  %v14348_v46 = vpop.f32.mrf.mxu1  ;;  %v11860_v29 = vld [vmem:[#allocation2 + $0x200] sm:$0xff]  ;;  %v11927_v60 = vpack.c.bf16 %v11909_v10, %v11908_v22  ;;  %v11880_v26 = vpack.c.bf16 %v11863_v35, %v11862_v55 }
 0x841   : > { %v10260_v21 = vpop.f32.mrf.mxu0  ;;  %v11911_v2 = vld [vmem:[#allocation2 + $0x3c0] sm:$0xff] }
 0x842   : > { %v17706_v1 = vadd.f32 %v14348_v46, %v10339_v18  ;;  %v10337_v41 = vadd.f32 %v10260_v21, %v17613_v9  ;;  %v10518_v51 = vpop.f32.mrf.mxu1  ;;  %v11928_v33 = vpack.c.bf16 %v11911_v2, %v11910_v63 }
 0x843   : > { %v14303_v59 = vpop.f32.mrf.mxu0  ;;  %14590 = vmatmul.mubr.bf16.gmra.mxu0 %v11877_v44 }
 0x844   : > { %v17709_v17 = vadd.f32 %v10518_v51, %v10337_v41  ;;  %v10342_v32 = vadd.f32 %v14303_v59, %v17616_v34  ;;  %v14351_v14 = vpop.f32.mrf.mxu1  ;;  %14638 = vmatmul.mubr.bf16.gmra.mxu1 %v11925_v11  ;;  %14593 = vmatprep.mubr.bf16.mxu0 %v11878_v13  ;;  %v11879_v34 = vpack.c.bf16 %v11861_v31, %v11860_v29  ;;  %v11912_v51 = vld [vmem:[#allocation2 + $0x2c0] sm:$0xff] }
 0x845   : > { %v10273_v48 = vpop.f32.mrf.mxu0  ;;  %14641 = vmatprep.mubr.bf16.mxu1 %v11926_v49  ;;  %v11865_v49 = vld [vmem:[#allocation2 + $0xd0] sm:$0xff]  ;;  %v11913_v59 = vld [vmem:[#allocation2 + $0x4a0] sm:$0xff] }
 0x846   : > { %v17712_v19 = vadd.f32 %v14351_v14, %v10342_v32  ;;  %v10340_v9 = vadd.f32 %v10273_v48, %v17619_v53  ;;  %v10531_v15 = vpop.f32.mrf.mxu1  ;;  %v11929_v10 = vpack.c.bf16 %v11913_v59, %v11912_v51 }
 0x847   : > { %v14304_v39 = vpop.f32.mrf.mxu0 }
 0x848   : > { %v17715_v0 = vadd.f32 %v10531_v15, %v10340_v9  ;;  %v10343_v23 = vadd.f32 %v14304_v39, %v17622_v61  ;;  %v14352_v5 = vpop.f32.mrf.mxu1  ;;  %v11864_v61 = vld [vmem:[#allocation2 + $0xba0] sm:$0xff] }
 0x849   : > { %v10276_v57 = vpop.f32.mrf.mxu0  ;;  %v11881_v31 = vpack.c.bf16 %v11865_v49, %v11864_v61 }
 0x84a   : > { %v17718_v44 = vadd.f32 %v14352_v5, %v10343_v23  ;;  %v10341_v18 = vadd.f32 %v10276_v57, %v17625_v58  ;;  %v10534_v46 = vpop.f32.mrf.mxu1 }
 0x84b   : > { %v14307_v53 = vpop.f32.mrf.mxu0  ;;  %14594 = vmatmul.mubr.bf16.gmra.mxu0 %v11879_v34 }
 0x84c   : > { %v17721_v11 = vadd.f32 %v10534_v46, %v10341_v18  ;;  %v10346_v13 = vadd.f32 %v14307_v53, %v17628_v27  ;;  %v14355_v21 = vpop.f32.mrf.mxu1  ;;  %14642 = vmatmul.mubr.bf16.gmra.mxu1 %v11927_v60  ;;  %14597 = vmatprep.mubr.bf16.mxu0 %v11880_v26 }
 0x84d   : > { %v10289_v41 = vpop.f32.mrf.mxu0  ;;  %14645 = vmatprep.mubr.bf16.mxu1 %v11928_v33 }
 0x84e   : > { %v17724_v32 = vadd.f32 %v14355_v21, %v10346_v13  ;;  %v10344_v58 = vadd.f32 %v10289_v41, %v17631_v36  ;;  %v10547_v14 = vpop.f32.mrf.mxu1 }
 0x84f   : > { %v14308_v29 = vpop.f32.mrf.mxu0 }
 0x850   : > { %v17727_v22 = vadd.f32 %v10547_v14, %v10344_v58  ;;  %v10347_v27 = vadd.f32 %v14308_v29, %v17634_v54  ;;  %v14356_v48 = vpop.f32.mrf.mxu1 }
 0x851   : > { %v10292_v55 = vpop.f32.mrf.mxu0 }
 0x852   : > { %v17730_v35 = vadd.f32 %v14356_v48, %v10347_v27  ;;  %v10345_v9 = vadd.f32 %v10292_v55, %v17637_v43  ;;  %v10550_v15 = vpop.f32.mrf.mxu1 }
 0x853   : > { %v14311_v63 = vpop.f32.mrf.mxu0  ;;  %14598 = vmatmul.mubr.bf16.gmra.mxu0 %v11881_v31 }
 0x854   : > { %v17733_v2 = vadd.f32 %v10550_v15, %v10345_v9  ;;  %v10350_v36 = vadd.f32 %v14311_v63, %v17640_v6  ;;  %v14359_v39 = vpop.f32.mrf.mxu1  ;;  %14646 = vmatmul.mubr.bf16.gmra.mxu1 %v11929_v10 }
 0x855   : > { %v10305_v34 = vpop.f32.mrf.mxu0 }
 0x856   : > { %v17736_v23 = vadd.f32 %v14359_v39, %v10350_v36  ;;  %v10348_v54 = vadd.f32 %v10305_v34, %v17643_v42  ;;  %v10563_v5 = vpop.f32.mrf.mxu1 }
 0x857   : > { %v14312_v60 = vpop.f32.mrf.mxu0 }
 0x858   : > { %v17739_v26 = vadd.f32 %v10563_v5, %v10348_v54  ;;  %v10351_v43 = vadd.f32 %v14312_v60, %v17646_v12  ;;  %v14360_v57 = vpop.f32.mrf.mxu1 }
 0x859   : > { %v10308_v33 = vpop.f32.mrf.mxu0 }
 0x85a   : > { %v17742_v18 = vadd.f32 %v14360_v57, %v10351_v43  ;;  %v10349_v46 = vadd.f32 %v10308_v33, %v17649_v38  ;;  %v10566_v6 = vpop.f32.mrf.mxu1 }
 0x85b   : > { %v14379_v53 = vpop.f32.mrf.mxu0 }
 0x85c   : > { %v17745_v13 = vadd.f32 %v10566_v6, %v10349_v46  ;;  %v10934_v21 = vadd.f32 %v14379_v53, %v17652_v8  ;;  %v14427_v61 = vpop.f32.mrf.mxu1 }
 0x85d   : > { %v10805_v42 = vpop.f32.mrf.mxu0 }
 0x85e   : > { %v17748_v49 = vadd.f32 %v14427_v61, %v10934_v21  ;;  %v10932_v41 = vadd.f32 %v10805_v42, %v17655_v4  ;;  %v11063_v51 = vpop.f32.mrf.mxu1 }
 0x85f   : > { %v14380_v12 = vpop.f32.mrf.mxu0 }
 0x860   : > { %v17751_v59 = vadd.f32 %v11063_v51, %v10932_v41  ;;  %v10935_v58 = vadd.f32 %v14380_v12, %v17658_v16  ;;  %v14428_v14 = vpop.f32.mrf.mxu1 }
 0x861   : > { %v10808_v38 = vpop.f32.mrf.mxu0 }
 0x862   : > { %v17754_v29 = vadd.f32 %v14428_v14, %v10935_v58  ;;  %v10933_v31 = vadd.f32 %v10808_v38, %v17661_v3  ;;  %v11066_v27 = vpop.f32.mrf.mxu1 }
 0x863   : > { %v14383_v8 = vpop.f32.mrf.mxu0 }
 0x864   : > { %v17757_v48 = vadd.f32 %v11066_v27, %v10933_v31  ;;  %v10938_v10 = vadd.f32 %v14383_v8, %v17664_v24  ;;  %v14431_v55 = vpop.f32.mrf.mxu1 }
 0x865   : > { %v10821_v4 = vpop.f32.mrf.mxu0 }
 0x866   : > { %v17760_v9 = vadd.f32 %v14431_v55, %v10938_v10  ;;  %v10936_v15 = vadd.f32 %v10821_v4, %v17667_v50  ;;  %v11079_v63 = vpop.f32.mrf.mxu1 }
 0x867   : > { %v14384_v16 = vpop.f32.mrf.mxu0 }
 0x868   : > { %v17763_v36 = vadd.f32 %v11079_v63, %v10936_v15  ;;  %v10939_v39 = vadd.f32 %v14384_v16, %v17670_v45  ;;  %v14432_v34 = vpop.f32.mrf.mxu1 }
 0x869   : > { %v10824_v3 = vpop.f32.mrf.mxu0 }
 0x86a   : > { %v17766_v54 = vadd.f32 %v14432_v34, %v10939_v39  ;;  %v10937_v5 = vadd.f32 %v10824_v3, %v17673_v37  ;;  %v11082_v60 = vpop.f32.mrf.mxu1 }
 0x86b   : > { %v14387_v24 = vpop.f32.mrf.mxu0 }
 0x86c   : > { %v17769_v43 = vadd.f32 %v11082_v60, %v10937_v5  ;;  %v10942_v57 = vadd.f32 %v14387_v24, %v17676_v40  ;;  %v14435_v33 = vpop.f32.mrf.mxu1 }
 0x86d   : > { %v10837_v50 = vpop.f32.mrf.mxu0 }
 0x86e   : > { %v17772_v46 = vadd.f32 %v14435_v33, %v10942_v57  ;;  %v10940_v6 = vadd.f32 %v10837_v50, %v17679_v52  ;;  %v11095_v53 = vpop.f32.mrf.mxu1 }
 0x86f   : > { %v14388_v45 = vpop.f32.mrf.mxu0 }
 0x870   : > { %v17775_v21 = vadd.f32 %v11095_v53, %v10940_v6  ;;  %v10943_v61 = vadd.f32 %v14388_v45, %v17682_v20  ;;  %v14436_v42 = vpop.f32.mrf.mxu1 }
 0x871   : > { %v10840_v37 = vpop.f32.mrf.mxu0 }
 0x872   : > { %v17778_v41 = vadd.f32 %v14436_v42, %v10943_v61  ;;  %v10941_v51 = vadd.f32 %v10840_v37, %v17685_v7  ;;  %v11098_v12 = vpop.f32.mrf.mxu1 }
 0x873   : > { %v14391_v40 = vpop.f32.mrf.mxu0 }
 0x874   : > { %v17781_v58 = vadd.f32 %v11098_v12, %v10941_v51  ;;  %v10946_v14 = vadd.f32 %v14391_v40, %v17688_v56  ;;  %v14439_v38 = vpop.f32.mrf.mxu1 }
 0x875   : > { %v10853_v52 = vpop.f32.mrf.mxu0 }
 0x876   : > { %v17784_v31 = vadd.f32 %v14439_v38, %v10946_v14  ;;  %v10944_v27 = vadd.f32 %v10853_v52, %v17691_v25  ;;  %v11111_v8 = vpop.f32.mrf.mxu1 }
 0x877   : > { %v14392_v20 = vpop.f32.mrf.mxu0 }
 0x878   : > { %v17787_v10 = vadd.f32 %v11111_v8, %v10944_v27  ;;  %v10947_v55 = vadd.f32 %v14392_v20, %v17694_v28  ;;  %v14440_v4 = vpop.f32.mrf.mxu1 }
 0x879   : > { %v10856_v7 = vpop.f32.mrf.mxu0 }
 0x87a   : > { %v17790_v15 = vadd.f32 %v14440_v4, %v10947_v55  ;;  %v10945_v63 = vadd.f32 %v10856_v7, %v17697_v47  ;;  %v11114_v16 = vpop.f32.mrf.mxu1 }
 0x87b   : > { %v14395_v56 = vpop.f32.mrf.mxu0 }
 0x87c   : > { %v17793_v39 = vadd.f32 %v11114_v16, %v10945_v63  ;;  %v10950_v34 = vadd.f32 %v14395_v56, %v17700_v30  ;;  %v14443_v3 = vpop.f32.mrf.mxu1 }
 0x87d   : > { %v10869_v25 = vpop.f32.mrf.mxu0 }
 0x87e   : > { %v17796_v5 = vadd.f32 %v14443_v3, %v10950_v34  ;;  %v10948_v60 = vadd.f32 %v10869_v25, %v17703_v62  ;;  %v11127_v24 = vpop.f32.mrf.mxu1 }
 0x87f   : > { %v14396_v28 = vpop.f32.mrf.mxu0 }
 0x880   : > { %v17799_v57 = vadd.f32 %v11127_v24, %v10948_v60  ;;  %v10951_v33 = vadd.f32 %v14396_v28, %v17706_v1  ;;  %v14444_v50 = vpop.f32.mrf.mxu1 }
 0x881   : > { %v10872_v47 = vpop.f32.mrf.mxu0 }
 0x882   : > { %v17802_v6 = vadd.f32 %v14444_v50, %v10951_v33  ;;  %v10949_v53 = vadd.f32 %v10872_v47, %v17709_v17  ;;  %v11130_v45 = vpop.f32.mrf.mxu1 }
 0x883   : > { %v14399_v30 = vpop.f32.mrf.mxu0 }
 0x884   : > { %18111 = vst [vmem:[#allocation7_spill] sm:$0xff] %v17802_v6  ;;  %v17805_v61 = vadd.f32 %v11130_v45, %v10949_v53  ;;  %v10954_v42 = vadd.f32 %v14399_v30, %v17712_v19  ;;  %v14447_v37 = vpop.f32.mrf.mxu1 }
 0x885   : > { %v10885_v62 = vpop.f32.mrf.mxu0 }
 0x886   : > { %18112 = vst [vmem:[#allocation8_spill] sm:$0xff] %v17805_v61  ;;  %v17808_v51 = vadd.f32 %v14447_v37, %v10954_v42  ;;  %v10952_v12 = vadd.f32 %v10885_v62, %v17715_v0  ;;  %v11143_v40 = vpop.f32.mrf.mxu1 }
 0x887   : > { %v14400_v1 = vpop.f32.mrf.mxu0 }
 0x888   : > { %18113 = vst [vmem:[#allocation9_spill] sm:$0xff] %v17808_v51  ;;  %v17811_v14 = vadd.f32 %v11143_v40, %v10952_v12  ;;  %v10955_v38 = vadd.f32 %v14400_v1, %v17718_v44  ;;  %v14448_v52 = vpop.f32.mrf.mxu1 }
 0x889   : > { %v10888_v17 = vpop.f32.mrf.mxu0 }
 0x88a   : > { %18114 = vst [vmem:[#allocation10_spill] sm:$0xff] %v17811_v14  ;;  %v17814_v27 = vadd.f32 %v14448_v52, %v10955_v38  ;;  %v10953_v8 = vadd.f32 %v10888_v17, %v17721_v11  ;;  %v11146_v20 = vpop.f32.mrf.mxu1 }
 0x88b   : > { %v14403_v19 = vpop.f32.mrf.mxu0 }
 0x88c   : > { %18115 = vst [vmem:[#allocation11_spill] sm:$0xff] %v17814_v27  ;;  %v17817_v55 = vadd.f32 %v11146_v20, %v10953_v8  ;;  %v10958_v4 = vadd.f32 %v14403_v19, %v17724_v32  ;;  %v14451_v7 = vpop.f32.mrf.mxu1 }
 0x88d   : > { %v10901_v0 = vpop.f32.mrf.mxu0 }
 0x88e   : > { %18116 = vst [vmem:[#allocation12_spill] sm:$0xff] %v17817_v55  ;;  %v17820_v63 = vadd.f32 %v14451_v7, %v10958_v4  ;;  %v10956_v16 = vadd.f32 %v10901_v0, %v17727_v22  ;;  %v11159_v56 = vpop.f32.mrf.mxu1 }
 0x88f   : > { %v14404_v44 = vpop.f32.mrf.mxu0 }
 0x890   : > { %18117 = vst [vmem:[#allocation13_spill] sm:$0xff] %v17820_v63  ;;  %v17823_v34 = vadd.f32 %v11159_v56, %v10956_v16  ;;  %v10959_v3 = vadd.f32 %v14404_v44, %v17730_v35  ;;  %v14452_v25 = vpop.f32.mrf.mxu1 }
 0x891   : > { %v10904_v11 = vpop.f32.mrf.mxu0 }
 0x892   : > { %18118 = vst [vmem:[#allocation14_spill] sm:$0xff] %v17823_v34  ;;  %v17826_v60 = vadd.f32 %v14452_v25, %v10959_v3  ;;  %v10957_v24 = vadd.f32 %v10904_v11, %v17733_v2  ;;  %v11162_v28 = vpop.f32.mrf.mxu1 }
 0x893   : > { %v14407_v32 = vpop.f32.mrf.mxu0 }
 0x894   : > { %18119 = vst [vmem:[#allocation15_spill] sm:$0xff] %v17826_v60  ;;  %v17829_v33 = vadd.f32 %v11162_v28, %v10957_v24  ;;  %v10962_v50 = vadd.f32 %v14407_v32, %v17736_v23  ;;  %v14455_v47 = vpop.f32.mrf.mxu1 }
 0x895   : > { %v10917_v22 = vpop.f32.mrf.mxu0 }
 0x896   : > { %18120 = vst [vmem:[#allocation16_spill] sm:$0xff] %v17829_v33  ;;  %v17832_v53 = vadd.f32 %v14455_v47, %v10962_v50  ;;  %v10960_v45 = vadd.f32 %v10917_v22, %v17739_v26  ;;  %v11175_v30 = vpop.f32.mrf.mxu1 }
 0x897   : > { %v14408_v35 = vpop.f32.mrf.mxu0 }
 0x898   : > { %18121 = vst [vmem:[#allocation17_spill] sm:$0xff] %v17832_v53  ;;  %v17835_v42 = vadd.f32 %v11175_v30, %v10960_v45  ;;  %v10963_v37 = vadd.f32 %v14408_v35, %v17742_v18  ;;  %v14456_v62 = vpop.f32.mrf.mxu1 }
 0x899   : > { %v10920_v2 = vpop.f32.mrf.mxu0 }
 0x89a   : > { %18122 = vst [vmem:[#allocation18_spill] sm:$0xff] %v17835_v42  ;;  %v17838_v12 = vadd.f32 %v14456_v62, %v10963_v37  ;;  %v10961_v40 = vadd.f32 %v10920_v2, %v17745_v13  ;;  %v11178_v1 = vpop.f32.mrf.mxu1 }
 0x89b   : > { %v14475_v23 = vpop.f32.mrf.mxu0 }
 0x89c   : > { %18123 = vst [vmem:[#allocation19_spill] sm:$0xff] %v17838_v12  ;;  %v17841_v38 = vadd.f32 %v11178_v1, %v10961_v40  ;;  %v17843_v52 = vpop.f32.mrf.mxu1 }
 0x89d   : > { %v11417_v17 = vpop.f32.mrf.mxu0 }
 0x89e   : > { %18124 = vst [vmem:[#allocation20_spill] sm:$0xff] %v17841_v38  ;;  %v17845_v26 = vpop.f32.mrf.mxu1 }
 0x89f   : > { %v14476_v8 = vpop.f32.mrf.mxu0 }
 0x8a0   : > { %v17847_v20 = vpop.f32.mrf.mxu1 }
 0x8a1   : > { %v17849_v19 = vpop.f32.mrf.mxu0 }
 0x8a2   : > { %v17851_v18 = vpop.f32.mrf.mxu1 }
 0x8a3   : > { %v17853_v4 = vpop.f32.mrf.mxu0 }
 0x8a4   : > { %v17855_v7 = vpop.f32.mrf.mxu1 }
 0x8a5   : > { %v17857_v13 = vpop.f32.mrf.mxu0 }
 0x8a6   : > { %v17859_v0 = vpop.f32.mrf.mxu1 }
 0x8a7   : > { %v17861_v16 = vpop.f32.mrf.mxu0 }
 0x8a8   : > { %v17863_v56 = vpop.f32.mrf.mxu1 }
 0x8a9   : > { %v17865_v44 = vpop.f32.mrf.mxu0 }
 0x8aa   : > { %v17867_v3 = vpop.f32.mrf.mxu1 }
 0x8ab   : > { %v17869_v25 = vpop.f32.mrf.mxu0 }
 0x8ac   : > { %v17871_v11 = vpop.f32.mrf.mxu1 }
 0x8ad   : > { %v17873_v24 = vpop.f32.mrf.mxu0 }
 0x8ae   : > { %v17875_v28 = vpop.f32.mrf.mxu1 }
 0x8af   : > { %v17877_v32 = vpop.f32.mrf.mxu0 }
 0x8b0   : > { %v17879_v50 = vpop.f32.mrf.mxu1 }
 0x8b1   : > { %v17881_v47 = vpop.f32.mrf.mxu0 }
 0x8b2   : > { %v17883_v22 = vpop.f32.mrf.mxu1 }
 0x8b3   : > { %v17885_v45 = vpop.f32.mrf.mxu0 }
 0x8b4   : > { %v17887_v30 = vpop.f32.mrf.mxu1 }
 0x8b5   : > { %v17889_v35 = vpop.f32.mrf.mxu0 }
 0x8b6   : > { %v17891_v37 = vpop.f32.mrf.mxu1 }
 0x8b7   : > { %v17893_v62 = vpop.f32.mrf.mxu0 }
 0x8b8   : > { %v17895_v2 = vpop.f32.mrf.mxu1 }
 0x8b9   : > { %v17897_v40 = vpop.f32.mrf.mxu0 }
 0x8ba   : > { %v17899_v1 = vpop.f32.mrf.mxu1 }
 0x8bb   : > { %v17901_v38 = vpop.f32.mrf.mxu0 }
 0x8bc   : > { %v17903_v12 = vpop.f32.mrf.mxu1 }
 0x8bd   : > { %v17905_v42 = vpop.f32.mrf.mxu0 }
 0x8be   : > { %v17907_v53 = vpop.f32.mrf.mxu1 }
 0x8bf   : > { %18125 = vst [vmem:[#allocation21_spill] sm:$0xff] %v17907_v53  ;;  %v17909_v33 = vpop.f32.mrf.mxu0 }
 0x8c0   : > { %18126 = vst [vmem:[#allocation22_spill] sm:$0xff] %v17909_v33  ;;  %v17911_v60 = vpop.f32.mrf.mxu1 }
 0x8c1   : > { %18127 = vst [vmem:[#allocation23_spill] sm:$0xff] %v17911_v60  ;;  %v17913_v34 = vpop.f32.mrf.mxu0 }
 0x8c2   : > { %18128 = vst [vmem:[#allocation24_spill] sm:$0xff] %v17913_v34  ;;  %v17915_v63 = vpop.f32.mrf.mxu1 }
 0x8c3   : > { %18129 = vst [vmem:[#allocation25_spill] sm:$0xff] %v17915_v63  ;;  %v17917_v55 = vpop.f32.mrf.mxu0 }
 0x8c4   : > { %18130 = vst [vmem:[#allocation26_spill] sm:$0xff] %v17917_v55  ;;  %v17919_v27 = vpop.f32.mrf.mxu1 }
 0x8c5   : > { %18131 = vst [vmem:[#allocation27_spill] sm:$0xff] %v17919_v27  ;;  %v17921_v14 = vpop.f32.mrf.mxu0 }
 0x8c6   : > { %18132 = vst [vmem:[#allocation28_spill] sm:$0xff] %v17921_v14  ;;  %v17923_v51 = vpop.f32.mrf.mxu1 }
 0x8c7   : > { %18133 = vst [vmem:[#allocation29_spill] sm:$0xff] %v17923_v51  ;;  %v17925_v61 = vpop.f32.mrf.mxu0 }
 0x8c8   : > { %18134 = vst [vmem:[#allocation30_spill] sm:$0xff] %v17925_v61  ;;  %v17927_v6 = vpop.f32.mrf.mxu1 }
 0x8c9   : > { %18135 = vst [vmem:[#allocation31_spill] sm:$0xff] %v17927_v6  ;;  %v17929_v53 = vpop.f32.mrf.mxu0 }
 0x8ca   : > { %18136 = vst [vmem:[#allocation32_spill] sm:$0xff] %v17929_v53  ;;  %v17931_v33 = vpop.f32.mrf.mxu1 }
 0x8cb   : > { %18137 = vst [vmem:[#allocation33_spill] sm:$0xff] %v17931_v33  ;;  %v17933_v60 = vpop.f32.mrf.mxu0 }
 0x8cc   : > { %18138 = vst [vmem:[#allocation34_spill] sm:$0xff] %v17933_v60  ;;  %v17935_v34 = vpop.f32.mrf.mxu1 }
 0x8cd   : > { %18139 = vst [vmem:[#allocation35_spill] sm:$0xff] %v17935_v34  ;;  %v17937_v63 = vpop.f32.mrf.mxu0  ;;  %v11546_v34 = vadd.f32 %v14475_v23, %v17748_v49  ;;  %v11545_v23 = vadd.f32 %v17849_v19, %v17757_v48 }
 0x8ce   : > { %18140 = vst [vmem:[#allocation36_spill] sm:$0xff] %v17937_v63  ;;  %v17939_v55 = vpop.f32.mrf.mxu1 }
 0x8cf   : > { %18141 = vst [vmem:[#allocation37_spill] sm:$0xff] %v17939_v55  ;;  %v17941_v27 = vpop.f32.mrf.mxu0  ;;  %v11544_v55 = vadd.f32 %v11417_v17, %v17751_v59 }
 0x8d0   : > { %18142 = vst [vmem:[#allocation38_spill] sm:$0xff] %v17941_v27  ;;  %v17943_v14 = vpop.f32.mrf.mxu1 }
 0x8d1   : > { %18143 = vst [vmem:[#allocation39_spill] sm:$0xff] %v17943_v14  ;;  %v17945_v51 = vpop.f32.mrf.mxu0  ;;  %v11802_v49 = vadd.f32 %v17845_v26, %v11544_v55  ;;  %v11548_v55 = vadd.f32 %v17857_v13, %v17763_v36  ;;  %v11549_v36 = vadd.f32 %v17865_v44, %v17769_v43  ;;  %v11552_v43 = vadd.f32 %v17873_v24, %v17775_v21 }
 0x8d2   : > { %v17947_v61 = vpop.f32.mrf.mxu1  ;;  %v11553_v21 = vadd.f32 %v17881_v47, %v17781_v58  ;;  %v11556_v58 = vadd.f32 %v17889_v35, %v17787_v10  ;;  %v11557_v10 = vadd.f32 %v17897_v40, %v17793_v39  ;;  %v11560_v39 = vadd.f32 %v17905_v42, %v17799_v57  ;;  %v18156_v57 = vld [vmem:[#allocation24_spill] sm:$0xff] }
 0x8d3   : > { %18144 = vst [vmem:[#allocation40_spill] sm:$0xff] %v17947_v61  ;;  %v17949_v6 = vpop.f32.mrf.mxu0  ;;  %v11804_v61 = vadd.f32 %v17843_v52, %v11546_v34  ;;  %v11550_v34 = vadd.f32 %v17853_v4, %v17760_v9  ;;  %v11551_v9 = vadd.f32 %v17861_v16, %v17766_v54  ;;  %v11554_v54 = vadd.f32 %v17869_v25, %v17772_v46 }
 0x8d4   : > { %18145 = vst [vmem:[#allocation41_spill] sm:$0xff] %v17949_v6  ;;  %v17951_v53 = vpop.f32.mrf.mxu1  ;;  %v11547_v6 = vadd.f32 %v14476_v8, %v17754_v29  ;;  %v11555_v46 = vadd.f32 %v17877_v32, %v17778_v41  ;;  %v11558_v41 = vadd.f32 %v17885_v45, %v17784_v31  ;;  %v11559_v31 = vadd.f32 %v17893_v62, %v17790_v15 }
 0x8d5   : > { %18146 = vst [vmem:[#allocation42_spill] sm:$0xff] %v17951_v53  ;;  %v17953_v33 = vpop.f32.mrf.mxu0  ;;  %v11562_v15 = vadd.f32 %v17901_v38, %v17796_v5  ;;  %v18153_v5 = vld [vmem:[#allocation22_spill] sm:$0xff] }
 0x8d6   : > { %18147 = vst [vmem:[#allocation43_spill] sm:$0xff] %v17953_v33  ;;  %v17956_v60 = vpop.f32.mrf.mxu1  ;;  %v11805_v17 = vadd.f32 %v17847_v20, %v11547_v6  ;;  %v11808_v6 = vadd.f32 %v17855_v7, %v11550_v34 }
 0x8d7   : > { %18148 = vst [vmem:[#allocation44_spill] sm:$0xff] %v17956_v60  ;;  %v17958_v63 = vpop.f32.mrf.mxu0 }
 0x8d8   : > { %18149 = vst [vmem:[#allocation45_spill] sm:$0xff] %v17958_v63  ;;  %v17961_v27 = vpop.f32.mrf.mxu1 }
 0x8d9   : > { %18150 = vst [vmem:[#allocation46_spill] sm:$0xff] %v17961_v27  ;;  %v17963_v14 = vpop.f32.mrf.mxu0 }
 0x8da   : > { %v17967_v53 = vpop.f32.mrf.mxu1 }
 0x8db   : > { %18151 = vst [vmem:[#allocation47_spill] sm:$0xff] %v17967_v53  ;;  %v14571_v33 = vpop.f32.mrf.mxu0  ;;  %v11803_v53 = vadd.f32 %v17851_v18, %v11545_v23  ;;  %v11806_v18 = vadd.f32 %v17859_v0, %v11548_v55  ;;  %v11810_v55 = vadd.f32 %v17875_v28, %v11552_v43 }
 0x8dc   : > { %v12158_v60 = vadd.f32 %v14571_v33, %v11804_v61  ;;  %v14619_v63 = vpop.f32.mrf.mxu1 }
 0x8dd   : > { %v12029_v59 = vpop.f32.mrf.mxu0 }
 0x8de   : > { %v12416_v52 = vadd.f32 %v14619_v63, %v12158_v60  ;;  %v12156_v29 = vadd.f32 %v12029_v59, %v11802_v49  ;;  %v12287_v8 = vpop.f32.mrf.mxu1  ;;  %v11809_v49 = vadd.f32 %v17863_v56, %v11551_v9  ;;  %v11807_v59 = vadd.f32 %v17867_v3, %v11549_v36 }
 0x8df   : > { %v14572_v27 = vpop.f32.mrf.mxu0  ;;  %v11811_v9 = vadd.f32 %v17883_v22, %v11553_v21  ;;  %v11814_v36 = vadd.f32 %v17891_v37, %v11556_v58 }
 0x8e0   : > { %12448 = vst [vmem:[%s15790_s9 + $0x10] sm:$0xff] %v12416_v52  ;;  %v12414_v48 = vadd.f32 %v12287_v8, %v12156_v29  ;;  %v12159_v61 = vadd.f32 %v14572_v27, %v11805_v17  ;;  %v14620_v33 = vpop.f32.mrf.mxu1  ;;  %v11812_v52 = vadd.f32 %v17871_v11, %v11554_v54  ;;  %v11815_v54 = vadd.f32 %v17899_v1, %v11557_v10 }
 0x8e1   : > { %v12032_v26 = vpop.f32.mrf.mxu0 }
 0x8e2   : > { %12446 = vst [vmem:[%s15790_s9] sm:$0xff] %v12414_v48  ;;  %v12417_v63 = vadd.f32 %v14620_v33, %v12159_v61  ;;  %v12157_v60 = vadd.f32 %v12032_v26, %v11803_v53  ;;  %v12290_v20 = vpop.f32.mrf.mxu1  ;;  %v11813_v33 = vadd.f32 %v17879_v50, %v11555_v46 }
 0x8e3   : > { %v14575_v19 = vpop.f32.mrf.mxu0 }
 0x8e4   : > { %12449 = vst [vmem:[%s15790_s9 + $0x18] sm:$0xff] %v12417_v63  ;;  %v12415_v27 = vadd.f32 %v12290_v20, %v12157_v60  ;;  %v12162_v4 = vadd.f32 %v14575_v19, %v11808_v6  ;;  %v14623_v13 = vpop.f32.mrf.mxu1  ;;  %v11816_v20 = vadd.f32 %v17887_v30, %v11558_v41 }
 0x8e5   : > { %v12045_v7 = vpop.f32.mrf.mxu0 }
 0x8e6   : > { %12447 = vst [vmem:[%s15790_s9 + $0x8] sm:$0xff] %v12415_v27  ;;  %v12420_v53 = vadd.f32 %v14623_v13, %v12162_v4  ;;  %v12160_v16 = vadd.f32 %v12045_v7, %v11806_v18  ;;  %v12303_v23 = vpop.f32.mrf.mxu1  ;;  %v11817_v13 = vadd.f32 %v17895_v2, %v11559_v31 }
 0x8e7   : > { %v14576_v0 = vpop.f32.mrf.mxu0 }
 0x8e8   : > { %12452 = vst [vmem:[%s15790_s9 + $0x30] sm:$0xff] %v12420_v53  ;;  %v12418_v44 = vadd.f32 %v12303_v23, %v12160_v16  ;;  %v12163_v17 = vadd.f32 %v14576_v0, %v11809_v49  ;;  %v14624_v34 = vpop.f32.mrf.mxu1  ;;  %v11820_v23 = vadd.f32 %v17903_v12, %v11562_v15  ;;  %v18152_v0 = vld [vmem:[#allocation7_spill] sm:$0xff] }
 0x8e9   : > { %v12048_v56 = vpop.f32.mrf.mxu0  ;;  %v11563_v38 = vadd.f32 %v18153_v5, %v18152_v0  ;;  %v18173_v5 = vld [vmem:[#allocation14_spill] sm:$0xff] }
 0x8ea   : > { %12450 = vst [vmem:[%s15790_s9 + $0x20] sm:$0xff] %v12418_v44  ;;  %v12421_v25 = vadd.f32 %v14624_v34, %v12163_v17  ;;  %v12161_v29 = vadd.f32 %v12048_v56, %v11807_v59  ;;  %v12306_v8 = vpop.f32.mrf.mxu1  ;;  %v18154_v17 = vld [vmem:[#allocation21_spill] sm:$0xff]  ;;  %v18155_v56 = vld [vmem:[#allocation8_spill] sm:$0xff] }
 0x8eb   : > { %v14579_v3 = vpop.f32.mrf.mxu0  ;;  %v11818_v34 = vadd.f32 %v18154_v17, %v11560_v39  ;;  %v11561_v42 = vadd.f32 %v18156_v57, %v18155_v56  ;;  %v18176_v57 = vld [vmem:[#allocation15_spill] sm:$0xff] }
 0x8ec   : > { %12453 = vst [vmem:[%s15790_s9 + $0x38] sm:$0xff] %v12421_v25  ;;  %v12419_v24 = vadd.f32 %v12306_v8, %v12161_v29  ;;  %v12166_v48 = vadd.f32 %v14579_v3, %v11812_v52  ;;  %v14627_v61 = vpop.f32.mrf.mxu1  ;;  %v18157_v29 = vld [vmem:[#allocation23_spill] sm:$0xff]  ;;  %v18158_v3 = vld [vmem:[#allocation9_spill] sm:$0xff] }
 0x8ed   : > { %v12061_v11 = vpop.f32.mrf.mxu0  ;;  %v11821_v8 = vadd.f32 %v18157_v29, %v11563_v38  ;;  %v18174_v38 = vld [vmem:[#allocation36_spill] sm:$0xff] }
 0x8ee   : > { %12451 = vst [vmem:[%s15790_s9 + $0x28] sm:$0xff] %v12419_v24  ;;  %v12424_v32 = vadd.f32 %v14627_v61, %v12166_v48  ;;  %v12164_v26 = vadd.f32 %v12061_v11, %v11810_v55  ;;  %v12319_v6 = vpop.f32.mrf.mxu1  ;;  %v18159_v55 = vld [vmem:[#allocation26_spill] sm:$0xff] }
 0x8ef   : > { %v14580_v28 = vpop.f32.mrf.mxu0  ;;  %v11566_v21 = vadd.f32 %v18159_v55, %v18158_v3  ;;  %v18179_v55 = vld [vmem:[#allocation16_spill] sm:$0xff] }
 0x8f0   : > { %12456 = vst [vmem:[%s15790_s9 + $0x50] sm:$0xff] %v12424_v32  ;;  %v12422_v47 = vadd.f32 %v12319_v6, %v12164_v26  ;;  %v12167_v63 = vadd.f32 %v14580_v28, %v11813_v33  ;;  %v14628_v60 = vpop.f32.mrf.mxu1  ;;  %v18160_v33 = vld [vmem:[#allocation25_spill] sm:$0xff]  ;;  %v18161_v32 = vld [vmem:[#allocation10_spill] sm:$0xff]  ;;  %v18162_v26 = vld [vmem:[#allocation28_spill] sm:$0xff] }
 0x8f1   : > { %v12064_v50 = vpop.f32.mrf.mxu0  ;;  %v11819_v41 = vadd.f32 %v18160_v33, %v11561_v42  ;;  %v11564_v6 = vadd.f32 %v18162_v26, %v18161_v32  ;;  %v18177_v42 = vld [vmem:[#allocation38_spill] sm:$0xff]  ;;  %v18180_v33 = vld [vmem:[#allocation39_spill] sm:$0xff]  ;;  %v18181_v32 = vld [vmem:[#allocation17_spill] sm:$0xff] }
 0x8f2   : > { %12454 = vst [vmem:[%s15790_s9 + $0x40] sm:$0xff] %v12422_v47  ;;  %v12425_v45 = vadd.f32 %v14628_v60, %v12167_v63  ;;  %v12165_v19 = vadd.f32 %v12064_v50, %v11811_v9  ;;  %v12322_v18 = vpop.f32.mrf.mxu1  ;;  %v18163_v63 = vld [vmem:[#allocation27_spill] sm:$0xff]  ;;  %v18182_v26 = vld [vmem:[#allocation41_spill] sm:$0xff] }
 0x8f3   : > { %v14583_v22 = vpop.f32.mrf.mxu0  ;;  %v11824_v60 = vadd.f32 %v18163_v63, %v11566_v21  ;;  %v18164_v50 = vld [vmem:[#allocation11_spill] sm:$0xff]  ;;  %v11569_v21 = vadd.f32 %v17945_v51, %v18179_v55  ;;  %v18183_v63 = vld [vmem:[#allocation40_spill] sm:$0xff] }
 0x8f4   : > { %12457 = vst [vmem:[%s15790_s9 + $0x58] sm:$0xff] %v12425_v45  ;;  %v12423_v35 = vadd.f32 %v12322_v18, %v12165_v19  ;;  %v12170_v27 = vadd.f32 %v14583_v22, %v11816_v20  ;;  %v14631_v4 = vpop.f32.mrf.mxu1  ;;  %v18165_v20 = vld [vmem:[#allocation30_spill] sm:$0xff]  ;;  %v18185_v51 = vld [vmem:[#allocation43_spill] sm:$0xff] }
 0x8f5   : > { %v12077_v30 = vpop.f32.mrf.mxu0  ;;  %v11567_v31 = vadd.f32 %v18165_v20, %v18164_v50  ;;  %v18184_v50 = vld [vmem:[#allocation18_spill] sm:$0xff] }
 0x8f6   : > { %12455 = vst [vmem:[%s15790_s9 + $0x48] sm:$0xff] %v12423_v35  ;;  %v12428_v62 = vadd.f32 %v14631_v4, %v12170_v27  ;;  %v12168_v7 = vadd.f32 %v12077_v30, %v11814_v36  ;;  %v12335_v49 = vpop.f32.mrf.mxu1  ;;  %v18166_v36 = vld [vmem:[#allocation29_spill] sm:$0xff]  ;;  %v18167_v35 = vld [vmem:[#allocation12_spill] sm:$0xff]  ;;  %v11572_v20 = vadd.f32 %v18185_v51, %v18184_v50 }
 0x8f7   : > { %v14584_v37 = vpop.f32.mrf.mxu0  ;;  %v11822_v10 = vadd.f32 %v18166_v36, %v11564_v6  ;;  %v18168_v27 = vld [vmem:[#allocation32_spill] sm:$0xff]  ;;  %v11574_v6 = vadd.f32 %v18182_v26, %v18181_v32 }
 0x8f8   : > { %12460 = vst [vmem:[%s15790_s9 + $0x70] sm:$0xff] %v12428_v62  ;;  %v12426_v40 = vadd.f32 %v12335_v49, %v12168_v7  ;;  %v12171_v53 = vadd.f32 %v14584_v37, %v11817_v13  ;;  %v14632_v16 = vpop.f32.mrf.mxu1  ;;  %v11565_v4 = vadd.f32 %v18168_v27, %v18167_v35  ;;  %v18169_v7 = vld [vmem:[#allocation31_spill] sm:$0xff]  ;;  %v18170_v37 = vld [vmem:[#allocation13_spill] sm:$0xff] }
 0x8f9   : > { %v12080_v2 = vpop.f32.mrf.mxu0  ;;  %v11825_v49 = vadd.f32 %v18169_v7, %v11567_v31  ;;  %v18188_v35 = vld [vmem:[#allocation45_spill] sm:$0xff] }
 0x8fa   : > { %12458 = vst [vmem:[%s15790_s9 + $0x60] sm:$0xff] %v12426_v40  ;;  %v12429_v59 = vadd.f32 %v14632_v16, %v12171_v53  ;;  %v12169_v43 = vadd.f32 %v12080_v2, %v11815_v54  ;;  %v12338_v44 = vpop.f32.mrf.mxu1  ;;  %v18171_v54 = vld [vmem:[#allocation34_spill] sm:$0xff] }
 0x8fb   : > { %v14587_v1 = vpop.f32.mrf.mxu0  ;;  %v11570_v39 = vadd.f32 %v18171_v54, %v18170_v37 }
 0x8fc   : > { %12461 = vst [vmem:[%s15790_s9 + $0x78] sm:$0xff] %v12429_v59  ;;  %v12427_v52 = vadd.f32 %v12338_v44, %v12169_v43  ;;  %v12174_v46 = vadd.f32 %v14587_v1, %v11820_v23  ;;  %v14635_v25 = vpop.f32.mrf.mxu1  ;;  %v18172_v23 = vld [vmem:[#allocation33_spill] sm:$0xff]  ;;  %v11568_v59 = vadd.f32 %v18174_v38, %v18173_v5 }
 0x8fd   : > { %v12093_v12 = vpop.f32.mrf.mxu0  ;;  %v11823_v0 = vadd.f32 %v18172_v23, %v11565_v4 }
 0x8fe   : > { %12459 = vst [vmem:[%s15790_s9 + $0x68] sm:$0xff] %v12427_v52  ;;  %v12432_v24 = vadd.f32 %v14635_v25, %v12174_v46  ;;  %v12172_v48 = vadd.f32 %v12093_v12, %v11818_v34  ;;  %v12351_v61 = vpop.f32.mrf.mxu1  ;;  %v18175_v34 = vld [vmem:[#allocation35_spill] sm:$0xff]  ;;  %v11571_v52 = vadd.f32 %v18177_v42, %v18176_v57 }
 0x8ff   : > { %v14588_v11 = vpop.f32.mrf.mxu0  ;;  %v11828_v56 = vadd.f32 %v18175_v34, %v11570_v39 }
 0x900   : > { %12464 = vst [vmem:[%s15790_s9 + $0x90] sm:$0xff] %v12432_v24  ;;  %v12430_v28 = vadd.f32 %v12351_v61, %v12172_v48  ;;  %v12175_v9 = vadd.f32 %v14588_v11, %v11821_v8  ;;  %v14636_v58 = vpop.f32.mrf.mxu1  ;;  %v18178_v8 = vld [vmem:[#allocation37_spill] sm:$0xff] }
 0x901   : > { %v12096_v47 = vpop.f32.mrf.mxu0  ;;  %v11826_v3 = vadd.f32 %v18178_v8, %v11568_v59  ;;  %v18192_v59 = vld [vmem:[#allocation47_spill] sm:$0xff] }
 0x902   : > { %12462 = vst [vmem:[%s15790_s9 + $0x80] sm:$0xff] %v12430_v28  ;;  %v12433_v45 = vadd.f32 %v14636_v58, %v12175_v9  ;;  %v12173_v19 = vadd.f32 %v12096_v47, %v11819_v41  ;;  %v12354_v18 = vpop.f32.mrf.mxu1  ;;  %v11829_v41 = vadd.f32 %v18180_v33, %v11571_v52 }
 0x903   : > { %v14591_v22 = vpop.f32.mrf.mxu0 }
 0x904   : > { %12465 = vst [vmem:[%s15790_s9 + $0x98] sm:$0xff] %v12433_v45  ;;  %v12431_v30 = vadd.f32 %v12354_v18, %v12173_v19  ;;  %v12178_v13 = vadd.f32 %v14591_v22, %v11824_v60  ;;  %v14639_v15 = vpop.f32.mrf.mxu1  ;;  %v11827_v60 = vadd.f32 %v18183_v63, %v11569_v21  ;;  %v18186_v22 = vld [vmem:[#allocation42_spill] sm:$0xff] }
 0x905   : > { %v12109_v62 = vpop.f32.mrf.mxu0  ;;  %v11832_v36 = vadd.f32 %v18186_v22, %v11574_v6 }
 0x906   : > { %12463 = vst [vmem:[%s15790_s9 + $0x88] sm:$0xff] %v12431_v30  ;;  %v12436_v40 = vadd.f32 %v14639_v15, %v12178_v13  ;;  %v12176_v53 = vadd.f32 %v12109_v62, %v11822_v10  ;;  %v12367_v16 = vpop.f32.mrf.mxu1  ;;  %v18187_v10 = vld [vmem:[#allocation19_spill] sm:$0xff]  ;;  %v18189_v62 = vld [vmem:[#allocation44_spill] sm:$0xff] }
 0x907   : > { %v14592_v2 = vpop.f32.mrf.mxu0  ;;  %v11575_v27 = vadd.f32 %v18188_v35, %v18187_v10  ;;  %v11830_v7 = vadd.f32 %v18189_v62, %v11572_v20 }
 0x908   : > { %12468 = vst [vmem:[%s15790_s9 + $0xb0] sm:$0xff] %v12436_v40  ;;  %v12434_v43 = vadd.f32 %v12367_v16, %v12176_v53  ;;  %v12179_v44 = vadd.f32 %v14592_v2, %v11825_v49  ;;  %v14640_v1 = vpop.f32.mrf.mxu1  ;;  %v18190_v49 = vld [vmem:[#allocation20_spill] sm:$0xff]  ;;  %v18191_v16 = vld [vmem:[#allocation46_spill] sm:$0xff] }
 0x909   : > { %v12112_v17 = vpop.f32.mrf.mxu0  ;;  %v11573_v37 = vadd.f32 %v17963_v14, %v18190_v49  ;;  %v11833_v2 = vadd.f32 %v18191_v16, %v11575_v27 }
 0x90a   : > { %12466 = vst [vmem:[%s15790_s9 + $0xa0] sm:$0xff] %v12434_v43  ;;  %v12437_v46 = vadd.f32 %v14640_v1, %v12179_v44  ;;  %v12177_v25 = vadd.f32 %v12112_v17, %v11823_v0  ;;  %v12370_v12 = vpop.f32.mrf.mxu1 }
 0x90b   : > { %v14595_v29 = vpop.f32.mrf.mxu0  ;;  %v11831_v43 = vadd.f32 %v18192_v59, %v11573_v37 }
 0x90c   : > { %12469 = vst [vmem:[%s15790_s9 + $0xb8] sm:$0xff] %v12437_v46  ;;  %v12435_v24 = vadd.f32 %v12370_v12, %v12177_v25  ;;  %v12182_v48 = vadd.f32 %v14595_v29, %v11828_v56  ;;  %v14643_v61 = vpop.f32.mrf.mxu1 }
 0x90d   : > { %v12125_v11 = vpop.f32.mrf.mxu0 }
 0x90e   : > { %12467 = vst [vmem:[%s15790_s9 + $0xa8] sm:$0xff] %v12435_v24  ;;  %v12440_v28 = vadd.f32 %v14643_v61, %v12182_v48  ;;  %v12180_v9 = vadd.f32 %v12125_v11, %v11826_v3  ;;  %v12383_v58 = vpop.f32.mrf.mxu1 }
 0x90f   : > { %v14596_v47 = vpop.f32.mrf.mxu0 }
 0x910   : > { %12472 = vst [vmem:[%s15790_s9 + $0xd0] sm:$0xff] %v12440_v28  ;;  %v12438_v31 = vadd.f32 %v12383_v58, %v12180_v9  ;;  %v12183_v45 = vadd.f32 %v14596_v47, %v11829_v41  ;;  %v14644_v19 = vpop.f32.mrf.mxu1 }
 0x911   : > { %v12128_v18 = vpop.f32.mrf.mxu0 }
 0x912   : > { %12470 = vst [vmem:[%s15790_s9 + $0xc0] sm:$0xff] %v12438_v31  ;;  %v12441_v4 = vadd.f32 %v14644_v19, %v12183_v45  ;;  %v12181_v30 = vadd.f32 %v12128_v18, %v11827_v60  ;;  %v12386_v13 = vpop.f32.mrf.mxu1 }
 0x913   : > { %v14599_v15 = vpop.f32.mrf.mxu0 }
 0x914   : > { %12473 = vst [vmem:[%s15790_s9 + $0xd8] sm:$0xff] %v12441_v4  ;;  %v12439_v54 = vadd.f32 %v12386_v13, %v12181_v30  ;;  %v12186_v39 = vadd.f32 %v14599_v15, %v11832_v36  ;;  %v14647_v40 = vpop.f32.mrf.mxu1 }
 0x915   : > { %v12141_v53 = vpop.f32.mrf.mxu0 }
 0x916   : > { %12471 = vst [vmem:[%s15790_s9 + $0xc8] sm:$0xff] %v12439_v54  ;;  %v12444_v23 = vadd.f32 %v14647_v40, %v12186_v39  ;;  %v12184_v0 = vadd.f32 %v12141_v53, %v11830_v7  ;;  %v12399_v5 = vpop.f32.mrf.mxu1 }
 0x917   : > { %v14600_v38 = vpop.f32.mrf.mxu0 }
 0x918   : > { %12476 = vst [vmem:[%s15790_s9 + $0xf0] sm:$0xff] %v12444_v23  ;;  %v12442_v44 = vadd.f32 %v12399_v5, %v12184_v0  ;;  %v12187_v14 = vadd.f32 %v14600_v38, %v11833_v2  ;;  %v14648_v1 = vpop.f32.mrf.mxu1 }
 0x919   : > { %v12144_v17 = vpop.f32.mrf.mxu0 }
 0x91a   : > { %12474 = vst [vmem:[%s15790_s9 + $0xe0] sm:$0xff] %v12442_v44  ;;  %v12445_v34 = vadd.f32 %v14648_v1, %v12187_v14  ;;  %v12185_v56 = vadd.f32 %v12144_v17, %v11831_v43  ;;  %v12402_v57 = vpop.f32.mrf.mxu1 }
 0x91c   : > { %12477 = vst [vmem:[%s15790_s9 + $0xf8] sm:$0xff] %v12445_v34  ;;  %v12443_v42 = vadd.f32 %v12402_v57, %v12185_v56 }
 0x91e   : > { %12475 = vst [vmem:[%s15790_s9 + $0xe8] sm:$0xff] %v12443_v42 }
 0x91f PF: > { %s25_s30 = sadd.s32 1, %s15701_s30   ;;  %s18193_s1 = smov %s15693_s28 }
 0x920   : > { %p22_p7 = scmp.ge.s32.totalorder %s25_s30, 8   ;;  %s18194_s27 = smov %s15697_s29 }
 0x921   : > { %s18195_s28 = smov %s18198_s6  ;;  %s18196_s29 = smov %s18202_s7 }
 0x922   :  { %24 = sbr.rel (!%p22_p7) target bundleno = 28 (0x1c), region = 88 }

</bundles_post_ra>
